<compile_context>
chip_gen: v5e
topology: v5e:2x2
jax: 0.10.0
libtpu: 0.0.40
codegen_flags: <defaults>
</compile_context>

<pallas_src>
import functools
import math

import jax
import jax.numpy as jnp
from jax.experimental import pallas as pl
from jax.experimental.pallas import tpu as pltpu

# ---------------- small, Llama-shaped synthetic config ----------------
VOCAB = 256
NUM_HEADS = 2
HEAD_DIM = 128                         # real Llama-2 head_dim -> lane-dense
HIDDEN = NUM_HEADS * HEAD_DIM          # 256
INTERMEDIATE = 512
NUM_LAYERS = 2                         # stands in for the 8 layers of split 1
SEQ = 128
MASK_NEG = -100.0                      # config.mask_neg
RMS_EPS = 1e-5                         # llama-2 rms_norm_eps
SCALE = 1.0 / math.sqrt(HEAD_DIM)

# Tiling constants. Re-tune per generation: 128-multiples for the v5e
# 128-wide MXU, 256-multiples for v6e/v7x; keep double-buffered tiles inside
# the 64 MiB VMEM budget on v7x (they are tiny here).
TQ = 64                                # sequence tile for kernel B
TI = 256                               # intermediate-dim reduction tile
VMEM_LIMIT = 32 * 1024 * 1024


# ------------------ kernel A: RMSNorm + QKV + RoPE + SDPA -------------------
def _attn_head_kernel(hid_ref, gamma_ref, wqkv_ref, cos_ref, sinr_ref,
                      mask_ref, ctx_ref, kc_ref, vc_ref):
    # One grid step == one attention head (SHA layout, config.use_sha=True).
    x = hid_ref[...]                                        # [S, D] f32
    var = jnp.mean(x * x, axis=-1, keepdims=True)
    xn = (x * jax.lax.rsqrt(var + RMS_EPS)) * gamma_ref[...]
    xb = xn.astype(jnp.bfloat16)

    # fused per-head QKV: one bf16 MXU matmul, f32 accumulation
    qkv = jnp.dot(xb, wqkv_ref[0], preferred_element_type=jnp.float32)
    q = qkv[:, :HEAD_DIM]
    k = qkv[:, HEAD_DIM:2 * HEAD_DIM]
    v = qkv[:, 2 * HEAD_DIM:]

    cos = cos_ref[...]
    sinr = sinr_ref[...]        # sin pre-multiplied by rotate_half sign pattern

    def rope(t):
        # rotate_half via a single XLU lane roll (no slice + concat)
        return t * cos + pltpu.roll(t, shift=HEAD_DIM // 2, axis=1) * sinr

    qr = (rope(q) * SCALE).astype(jnp.bfloat16)
    kr = rope(k)                                            # keep f32 copy

    # scores: q @ k^T in bf16 with f32 accumulation, mask/softmax in f32
    s = jax.lax.dot_general(qr, kr.astype(jnp.bfloat16),
                            (((1,), (1,)), ((), ())),
                            preferred_element_type=jnp.float32)
    s = s + mask_ref[...]                                   # combined additive mask
    m = jnp.max(s, axis=-1, keepdims=True)
    p = jnp.exp(s - m)
    inv_l = pl.reciprocal(jnp.sum(p, axis=-1, keepdims=True), approx=True)

    ctx = jnp.dot(p.astype(jnp.bfloat16), v.astype(jnp.bfloat16),
                  preferred_element_type=jnp.float32) * inv_l

    ctx_ref[0] = ctx.astype(jnp.bfloat16)                   # [S, Dh] lane-dense
    kc_ref[0] = kr.astype(jnp.bfloat16)                     # post-RoPE key cache
    vc_ref[0] = v.astype(jnp.bfloat16)                      # value cache


def attention_block(hidden, gamma, wqkv, cos, sin_rot, mask):
    S, D = hidden.shape
    H, Dh = NUM_HEADS, HEAD_DIM
    kv_shape = jax.ShapeDtypeStruct((H, S, Dh), jnp.bfloat16)
    return pl.pallas_call(
        _attn_head_kernel,
        out_shape=(kv_shape, kv_shape, kv_shape),
        grid=(H,),
        in_specs=[
            pl.BlockSpec((S, D), lambda h: (0, 0)),          # hidden (resident)
            pl.BlockSpec((1, D), lambda h: (0, 0)),          # input_norm
            pl.BlockSpec((1, D, 3 * Dh), lambda h: (h, 0, 0)),  # fused QKV / head
            pl.BlockSpec((S, Dh), lambda h: (0, 0)),         # cos
            pl.BlockSpec((S, Dh), lambda h: (0, 0)),         # sign * sin
            pl.BlockSpec((S, S), lambda h: (0, 0)),          # combined mask (f32)
        ],
        out_specs=(
            pl.BlockSpec((1, S, Dh), lambda h: (h, 0, 0)),   # per-head context
            pl.BlockSpec((1, S, Dh), lambda h: (h, 0, 0)),   # key cache
            pl.BlockSpec((1, S, Dh), lambda h: (h, 0, 0)),   # value cache
        ),
        compiler_params=pltpu.CompilerParams(
            dimension_semantics=("parallel",),
            vmem_limit_bytes=VMEM_LIMIT),
    )(hidden, gamma, wqkv, cos, sin_rot, mask)


# ---------- kernel B: O-proj + residual + RMSNorm + SiLU-MLP + residual -----
def _oproj_mlp_kernel(resid_ref, ctx_ref, wo_ref, gamma_ref,
                      gate_ref, up_ref, down_ref, out_ref,
                      h1_ref, xn_ref, acc_ref):
    ii = pl.program_id(1)                # intermediate-dim reduction axis (last)

    @pl.when(ii == 0)
    def _():
        # O-projection (concat-head) + attention residual, then post-RMSNorm.
        o = jnp.zeros((TQ, HIDDEN), jnp.float32)
        for h in range(NUM_HEADS):       # static unroll: one MXU dot per head
            o = o + jnp.dot(ctx_ref[h], wo_ref[h],
                            preferred_element_type=jnp.float32)
        h1 = resid_ref[...] + o
        h1_ref[...] = h1
        var = jnp.mean(h1 * h1, axis=-1, keepdims=True)
        xn_ref[...] = ((h1 * jax.lax.rsqrt(var + RMS_EPS))
                       * gamma_ref[...]).astype(jnp.bfloat16)
        acc_ref[...] = jnp.zeros_like(acc_ref)

    xn = xn_ref[...]
    g = jnp.dot(xn, gate_ref[...], preferred_element_type=jnp.float32)
    u = jnp.dot(xn, up_ref[...], preferred_element_type=jnp.float32)
    hmid = (g * jax.nn.sigmoid(g)) * u                       # SiLU(gate)*up, f32
    acc_ref[...] += jnp.dot(hmid.astype(jnp.bfloat16), down_ref[...],
                            preferred_element_type=jnp.float32)

    @pl.when(ii == pl.num_programs(1) - 1)
    def _():
        out_ref[...] = h1_ref[...] + acc_ref[...]            # MLP residual fused


def ffn_block(hidden, ctx, wo_heads, gamma, gate, up, down):
    S, D = hidden.shape
    H, Dh = NUM_HEADS, HEAD_DIM
    I = gate.shape[1]
    assert S % TQ == 0 and I % TI == 0
    return pl.pallas_call(
        _oproj_mlp_kernel,
        out_shape=jax.ShapeDtypeStruct((S, D), jnp.float32),
        grid=(S // TQ, I // TI),
        in_specs=[
            pl.BlockSpec((TQ, D), lambda iq, ii: (iq, 0)),       # residual in
            pl.BlockSpec((H, TQ, Dh), lambda iq, ii: (0, iq, 0)),  # attn context
            pl.BlockSpec((H, Dh, D), lambda iq, ii: (0, 0, 0)),  # o_proj / head
            pl.BlockSpec((1, D), lambda iq, ii: (0, 0)),         # post_norm
            pl.BlockSpec((D, TI), lambda iq, ii: (0, ii)),       # gate tile
            pl.BlockSpec((D, TI), lambda iq, ii: (0, ii)),       # up tile
            pl.BlockSpec((TI, D), lambda iq, ii: (ii, 0)),       # down tile
        ],
        out_specs=pl.BlockSpec((TQ, D), lambda iq, ii: (iq, 0)),
        scratch_shapes=[
            pltpu.VMEM((TQ, D), jnp.float32),    # h1 (attn residual output)
            pltpu.VMEM((TQ, D), jnp.bfloat16),   # normalized MLP input
            pltpu.VMEM((TQ, D), jnp.float32),    # down-proj accumulator
        ],
        compiler_params=pltpu.CompilerParams(
            dimension_semantics=("parallel", "arbitrary"),
            vmem_limit_bytes=VMEM_LIMIT),
    )(hidden, ctx, wo_heads, gamma, gate, up, down)


# --------------------------- model driver ------------------------------
def init_params(key):
    H, Dh, D, I = NUM_HEADS, HEAD_DIM, HIDDEN, INTERMEDIATE

    def w(k, shape, scale=0.02):
        return scale * jax.random.normal(k, shape, jnp.float32)

    keys = jax.random.split(key, 1 + NUM_LAYERS)
    params = {'embed': w(keys[0], (VOCAB, D)), 'layers': []}
    for li in range(NUM_LAYERS):
        lk = jax.random.split(keys[1 + li], 7)
        wq, wk, wv = w(lk[0], (D, D)), w(lk[1], (D, D)), w(lk[2], (D, D))
        # SHA layout (prepare_sha): per-head fused QKV weight [H, D, 3*Dh]
        wqkv = jnp.stack(
            [jnp.concatenate([wq[:, h * Dh:(h + 1) * Dh],
                              wk[:, h * Dh:(h + 1) * Dh],
                              wv[:, h * Dh:(h + 1) * Dh]], axis=1)
             for h in range(H)], axis=0)
        wo_heads = w(lk[3], (D, D)).reshape(H, Dh, D)   # per-head o_proj rows
        params['layers'].append({
            'input_norm': jnp.ones((1, D), jnp.float32),
            'post_norm': jnp.ones((1, D), jnp.float32),
            'wqkv': wqkv.astype(jnp.bfloat16),
            'wo_h': wo_heads.astype(jnp.bfloat16),
            'gate': w(lk[4], (D, I)).astype(jnp.bfloat16),
            'up': w(lk[5], (D, I)).astype(jnp.bfloat16),
            'down': w(lk[6], (I, D)).astype(jnp.bfloat16),
        })
    return params


def llama2_split1_forward(params, input_ids, attention_mask,
                          position_ids_cos, position_ids_sin):
    """Mirrors Llama2Wrapper.forward (prompt processor, split 1): returns
    (hidden_states,) + flattened per-layer (transposed key, value) caches."""
    S = input_ids.shape[-1]
    Dh = HEAD_DIM
    half = Dh // 2

    hidden = jnp.take(params['embed'], input_ids.reshape(-1), axis=0)  # [S, D]
    mask = attention_mask.reshape(S, S).astype(jnp.float32)
    cos = position_ids_cos.reshape(S, Dh).astype(jnp.float32)
    sin = position_ids_sin.reshape(S, Dh).astype(jnp.float32)
    # pre-apply the rotate_half sign so the kernel only needs one XLU roll
    sign = jnp.concatenate([jnp.full((half,), -1.0, jnp.float32),
                            jnp.ones((half,), jnp.float32)])
    sin_rot = sin * sign[None, :]

    new_kvs = []
    for layer in params['layers']:
        ctx, k_c, v_c = attention_block(hidden, layer['input_norm'],
                                        layer['wqkv'], cos, sin_rot, mask)
        hidden = ffn_block(hidden, ctx, layer['wo_h'], layer['post_norm'],
                           layer['gate'], layer['up'], layer['down'])
        # config.transposed_key_cache=True: key cache layout [1, H, Dh, S]
        # (transpose done in XLA on the lane-dense bf16 kernel output).
        new_kvs.append((jnp.transpose(k_c, (0, 2, 1))[None], v_c[None]))

    flat_kv = tuple(t for kv in new_kvs for t in kv)
    return (hidden[None],) + flat_kv


# ------------------------------- main ----------------------------------
if __name__ == "__main__":
    key = jax.random.PRNGKey(0)
    pkey, ikey = jax.random.split(key)
    params = init_params(pkey)

    input_ids = jax.random.randint(ikey, (1, SEQ), 0, VOCAB, dtype=jnp.int32)

    # combined causal attention mask with config.mask_neg = -100
    i = jnp.arange(SEQ)[:, None]
    j = jnp.arange(SEQ)[None, :]
    attention_mask = jnp.where(j <= i, 0.0, MASK_NEG).astype(
        jnp.float32).reshape(1, 1, SEQ, SEQ)

    # precomputed RoPE cos/sin passed in as position_ids (QC-style inputs)
    pos = jnp.arange(SEQ, dtype=jnp.float32)[:, None]
    inv_freq = 1.0 / (10000.0 ** (jnp.arange(0, HEAD_DIM, 2,
                                             dtype=jnp.float32) / HEAD_DIM))
    ang = pos * inv_freq[None, :]                           # [S, Dh/2]
    position_ids_cos = jnp.concatenate([jnp.cos(ang)] * 2,
                                       axis=-1).reshape(1, 1, SEQ, HEAD_DIM)
    position_ids_sin = jnp.concatenate([jnp.sin(ang)] * 2,
                                       axis=-1).reshape(1, 1, SEQ, HEAD_DIM)

    fwd = jax.jit(functools.partial(llama2_split1_forward, params))
    out = jax.block_until_ready(fwd(input_ids, attention_mask,
                                    position_ids_cos, position_ids_sin))

    # sanity: 1 hidden-state output + (key_t, value) per layer
    assert len(out) == 1 + 2 * NUM_LAYERS
    assert out[0].shape == (1, SEQ, HIDDEN)
    assert out[1].shape == (1, NUM_HEADS, HEAD_DIM, SEQ)    # transposed key
    assert out[2].shape == (1, NUM_HEADS, SEQ, HEAD_DIM)    # value
    assert all(bool(jnp.all(jnp.isfinite(o.astype(jnp.float32)))) for o in out)

    # TODO(synk): token-generator path (past_key_values concat) and the
    # lm_head/logits of split 4 are not exercised in this split-1 kernel.
    print("KERNEL_OK")
</pallas_src>

<mosaic_0001>
module attributes {stable_mosaic.version = 11 : i64} {
  func.func @_attn_head_kernel(%arg0: i32, %arg1: memref<128x256xf32, #tpu.memory_space<vmem>>, %arg2: memref<1x256xf32, #tpu.memory_space<vmem>>, %arg3: memref<1x256x384xbf16, #tpu.memory_space<vmem>>, %arg4: memref<128x128xf32, #tpu.memory_space<vmem>>, %arg5: memref<128x128xf32, #tpu.memory_space<vmem>>, %arg6: memref<128x128xf32, #tpu.memory_space<vmem>>, %arg7: memref<1x128x128xbf16, #tpu.memory_space<vmem>>, %arg8: memref<1x128x128xbf16, #tpu.memory_space<vmem>>, %arg9: memref<1x128x128xbf16, #tpu.memory_space<vmem>>) attributes {dimension_semantics = [#tpu.dimension_semantics<parallel>], iteration_bounds = array<i64: 2>, scalar_prefetch = 0 : i64, scratch_operands = 0 : i64, tpu.core_type = #tpu.core_type<tc>, window_params = [{pipeline_mode = #tpu.pipeline_mode<synchronous>, transform_indices = @transform_0, window_bounds = array<i64: 128, 256>}, {pipeline_mode = #tpu.pipeline_mode<synchronous>, transform_indices = @transform_1, window_bounds = array<i64: 1, 256>}, {transform_indices = @transform_2, window_bounds = array<i64: 1, 256, 384>}, {pipeline_mode = #tpu.pipeline_mode<synchronous>, transform_indices = @transform_3, window_bounds = array<i64: 128, 128>}, {pipeline_mode = #tpu.pipeline_mode<synchronous>, transform_indices = @transform_4, window_bounds = array<i64: 128, 128>}, {pipeline_mode = #tpu.pipeline_mode<synchronous>, transform_indices = @transform_5, window_bounds = array<i64: 128, 128>}, {transform_indices = @transform_6, window_bounds = array<i64: 1, 128, 128>}, {transform_indices = @transform_7, window_bounds = array<i64: 1, 128, 128>}, {transform_indices = @transform_8, window_bounds = array<i64: 1, 128, 128>}]} {
    %c0 = arith.constant 0 : index
    %c0_0 = arith.constant 0 : index
    %0 = vector.load %arg1[%c0, %c0_0] : memref<128x256xf32, #tpu.memory_space<vmem>>, vector<128x256xf32>
    %1 = arith.mulf %0, %0 : vector<128x256xf32>
    %cst = arith.constant dense<0.000000e+00> : vector<128xf32>
    %2 = vector.multi_reduction <add>, %1, %cst [1] : vector<128x256xf32> to vector<128xf32>
    %3 = vector.shape_cast %2 : vector<128xf32> to vector<128x1xf32>
    %cst_1 = arith.constant 2.560000e+02 : f32
    %4 = vector.broadcast %cst_1 : f32 to vector<128x1xf32>
    %5 = arith.divf %3, %4 : vector<128x1xf32>
    %cst_2 = arith.constant 9.99999974E-6 : f32
    %6 = vector.broadcast %cst_2 : f32 to vector<128x1xf32>
    %7 = arith.addf %5, %6 : vector<128x1xf32>
    %8 = math.rsqrt %7 : vector<128x1xf32>
    %9 = vector.broadcast %8 : vector<128x1xf32> to vector<128x256xf32>
    %10 = arith.mulf %0, %9 : vector<128x256xf32>
    %c0_3 = arith.constant 0 : index
    %c0_4 = arith.constant 0 : index
    %11 = vector.load %arg2[%c0_3, %c0_4] : memref<1x256xf32, #tpu.memory_space<vmem>>, vector<1x256xf32>
    %12 = vector.broadcast %11 : vector<1x256xf32> to vector<128x256xf32>
    %13 = arith.mulf %10, %12 : vector<128x256xf32>
    %14 = arith.truncf %13 : vector<128x256xf32> to vector<128x256xbf16>
    %c0_5 = arith.constant 0 : index
    %c0_6 = arith.constant 0 : index
    %c0_7 = arith.constant 0 : index
    %15 = vector.load %arg3[%c0_5, %c0_6, %c0_7] : memref<1x256x384xbf16, #tpu.memory_space<vmem>>, vector<1x256x384xbf16>
    %16 = vector.shape_cast %15 : vector<1x256x384xbf16> to vector<256x384xbf16>
    %cst_8 = arith.constant dense<0.000000e+00> : vector<128x384xf32>
    %17 = tpu.matmul %14, %16, %cst_8 {dimension_numbers = #tpu.dot_dimension_numbers<[1], [0], [0], [1], [0, 0, 1, 1], [], []>} : vector<128x256xbf16>, vector<256x384xbf16>, vector<128x384xf32> -> vector<128x384xf32>
    %18 = vector.extract_strided_slice %17 {offsets = [0, 0], sizes = [128, 128], strides = [1, 1]} : vector<128x384xf32> to vector<128x128xf32>
    %19 = vector.extract_strided_slice %17 {offsets = [0, 128], sizes = [128, 128], strides = [1, 1]} : vector<128x384xf32> to vector<128x128xf32>
    %20 = vector.extract_strided_slice %17 {offsets = [0, 256], sizes = [128, 128], strides = [1, 1]} : vector<128x384xf32> to vector<128x128xf32>
    %c0_9 = arith.constant 0 : index
    %c0_10 = arith.constant 0 : index
    %21 = vector.load %arg4[%c0_9, %c0_10] : memref<128x128xf32, #tpu.memory_space<vmem>>, vector<128x128xf32>
    %c0_11 = arith.constant 0 : index
    %c0_12 = arith.constant 0 : index
    %22 = vector.load %arg5[%c0_11, %c0_12] : memref<128x128xf32, #tpu.memory_space<vmem>>, vector<128x128xf32>
    %23 = arith.mulf %18, %21 : vector<128x128xf32>
    %c64_i32 = arith.constant 64 : i32
    %24 = tpu.dynamic_rotate %18 by %c64_i32 dim 1 : vector<128x128xf32>, i32 -> vector<128x128xf32>
    %25 = arith.mulf %24, %22 : vector<128x128xf32>
    %26 = arith.addf %23, %25 : vector<128x128xf32>
    %cst_13 = arith.constant 0.0883883461 : f32
    %27 = vector.broadcast %cst_13 : f32 to vector<128x128xf32>
    %28 = arith.mulf %26, %27 : vector<128x128xf32>
    %29 = arith.truncf %28 : vector<128x128xf32> to vector<128x128xbf16>
    %30 = arith.mulf %19, %21 : vector<128x128xf32>
    %c64_i32_14 = arith.constant 64 : i32
    %31 = tpu.dynamic_rotate %19 by %c64_i32_14 dim 1 : vector<128x128xf32>, i32 -> vector<128x128xf32>
    %32 = arith.mulf %31, %22 : vector<128x128xf32>
    %33 = arith.addf %30, %32 : vector<128x128xf32>
    %34 = arith.truncf %33 : vector<128x128xf32> to vector<128x128xbf16>
    %cst_15 = arith.constant dense<0.000000e+00> : vector<128x128xf32>
    %35 = tpu.matmul %29, %34, %cst_15 {dimension_numbers = #tpu.dot_dimension_numbers<[1], [1], [0], [0], [0, 0, 1, 0], [], []>} : vector<128x128xbf16>, vector<128x128xbf16>, vector<128x128xf32> -> vector<128x128xf32>
    %c0_16 = arith.constant 0 : index
    %c0_17 = arith.constant 0 : index
    %36 = vector.load %arg6[%c0_16, %c0_17] : memref<128x128xf32, #tpu.memory_space<vmem>>, vector<128x128xf32>
    %37 = arith.addf %35, %36 : vector<128x128xf32>
    %cst_18 = arith.constant dense<0xFF800000> : vector<128xf32>
    %38 = vector.multi_reduction <maximumf>, %37, %cst_18 [1] : vector<128x128xf32> to vector<128xf32>
    %39 = vector.shape_cast %38 : vector<128xf32> to vector<128x1xf32>
    %40 = vector.broadcast %39 : vector<128x1xf32> to vector<128x128xf32>
    %41 = arith.subf %37, %40 : vector<128x128xf32>
    %42 = math.exp %41 : vector<128x128xf32>
    %cst_19 = arith.constant dense<0.000000e+00> : vector<128xf32>
    %43 = vector.multi_reduction <add>, %42, %cst_19 [1] : vector<128x128xf32> to vector<128xf32>
    %44 = vector.shape_cast %43 : vector<128xf32> to vector<128x1xf32>
    %45 = tpu.reciprocal %44 {approx = true} : vector<128x1xf32> -> vector<128x1xf32>
    %46 = arith.truncf %42 : vector<128x128xf32> to vector<128x128xbf16>
    %47 = arith.truncf %20 : vector<128x128xf32> to vector<128x128xbf16>
    %cst_20 = arith.constant dense<0.000000e+00> : vector<128x128xf32>
    %48 = tpu.matmul %46, %47, %cst_20 {dimension_numbers = #tpu.dot_dimension_numbers<[1], [0], [0], [1], [0, 0, 1, 1], [], []>} : vector<128x128xbf16>, vector<128x128xbf16>, vector<128x128xf32> -> vector<128x128xf32>
    %49 = vector.broadcast %45 : vector<128x1xf32> to vector<128x128xf32>
    %50 = arith.mulf %48, %49 : vector<128x128xf32>
    %51 = arith.truncf %50 : vector<128x128xf32> to vector<128x128xbf16>
    %c0_21 = arith.constant 0 : index
    %c0_22 = arith.constant 0 : index
    %c0_23 = arith.constant 0 : index
    %52 = vector.load %arg7[%c0_21, %c0_22, %c0_23] : memref<1x128x128xbf16, #tpu.memory_space<vmem>>, vector<1x128x128xbf16>
    %53 = vector.shape_cast %52 : vector<1x128x128xbf16> to vector<128x128xbf16>
    %54 = vector.shape_cast %51 : vector<128x128xbf16> to vector<1x128x128xbf16>
    tpu.vector_store %arg7[%c0_21, %c0_22, %c0_23], %54 {strides = array<i32>} : memref<1x128x128xbf16, #tpu.memory_space<vmem>>, vector<1x128x128xbf16>,
    %55 = arith.truncf %33 : vector<128x128xf32> to vector<128x128xbf16>
    %c0_24 = arith.constant 0 : index
    %c0_25 = arith.constant 0 : index
    %c0_26 = arith.constant 0 : index
    %56 = vector.load %arg8[%c0_24, %c0_25, %c0_26] : memref<1x128x128xbf16, #tpu.memory_space<vmem>>, vector<1x128x128xbf16>
    %57 = vector.shape_cast %56 : vector<1x128x128xbf16> to vector<128x128xbf16>
    %58 = vector.shape_cast %55 : vector<128x128xbf16> to vector<1x128x128xbf16>
    tpu.vector_store %arg8[%c0_24, %c0_25, %c0_26], %58 {strides = array<i32>} : memref<1x128x128xbf16, #tpu.memory_space<vmem>>, vector<1x128x128xbf16>,
    %59 = arith.truncf %20 : vector<128x128xf32> to vector<128x128xbf16>
    %c0_27 = arith.constant 0 : index
    %c0_28 = arith.constant 0 : index
    %c0_29 = arith.constant 0 : index
    %60 = vector.load %arg9[%c0_27, %c0_28, %c0_29] : memref<1x128x128xbf16, #tpu.memory_space<vmem>>, vector<1x128x128xbf16>
    %61 = vector.shape_cast %60 : vector<1x128x128xbf16> to vector<128x128xbf16>
    %62 = vector.shape_cast %59 : vector<128x128xbf16> to vector<1x128x128xbf16>
    tpu.vector_store %arg9[%c0_27, %c0_28, %c0_29], %62 {strides = array<i32>} : memref<1x128x128xbf16, #tpu.memory_space<vmem>>, vector<1x128x128xbf16>,
    return
  }
  func.func @transform_0(%arg0: i32) -> (i32, i32) {
    %c0_i32 = arith.constant 0 : i32
    %c0_i32_0 = arith.constant 0 : i32
    %c0_i32_1 = arith.constant 0 : i32
    return %c0_i32, %c0_i32_0 : i32, i32
  }
  func.func @transform_1(%arg0: i32) -> (i32, i32) {
    %c0_i32 = arith.constant 0 : i32
    %c0_i32_0 = arith.constant 0 : i32
    %c0_i32_1 = arith.constant 0 : i32
    return %c0_i32, %c0_i32_0 : i32, i32
  }
  func.func @transform_2(%arg0: i32) -> (i32, i32, i32) {
    %c0_i32 = arith.constant 0 : i32
    %c0_i32_0 = arith.constant 0 : i32
    %c0_i32_1 = arith.constant 0 : i32
    return %arg0, %c0_i32, %c0_i32_0 : i32, i32, i32
  }
  func.func @transform_3(%arg0: i32) -> (i32, i32) {
    %c0_i32 = arith.constant 0 : i32
    %c0_i32_0 = arith.constant 0 : i32
    %c0_i32_1 = arith.constant 0 : i32
    return %c0_i32, %c0_i32_0 : i32, i32
  }
  func.func @transform_4(%arg0: i32) -> (i32, i32) {
    %c0_i32 = arith.constant 0 : i32
    %c0_i32_0 = arith.constant 0 : i32
    %c0_i32_1 = arith.constant 0 : i32
    return %c0_i32, %c0_i32_0 : i32, i32
  }
  func.func @transform_5(%arg0: i32) -> (i32, i32) {
    %c0_i32 = arith.constant 0 : i32
    %c0_i32_0 = arith.constant 0 : i32
    %c0_i32_1 = arith.constant 0 : i32
    return %c0_i32, %c0_i32_0 : i32, i32
  }
  func.func @transform_6(%arg0: i32) -> (i32, i32, i32) {
    %c0_i32 = arith.constant 0 : i32
    %c0_i32_0 = arith.constant 0 : i32
    %c0_i32_1 = arith.constant 0 : i32
    return %arg0, %c0_i32, %c0_i32_0 : i32, i32, i32
  }
  func.func @transform_7(%arg0: i32) -> (i32, i32, i32) {
    %c0_i32 = arith.constant 0 : i32
    %c0_i32_0 = arith.constant 0 : i32
    %c0_i32_1 = arith.constant 0 : i32
    return %arg0, %c0_i32, %c0_i32_0 : i32, i32, i32
  }
  func.func @transform_8(%arg0: i32) -> (i32, i32, i32) {
    %c0_i32 = arith.constant 0 : i32
    %c0_i32_0 = arith.constant 0 : i32
    %c0_i32_1 = arith.constant 0 : i32
    return %arg0, %c0_i32, %c0_i32_0 : i32, i32, i32
  }
}

module attributes {stable_mosaic.version = 11 : i64} {
  func.func @_oproj_mlp_kernel(%arg0: i32, %arg1: i32, %arg2: memref<64x256xf32, #tpu.memory_space<vmem>>, %arg3: memref<2x64x128xbf16, #tpu.memory_space<vmem>>, %arg4: memref<2x128x256xbf16, #tpu.memory_space<vmem>>, %arg5: memref<1x256xf32, #tpu.memory_space<vmem>>, %arg6: memref<256x256xbf16, #tpu.memory_space<vmem>>, %arg7: memref<256x256xbf16, #tpu.memory_space<vmem>>, %arg8: memref<256x256xbf16, #tpu.memory_space<vmem>>, %arg9: memref<64x256xf32, #tpu.memory_space<vmem>>, %arg10: memref<64x256xf32, #tpu.memory_space<vmem>>, %arg11: memref<64x256xbf16, #tpu.memory_space<vmem>>, %arg12: memref<64x256xf32, #tpu.memory_space<vmem>>) attributes {dimension_semantics = [#tpu.dimension_semantics<parallel>, #tpu.dimension_semantics<arbitrary>], iteration_bounds = array<i64: 2, 2>, scalar_prefetch = 0 : i64, scratch_operands = 3 : i64, tpu.core_type = #tpu.core_type<tc>, window_params = [{transform_indices = @transform_0, window_bounds = array<i64: 64, 256>}, {transform_indices = @transform_1, window_bounds = array<i64: 2, 64, 128>}, {pipeline_mode = #tpu.pipeline_mode<synchronous>, transform_indices = @transform_2, window_bounds = array<i64: 2, 128, 256>}, {pipeline_mode = #tpu.pipeline_mode<synchronous>, transform_indices = @transform_3, window_bounds = array<i64: 1, 256>}, {transform_indices = @transform_4, window_bounds = array<i64: 256, 256>}, {transform_indices = @transform_5, window_bounds = array<i64: 256, 256>}, {transform_indices = @transform_6, window_bounds = array<i64: 256, 256>}, {transform_indices = @transform_7, window_bounds = array<i64: 64, 256>}]} {
    %c0_i32 = arith.constant 0 : i32
    %0 = arith.cmpi eq, %arg1, %c0_i32 : i32
    %1 = arith.extui %0 : i1 to i32
    %c0_i32_0 = arith.constant 0 : i32
    %2 = arith.cmpi ne, %1, %c0_i32_0 : i32
    scf.if %2 {
      %cst_16 = arith.constant 0.000000e+00 : f32
      %24 = vector.broadcast %cst_16 : f32 to vector<64x256xf32>
      %c0_17 = arith.constant 0 : index
      %c0_18 = arith.constant 0 : index
      %c0_19 = arith.constant 0 : index
      %25 = vector.load %arg3[%c0_17, %c0_18, %c0_19] : memref<2x64x128xbf16, #tpu.memory_space<vmem>>, vector<1x64x128xbf16>
      %26 = vector.shape_cast %25 : vector<1x64x128xbf16> to vector<64x128xbf16>
      %c0_20 = arith.constant 0 : index
      %c0_21 = arith.constant 0 : index
      %c0_22 = arith.constant 0 : index
      %27 = vector.load %arg4[%c0_20, %c0_21, %c0_22] : memref<2x128x256xbf16, #tpu.memory_space<vmem>>, vector<1x128x256xbf16>
      %28 = vector.shape_cast %27 : vector<1x128x256xbf16> to vector<128x256xbf16>
      %cst_23 = arith.constant dense<0.000000e+00> : vector<64x256xf32>
      %29 = tpu.matmul %26, %28, %cst_23 {dimension_numbers = #tpu.dot_dimension_numbers<[1], [0], [0], [1], [0, 0, 1, 1], [], []>} : vector<64x128xbf16>, vector<128x256xbf16>, vector<64x256xf32> -> vector<64x256xf32>
      %30 = arith.addf %24, %29 : vector<64x256xf32>
      %c1 = arith.constant 1 : index
      %c0_24 = arith.constant 0 : index
      %c0_25 = arith.constant 0 : index
      %31 = vector.load %arg3[%c1, %c0_24, %c0_25] : memref<2x64x128xbf16, #tpu.memory_space<vmem>>, vector<1x64x128xbf16>
      %32 = vector.shape_cast %31 : vector<1x64x128xbf16> to vector<64x128xbf16>
      %c1_26 = arith.constant 1 : index
      %c0_27 = arith.constant 0 : index
      %c0_28 = arith.constant 0 : index
      %33 = vector.load %arg4[%c1_26, %c0_27, %c0_28] : memref<2x128x256xbf16, #tpu.memory_space<vmem>>, vector<1x128x256xbf16>
      %34 = vector.shape_cast %33 : vector<1x128x256xbf16> to vector<128x256xbf16>
      %cst_29 = arith.constant dense<0.000000e+00> : vector<64x256xf32>
      %35 = tpu.matmul %32, %34, %cst_29 {dimension_numbers = #tpu.dot_dimension_numbers<[1], [0], [0], [1], [0, 0, 1, 1], [], []>} : vector<64x128xbf16>, vector<128x256xbf16>, vector<64x256xf32> -> vector<64x256xf32>
      %36 = arith.addf %30, %35 : vector<64x256xf32>
      %c0_30 = arith.constant 0 : index
      %c0_31 = arith.constant 0 : index
      %37 = vector.load %arg2[%c0_30, %c0_31] : memref<64x256xf32, #tpu.memory_space<vmem>>, vector<64x256xf32>
      %38 = arith.addf %37, %36 : vector<64x256xf32>
      %c0_32 = arith.constant 0 : index
      %c0_33 = arith.constant 0 : index
      %39 = vector.load %arg10[%c0_32, %c0_33] : memref<64x256xf32, #tpu.memory_space<vmem>>, vector<64x256xf32>
      tpu.vector_store %arg10[%c0_32, %c0_33], %38 {strides = array<i32>} : memref<64x256xf32, #tpu.memory_space<vmem>>, vector<64x256xf32>,
      %40 = arith.mulf %38, %38 : vector<64x256xf32>
      %cst_34 = arith.constant dense<0.000000e+00> : vector<64xf32>
      %41 = vector.multi_reduction <add>, %40, %cst_34 [1] : vector<64x256xf32> to vector<64xf32>
      %42 = vector.shape_cast %41 : vector<64xf32> to vector<64x1xf32>
      %cst_35 = arith.constant 2.560000e+02 : f32
      %43 = vector.broadcast %cst_35 : f32 to vector<64x1xf32>
      %44 = arith.divf %42, %43 : vector<64x1xf32>
      %cst_36 = arith.constant 9.99999974E-6 : f32
      %45 = vector.broadcast %cst_36 : f32 to vector<64x1xf32>
      %46 = arith.addf %44, %45 : vector<64x1xf32>
      %47 = math.rsqrt %46 : vector<64x1xf32>
      %48 = vector.broadcast %47 : vector<64x1xf32> to vector<64x256xf32>
      %49 = arith.mulf %38, %48 : vector<64x256xf32>
      %c0_37 = arith.constant 0 : index
      %c0_38 = arith.constant 0 : index
      %50 = vector.load %arg5[%c0_37, %c0_38] : memref<1x256xf32, #tpu.memory_space<vmem>>, vector<1x256xf32>
      %51 = vector.broadcast %50 : vector<1x256xf32> to vector<64x256xf32>
      %52 = arith.mulf %49, %51 : vector<64x256xf32>
      %53 = arith.truncf %52 : vector<64x256xf32> to vector<64x256xbf16>
      %c0_39 = arith.constant 0 : index
      %c0_40 = arith.constant 0 : index
      %54 = vector.load %arg11[%c0_39, %c0_40] : memref<64x256xbf16, #tpu.memory_space<vmem>>, vector<64x256xbf16>
      tpu.vector_store %arg11[%c0_39, %c0_40], %53 {strides = array<i32>} : memref<64x256xbf16, #tpu.memory_space<vmem>>, vector<64x256xbf16>,
      %cst_41 = arith.constant 0.000000e+00 : f32
      %55 = vector.broadcast %cst_41 : f32 to vector<64x256xf32>
      %c0_42 = arith.constant 0 : index
      %c0_43 = arith.constant 0 : index
      %56 = vector.load %arg12[%c0_42, %c0_43] : memref<64x256xf32, #tpu.memory_space<vmem>>, vector<64x256xf32>
      tpu.vector_store %arg12[%c0_42, %c0_43], %55 {strides = array<i32>} : memref<64x256xf32, #tpu.memory_space<vmem>>, vector<64x256xf32>,
    } else {
    }
    %c0 = arith.constant 0 : index
    %c0_1 = arith.constant 0 : index
    %3 = vector.load %arg11[%c0, %c0_1] : memref<64x256xbf16, #tpu.memory_space<vmem>>, vector<64x256xbf16>
    %c0_2 = arith.constant 0 : index
    %c0_3 = arith.constant 0 : index
    %4 = vector.load %arg6[%c0_2, %c0_3] : memref<256x256xbf16, #tpu.memory_space<vmem>>, vector<256x256xbf16>
    %cst = arith.constant dense<0.000000e+00> : vector<64x256xf32>
    %5 = tpu.matmul %3, %4, %cst {dimension_numbers = #tpu.dot_dimension_numbers<[1], [0], [0], [1], [0, 0, 1, 1], [], []>} : vector<64x256xbf16>, vector<256x256xbf16>, vector<64x256xf32> -> vector<64x256xf32>
    %c0_4 = arith.constant 0 : index
    %c0_5 = arith.constant 0 : index
    %6 = vector.load %arg7[%c0_4, %c0_5] : memref<256x256xbf16, #tpu.memory_space<vmem>>, vector<256x256xbf16>
    %cst_6 = arith.constant dense<0.000000e+00> : vector<64x256xf32>
    %7 = tpu.matmul %3, %6, %cst_6 {dimension_numbers = #tpu.dot_dimension_numbers<[1], [0], [0], [1], [0, 0, 1, 1], [], []>} : vector<64x256xbf16>, vector<256x256xbf16>, vector<64x256xf32> -> vector<64x256xf32>
    %8 = arith.negf %5 : vector<64x256xf32>
    %9 = math.exp %8 : vector<64x256xf32>
    %cst_7 = arith.constant 1.000000e+00 : f32
    %10 = vector.broadcast %cst_7 : f32 to vector<64x256xf32>
    %11 = arith.addf %10, %9 : vector<64x256xf32>
    %12 = arith.divf %10, %11 : vector<64x256xf32>
    %13 = arith.mulf %5, %12 : vector<64x256xf32>
    %14 = arith.mulf %13, %7 : vector<64x256xf32>
    %c0_8 = arith.constant 0 : index
    %c0_9 = arith.constant 0 : index
    %15 = vector.load %arg12[%c0_8, %c0_9] : memref<64x256xf32, #tpu.memory_space<vmem>>, vector<64x256xf32>
    %16 = arith.truncf %14 : vector<64x256xf32> to vector<64x256xbf16>
    %c0_10 = arith.constant 0 : index
    %c0_11 = arith.constant 0 : index
    %17 = vector.load %arg8[%c0_10, %c0_11] : memref<256x256xbf16, #tpu.memory_space<vmem>>, vector<256x256xbf16>
    %cst_12 = arith.constant dense<0.000000e+00> : vector<64x256xf32>
    %18 = tpu.matmul %16, %17, %cst_12 {dimension_numbers = #tpu.dot_dimension_numbers<[1], [0], [0], [1], [0, 0, 1, 1], [], []>} : vector<64x256xbf16>, vector<256x256xbf16>, vector<64x256xf32> -> vector<64x256xf32>
    %19 = arith.addf %15, %18 : vector<64x256xf32>
    %c0_13 = arith.constant 0 : index
    %c0_14 = arith.constant 0 : index
    %20 = vector.load %arg12[%c0_13, %c0_14] : memref<64x256xf32, #tpu.memory_space<vmem>>, vector<64x256xf32>
    tpu.vector_store %arg12[%c0_13, %c0_14], %19 {strides = array<i32>} : memref<64x256xf32, #tpu.memory_space<vmem>>, vector<64x256xf32>,
    %c1_i32 = arith.constant 1 : i32
    %21 = arith.cmpi eq, %arg1, %c1_i32 : i32
    %22 = arith.extui %21 : i1 to i32
    %c0_i32_15 = arith.constant 0 : i32
    %23 = arith.cmpi ne, %22, %c0_i32_15 : i32
    scf.if %23 {
      %c0_16 = arith.constant 0 : index
      %c0_17 = arith.constant 0 : index
      %24 = vector.load %arg10[%c0_16, %c0_17] : memref<64x256xf32, #tpu.memory_space<vmem>>, vector<64x256xf32>
      %c0_18 = arith.constant 0 : index
      %c0_19 = arith.constant 0 : index
      %25 = vector.load %arg12[%c0_18, %c0_19] : memref<64x256xf32, #tpu.memory_space<vmem>>, vector<64x256xf32>
      %26 = arith.addf %24, %25 : vector<64x256xf32>
      %c0_20 = arith.constant 0 : index
      %c0_21 = arith.constant 0 : index
      %27 = vector.load %arg9[%c0_20, %c0_21] : memref<64x256xf32, #tpu.memory_space<vmem>>, vector<64x256xf32>
      tpu.vector_store %arg9[%c0_20, %c0_21], %26 {strides = array<i32>} : memref<64x256xf32, #tpu.memory_space<vmem>>, vector<64x256xf32>,
    } else {
    }
    return
  }
  func.func @transform_0(%arg0: i32, %arg1: i32) -> (i32, i32) {
    %c0_i32 = arith.constant 0 : i32
    %c0_i32_0 = arith.constant 0 : i32
    return %arg0, %c0_i32 : i32, i32
  }
  func.func @transform_1(%arg0: i32, %arg1: i32) -> (i32, i32, i32) {
    %c0_i32 = arith.constant 0 : i32
    %c0_i32_0 = arith.constant 0 : i32
    %c0_i32_1 = arith.constant 0 : i32
    return %c0_i32, %arg0, %c0_i32_0 : i32, i32, i32
  }
  func.func @transform_2(%arg0: i32, %arg1: i32) -> (i32, i32, i32) {
    %c0_i32 = arith.constant 0 : i32
    %c0_i32_0 = arith.constant 0 : i32
    %c0_i32_1 = arith.constant 0 : i32
    %c0_i32_2 = arith.constant 0 : i32
    return %c0_i32, %c0_i32_0, %c0_i32_1 : i32, i32, i32
  }
  func.func @transform_3(%arg0: i32, %arg1: i32) -> (i32, i32) {
    %c0_i32 = arith.constant 0 : i32
    %c0_i32_0 = arith.constant 0 : i32
    %c0_i32_1 = arith.constant 0 : i32
    return %c0_i32, %c0_i32_0 : i32, i32
  }
  func.func @transform_4(%arg0: i32, %arg1: i32) -> (i32, i32) {
    %c0_i32 = arith.constant 0 : i32
    %c0_i32_0 = arith.constant 0 : i32
    return %c0_i32, %arg1 : i32, i32
  }
  func.func @transform_5(%arg0: i32, %arg1: i32) -> (i32, i32) {
    %c0_i32 = arith.constant 0 : i32
    %c0_i32_0 = arith.constant 0 : i32
    return %c0_i32, %arg1 : i32, i32
  }
  func.func @transform_6(%arg0: i32, %arg1: i32) -> (i32, i32) {
    %c0_i32 = arith.constant 0 : i32
    %c0_i32_0 = arith.constant 0 : i32
    return %arg1, %c0_i32 : i32, i32
  }
  func.func @transform_7(%arg0: i32, %arg1: i32) -> (i32, i32) {
    %c0_i32 = arith.constant 0 : i32
    %c0_i32_0 = arith.constant 0 : i32
    return %arg0, %c0_i32 : i32, i32
  }
}

module attributes {stable_mosaic.version = 11 : i64} {
  func.func @_oproj_mlp_kernel(%arg0: i32, %arg1: i32, %arg2: memref<64x256xf32, #tpu.memory_space<vmem>>, %arg3: memref<2x64x128xbf16, #tpu.memory_space<vmem>>, %arg4: memref<2x128x256xbf16, #tpu.memory_space<vmem>>, %arg5: memref<1x256xf32, #tpu.memory_space<vmem>>, %arg6: memref<256x256xbf16, #tpu.memory_space<vmem>>, %arg7: memref<256x256xbf16, #tpu.memory_space<vmem>>, %arg8: memref<256x256xbf16, #tpu.memory_space<vmem>>, %arg9: memref<64x256xf32, #tpu.memory_space<vmem>>, %arg10: memref<64x256xf32, #tpu.memory_space<vmem>>, %arg11: memref<64x256xbf16, #tpu.memory_space<vmem>>, %arg12: memref<64x256xf32, #tpu.memory_space<vmem>>) attributes {dimension_semantics = [#tpu.dimension_semantics<parallel>, #tpu.dimension_semantics<arbitrary>], iteration_bounds = array<i64: 2, 2>, scalar_prefetch = 0 : i64, scratch_operands = 3 : i64, tpu.core_type = #tpu.core_type<tc>, window_params = [{transform_indices = @transform_0, window_bounds = array<i64: 64, 256>}, {transform_indices = @transform_1, window_bounds = array<i64: 2, 64, 128>}, {pipeline_mode = #tpu.pipeline_mode<synchronous>, transform_indices = @transform_2, window_bounds = array<i64: 2, 128, 256>}, {pipeline_mode = #tpu.pipeline_mode<synchronous>, transform_indices = @transform_3, window_bounds = array<i64: 1, 256>}, {transform_indices = @transform_4, window_bounds = array<i64: 256, 256>}, {transform_indices = @transform_5, window_bounds = array<i64: 256, 256>}, {transform_indices = @transform_6, window_bounds = array<i64: 256, 256>}, {transform_indices = @transform_7, window_bounds = array<i64: 64, 256>}]} {
    %c0_i32 = arith.constant 0 : i32
    %0 = arith.cmpi eq, %arg1, %c0_i32 : i32
    %1 = arith.extui %0 : i1 to i32
    %c0_i32_0 = arith.constant 0 : i32
    %2 = arith.cmpi ne, %1, %c0_i32_0 : i32
    scf.if %2 {
      %cst_16 = arith.constant 0.000000e+00 : f32
      %24 = vector.broadcast %cst_16 : f32 to vector<64x256xf32>
      %c0_17 = arith.constant 0 : index
      %c0_18 = arith.constant 0 : index
      %c0_19 = arith.constant 0 : index
      %25 = vector.load %arg3[%c0_17, %c0_18, %c0_19] : memref<2x64x128xbf16, #tpu.memory_space<vmem>>, vector<1x64x128xbf16>
      %26 = vector.shape_cast %25 : vector<1x64x128xbf16> to vector<64x128xbf16>
      %c0_20 = arith.constant 0 : index
      %c0_21 = arith.constant 0 : index
      %c0_22 = arith.constant 0 : index
      %27 = vector.load %arg4[%c0_20, %c0_21, %c0_22] : memref<2x128x256xbf16, #tpu.memory_space<vmem>>, vector<1x128x256xbf16>
      %28 = vector.shape_cast %27 : vector<1x128x256xbf16> to vector<128x256xbf16>
      %cst_23 = arith.constant dense<0.000000e+00> : vector<64x256xf32>
      %29 = tpu.matmul %26, %28, %cst_23 {dimension_numbers = #tpu.dot_dimension_numbers<[1], [0], [0], [1], [0, 0, 1, 1], [], []>} : vector<64x128xbf16>, vector<128x256xbf16>, vector<64x256xf32> -> vector<64x256xf32>
      %30 = arith.addf %24, %29 : vector<64x256xf32>
      %c1 = arith.constant 1 : index
      %c0_24 = arith.constant 0 : index
      %c0_25 = arith.constant 0 : index
      %31 = vector.load %arg3[%c1, %c0_24, %c0_25] : memref<2x64x128xbf16, #tpu.memory_space<vmem>>, vector<1x64x128xbf16>
      %32 = vector.shape_cast %31 : vector<1x64x128xbf16> to vector<64x128xbf16>
      %c1_26 = arith.constant 1 : index
      %c0_27 = arith.constant 0 : index
      %c0_28 = arith.constant 0 : index
      %33 = vector.load %arg4[%c1_26, %c0_27, %c0_28] : memref<2x128x256xbf16, #tpu.memory_space<vmem>>, vector<1x128x256xbf16>
      %34 = vector.shape_cast %33 : vector<1x128x256xbf16> to vector<128x256xbf16>
      %cst_29 = arith.constant dense<0.000000e+00> : vector<64x256xf32>
      %35 = tpu.matmul %32, %34, %cst_29 {dimension_numbers = #tpu.dot_dimension_numbers<[1], [0], [0], [1], [0, 0, 1, 1], [], []>} : vector<64x128xbf16>, vector<128x256xbf16>, vector<64x256xf32> -> vector<64x256xf32>
      %36 = arith.addf %30, %35 : vector<64x256xf32>
      %c0_30 = arith.constant 0 : index
      %c0_31 = arith.constant 0 : index
      %37 = vector.load %arg2[%c0_30, %c0_31] : memref<64x256xf32, #tpu.memory_space<vmem>>, vector<64x256xf32>
      %38 = arith.addf %37, %36 : vector<64x256xf32>
      %c0_32 = arith.constant 0 : index
      %c0_33 = arith.constant 0 : index
      %39 = vector.load %arg10[%c0_32, %c0_33] : memref<64x256xf32, #tpu.memory_space<vmem>>, vector<64x256xf32>
      tpu.vector_store %arg10[%c0_32, %c0_33], %38 {strides = array<i32>} : memref<64x256xf32, #tpu.memory_space<vmem>>, vector<64x256xf32>,
      %40 = arith.mulf %38, %38 : vector<64x256xf32>
      %cst_34 = arith.constant dense<0.000000e+00> : vector<64xf32>
      %41 = vector.multi_reduction <add>, %40, %cst_34 [1] : vector<64x256xf32> to vector<64xf32>
      %42 = vector.shape_cast %41 : vector<64xf32> to vector<64x1xf32>
      %cst_35 = arith.constant 2.560000e+02 : f32
      %43 = vector.broadcast %cst_35 : f32 to vector<64x1xf32>
      %44 = arith.divf %42, %43 : vector<64x1xf32>
      %cst_36 = arith.constant 9.99999974E-6 : f32
      %45 = vector.broadcast %cst_36 : f32 to vector<64x1xf32>
      %46 = arith.addf %44, %45 : vector<64x1xf32>
      %47 = math.rsqrt %46 : vector<64x1xf32>
      %48 = vector.broadcast %47 : vector<64x1xf32> to vector<64x256xf32>
      %49 = arith.mulf %38, %48 : vector<64x256xf32>
      %c0_37 = arith.constant 0 : index
      %c0_38 = arith.constant 0 : index
      %50 = vector.load %arg5[%c0_37, %c0_38] : memref<1x256xf32, #tpu.memory_space<vmem>>, vector<1x256xf32>
      %51 = vector.broadcast %50 : vector<1x256xf32> to vector<64x256xf32>
      %52 = arith.mulf %49, %51 : vector<64x256xf32>
      %53 = arith.truncf %52 : vector<64x256xf32> to vector<64x256xbf16>
      %c0_39 = arith.constant 0 : index
      %c0_40 = arith.constant 0 : index
      %54 = vector.load %arg11[%c0_39, %c0_40] : memref<64x256xbf16, #tpu.memory_space<vmem>>, vector<64x256xbf16>
      tpu.vector_store %arg11[%c0_39, %c0_40], %53 {strides = array<i32>} : memref<64x256xbf16, #tpu.memory_space<vmem>>, vector<64x256xbf16>,
      %cst_41 = arith.constant 0.000000e+00 : f32
      %55 = vector.broadcast %cst_41 : f32 to vector<64x256xf32>
      %c0_42 = arith.constant 0 : index
      %c0_43 = arith.constant 0 : index
      %56 = vector.load %arg12[%c0_42, %c0_43] : memref<64x256xf32, #tpu.memory_space<vmem>>, vector<64x256xf32>
      tpu.vector_store %arg12[%c0_42, %c0_43], %55 {strides = array<i32>} : memref<64x256xf32, #tpu.memory_space<vmem>>, vector<64x256xf32>,
    } else {
    }
    %c0 = arith.constant 0 : index
    %c0_1 = arith.constant 0 : index
    %3 = vector.load %arg11[%c0, %c0_1] : memref<64x256xbf16, #tpu.memory_space<vmem>>, vector<64x256xbf16>
    %c0_2 = arith.constant 0 : index
    %c0_3 = arith.constant 0 : index
    %4 = vector.load %arg6[%c0_2, %c0_3] : memref<256x256xbf16, #tpu.memory_space<vmem>>, vector<256x256xbf16>
    %cst = arith.constant dense<0.000000e+00> : vector<64x256xf32>
    %5 = tpu.matmul %3, %4, %cst {dimension_numbers = #tpu.dot_dimension_numbers<[1], [0], [0], [1], [0, 0, 1, 1], [], []>} : vector<64x256xbf16>, vector<256x256xbf16>, vector<64x256xf32> -> vector<64x256xf32>
    %c0_4 = arith.constant 0 : index
    %c0_5 = arith.constant 0 : index
    %6 = vector.load %arg7[%c0_4, %c0_5] : memref<256x256xbf16, #tpu.memory_space<vmem>>, vector<256x256xbf16>
    %cst_6 = arith.constant dense<0.000000e+00> : vector<64x256xf32>
    %7 = tpu.matmul %3, %6, %cst_6 {dimension_numbers = #tpu.dot_dimension_numbers<[1], [0], [0], [1], [0, 0, 1, 1], [], []>} : vector<64x256xbf16>, vector<256x256xbf16>, vector<64x256xf32> -> vector<64x256xf32>
    %8 = arith.negf %5 : vector<64x256xf32>
    %9 = math.exp %8 : vector<64x256xf32>
    %cst_7 = arith.constant 1.000000e+00 : f32
    %10 = vector.broadcast %cst_7 : f32 to vector<64x256xf32>
    %11 = arith.addf %10, %9 : vector<64x256xf32>
    %12 = arith.divf %10, %11 : vector<64x256xf32>
    %13 = arith.mulf %5, %12 : vector<64x256xf32>
    %14 = arith.mulf %13, %7 : vector<64x256xf32>
    %c0_8 = arith.constant 0 : index
    %c0_9 = arith.constant 0 : index
    %15 = vector.load %arg12[%c0_8, %c0_9] : memref<64x256xf32, #tpu.memory_space<vmem>>, vector<64x256xf32>
    %16 = arith.truncf %14 : vector<64x256xf32> to vector<64x256xbf16>
    %c0_10 = arith.constant 0 : index
    %c0_11 = arith.constant 0 : index
    %17 = vector.load %arg8[%c0_10, %c0_11] : memref<256x256xbf16, #tpu.memory_space<vmem>>, vector<256x256xbf16>
    %cst_12 = arith.constant dense<0.000000e+00> : vector<64x256xf32>
    %18 = tpu.matmul %16, %17, %cst_12 {dimension_numbers = #tpu.dot_dimension_numbers<[1], [0], [0], [1], [0, 0, 1, 1], [], []>} : vector<64x256xbf16>, vector<256x256xbf16>, vector<64x256xf32> -> vector<64x256xf32>
    %19 = arith.addf %15, %18 : vector<64x256xf32>
    %c0_13 = arith.constant 0 : index
    %c0_14 = arith.constant 0 : index
    %20 = vector.load %arg12[%c0_13, %c0_14] : memref<64x256xf32, #tpu.memory_space<vmem>>, vector<64x256xf32>
    tpu.vector_store %arg12[%c0_13, %c0_14], %19 {strides = array<i32>} : memref<64x256xf32, #tpu.memory_space<vmem>>, vector<64x256xf32>,
    %c1_i32 = arith.constant 1 : i32
    %21 = arith.cmpi eq, %arg1, %c1_i32 : i32
    %22 = arith.extui %21 : i1 to i32
    %c0_i32_15 = arith.constant 0 : i32
    %23 = arith.cmpi ne, %22, %c0_i32_15 : i32
    scf.if %23 {
      %c0_16 = arith.constant 0 : index
      %c0_17 = arith.constant 0 : index
      %24 = vector.load %arg10[%c0_16, %c0_17] : memref<64x256xf32, #tpu.memory_space<vmem>>, vector<64x256xf32>
      %c0_18 = arith.constant 0 : index
      %c0_19 = arith.constant 0 : index
      %25 = vector.load %arg12[%c0_18, %c0_19] : memref<64x256xf32, #tpu.memory_space<vmem>>, vector<64x256xf32>
      %26 = arith.addf %24, %25 : vector<64x256xf32>
      %c0_20 = arith.constant 0 : index
      %c0_21 = arith.constant 0 : index
      %27 = vector.load %arg9[%c0_20, %c0_21] : memref<64x256xf32, #tpu.memory_space<vmem>>, vector<64x256xf32>
      tpu.vector_store %arg9[%c0_20, %c0_21], %26 {strides = array<i32>} : memref<64x256xf32, #tpu.memory_space<vmem>>, vector<64x256xf32>,
    } else {
    }
    return
  }
  func.func @transform_0(%arg0: i32, %arg1: i32) -> (i32, i32) {
    %c0_i32 = arith.constant 0 : i32
    %c0_i32_0 = arith.constant 0 : i32
    return %arg0, %c0_i32 : i32, i32
  }
  func.func @transform_1(%arg0: i32, %arg1: i32) -> (i32, i32, i32) {
    %c0_i32 = arith.constant 0 : i32
    %c0_i32_0 = arith.constant 0 : i32
    %c0_i32_1 = arith.constant 0 : i32
    return %c0_i32, %arg0, %c0_i32_0 : i32, i32, i32
  }
  func.func @transform_2(%arg0: i32, %arg1: i32) -> (i32, i32, i32) {
    %c0_i32 = arith.constant 0 : i32
    %c0_i32_0 = arith.constant 0 : i32
    %c0_i32_1 = arith.constant 0 : i32
    %c0_i32_2 = arith.constant 0 : i32
    return %c0_i32, %c0_i32_0, %c0_i32_1 : i32, i32, i32
  }
  func.func @transform_3(%arg0: i32, %arg1: i32) -> (i32, i32) {
    %c0_i32 = arith.constant 0 : i32
    %c0_i32_0 = arith.constant 0 : i32
    %c0_i32_1 = arith.constant 0 : i32
    return %c0_i32, %c0_i32_0 : i32, i32
  }
  func.func @transform_4(%arg0: i32, %arg1: i32) -> (i32, i32) {
    %c0_i32 = arith.constant 0 : i32
    %c0_i32_0 = arith.constant 0 : i32
    return %c0_i32, %arg1 : i32, i32
  }
  func.func @transform_5(%arg0: i32, %arg1: i32) -> (i32, i32) {
    %c0_i32 = arith.constant 0 : i32
    %c0_i32_0 = arith.constant 0 : i32
    return %c0_i32, %arg1 : i32, i32
  }
  func.func @transform_6(%arg0: i32, %arg1: i32) -> (i32, i32) {
    %c0_i32 = arith.constant 0 : i32
    %c0_i32_0 = arith.constant 0 : i32
    return %arg1, %c0_i32 : i32, i32
  }
  func.func @transform_7(%arg0: i32, %arg1: i32) -> (i32, i32) {
    %c0_i32 = arith.constant 0 : i32
    %c0_i32_0 = arith.constant 0 : i32
    return %arg0, %c0_i32 : i32, i32
  }
}

</mosaic_0001>

<bundles_post_ra>
// kernel: llama2_split1_forward.4
= control target key start
LH: loop header
LB: loop body
LE: loop exit
PB: predicated region body
PF: predicated region fallthrough
CT: control target
= control target key end

     0   :  { %s4318_s0 = inlined_call_operand.vmem [shape: f32[128,256], index: 0, kind: input, shape index: {}]   ;;  %s4319_s1 = inlined_call_operand.vmem [shape: f32[1,256], index: 1, kind: input, shape index: {}]   ;;  %s4320_s2 = inlined_call_operand.vmem [shape: bf16[2,256,384], index: 2, kind: input, shape index: {}]   ;;  %s4321_s3 = inlined_call_operand.hbm [shape: f32[128,128], index: 3, kind: input, shape index: {}]   ;;  %s4322_s4 = inlined_call_operand.vmem [shape: f32[128,128], index: 4, kind: input, shape index: {}]   ;;  %s4323_s5 = inlined_call_operand.hbm [shape: f32[128,128], index: 5, kind: input, shape index: {}]   ;;  %s4324_s6 = inlined_call_operand.vmem [shape: bf16[2,128,128], index: 6, kind: output, shape index: {0}]   ;;  %s4325_s7 = inlined_call_operand.vmem [shape: bf16[2,128,128], index: 7, kind: output, shape index: {1}]   ;;  %s4326_s8 = inlined_call_operand.hbm [shape: bf16[2,128,128], index: 8, kind: output, shape index: {2}]  }
   0x1   :  { %4349 = sst [smem:[#allocation32_spill]] %s4318_s0 }
   0x2   :  { %14 = vsyncpa [#allocation3], 0 }
   0x3   :  { %15 = vsyncpa [#allocation6], 0 }
   0x4   :  { %16 = vsyncpa [#allocation4], 0 }
   0x5   :  { %18 = vsyncpa [#allocation4 + $0x1], 0  ;;  %s2969_s27 = smov 0   ;;  %s2971_s28 = smov 0  }
   0x6   :  { %s2973_s29 = smov 0   ;;  %s2975_s30 = smov 0  }
   0x7 LB: > { %s2990_s9 = sadd.s32 4294967295, %s2915_s30   ;;  %s2214_s10 = sadd.s32 4294967294, %s2915_s30   ;;  %s2915_s30 = sphi %s2975_s30, %s4406_s30   ;;  %s2911_s29 = sphi %s2973_s29, %s4405_s29   ;;  %s2907_s28 = sphi %s2971_s28, %s4404_s28   ;;  %s2903_s27 = sphi %s2969_s27, %s4403_s27  }
   0x8   : > { %s2994_s11 = sadd.s32 1, %s2915_s30   ;;  %s214_s12 = sadd.s32 1, %s2911_s29 }
   0x9   : > { %s211_s13 = ssub.s32 %s2915_s30, %s2994_s11  ;;  %p224_p0 = scmp.ne.s32.totalorder %s2911_s29, %s2907_s28 }
   0xa   : > { %p212_p1 = scmp.eq.s32.totalorder %s211_s13, 0  ;;  %p225_p2 = scmp.eq.s32.totalorder %s2990_s9, 1 }
   0xb   : > { %p230_p3 = scmp.ne.s32.totalorder %s2907_s28, %s2903_s27  ;;  %p231_p4 = scmp.eq.s32.totalorder %s2214_s10, 1 }
   0xc   : > { %s3005_s14 = scalar_select %p212_p1, %s2911_s29, %s214_s12  }
   0xd   : > { %p3007_p5 = por %p225_p2, %p224_p0  ;;  %p3011_p6 = por %p231_p4, %p230_p3 }
   0xe   : > { %p2215_p7 = scmp.ge.s32.totalorder %s2915_s30, 1  ;;  %p238_p8 = scmp.lt.s32.totalorder %s2915_s30, 3 }
   0xf   : > { %p2639_p9 = scmp.eq.s32.totalorder %s2990_s9, 0  ;;  %s255_s20 = sshll.u32 %s4321_s3, 4  ;;  %s256_s20 = int_to_ptr.hbm [resolvable:$true] %s255_s20 }
  0x10   : > { %p3018_p10 = pnand %p2215_p7, %p238_p8  ;;  %s2917_s21 = smov [#allocation2]  }
  0x11   : > { %s257_s22 = sshll.u32 %s2917_s21, 4  ;;  %s272_s25 = sshll.u32 %s4323_s5, 4  ;;  %s258_s22 = int_to_ptr.vmem [resolvable:$true] %s257_s22  ;;  %s273_s25 = int_to_ptr.hbm [resolvable:$true] %s272_s25 }
  0x12   : > { %p2628_p11 = pneg %p3018_p10  ;;  %s2918_s26 = smov 128  }
  0x13   : > { %s2919_s10 = smov 8   ;;  %s2920_s12 = smov [#allocation5]  }
  0x14   : > { %p2629_p12 = pnand %p2639_p9, %p2628_p11  ;;  %s274_s13 = sshll.u32 %s2920_s12, 4  ;;  %s275_s13 = int_to_ptr.vmem [resolvable:$true] %s274_s13 }
  0x15   : > { %298 = sbr.rel (%p3018_p10) target bundleno = 1156 (0x484), region = 44 }
  0x16   : > { %2631 = dma.hbm_to_vmem [thread:$0]  (!%p2629_p12), %s256_s20, 2048, %s258_s22, [#allocation3], %s2918_s26, %s2918_s26, %s2919_s10  }
  0x17   : > { %2634 = dma.hbm_to_vmem [thread:$0]  (!%p2629_p12), %s273_s25, 2048, %s275_s13, [#allocation6], %s2918_s26, %s2918_s26, %s2919_s10  }
  0x1a   : > { %2890 = dma.done.wait (%p2639_p9), [#allocation3], 2048  }
  0x1b   : > { %2892 = vsyncadd (%p2639_p9), [#allocation3], 4294965248 }
  0x1c   : > { %2894 = dma.done.wait (%p2639_p9), [#allocation6], 2048  }
  0x1d   : > { %2896 = vsyncadd (%p2639_p9), [#allocation6], 4294965248  ;;  %s4353_s0 = sld [smem:[#allocation32_spill]]  ;;  %p348_p13 = scmp.lt.s32.totalorder %s2990_s9, 1 }
  0x1e   : > { %s4348_s20 = smov 64   ;;  %s2475_s19 = sshll.u32 %s2990_s9, 6 }
  0x1f   : > { %s3252_s13 = scalar_select %p348_p13, %s2990_s9, 1 }
  0x20   : > { %s2076_s25 = scalar_lea.hbm %s4326_s8, %s2475_s19 }
  0x21   : > { %s2617_s18 = smul.u32 384, %s3252_s13  ;;  %s2079_s26 = sshll.u32 %s2076_s25, 4  ;;  %s2080_s26 = int_to_ptr.hbm [resolvable:$true] %s2079_s26 }
  0x22   : > { %s2859_s12 = sshra.s32 %s2080_s26, 4  ;;  %s2860_s12 = int_to_ptr.hbm [resolvable:$true] %s2859_s12 }
  0x23   : > { %v3045_v0 = vld [vmem:[%s4353_s0 + $0x20] sm:$0xff]  ;;  %v3050_v1 = vld [vmem:[%s4353_s0 + $0x28] sm:$0xff]  ;;  %v3073_v8 = vld [vmem:[%s4353_s0 + $0x30] sm:$0xff]  ;;  %s3258_s17 = scalar_lea.vmem %s4320_s2, %s2617_s18  ;;  %s4347_s18 = sshll.u32 %s3252_s13, 6 }
  0x24   : > { %v3055_v2 = vld [vmem:[%s4353_s0] sm:$0xff]  ;;  %v399_v3 = vmul.f32 %v3045_v0, %v3045_v0  ;;  %v400_v4 = vmul.f32 %v3050_v1, %v3050_v1  ;;  %v3064_v5 = vld [vmem:[%s4353_s0 + $0x8] sm:$0xff]  ;;  %v3078_v9 = vld [vmem:[%s4353_s0 + $0x38] sm:$0xff]  ;;  %v401_v18 = vmul.f32 %v3073_v8, %v3073_v8  ;;  %s3947_s23 = scalar_lea.vmem %s4325_s7, %s4347_s18  ;;  %s2861_s18 = scalar_lea.hbm %s2860_s12, 64 }
  0x25   : > { %v395_v6 = vmul.f32 %v3055_v2, %v3055_v2  ;;  %v396_v7 = vmul.f32 %v3064_v5, %v3064_v5  ;;  %v3083_v10 = vld [vmem:[%s4353_s0 + $0x40] sm:$0xff]  ;;  %v3088_v12 = vld [vmem:[%s4353_s0 + $0x10] sm:$0xff]  ;;  %v3093_v13 = vld [vmem:[%s4353_s0 + $0x18] sm:$0xff]  ;;  %v402_v19 = vmul.f32 %v3078_v9, %v3078_v9  ;;  %p2862_p0 = scmp.ne.s32.totalorder %s2860_s12, %s2861_s18  ;;  %p2866_p3 = scmp.lt.s32.totalorder %s2860_s12, %s4326_s8 }
  0x26   : > { %v433_v11 = vadd.f32 %v400_v4, %v399_v3  ;;  %v3098_v14 = vld [vmem:[%s4353_s0 + $0x48] sm:$0xff]  ;;  %v403_v15 = vmul.f32 %v3083_v10, %v3083_v10  ;;  %v3111_v20 = vld [vmem:[%s4353_s0 + $0x50] sm:$0xff]  ;;  %v3116_v21 = vld [vmem:[%s4353_s0 + $0x58] sm:$0xff]  ;;  %v397_v22 = vmul.f32 %v3088_v12, %v3088_v12  ;;  %v398_v23 = vmul.f32 %v3093_v13, %v3093_v13 }
  0x27   : > { %v427_v16 = vadd.f32 %v396_v7, %v395_v6  ;;  %v404_v17 = vmul.f32 %v3098_v14, %v3098_v14  ;;  %v405_v25 = vmul.f32 %v3111_v20, %v3111_v20  ;;  %v406_v26 = vmul.f32 %v3116_v21, %v3116_v21  ;;  %v3129_v29 = vld [vmem:[%s4353_s0 + $0x70] sm:$0xff]  ;;  %v3134_v30 = vld [vmem:[%s4353_s0 + $0x78] sm:$0xff]  ;;  %v3139_v31 = vld [vmem:[%s4353_s0 + $0x60] sm:$0xff]  ;;  %p2863_p1 = pnand %p2862_p0, %p3007_p5 }
  0x28   : > { %434 = vadd.xlane.f32.xlu1 %v433_v11  ;;  %v436_v27 = vadd.f32 %v402_v19, %v401_v18  ;;  %v430_v28 = vadd.f32 %v398_v23, %v397_v22  ;;  %v3144_v32 = vld [vmem:[%s4353_s0 + $0x68] sm:$0xff]  ;;  %v409_v34 = vmul.f32 %v3129_v29, %v3129_v29  ;;  %v410_v35 = vmul.f32 %v3134_v30, %v3134_v30  ;;  %v3153_v36 = vld [vmem:[%s4353_s0 + $0x80] sm:$0xff]  ;;  %v3181_v46 = vld [vmem:[%s4353_s0 + $0x90] sm:$0xff] }
  0x29   : > { %428 = vadd.xlane.f32.xlu0 %v427_v16  ;;  %v439_v24 = vadd.f32 %v404_v17, %v403_v15  ;;  %v442_v33 = vadd.f32 %v406_v26, %v405_v25  ;;  %v3158_v37 = vld [vmem:[%s4353_s0 + $0x88] sm:$0xff]  ;;  %v407_v38 = vmul.f32 %v3139_v31, %v3139_v31  ;;  %v408_v39 = vmul.f32 %v3144_v32, %v3144_v32  ;;  %v3171_v44 = vld [vmem:[%s4353_s0 + $0xa0] sm:$0xff]  ;;  %v3186_v47 = vld [vmem:[%s4353_s0 + $0x98] sm:$0xff]  ;;  %p2864_p2 = pneg %p2863_p1 }
  0x2a   : > { %v411_v40 = vmul.f32 %v3153_v36, %v3153_v36  ;;  %v412_v41 = vmul.f32 %v3158_v37, %v3158_v37  ;;  %v448_v42 = vadd.f32 %v410_v35, %v409_v34  ;;  %v3176_v45 = vld [vmem:[%s4353_s0 + $0xa8] sm:$0xff]  ;;  %v3191_v49 = vld [vmem:[%s4353_s0 + $0xb0] sm:$0xff]  ;;  %v3196_v50 = vld [vmem:[%s4353_s0 + $0xb8] sm:$0xff]  ;;  %v415_v51 = vmul.f32 %v3171_v44, %v3171_v44 }
  0x2b   : > { %440 = vadd.xlane.f32.xlu2 %v439_v24  ;;  %v445_v43 = vadd.f32 %v408_v39, %v407_v38  ;;  %v416_v52 = vmul.f32 %v3176_v45, %v3176_v45  ;;  %v413_v53 = vmul.f32 %v3181_v46, %v3181_v46  ;;  %v414_v54 = vmul.f32 %v3186_v47, %v3186_v47  ;;  %v3213_v59 = vld [vmem:[%s4353_s0 + $0xd0] sm:$0xff]  ;;  %v3218_v60 = vld [vmem:[%s4353_s0 + $0xd8] sm:$0xff]  ;;  %v3223_v61 = vld [vmem:[%s4353_s0 + $0xc0] sm:$0xff] }
  0x2c   : > { %v451_v48 = vadd.f32 %v412_v41, %v411_v40  ;;  %v417_v55 = vmul.f32 %v3191_v49, %v3191_v49  ;;  %v418_v56 = vmul.f32 %v3196_v50, %v3196_v50  ;;  %v3228_v62 = vld [vmem:[%s4353_s0 + $0xc8] sm:$0xff]  ;;  %v421_v3 = vmul.f32 %v3213_v59, %v3213_v59  ;;  %v391_v6 = vld [vmem:[%s4353_s0 + $0xe0] sm:$0xff]  ;;  %v393_v22 = vld [vmem:[%s4353_s0 + $0xf0] sm:$0xff] }
  0x2d   : > { %v457_v57 = vadd.f32 %v416_v52, %v415_v51  ;;  %v454_v58 = vadd.f32 %v414_v54, %v413_v53  ;;  %v422_v4 = vmul.f32 %v3218_v60, %v3218_v60  ;;  %v392_v7 = vld [vmem:[%s4353_s0 + $0xe8] sm:$0xff]  ;;  %v419_v11 = vmul.f32 %v3223_v61, %v3223_v61  ;;  %v394_v23 = vld [vmem:[%s4353_s0 + $0xf8] sm:$0xff]  ;;  %v2473_v38 = vld [vmem:[%s3258_s17 + $0x170] sm:$0xf0] }
  0x2e   : > { %v460_v63 = vadd.f32 %v418_v56, %v417_v55  ;;  %v420_v15 = vmul.f32 %v3228_v62, %v3228_v62  ;;  %v423_v16 = vmul.f32 %v391_v6, %v391_v6  ;;  %v424_v17 = vmul.f32 %v392_v7, %v392_v7  ;;  %v2410_v34 = vld [vmem:[%s3258_s17 + $0x168] sm:$0xf]  ;;  %v2448_v39 = vld [vmem:[%s3258_s17 + $0xac] sm:$0xf]  ;;  %v2316_v40 = vld [vmem:[%s3258_s17 + $0xb4] sm:$0xf0] }
  0x2f   : > { %v466_v18 = vadd.f32 %v422_v4, %v421_v3  ;;  %v425_v25 = vmul.f32 %v393_v22, %v393_v22  ;;  %v426_v26 = vmul.f32 %v394_v23, %v394_v23  ;;  %v2921_v41 = vmov 256.0   ;;  %v2412_v51 = vld [vmem:[%s3258_s17 + $0x174] sm:$0xf0]  ;;  %v2302_v53 = vld [vmem:[%s3258_s17 + $0x90] sm:$0xf] }
  0x30   : > { %437 = vadd.xlane.f32.xlu1 %v436_v27  ;;  %v463_v19 = vadd.f32 %v420_v15, %v419_v11  ;;  %v469_v24 = vadd.f32 %v424_v17, %v423_v16  ;;  %2683 = vrcp.f32 %v2921_v41  ;;  %v2446_v54 = vld [vmem:[%s3258_s17 + $0x98] sm:$0xf0]  ;;  %v2398_v55 = vld [vmem:[%s3258_s17 + $0x150] sm:$0xf]  ;;  %v2469_v6 = vld [vmem:[%s3258_s17 + $0x154] sm:$0xf] }
  0x31   : > { %431 = vadd.xlane.f32.xlu0 %v430_v28  ;;  %v472_v27 = vadd.f32 %v426_v26, %v425_v25  ;;  %v2314_v28 = vld [vmem:[%s3258_s17 + $0xa8] sm:$0xf]  ;;  %v2303_v56 = vor.u32 %v2446_v54, %v2302_v53  ;;  %v2400_v7 = vld [vmem:[%s3258_s17 + $0x15c] sm:$0xf0]  ;;  %v2290_v16 = vld [vmem:[%s3258_s17 + $0x78] sm:$0xf] }
  0x32   : > { %v2403_v11 = vor.u32 %v2469_v6, %v2400_v7  ;;  %v2443_v17 = vld [vmem:[%s3258_s17 + $0x80] sm:$0xf0]  ;;  %v2442_v23 = vld [vmem:[%s3258_s17 + $0x7c] sm:$0xf]  ;;  %v2464_v41 = vld [vmem:[%s3258_s17 + $0x128] sm:$0xf0] }
  0x33   : > { %443 = vadd.xlane.f32.xlu2 %v442_v33  ;;  %v2449_v33 = vld [vmem:[%s3258_s17 + $0xb0] sm:$0xf0]  ;;  %v2467_v22 = vld [vmem:[%s3258_s17 + $0x140] sm:$0xf0]  ;;  %v2376_v53 = vld [vmem:[%s3258_s17 + $0x12c] sm:$0xf0] }
  0x34   : > { %v2315_v35 = vor.u32 %v2449_v33, %v2314_v28  ;;  %v2388_v28 = vld [vmem:[%s3258_s17 + $0x144] sm:$0xf0]  ;;  %v2268_v6 = vld [vmem:[%s3258_s17 + $0x54] sm:$0xf0] }
  0x36   : > { %1080 = vmatpush.bf16.msra.mxu0 %v2315_v35  ;;  %v3276_v15 = vpop.eup %2683  ;;  %v2278_v35 = vld [vmem:[%s3258_s17 + $0x60] sm:$0xf] }
  0x37   : > { %v476_v33 = vmul.f32 256.0, %v3276_v15  ;;  %vm480_vm0 = vweird.f32 %v3276_v15 }
  0x38   : > { %449 = vadd.xlane.f32.xlu1 %v448_v42  ;;  %v2411_v42 = vor.u32 %v2473_v38, %v2410_v34  ;;  %v2440_v38 = vld [vmem:[%s3258_s17 + $0x68] sm:$0xf0] }
  0x39   : > { %446 = vadd.xlane.f32.xlu0 %v445_v43  ;;  %v2319_v43 = vor.u32 %v2448_v39, %v2316_v40  ;;  %v2374_v39 = vld [vmem:[%s3258_s17 + $0x120] sm:$0xf]  ;;  %v2279_v40 = vor.u32 %v2440_v38, %v2278_v35  ;;  %v477_v54 = vsub.f32 1.0, %v476_v33  ;;  %v2457_v35 = vld [vmem:[%s3258_s17 + $0xf4] sm:$0xf] }
  0x3a   : > { %1129 = vmatpush.bf16.msra.mxu1 %v2411_v42  ;;  %1081 = vmatpush.bf16.msra.mxu0 %v2303_v56  ;;  %v2439_v42 = vld [vmem:[%s3258_s17 + $0x64] sm:$0xf]  ;;  %v2266_v56 = vld [vmem:[%s3258_s17 + $0x48] sm:$0xf]  ;;  %v2352_v38 = vld [vmem:[%s3258_s17 + $0xfc] sm:$0xf0] }
  0x3b   : > { %452 = vadd.xlane.f32.xlu2 %v451_v48  ;;  %v2472_v48 = vld [vmem:[%s3258_s17 + $0x16c] sm:$0xf]  ;;  %1178 = vmatpush.bf16.msra.mxu2 %v2319_v43  ;;  %v2280_v43 = vld [vmem:[%s3258_s17 + $0x6c] sm:$0xf0] }
  0x3c   : > { %v2415_v52 = vor.u32 %v2472_v48, %v2412_v51  ;;  %v2375_v48 = vor.u32 %v2464_v41, %v2374_v39  ;;  %v2283_v51 = vor.u32 %v2439_v42, %v2280_v43  ;;  %v2242_v41 = vld [vmem:[%s3258_s17 + $0x18] sm:$0xf]  ;;  %v2431_v42 = vld [vmem:[%s3258_s17 + $0x20] sm:$0xf0] }
  0x3d   : > { %v2338_v43 = vld [vmem:[%s3258_s17 + $0xd8] sm:$0xf] }
  0x3e   : > { %1227 = vmatpush.bf16.msra.mxu3 %v2415_v52  ;;  %v2463_v52 = vld [vmem:[%s3258_s17 + $0x124] sm:$0xf] }
  0x40   : > { %458 = vadd.xlane.f32.xlu1 %v457_v57  ;;  %v2470_v57 = vld [vmem:[%s3258_s17 + $0x158] sm:$0xf0] }
  0x41   : > { %455 = vadd.xlane.f32.xlu0 %v454_v58  ;;  %v2445_v58 = vld [vmem:[%s3258_s17 + $0x94] sm:$0xf]  ;;  %v2399_v3 = vor.u32 %v2470_v57, %v2398_v55  ;;  %v2379_v55 = vor.u32 %v2463_v52, %v2376_v53  ;;  %v2430_v52 = vld [vmem:[%s3258_s17 + $0x1c] sm:$0xf]  ;;  %v2244_v53 = vld [vmem:[%s3258_s17 + $0x24] sm:$0xf0] }
  0x42   : > { %1228 = vmatpush.bf16.msra.mxu3 %v2403_v11  ;;  %v2437_v57 = vld [vmem:[%s3258_s17 + $0x50] sm:$0xf0] }
  0x43   : > { %461 = vadd.xlane.f32.xlu2 %v460_v63  ;;  %v2304_v63 = vld [vmem:[%s3258_s17 + $0x9c] sm:$0xf0]  ;;  %1130 = vmatpush.bf16.msra.mxu1 %v2399_v3  ;;  %v2461_v3 = vld [vmem:[%s3258_s17 + $0x110] sm:$0xf0] }
  0x44   : > { %v2307_v4 = vor.u32 %v2445_v58, %v2304_v63  ;;  %v2362_v58 = vld [vmem:[%s3258_s17 + $0x108] sm:$0xf]  ;;  %v2267_v63 = vor.u32 %v2437_v57, %v2266_v56  ;;  %v2454_v56 = vld [vmem:[%s3258_s17 + $0xdc] sm:$0xf] }
  0x45   : > { %v2363_v7 = vor.u32 %v2461_v3, %v2362_v58  ;;  %v2340_v57 = vld [vmem:[%s3258_s17 + $0xe4] sm:$0xf0] }
  0x46   : > { %1179 = vmatpush.bf16.msra.mxu2 %v2307_v4  ;;  %v2436_v4 = vld [vmem:[%s3258_s17 + $0x4c] sm:$0xf] }
  0x47   : > { %v2271_v11 = vor.u32 %v2436_v4, %v2268_v6  ;;  %v2230_v4 = vld [vmem:[%s3258_s17] sm:$0xf]  ;;  %v2428_v6 = vld [vmem:[%s3258_s17 + $0x8] sm:$0xf0] }
  0x48   : > { %467 = vadd.xlane.f32.xlu1 %v466_v18  ;;  %v2386_v18 = vld [vmem:[%s3258_s17 + $0x138] sm:$0xf] }
  0x49   : > { %464 = vadd.xlane.f32.xlu0 %v463_v19  ;;  %v2291_v19 = vor.u32 %v2443_v17, %v2290_v16  ;;  %v2387_v25 = vor.u32 %v2467_v22, %v2386_v18  ;;  %v2460_v16 = vld [vmem:[%s3258_s17 + $0x10c] sm:$0xf]  ;;  %v2364_v17 = vld [vmem:[%s3258_s17 + $0x114] sm:$0xf0]  ;;  %v478_v18 = vmul.f32 %v3276_v15, %v477_v54  ;;  %v2254_v22 = vld [vmem:[%s3258_s17 + $0x30] sm:$0xf] }
  0x4b   : > { %470 = vadd.xlane.f32.xlu2 %v469_v24  ;;  %v2292_v24 = vld [vmem:[%s3258_s17 + $0x84] sm:$0xf0]  ;;  %1082 = vmatpush.bf16.msra.mxu0 %v2291_v19  ;;  %v2367_v19 = vor.u32 %v2460_v16, %v2364_v17  ;;  %v479_v39 = vadd.f32 %v3276_v15, %v478_v18  ;;  %v2231_v16 = vor.u32 %v2428_v6, %v2230_v4  ;;  %v2452_v17 = vld [vmem:[%s3258_s17 + $0xc8] sm:$0xf0]  ;;  %v2427_v18 = vld [vmem:[%s3258_s17 + $0x4] sm:$0xf] }
  0x4c   : > { %v2295_v26 = vor.u32 %v2442_v23, %v2292_v24  ;;  %1131 = vmatpush.bf16.msra.mxu1 %v2387_v25  ;;  %v2434_v23 = vld [vmem:[%s3258_s17 + $0x38] sm:$0xf0]  ;;  %v2350_v24 = vld [vmem:[%s3258_s17 + $0xf0] sm:$0xf] }
  0x4d   : > { %v2255_v25 = vor.u32 %v2434_v23, %v2254_v22  ;;  %v3323_v58 = vsel %vm480_vm0, %v3276_v15, %v479_v39 }
  0x4e   : > { %1180 = vmatpush.bf16.msra.mxu2 %v2295_v26  ;;  %v2458_v26 = vld [vmem:[%s3258_s17 + $0xf8] sm:$0xf0] }
  0x4f   : > { %1083 = vmatpush.bf16.msra.mxu0 %v2279_v40  ;;  %v2351_v33 = vor.u32 %v2458_v26, %v2350_v24  ;;  %v2355_v40 = vor.u32 %v2457_v35, %v2352_v38  ;;  %v2451_v24 = vld [vmem:[%s3258_s17 + $0xc4] sm:$0xf] }
  0x50   : > { %1132 = vmatpush.bf16.msra.mxu1 %v2375_v48  ;;  %v2243_v48 = vor.u32 %v2431_v42, %v2242_v41 }
  0x51   : > { %473 = vadd.xlane.f32.xlu0 %v472_v27  ;;  %v2466_v27 = vld [vmem:[%s3258_s17 + $0x13c] sm:$0xf] }
  0x52   : > { %v2391_v34 = vor.u32 %v2466_v27, %v2388_v28  ;;  %1181 = vmatpush.bf16.msra.mxu2 %v2283_v51  ;;  %v2433_v27 = vld [vmem:[%s3258_s17 + $0x34] sm:$0xf]  ;;  %v2256_v28 = vld [vmem:[%s3258_s17 + $0x3c] sm:$0xf0]  ;;  %v2455_v51 = vld [vmem:[%s3258_s17 + $0xe0] sm:$0xf0] }
  0x53   : > { %1084 = vmatpush.bf16.msra.mxu0 %v2267_v63  ;;  %v2339_v54 = vor.u32 %v2455_v51, %v2338_v43  ;;  %v2343_v63 = vor.u32 %v2454_v56, %v2340_v57 }
  0x54   : > { %1229 = vmatpush.bf16.msra.mxu3 %v2391_v34  ;;  %1133 = vmatpush.bf16.msra.mxu1 %v2363_v7  ;;  %v2259_v34 = vor.u32 %v2433_v27, %v2256_v28  ;;  %v2326_v7 = vld [vmem:[%s3258_s17 + $0xc0] sm:$0xf] }
  0x55   : > { %v2327_v15 = vor.u32 %v2452_v17, %v2326_v7 }
  0x56   : > { %1182 = vmatpush.bf16.msra.mxu2 %v2271_v11 }
  0x57   : > { %1085 = vmatpush.bf16.msra.mxu0 %v2255_v25  ;;  %v2328_v25 = vld [vmem:[%s3258_s17 + $0xcc] sm:$0xf0] }
  0x58   : > { %1230 = vmatpush.bf16.msra.mxu3 %v2379_v55  ;;  %1134 = vmatpush.bf16.msra.mxu1 %v2351_v33  ;;  %v2247_v55 = vor.u32 %v2430_v52, %v2244_v53  ;;  %v2331_v26 = vor.u32 %v2451_v24, %v2328_v25  ;;  %v706_v25 = vld [vmem:[%s4319_s1] sm:$0x3] }
  0x5a   : > { %1183 = vmatpush.bf16.msra.mxu2 %v2259_v34 }
  0x5b   : > { %1086 = vmatpush.bf16.msra.mxu0 %v2243_v48 }
  0x5c   : > { %1231 = vmatpush.bf16.msra.mxu3 %v2367_v19  ;;  %1135 = vmatpush.bf16.msra.mxu1 %v2339_v54  ;;  %v2232_v19 = vld [vmem:[%s3258_s17 + $0xc] sm:$0xf0] }
  0x5d   : > { %v2235_v23 = vor.u32 %v2427_v18, %v2232_v19 }
  0x5e   : > { %1184 = vmatpush.bf16.msra.mxu2 %v2247_v55 }
  0x5f   : > { %1087 = vmatpush.bf16.msra.mxu0 %v2231_v16 }
  0x60   : > { %1232 = vmatpush.bf16.msra.mxu3 %v2355_v40  ;;  %1136 = vmatpush.bf16.msra.mxu1 %v2327_v15 }
  0x62   : > { %1185 = vmatpush.bf16.msra.mxu2 %v2235_v23 }
  0x64   : > { %1233 = vmatpush.bf16.msra.mxu3 %v2343_v63 }
  0x68   : > { %1234 = vmatpush.bf16.msra.mxu3 %v2331_v26 }
  0x9b   : > { %v435_v3 = vpop.xlane.xlu1 %434 }
  0x9c   : > { %v429_v11 = vpop.xlane.xlu0 %428  ;;  %v484_v27 = vmul.f32 %v3323_v58, %v435_v3 }
  0x9d   : > { %v482_v22 = vmul.f32 %v3323_v58, %v429_v11 }
  0x9e   : > { %v441_v33 = vpop.xlane.xlu2 %440  ;;  %v3335_v34 = vadd.f32 1e-05, %v484_v27 }
  0x9f   : > { %v498_v28 = vadd.f32 1e-05, %v482_v22  ;;  %v486_v55 = vmul.f32 %v3323_v58, %v441_v33  ;;  %v3365_v33 = vperm.slane %v706_v25, 0 }
  0xa0   : > { %vm540_vm9 = vweird.f32 %v3335_v34 }
  0xa1   : > { %2685 = vrsqrt.f32 %v498_v28  ;;  %v3351_v7 = vadd.f32 1e-05, %v486_v55  ;;  %vm520_vm2 = vweird.f32 %v498_v28 }
  0xa2   : > { %2687 = vrsqrt.f32 %v3335_v34 }
  0xa3   : > { %v438_v35 = vpop.xlane.xlu1 %437  ;;  %vm560_vm13 = vweird.f32 %v3351_v7 }
  0xa4   : > { %v485_v38 = vmul.f32 %v3323_v58, %v438_v35  ;;  %v432_v39 = vpop.xlane.xlu0 %431 }
  0xa5   : > { %v483_v40 = vmul.f32 %v3323_v58, %v432_v39 }
  0xa6   : > { %v3339_v41 = vadd.f32 1e-05, %v485_v38  ;;  %v444_v53 = vpop.xlane.xlu2 %443  ;;  %v3368_v38 = vperm.slane %v706_v25, 1 }
  0xa7   : > { %v2686_v42 = vpop.eup %2685  ;;  %v499_v43 = vadd.f32 1e-05, %v483_v40  ;;  %v487_v3 = vmul.f32 %v3323_v58, %v444_v53 }
  0xa8   : > { %v515_v48 = vmul.f32 %v2686_v42, %v498_v28  ;;  %2689 = vrsqrt.f32 %v3339_v41  ;;  %v3343_v54 = vpop.eup %2687  ;;  %vm521_vm1 = vweird.f32 %v2686_v42  ;;  %vm550_vm7 = vweird.f32 %v3339_v41 }
  0xa9   : > { %2691 = vrsqrt.f32 %v499_v43  ;;  %v535_v11 = vmul.f32 %v3343_v54, %v3335_v34  ;;  %v3355_v18 = vadd.f32 1e-05, %v487_v3  ;;  %vm522_vm3 = vmor %vm520_vm2, %vm521_vm1  ;;  %vm530_vm5 = vweird.f32 %v499_v43 }
  0xaa   : > { %v516_v51 = vmul.f32 %v2686_v42, %v515_v48  ;;  %2693 = vrsqrt.f32 %v3351_v7  ;;  %vm541_vm10 = vweird.f32 %v3343_v54 }
  0xab   : > { %v536_v15 = vmul.f32 %v3343_v54, %v535_v11  ;;  %2695 = vrsqrt.f32 %v3355_v18  ;;  %v450_v39 = vpop.xlane.xlu1 %449  ;;  %vm542_vm12 = vmor %vm540_vm9, %vm541_vm10  ;;  %vm570_vm15 = vweird.f32 %v3355_v18 }
  0xac   : > { %v517_v52 = vmul.f32 0.5, %v516_v51  ;;  %v447_v55 = vpop.xlane.xlu0 %446 }
  0xad   : > { %v537_v40 = vmul.f32 0.5, %v536_v15  ;;  %v488_v11 = vmul.f32 %v3323_v58, %v447_v55 }
  0xae   : > { %v3346_v56 = vpop.eup %2689  ;;  %v518_v57 = vsub.f32 1.5, %v517_v52 }
  0xaf   : > { %v2692_v63 = vpop.eup %2691  ;;  %v545_v4 = vmul.f32 %v3346_v56, %v3339_v41  ;;  %vm551_vm8 = vweird.f32 %v3346_v56 }
  0xb0   : > { %v525_v6 = vmul.f32 %v2692_v63, %v499_v43  ;;  %v519_v16 = vmul.f32 %v2686_v42, %v518_v57  ;;  %vm531_vm4 = vweird.f32 %v2692_v63  ;;  %v3370_v48 = vpop.eup %2693  ;;  %v489_v43 = vmul.f32 %v3323_v58, %v450_v39  ;;  %vm552_vm11 = vmor %vm550_vm7, %vm551_vm8 }
  0xb1   : > { %v546_v19 = vmul.f32 %v3346_v56, %v545_v4  ;;  %vm532_vm6 = vmor %vm530_vm5, %vm531_vm4  ;;  %v538_v4 = vsub.f32 1.5, %v537_v40  ;;  %vm561_vm14 = vweird.f32 %v3370_v48 }
  0xb2   : > { %v526_v17 = vmul.f32 %v2692_v63, %v525_v6  ;;  %v523_v23 = vsel %vm522_vm3, %v2686_v42, %v519_v16  ;;  %vm562_vm1 = vmor %vm560_vm13, %vm561_vm14 }
  0xb3   : > { %v547_v26 = vmul.f32 0.5, %v546_v19  ;;  %v674_v28 = vmul.f32 %v523_v23, %v3055_v2  ;;  %v675_v35 = vmul.f32 %v523_v23, %v3064_v5  ;;  %v3375_v2 = vpop.eup %2695  ;;  %v539_v19 = vmul.f32 %v3343_v54, %v538_v4 }
  0xb4   : > { %v527_v22 = vmul.f32 0.5, %v526_v17  ;;  %v565_v41 = vmul.f32 %v3375_v2, %v3355_v18  ;;  %v3397_v17 = vadd.f32 1e-05, %v489_v43  ;;  %vm571_vm0 = vweird.f32 %v3375_v2 }
  0xb5   : > { %v548_v53 = vsub.f32 1.5, %v547_v26  ;;  %v712_v57 = vmul.f32 %v3365_v33, %v674_v28  ;;  %v713_v3 = vmul.f32 %v3368_v38, %v675_v35  ;;  %vm572_vm2 = vmor %vm570_vm15, %vm571_vm0 }
  0xb6   : > { %v528_v24 = vsub.f32 1.5, %v527_v22  ;;  %v3403_v22 = vadd.f32 1e-05, %v488_v11  ;;  %v566_v23 = vmul.f32 %v3375_v2, %v565_v41  ;;  %2697 = vrsqrt.f32 %v3397_v17 }
  0xb7   : > { %v549_v16 = vmul.f32 %v3346_v56, %v548_v53  ;;  %v456_v53 = vpop.xlane.xlu0 %455  ;;  %vm590_vm3 = vweird.f32 %v3397_v17 }
  0xb8   : > { %v529_v27 = vmul.f32 %v2692_v63, %v528_v24  ;;  %v543_v24 = vsel %vm542_vm12, %v3343_v54, %v539_v19  ;;  %2699 = vrsqrt.f32 %v3403_v22  ;;  %v567_v28 = vmul.f32 0.5, %v566_v23  ;;  %v453_v54 = vpop.xlane.xlu2 %452 }
  0xb9   : > { %v553_v15 = vsel %vm552_vm11, %v3346_v56, %v549_v16  ;;  %v678_v35 = vmul.f32 %v543_v24, %v3045_v0  ;;  %v679_v39 = vmul.f32 %v543_v24, %v3050_v1  ;;  %vm580_vm5 = vweird.f32 %v3403_v22 }
  0xba   : > { %v533_v42 = vsel %vm532_vm6, %v2692_v63, %v529_v27  ;;  %v680_v26 = vmul.f32 %v553_v15, %v3073_v8  ;;  %v681_v27 = vmul.f32 %v553_v15, %v3078_v9  ;;  %v490_v9 = vmul.f32 %v3323_v58, %v453_v54 }
  0xbb   : > { %v676_v51 = vmul.f32 %v533_v42, %v3088_v12  ;;  %v677_v52 = vmul.f32 %v533_v42, %v3093_v13  ;;  %v555_v12 = vmul.f32 %v3370_v48, %v3351_v7  ;;  %v716_v0 = vmul.f32 %v3365_v33, %v678_v35 }
  0xbc   : > { %v3414_v40 = vpop.eup %2697  ;;  %v718_v42 = vmul.f32 %v3365_v33, %v680_v26  ;;  %v717_v1 = vmul.f32 %v3368_v38, %v679_v39  ;;  %v3443_v4 = vadd.f32 1e-05, %v490_v9  ;;  %v459_v26 = vpop.xlane.xlu1 %458 }
  0xbd   : > { %v714_v5 = vmul.f32 %v3365_v33, %v676_v51  ;;  %v715_v63 = vmul.f32 %v3368_v38, %v677_v52  ;;  %v556_v34 = vmul.f32 %v3370_v48, %v555_v12  ;;  %v719_v51 = vmul.f32 %v3368_v38, %v681_v27 }
  0xbe   : > { %v568_v52 = vsub.f32 1.5, %v567_v28  ;;  %v3418_v43 = vpop.eup %2699  ;;  %v585_v8 = vmul.f32 %v3414_v40, %v3397_v17  ;;  %2701 = vrsqrt.f32 %v3443_v4  ;;  %vm591_vm4 = vweird.f32 %v3414_v40 }
  0xbf   : > { %v3385_v13 = vpack.c.bf16 %v714_v5, %v712_v57  ;;  %v3387_v6 = vpack.c.bf16 %v715_v63, %v713_v3  ;;  %v557_v25 = vmul.f32 0.5, %v556_v34  ;;  %v3430_v57 = vpack.c.bf16 %v718_v42, %v716_v0  ;;  %vm592_vm7 = vmor %vm590_vm3, %vm591_vm4 }
  0xc0   : > { %v3432_v7 = vpack.c.bf16 %v719_v51, %v717_v1  ;;  %v491_v5 = vmul.f32 %v3323_v58, %v456_v53  ;;  %v569_v3 = vmul.f32 %v3375_v2, %v568_v52  ;;  %v575_v18 = vmul.f32 %v3418_v43, %v3403_v22 }
  0xc1   : > { %1088 = vmatmul.bf16.vlgmr.msra.gmra.mxu0 %v3385_v13  ;;  %1137 = vmatmul.bf16.vlgmr.msra.gmra.mxu1 %v3387_v6  ;;  %v558_v56 = vsub.f32 1.5, %v557_v25  ;;  %v586_v63 = vmul.f32 %v3414_v40, %v585_v8  ;;  %v462_v25 = vpop.xlane.xlu2 %461  ;;  %vm581_vm6 = vweird.f32 %v3418_v43  ;;  %vm600_vm9 = vweird.f32 %v3443_v4 }
  0xc2   : > { %1186 = vmatmul.bf16.vlgmr.msra.gmra.mxu2 %v3385_v13  ;;  %1235 = vmatmul.bf16.vlgmr.msra.gmra.mxu3 %v3387_v6  ;;  %v3446_v11 = vadd.f32 1e-05, %v491_v5  ;;  %v573_v16 = vsel %vm572_vm2, %v3375_v2, %v569_v3  ;;  %v576_v41 = vmul.f32 %v3418_v43, %v575_v18  ;;  %v493_v39 = vmul.f32 %v3323_v58, %v462_v25  ;;  %vm582_vm8 = vmor %vm580_vm5, %vm581_vm6 }
  0xc3   : > { %v559_v55 = vmul.f32 %v3370_v48, %v558_v56  ;;  %v587_v19 = vmul.f32 0.5, %v586_v63  ;;  %v684_v15 = vmul.f32 %v573_v16, %v3111_v20  ;;  %v685_v24 = vmul.f32 %v573_v16, %v3116_v21 }
  0xc4   : > { %2703 = vrsqrt.f32 %v3446_v11  ;;  %v3461_v56 = vpop.eup %2701  ;;  %v3475_v52 = vadd.f32 1e-05, %v493_v39  ;;  %vm610_vm11 = vweird.f32 %v3446_v11 }
  0xc5   : > { %v563_v12 = vsel %vm562_vm1, %v3370_v48, %v559_v55  ;;  %v577_v48 = vmul.f32 0.5, %v576_v41  ;;  %v588_v27 = vsub.f32 1.5, %v587_v19  ;;  %v722_v28 = vmul.f32 %v3365_v33, %v684_v15  ;;  %v468_v41 = vpop.xlane.xlu1 %467  ;;  %v465_v19 = vpop.xlane.xlu0 %464 }
  0xc6   : > { %v682_v34 = vmul.f32 %v563_v12, %v3083_v10  ;;  %v683_v23 = vmul.f32 %v563_v12, %v3098_v14  ;;  %v723_v10 = vmul.f32 %v3368_v38, %v685_v24  ;;  %v492_v14 = vmul.f32 %v3323_v58, %v459_v26 }
  0xc7   : > { %v578_v20 = vsub.f32 1.5, %v577_v48  ;;  %v589_v42 = vmul.f32 %v3414_v40, %v588_v27  ;;  %v595_v17 = vmul.f32 %v3461_v56, %v3443_v4  ;;  %2705 = vrsqrt.f32 %v3475_v52 }
  0xc8   : > { %v720_v2 = vmul.f32 %v3365_v33, %v682_v34  ;;  %v721_v35 = vmul.f32 %v3368_v38, %v683_v23  ;;  %v3482_v22 = vadd.f32 1e-05, %v492_v14  ;;  %vm601_vm10 = vweird.f32 %v3461_v56 }
  0xc9   : > { %v579_v53 = vmul.f32 %v3418_v43, %v578_v20  ;;  %v593_v1 = vsel %vm592_vm7, %v3414_v40, %v589_v42  ;;  %v596_v9 = vmul.f32 %v3461_v56, %v595_v17  ;;  %v494_v25 = vmul.f32 %v3323_v58, %v465_v19  ;;  %vm602_vm13 = vmor %vm600_vm9, %vm601_vm10 }
  0xca   : > { %v3464_v21 = vpop.eup %2703  ;;  %v3471_v51 = vpack.c.bf16 %v722_v28, %v720_v2  ;;  %v3473_v54 = vpack.c.bf16 %v723_v10, %v721_v35  ;;  %2707 = vrsqrt.f32 %v3482_v22  ;;  %v688_v3 = vmul.f32 %v593_v1, %v3129_v29 }
  0xcb   : > { %v605_v0 = vmul.f32 %v3464_v21, %v3446_v11  ;;  %v583_v8 = vsel %vm582_vm8, %v3418_v43, %v579_v53  ;;  %v689_v63 = vmul.f32 %v593_v1, %v3134_v30  ;;  %v597_v12 = vmul.f32 0.5, %v596_v9 }
  0xcc   : > { %v686_v5 = vmul.f32 %v583_v8, %v3139_v31  ;;  %v687_v18 = vmul.f32 %v583_v8, %v3144_v32  ;;  %v726_v15 = vmul.f32 %v3365_v33, %v688_v3  ;;  %v495_v32 = vmul.f32 %v3323_v58, %v468_v41 }
  0xcd   : > { %v606_v55 = vmul.f32 %v3464_v21, %v605_v0  ;;  %v3498_v16 = vpop.eup %2705  ;;  %v727_v29 = vmul.f32 %v3368_v38, %v689_v63  ;;  %v598_v23 = vsub.f32 1.5, %v597_v12  ;;  %vm611_vm12 = vweird.f32 %v3464_v21 }
  0xce   : > { %v724_v34 = vmul.f32 %v3365_v33, %v686_v5  ;;  %v725_v31 = vmul.f32 %v3368_v38, %v687_v18  ;;  %v625_v24 = vmul.f32 %v3498_v16, %v3475_v52  ;;  %v3522_v28 = vadd.f32 1e-05, %v495_v32  ;;  %vm612_vm14 = vmor %vm610_vm11, %vm611_vm12  ;;  %v2474_v32 = vld [vmem:[%s3258_s17 + $0x178] sm:$0xf0] }
  0xcf   : > { %v607_v40 = vmul.f32 0.5, %v606_v55  ;;  %v599_v27 = vmul.f32 %v3461_v56, %v598_v23  ;;  %v3528_v11 = vadd.f32 1e-05, %v494_v25  ;;  %vm630_vm15 = vweird.f32 %v3475_v52  ;;  %v2418_v23 = vld [vmem:[%s3258_s17 + $0x170] sm:$0xf] }
  0xd0   : > { %v3500_v43 = vpop.eup %2707  ;;  %v3516_v26 = vpack.c.bf16 %v726_v15, %v724_v34  ;;  %v3518_v4 = vpack.c.bf16 %v727_v29, %v725_v31  ;;  %v626_v35 = vmul.f32 %v3498_v16, %v625_v24  ;;  %2709 = vrsqrt.f32 %v3522_v28  ;;  %v2310_v24 = vld [vmem:[%s3258_s17 + $0x98] sm:$0xf] }
  0xd1   : > { %1093 = vmatmul.bf16.gmra.mxu0 %v3430_v57  ;;  %1142 = vmatmul.bf16.gmra.mxu1 %v3432_v7  ;;  %v608_v30 = vsub.f32 1.5, %v607_v40  ;;  %v615_v48 = vmul.f32 %v3500_v43, %v3482_v22  ;;  %v603_v39 = vsel %vm602_vm13, %v3461_v56, %v599_v27  ;;  %2711 = vrsqrt.f32 %v3528_v11  ;;  %v471_v56 = vpop.xlane.xlu2 %470 }
  0xd2   : > { %1191 = vmatmul.bf16.gmra.mxu2 %v3430_v57  ;;  %1240 = vmatmul.bf16.gmra.mxu3 %v3432_v7  ;;  %v627_v14 = vmul.f32 0.5, %v626_v35  ;;  %v690_v53 = vmul.f32 %v603_v39, %v3153_v36  ;;  %v691_v0 = vmul.f32 %v603_v39, %v3158_v37  ;;  %vm631_vm0 = vweird.f32 %v3498_v16  ;;  %v474_v36 = vpop.xlane.xlu0 %473  ;;  %v2406_v35 = vld [vmem:[%s3258_s17 + $0x158] sm:$0xf] }
  0xd3   : > { %v609_v2 = vmul.f32 %v3464_v21, %v608_v30  ;;  %v616_v10 = vmul.f32 %v3500_v43, %v615_v48  ;;  %vm620_vm1 = vweird.f32 %v3482_v22  ;;  %vm621_vm2 = vweird.f32 %v3500_v43  ;;  %vm632_vm3 = vmor %vm630_vm15, %vm631_vm0  ;;  %v2447_v48 = vld [vmem:[%s3258_s17 + $0xa0] sm:$0xf0] }
  0xd4   : > { %v628_v8 = vsub.f32 1.5, %v627_v14  ;;  %v728_v37 = vmul.f32 %v3365_v33, %v690_v53  ;;  %v496_v22 = vmul.f32 %v3323_v58, %v471_v56  ;;  %v497_v18 = vmul.f32 %v3323_v58, %v474_v36  ;;  %vm622_vm4 = vmor %vm620_vm1, %vm621_vm2 }
  0xd5   : > { %v613_v20 = vsel %vm612_vm14, %v3464_v21, %v609_v2  ;;  %v617_v42 = vmul.f32 0.5, %v616_v10  ;;  %v2419_v2 = vor.u32 %v2474_v32, %v2418_v23  ;;  %v2471_v10 = vld [vmem:[%s3258_s17 + $0x160] sm:$0xf0]  ;;  %v2311_v14 = vor.u32 %v2447_v48, %v2310_v24  ;;  %v2274_v23 = vld [vmem:[%s3258_s17 + $0x50] sm:$0xf] }
  0xd6   : > { %v692_v17 = vmul.f32 %v613_v20, %v3181_v46  ;;  %v693_v1 = vmul.f32 %v613_v20, %v3186_v47  ;;  %v3540_v55 = vpop.eup %2709  ;;  %v729_v47 = vmul.f32 %v3368_v38, %v691_v0  ;;  %v629_v52 = vmul.f32 %v3498_v16, %v628_v8  ;;  %v2394_v0 = vld [vmem:[%s3258_s17 + $0x140] sm:$0xf]  ;;  %v2370_v32 = vld [vmem:[%s3258_s17 + $0x110] sm:$0xf] }
  0xd7   : > { %v618_v9 = vsub.f32 1.5, %v617_v42  ;;  %v3546_v21 = vpop.eup %2711  ;;  %v645_v63 = vmul.f32 %v3540_v55, %v3522_v28  ;;  %v3568_v34 = vadd.f32 1e-05, %v496_v22  ;;  %v3570_v15 = vadd.f32 1e-05, %v497_v18  ;;  %1325 = vmatpush.bf16.msrb.mxu1 %v2419_v2 }
  0xd8   : > { %v730_v46 = vmul.f32 %v3365_v33, %v692_v17  ;;  %v731_v5 = vmul.f32 %v3368_v38, %v693_v1  ;;  %v635_v12 = vmul.f32 %v3546_v21, %v3528_v11  ;;  %v633_v19 = vsel %vm632_vm3, %v3498_v16, %v629_v52  ;;  %v2322_v16 = vld [vmem:[%s3258_s17 + $0xb0] sm:$0xf]  ;;  %v2444_v17 = vld [vmem:[%s3258_s17 + $0x88] sm:$0xf0]  ;;  %v2382_v22 = vld [vmem:[%s3258_s17 + $0x128] sm:$0xf] }
  0xd9   : > { %v619_v3 = vmul.f32 %v3500_v43, %v618_v9  ;;  %v646_v31 = vmul.f32 %v3540_v55, %v645_v63  ;;  %v696_v27 = vmul.f32 %v633_v19, %v3191_v49  ;;  %2713 = vrsqrt.f32 %v3568_v34  ;;  %v2298_v49 = vld [vmem:[%s3258_s17 + $0x80] sm:$0xf]  ;;  %v2468_v1 = vld [vmem:[%s3258_s17 + $0x148] sm:$0xf0]  ;;  %v2465_v18 = vld [vmem:[%s3258_s17 + $0x130] sm:$0xf0] }
  0xda   : > { %v3560_v40 = vpack.c.bf16 %v730_v46, %v728_v37  ;;  %v3562_v41 = vpack.c.bf16 %v731_v5, %v729_v47  ;;  %v636_v29 = vmul.f32 %v3546_v21, %v635_v12  ;;  %v697_v20 = vmul.f32 %v633_v19, %v3196_v50  ;;  %v2286_v5 = vld [vmem:[%s3258_s17 + $0x68] sm:$0xf]  ;;  %v2435_v2 = vld [vmem:[%s3258_s17 + $0x40] sm:$0xf0] }
  0xdb   : > { %v623_v58 = vsel %vm622_vm4, %v3500_v43, %v619_v3  ;;  %v2450_v43 = vld [vmem:[%s3258_s17 + $0xb8] sm:$0xf0]  ;;  %v647_v42 = vmul.f32 0.5, %v646_v31  ;;  %2715 = vrsqrt.f32 %v3570_v15  ;;  %v734_v9 = vmul.f32 %v3365_v33, %v696_v27  ;;  %v2441_v3 = vld [vmem:[%s3258_s17 + $0x70] sm:$0xf0] }
  0xdc   : > { %v2323_v30 = vor.u32 %v2450_v43, %v2322_v16  ;;  %v694_v25 = vmul.f32 %v623_v58, %v3171_v44  ;;  %v695_v39 = vmul.f32 %v623_v58, %v3176_v45  ;;  %v637_v53 = vmul.f32 0.5, %v636_v29  ;;  %v2462_v27 = vld [vmem:[%s3258_s17 + $0x118] sm:$0xf0] }
  0xdd   : > { %v2407_v44 = vor.u32 %v2471_v10, %v2406_v35  ;;  %v2299_v50 = vor.u32 %v2444_v17, %v2298_v49  ;;  %v648_v56 = vsub.f32 1.5, %v647_v42  ;;  %v735_v37 = vmul.f32 %v3368_v38, %v697_v20  ;;  %v2358_v35 = vld [vmem:[%s3258_s17 + $0xf8] sm:$0xf]  ;;  %v2459_v10 = vld [vmem:[%s3258_s17 + $0x100] sm:$0xf0] }
  0xde   : > { %1276 = vmatpush.bf16.msrb.mxu0 %v2323_v30  ;;  %v732_v8 = vmul.f32 %v3365_v33, %v694_v25  ;;  %v733_v45 = vmul.f32 %v3368_v38, %v695_v39  ;;  %v638_v36 = vsub.f32 1.5, %v637_v53  ;;  %v2395_v46 = vor.u32 %v2468_v1, %v2394_v0  ;;  %v2438_v30 = vld [vmem:[%s3258_s17 + $0x58] sm:$0xf0]  ;;  %v2250_v0 = vld [vmem:[%s3258_s17 + $0x20] sm:$0xf] }
  0xdf   : > { %1326 = vmatpush.bf16.msrb.mxu1 %v2407_v44  ;;  %v3598_v47 = vpop.eup %2713  ;;  %vm650_vm5 = vweird.f32 %v3522_v28  ;;  %vm651_vm6 = vweird.f32 %v3540_v55  ;;  %vm640_vm7 = vweird.f32 %v3528_v11  ;;  %vm641_vm8 = vweird.f32 %v3546_v21  ;;  %v2432_v1 = vld [vmem:[%s3258_s17 + $0x28] sm:$0xf0] }
  0xe0   : > { %v649_v63 = vmul.f32 %v3540_v55, %v648_v56  ;;  %vm652_vm9 = vmor %vm650_vm5, %vm651_vm6  ;;  %v639_v12 = vmul.f32 %v3546_v21, %v638_v36  ;;  %v3612_v28 = vpack.c.bf16 %v734_v9, %v732_v8  ;;  %v3614_v19 = vpack.c.bf16 %v735_v37, %v733_v45  ;;  %v2346_v8 = vld [vmem:[%s3258_s17 + $0xe0] sm:$0xf]  ;;  %v2456_v9 = vld [vmem:[%s3258_s17 + $0xe8] sm:$0xf0] }
  0xe1   : > { %1098 = vmatmul.bf16.gmra.mxu0 %v3471_v51  ;;  %1147 = vmatmul.bf16.gmra.mxu1 %v3473_v54  ;;  %v3603_v52 = vpop.eup %2715  ;;  %vm642_vm10 = vmor %vm640_vm7, %vm641_vm8  ;;  %v655_v11 = vmul.f32 %v3598_v47, %v3568_v34  ;;  %v2287_v31 = vor.u32 %v2441_v3, %v2286_v5  ;;  %v2383_v29 = vor.u32 %v2465_v18, %v2382_v22  ;;  %vm660_vm11 = vweird.f32 %v3568_v34  ;;  %v2238_v37 = vld [vmem:[%s3258_s17 + $0x8] sm:$0xf] }
  0xe2   : > { %1196 = vmatmul.bf16.gmra.mxu2 %v3471_v51  ;;  %1245 = vmatmul.bf16.gmra.mxu3 %v3473_v54  ;;  %v665_v58 = vmul.f32 %v3603_v52, %v3570_v15  ;;  %v653_v16 = vsel %vm652_vm9, %v3540_v55, %v649_v63  ;;  %v643_v43 = vsel %vm642_vm10, %v3546_v21, %v639_v12  ;;  %v2262_v55 = vld [vmem:[%s3258_s17 + $0x38] sm:$0xf]  ;;  %vm661_vm12 = vweird.f32 %v3598_v47  ;;  %v2334_v5 = vld [vmem:[%s3258_s17 + $0xc8] sm:$0xf]  ;;  %v2453_v63 = vld [vmem:[%s3258_s17 + $0xd0] sm:$0xf0] }
  0xe3   : > { %1277 = vmatpush.bf16.msrb.mxu0 %v2311_v14  ;;  %1327 = vmatpush.bf16.msrb.mxu1 %v2395_v46  ;;  %v656_v24 = vmul.f32 %v3598_v47, %v655_v11  ;;  %v2275_v25 = vor.u32 %v2438_v30, %v2274_v23  ;;  %v2371_v21 = vor.u32 %v2462_v27, %v2370_v32  ;;  %vm670_vm13 = vweird.f32 %v3570_v15  ;;  %v2429_v46 = vld [vmem:[%s3258_s17 + $0x10] sm:$0xf0]  ;;  %vm662_vm15 = vmor %vm660_vm11, %vm661_vm12  ;;  %v2783_v23 = vld [vmem:[%s4353_s0 + $0xe8] sm:$0xff]  ;;  %s345_s17 = sand.u32 1, %s2907_s28  }
  0xe4   : > { %v666_v48 = vmul.f32 %v3603_v52, %v665_v58  ;;  %v698_v39 = vmul.f32 %v643_v43, %v3223_v61  ;;  %v700_v20 = vmul.f32 %v653_v16, %v3213_v59  ;;  %v699_v14 = vmul.f32 %v643_v43, %v3228_v62  ;;  %s2222_s21 = sshll.u32 %s345_s17, 6  ;;  %s2059_s10 = scalar_lea.sflag [#allocation4], %s345_s17 }
  0xe5   : > { %v701_v42 = vmul.f32 %v653_v16, %v3218_v60  ;;  %v657_v53 = vmul.f32 0.5, %v656_v24  ;;  %v2263_v49 = vor.u32 %v2435_v2, %v2262_v55  ;;  %v2359_v17 = vor.u32 %v2459_v10, %v2358_v35  ;;  %v2782_v16 = vld [vmem:[%s4353_s0 + $0xf0] sm:$0xff]  ;;  %s3813_s22 = scalar_lea.vmem [#allocation7], %s2222_s21 }
  0xe6   : > { %v667_v44 = vmul.f32 0.5, %v666_v48  ;;  %v736_v61 = vmul.f32 %v3365_v33, %v698_v39  ;;  %v738_v59 = vmul.f32 %v3365_v33, %v700_v20  ;;  %v737_v62 = vmul.f32 %v3368_v38, %v699_v14 }
  0xe7   : > { %1278 = vmatpush.bf16.msrb.mxu0 %v2299_v50  ;;  %1328 = vmatpush.bf16.msrb.mxu1 %v2383_v29  ;;  %v739_v60 = vmul.f32 %v3368_v38, %v701_v42  ;;  %v2251_v45 = vor.u32 %v2432_v1, %v2250_v0  ;;  %v2347_v50 = vor.u32 %v2456_v9, %v2346_v8  ;;  %v658_v56 = vsub.f32 1.5, %v657_v53  ;;  %v2781_v29 = vld [vmem:[%s4353_s0 + $0xe0] sm:$0xff] }
  0xe8   : > { %v668_v36 = vsub.f32 1.5, %v667_v44  ;;  %vm671_vm14 = vweird.f32 %v3603_v52  ;;  %v3655_v3 = vpack.c.bf16 %v738_v59, %v736_v61  ;;  %v2239_v18 = vor.u32 %v2429_v46, %v2238_v37 }
  0xe9   : > { %v3657_v22 = vpack.c.bf16 %v739_v60, %v737_v62  ;;  %v659_v12 = vmul.f32 %v3598_v47, %v658_v56  ;;  %v2335_v11 = vor.u32 %v2453_v63, %v2334_v5  ;;  %vm672_vm0 = vmor %vm670_vm13, %vm671_vm14 }
  0xea   : > { %v669_v34 = vmul.f32 %v3603_v52, %v668_v36 }
  0xeb   : > { %1279 = vmatpush.bf16.msrb.mxu0 %v2287_v31  ;;  %1329 = vmatpush.bf16.msrb.mxu1 %v2371_v21  ;;  %v663_v58 = vsel %vm662_vm15, %v3598_v47, %v659_v12  ;;  %v2784_v47 = vld [vmem:[%s4353_s0 + $0xf8] sm:$0xff] }
  0xec   : > { %v673_v31 = vsel %vm672_vm0, %v3603_v52, %v669_v34  ;;  %v702_v15 = vmul.f32 %v2781_v29, %v663_v58  ;;  %v703_v30 = vmul.f32 %v2783_v23, %v663_v58 }
  0xed   : > { %v704_v43 = vmul.f32 %v2782_v16, %v673_v31  ;;  %v705_v52 = vmul.f32 %v2784_v47, %v673_v31 }
  0xee   : > { %v740_v32 = vmul.f32 %v3365_v33, %v702_v15  ;;  %v741_v48 = vmul.f32 %v3368_v38, %v703_v30 }
  0xef   : > { %1280 = vmatpush.bf16.msrb.mxu0 %v2275_v25  ;;  %1330 = vmatpush.bf16.msrb.mxu1 %v2359_v17  ;;  %v742_v24 = vmul.f32 %v3365_v33, %v704_v43  ;;  %v743_v25 = vmul.f32 %v3368_v38, %v705_v52 }
  0xf1   : > { %1103 = vmatmul.bf16.gmra.mxu0 %v3516_v26  ;;  %1152 = vmatmul.bf16.gmra.mxu1 %v3518_v4  ;;  %v3686_v27 = vpack.c.bf16 %v742_v24, %v740_v32  ;;  %v3688_v55 = vpack.c.bf16 %v743_v25, %v741_v48 }
  0xf2   : > { %1201 = vmatmul.bf16.gmra.mxu2 %v3516_v26  ;;  %1250 = vmatmul.bf16.gmra.mxu3 %v3518_v4 }
  0xf3   : > { %1281 = vmatpush.bf16.msrb.mxu0 %v2263_v49  ;;  %1331 = vmatpush.bf16.msrb.mxu1 %v2347_v50 }
  0xf7   : > { %1282 = vmatpush.bf16.msrb.mxu0 %v2251_v45  ;;  %1332 = vmatpush.bf16.msrb.mxu1 %v2335_v11 }
  0xfb   : > { %1283 = vmatpush.bf16.msrb.mxu0 %v2239_v18 }
 0x101   : > { %1108 = vmatmul.bf16.gmra.mxu0 %v3560_v40  ;;  %1157 = vmatmul.bf16.gmra.mxu1 %v3562_v41 }
 0x102   : > { %1206 = vmatmul.bf16.gmra.mxu2 %v3560_v40  ;;  %1255 = vmatmul.bf16.gmra.mxu3 %v3562_v41 }
 0x111   : > { %1113 = vmatmul.bf16.gmra.mxu0 %v3612_v28  ;;  %1162 = vmatmul.bf16.gmra.mxu1 %v3614_v19 }
 0x112   : > { %1211 = vmatmul.bf16.gmra.mxu2 %v3612_v28  ;;  %1260 = vmatmul.bf16.gmra.mxu3 %v3614_v19 }
 0x121   : > { %1118 = vmatmul.bf16.gmra.mxu0 %v3655_v3  ;;  %1167 = vmatmul.bf16.gmra.mxu1 %v3657_v22 }
 0x122   : > { %1216 = vmatmul.bf16.gmra.mxu2 %v3655_v3  ;;  %1265 = vmatmul.bf16.gmra.mxu3 %v3657_v22 }
 0x131   : > { %1123 = vmatmul.bf16.gmra.mxu0 %v3686_v27  ;;  %1172 = vmatmul.bf16.gmra.mxu1 %v3688_v55 }
 0x132   : > { %1221 = vmatmul.bf16.gmra.mxu2 %v3686_v27  ;;  %1270 = vmatmul.bf16.gmra.mxu3 %v3688_v55 }
 0x13e   : > { %v1089_v21 = vpop.f32.mrf.mxu0  ;;  %v1138_v2 = vpop.f32.mrf.mxu1 }
 0x13f   : > { %v3694_v35 = vadd.f32 %v1138_v2, %v1089_v21 }
 0x141   : > { %4354 = vst [vmem:[#allocation11_spill] sm:$0xff] %v3694_v35  ;;  %1284 = vmatmul.bf16.vlgmr.msrb.gmra.mxu0 %v3385_v13  ;;  %1333 = vmatmul.bf16.vlgmr.msrb.gmra.mxu1 %v3387_v6 }
 0x145   : > { %v1187_v33 = vpop.f32.mrf.mxu2  ;;  %v1236_v38 = vpop.f32.mrf.mxu3 }
 0x146   : > { %v3698_v10 = vadd.f32 %v1236_v38, %v1187_v33  ;;  %v1091_v39 = vpop.f32.mrf.mxu0  ;;  %v1140_v20 = vpop.f32.mrf.mxu1 }
 0x147   : > { %v3700_v14 = vadd.f32 %v1140_v20, %v1091_v39 }
 0x149   : > { %4355 = vst [vmem:[#allocation12_spill] sm:$0xff] %v3700_v14 }
 0x14d   : > { %v3702_v42 = vpop.f32.mrf.mxu2  ;;  %v3704_v53 = vpop.f32.mrf.mxu3 }
 0x14e   : > { %v1094_v44 = vpop.f32.mrf.mxu0  ;;  %v1143_v49 = vpop.f32.mrf.mxu1 }
 0x14f   : > { %v3706_v17 = vadd.f32 %v1143_v49, %v1094_v44 }
 0x151   : > { %4356 = vst [vmem:[#allocation13_spill] sm:$0xff] %v3706_v17  ;;  %1289 = vmatmul.bf16.gmra.mxu0 %v3430_v57  ;;  %1338 = vmatmul.bf16.gmra.mxu1 %v3432_v7 }
 0x155   : > { %v1192_v13 = vpop.f32.mrf.mxu2  ;;  %v1241_v6 = vpop.f32.mrf.mxu3 }
 0x156   : > { %v3710_v0 = vadd.f32 %v1241_v6, %v1192_v13  ;;  %v1096_v1 = vpop.f32.mrf.mxu0  ;;  %v1145_v8 = vpop.f32.mrf.mxu1 }
 0x157   : > { %v3712_v9 = vadd.f32 %v1145_v8, %v1096_v1 }
 0x159   : > { %4357 = vst [vmem:[#allocation14_spill] sm:$0xff] %v3712_v9 }
 0x15d   : > { %v3714_v61 = vpop.f32.mrf.mxu2  ;;  %v3716_v59 = vpop.f32.mrf.mxu3 }
 0x15e   : > { %v1099_v62 = vpop.f32.mrf.mxu0  ;;  %v1148_v60 = vpop.f32.mrf.mxu1 }
 0x15f   : > { %v3718_v45 = vadd.f32 %v1148_v60, %v1099_v62 }
 0x161   : > { %1294 = vmatmul.bf16.gmra.mxu0 %v3471_v51  ;;  %1343 = vmatmul.bf16.gmra.mxu1 %v3473_v54 }
 0x165   : > { %v1197_v57 = vpop.f32.mrf.mxu2  ;;  %v1246_v7 = vpop.f32.mrf.mxu3 }
 0x166   : > { %v3722_v50 = vadd.f32 %v1246_v7, %v1197_v57  ;;  %v1101_v56 = vpop.f32.mrf.mxu0  ;;  %v1150_v36 = vpop.f32.mrf.mxu1 }
 0x167   : > { %v3724_v37 = vadd.f32 %v1150_v36, %v1101_v56 }
 0x16d   : > { %v3726_v46 = vpop.f32.mrf.mxu2  ;;  %v3728_v5 = vpop.f32.mrf.mxu3 }
 0x16e   : > { %v1104_v18 = vpop.f32.mrf.mxu0  ;;  %v1153_v63 = vpop.f32.mrf.mxu1 }
 0x16f   : > { %v3730_v12 = vadd.f32 %v1153_v63, %v1104_v18 }
 0x171   : > { %1299 = vmatmul.bf16.gmra.mxu0 %v3516_v26  ;;  %1348 = vmatmul.bf16.gmra.mxu1 %v3518_v4 }
 0x175   : > { %v1202_v51 = vpop.f32.mrf.mxu2  ;;  %v1251_v54 = vpop.f32.mrf.mxu3 }
 0x176   : > { %v3734_v34 = vadd.f32 %v1251_v54, %v1202_v51  ;;  %v1106_v11 = vpop.f32.mrf.mxu0  ;;  %v1155_v58 = vpop.f32.mrf.mxu1 }
 0x177   : > { %v3736_v31 = vadd.f32 %v1155_v58, %v1106_v11 }
 0x17d   : > { %v3738_v29 = vpop.f32.mrf.mxu2  ;;  %v3740_v15 = vpop.f32.mrf.mxu3 }
 0x17e   : > { %v1109_v16 = vpop.f32.mrf.mxu0  ;;  %v1158_v43 = vpop.f32.mrf.mxu1 }
 0x17f   : > { %v3742_v23 = vadd.f32 %v1158_v43, %v1109_v16 }
 0x181   : > { %1304 = vmatmul.bf16.gmra.mxu0 %v3560_v40  ;;  %1353 = vmatmul.bf16.gmra.mxu1 %v3562_v41 }
 0x185   : > { %v1207_v26 = vpop.f32.mrf.mxu2  ;;  %v1256_v4 = vpop.f32.mrf.mxu3 }
 0x186   : > { %v3746_v30 = vadd.f32 %v1256_v4, %v1207_v26  ;;  %v1111_v47 = vpop.f32.mrf.mxu0  ;;  %v1160_v52 = vpop.f32.mrf.mxu1 }
 0x187   : > { %v3748_v32 = vadd.f32 %v1160_v52, %v1111_v47 }
 0x189   : > { %4358 = vst [vmem:[#allocation15_spill] sm:$0xff] %v3748_v32 }
 0x18d   : > { %v1209_v24 = vpop.f32.mrf.mxu2  ;;  %v1258_v48 = vpop.f32.mrf.mxu3 }
 0x18e   : > { %v1114_v25 = vpop.f32.mrf.mxu0  ;;  %v1163_v21 = vpop.f32.mrf.mxu1 }
 0x18f   : > { %v3750_v2 = vadd.f32 %v1163_v21, %v1114_v25 }
 0x191   : > { %1309 = vmatmul.bf16.gmra.mxu0 %v3612_v28  ;;  %1358 = vmatmul.bf16.gmra.mxu1 %v3614_v19 }
 0x195   : > { %v1212_v40 = vpop.f32.mrf.mxu2  ;;  %v1261_v41 = vpop.f32.mrf.mxu3 }
 0x196   : > { %v1116_v33 = vpop.f32.mrf.mxu0  ;;  %v1165_v38 = vpop.f32.mrf.mxu1  ;;  %v3786_v43 = vadd.f32 %v1261_v41, %v1212_v40 }
 0x197   : > { %v3754_v39 = vadd.f32 %v1165_v38, %v1116_v33 }
 0x199   : > { %4359 = vst [vmem:[#allocation16_spill] sm:$0xff] %v3754_v39 }
 0x19d   : > { %v1214_v20 = vpop.f32.mrf.mxu2  ;;  %v1263_v44 = vpop.f32.mrf.mxu3 }
 0x19e   : > { %v1119_v49 = vpop.f32.mrf.mxu0  ;;  %v1168_v13 = vpop.f32.mrf.mxu1  ;;  %v3766_v56 = vadd.f32 %v1263_v44, %v1214_v20 }
 0x19f   : > { %v3756_v6 = vadd.f32 %v1168_v13, %v1119_v49 }
 0x1a1   : > { %4360 = vst [vmem:[#allocation17_spill] sm:$0xff] %v3756_v6  ;;  %1314 = vmatmul.bf16.gmra.mxu0 %v3655_v3  ;;  %1363 = vmatmul.bf16.gmra.mxu1 %v3657_v22 }
 0x1a5   : > { %v1217_v1 = vpop.f32.mrf.mxu2  ;;  %v1266_v28 = vpop.f32.mrf.mxu3 }
 0x1a6   : > { %v3760_v8 = vadd.f32 %v1266_v28, %v1217_v1  ;;  %v1121_v19 = vpop.f32.mrf.mxu0  ;;  %v1170_v62 = vpop.f32.mrf.mxu1  ;;  %v3826_v1 = vadd.f32 %v3716_v59, %v3714_v61 }
 0x1a7   : > { %v3762_v60 = vadd.f32 %v1170_v62, %v1121_v19  ;;  %v3830_v62 = vadd.f32 %v3740_v15, %v3738_v29 }
 0x1a8   : > { %1550 = vrot.lane.b32.xlu0 %v3760_v8, %s4348_s20 }
 0x1ad   : > { %v1219_v57 = vpop.f32.mrf.mxu2  ;;  %v1268_v7 = vpop.f32.mrf.mxu3 }
 0x1ae   : > { %v1124_v36 = vpop.f32.mrf.mxu0  ;;  %v1173_v3 = vpop.f32.mrf.mxu1  ;;  %v3801_v21 = vadd.f32 %v1268_v7, %v1219_v57 }
 0x1af   : > { %v3768_v18 = vadd.f32 %v1173_v3, %v1124_v36 }
 0x1b0   : > { %1548 = vrot.lane.b32.xlu0 %v3766_v56, %s4348_s20 }
 0x1b1   : > { %4361 = vst [vmem:[#allocation18_spill] sm:$0xff] %v3768_v18  ;;  %1319 = vmatmul.bf16.gmra.mxu0 %v3686_v27  ;;  %1368 = vmatmul.bf16.gmra.mxu1 %v3688_v55  ;;  %v3784_v55 = vadd.f32 %v3728_v5, %v3726_v46  ;;  %v3799_v46 = vadd.f32 %v1258_v48, %v1209_v24 }
 0x1b5   : > { %v1222_v22 = vpop.f32.mrf.mxu2  ;;  %v1271_v63 = vpop.f32.mrf.mxu3 }
 0x1b6   : > { %v3774_v51 = vadd.f32 %v1271_v63, %v1222_v22  ;;  %v1126_v54 = vpop.f32.mrf.mxu0  ;;  %v1175_v11 = vpop.f32.mrf.mxu1 }
 0x1b7   : > { %v3776_v58 = vadd.f32 %v1175_v11, %v1126_v54 }
 0x1b8   : > { %1538 = vrot.lane.b32.xlu0 %v3734_v34, %s4348_s20  ;;  %1554 = vrot.lane.b32.xlu1 %v3774_v51, %s4348_s20 }
 0x1b9   : > { %4362 = vst [vmem:[#allocation19_spill] sm:$0xff] %v3776_v58 }
 0x1bd   : > { %v1224_v16 = vpop.f32.mrf.mxu2  ;;  %v1273_v27 = vpop.f32.mrf.mxu3 }
 0x1be   : > { %v3788_v26 = vadd.f32 %v1273_v27, %v1224_v16  ;;  %v1285_v4 = vpop.f32.mrf.mxu0  ;;  %v1334_v47 = vpop.f32.mrf.mxu1  ;;  %v3853_v16 = vadd.f32 %v3704_v53, %v3702_v42 }
 0x1bf   : > { %v1335_v52 = vadd.f32 %v1334_v47, %v1285_v4 }
 0x1c0   : > { %1536 = vrot.lane.b32.xlu0 %v3784_v55, %s4348_s20  ;;  %1546 = vrot.lane.b32.xlu1 %v3786_v43, %s4348_s20 }
 0x1c1   : > { %1556 = vrot.lane.b32.xlu2 %v3788_v26, %s4348_s20  ;;  %v1855_v40 = vpack.c.bf16 %v1335_v52, %v1335_v52 }
 0x1c3   : > { %v3809_v20 = vunpack.c.l.b16 %v1855_v40 }
 0x1c6   : > { %v1287_v5 = vpop.f32.mrf.mxu0  ;;  %v1336_v25 = vpop.f32.mrf.mxu1 }
 0x1c7   : > { %v1337_v41 = vadd.f32 %v1336_v25, %v1287_v5 }
 0x1c8   : > { %1526 = vrot.lane.b32.xlu0 %v3698_v10, %s4348_s20  ;;  %1544 = vrot.lane.b32.xlu1 %v3799_v46, %s4348_s20 }
 0x1c9   : > { %v1856_v33 = vpack.c.bf16 %v1337_v41, %v1337_v41  ;;  %v2559_v38 = vpack.c.bf16 %v1337_v41, %v1335_v52  ;;  %1552 = vrot.lane.b32.xlu2 %v3801_v21, %s4348_s20 }
 0x1cb   : > { %v3811_v24 = vunpack.c.l.b16 %v1856_v33  ;;  %2560 = vst [vmem:[%s3813_s22] sm:$0xff] %v2559_v38  }
 0x1ce   : > { %v1290_v44 = vpop.f32.mrf.mxu0  ;;  %v1339_v49 = vpop.f32.mrf.mxu1 }
 0x1cf   : > { %v1340_v13 = vadd.f32 %v1339_v49, %v1290_v44 }
 0x1d0   : > { %1424 = vrot.lane.b32.xlu0 %v3700_v14, %s4348_s20  ;;  %1534 = vrot.lane.b32.xlu1 %v3722_v50, %s4348_s20 }
 0x1d1   : > { %1542 = vrot.lane.b32.xlu2 %v3746_v30, %s4348_s20  ;;  %v1857_v57 = vpack.c.bf16 %v1340_v13, %v1340_v13 }
 0x1d3   : > { %v3838_v61 = vunpack.c.l.b16 %v1857_v57 }
 0x1d6   : > { %v1292_v28 = vpop.f32.mrf.mxu0  ;;  %v1341_v19 = vpop.f32.mrf.mxu1 }
 0x1d7   : > { %v1342_v7 = vadd.f32 %v1341_v19, %v1292_v28 }
 0x1d8   : > { %1430 = vrot.lane.b32.xlu0 %v3718_v45, %s4348_s20  ;;  %1532 = vrot.lane.b32.xlu1 %v3826_v1, %s4348_s20 }
 0x1d9   : > { %v1858_v36 = vpack.c.bf16 %v1342_v7, %v1342_v7  ;;  %v2564_v3 = vpack.c.bf16 %v1342_v7, %v1340_v13  ;;  %1540 = vrot.lane.b32.xlu2 %v3830_v62, %s4348_s20 }
 0x1db   : > { %v3840_v59 = vunpack.c.l.b16 %v1858_v36  ;;  %2610 = vst [vmem:[%s3813_s22 + $0x8] sm:$0xff] %v2564_v3  }
 0x1de   : > { %v1295_v15 = vpop.f32.mrf.mxu0  ;;  %v1344_v22 = vpop.f32.mrf.mxu1 }
 0x1df   : > { %v1345_v63 = vadd.f32 %v1344_v22, %v1295_v15 }
 0x1e0   : > { %1436 = vrot.lane.b32.xlu0 %v3736_v31, %s4348_s20  ;;  %1422 = vrot.lane.b32.xlu1 %v3694_v35, %s4348_s20 }
 0x1e1   : > { %1530 = vrot.lane.b32.xlu2 %v3710_v0, %s4348_s20  ;;  %v1859_v27 = vpack.c.bf16 %v1345_v63, %v1345_v63 }
 0x1e3   : > { %v3861_v5 = vunpack.c.l.b16 %v1859_v27 }
 0x1e6   : > { %v1297_v54 = vpop.f32.mrf.mxu0  ;;  %v1346_v11 = vpop.f32.mrf.mxu1 }
 0x1e7   : > { %v1347_v4 = vadd.f32 %v1346_v11, %v1297_v54 }
 0x1e8   : > { %1442 = vrot.lane.b32.xlu0 %v3750_v2, %s4348_s20  ;;  %1428 = vrot.lane.b32.xlu1 %v3712_v9, %s4348_s20 }
 0x1e9   : > { %v1860_v47 = vpack.c.bf16 %v1347_v4, %v1347_v4  ;;  %v2569_v52 = vpack.c.bf16 %v1347_v4, %v1345_v63  ;;  %1528 = vrot.lane.b32.xlu2 %v3853_v16, %s4348_s20 }
 0x1eb   : > { %v3863_v25 = vunpack.c.l.b16 %v1860_v47  ;;  %2611 = vst [vmem:[%s3813_s22 + $0x10] sm:$0xff] %v2569_v52  }
 0x1ee   : > { %v1300_v53 = vpop.f32.mrf.mxu0  ;;  %v1349_v40 = vpop.f32.mrf.mxu1 }
 0x1ef   : > { %v1350_v41 = vadd.f32 %v1349_v40, %v1300_v53 }
 0x1f0   : > { %1448 = vrot.lane.b32.xlu0 %v3762_v60, %s4348_s20  ;;  %1434 = vrot.lane.b32.xlu1 %v3730_v12, %s4348_s20 }
 0x1f1   : > { %1426 = vrot.lane.b32.xlu2 %v3706_v17, %s4348_s20  ;;  %v1861_v44 = vpack.c.bf16 %v1350_v41, %v1350_v41 }
 0x1f3   : > { %v3878_v19 = vunpack.c.l.b16 %v1861_v44  ;;  %v3912_v44 = vld [vmem:[%s4322_s4 + $0x60] sm:$0xff] }
 0x1f4   : > { %4363 = vst [vmem:[#allocation20_spill] sm:$0xff] %v3912_v44 }
 0x1f6   : > { %v1302_v33 = vpop.f32.mrf.mxu0  ;;  %v1351_v38 = vpop.f32.mrf.mxu1 }
 0x1f7   : > { %v1352_v49 = vadd.f32 %v1351_v38, %v1302_v33 }
 0x1f8   : > { %1440 = vrot.lane.b32.xlu1 %v3748_v32, %s4348_s20 }
 0x1f9   : > { %v1862_v13 = vpack.c.bf16 %v1352_v49, %v1352_v49  ;;  %v2574_v28 = vpack.c.bf16 %v1352_v49, %v1350_v41  ;;  %1432 = vrot.lane.b32.xlu2 %v3724_v37, %s4348_s20 }
 0x1fb   : > { %v3880_v57 = vunpack.c.l.b16 %v1862_v13  ;;  %2612 = vst [vmem:[%s3813_s22 + $0x18] sm:$0xff] %v2574_v28  }
 0x1fe   : > { %v1305_v36 = vpop.f32.mrf.mxu0  ;;  %v1354_v3 = vpop.f32.mrf.mxu1 }
 0x1ff   : > { %v3889_v63 = vadd.f32 %v1354_v3, %v1305_v36  ;;  %v3915_v36 = vld [vmem:[#allocation2 + $0x60] sm:$0xff] }
 0x200   : > { %1446 = vrot.lane.b32.xlu1 %v3756_v6, %s4348_s20  ;;  %4364 = vst [vmem:[#allocation21_spill] sm:$0xff] %v3915_v36  ;;  %v1522_v3 = vmul.f32 %v3915_v36, %v3760_v8 }
 0x201   : > { %1438 = vrot.lane.b32.xlu2 %v3742_v23, %s4348_s20 }
 0x206   : > { %v1307_v15 = vpop.f32.mrf.mxu0  ;;  %v1356_v22 = vpop.f32.mrf.mxu1 }
 0x207   : > { %v3891_v54 = vadd.f32 %v1356_v22, %v1307_v15  ;;  %v3922_v15 = vld [vmem:[%s4322_s4 + $0x68] sm:$0xff]  ;;  %v3927_v22 = vld [vmem:[%s4322_s4 + $0x78] sm:$0xff] }
 0x208   : > { %1452 = vrot.lane.b32.xlu1 %v3776_v58, %s4348_s20  ;;  %4365 = vst [vmem:[#allocation22_spill] sm:$0xff] %v3922_v15  ;;  %v3989_v58 = vld [vmem:[%s4322_s4 + $0x50] sm:$0xff] }
 0x209   : > { %v2579_v11 = vpack.c.bf16 %v3891_v54, %v3889_v63  ;;  %1444 = vrot.lane.b32.xlu2 %v3754_v39, %s4348_s20  ;;  %4366 = vst [vmem:[#allocation23_spill] sm:$0xff] %v3927_v22 }
 0x20b   : > { %2613 = vst [vmem:[%s3813_s22 + $0x20] sm:$0xff] %v2579_v11  }
 0x20e   : > { %v1310_v27 = vpop.f32.mrf.mxu0  ;;  %v1359_v4 = vpop.f32.mrf.mxu1 }
 0x20f   : > { %v3902_v53 = vadd.f32 %v1359_v4, %v1310_v27  ;;  %v3929_v4 = vld [vmem:[#allocation2 + $0x68] sm:$0xff] }
 0x211   : > { %1450 = vrot.lane.b32.xlu2 %v3768_v18, %s4348_s20  ;;  %s2865_s20 = scalar_lea.hbm %s4326_s8, 128 }
 0x212   : > { %p2867_p4 = scmp.lt.s32.totalorder %s2865_s20, %s2861_s18 }
 0x214   : > { %p2868_p7 = por %p2867_p4, %p2866_p3 }
 0x216   : > { %v1312_v47 = vpop.f32.mrf.mxu0  ;;  %v1361_v52 = vpop.f32.mrf.mxu1  ;;  %p2869_p8 = pnand %p2868_p7, %p2864_p2 }
 0x217   : > { %v3904_v40 = vadd.f32 %v1361_v52, %v1312_v47  ;;  %v1523_v52 = vmul.f32 %v3929_v4, %v3801_v21 }
 0x219   : > { %v2584_v41 = vpack.c.bf16 %v3904_v40, %v3902_v53 }
 0x21a   : > { %v1551_v33 = vpop.permute.xlu0 %1550 }
 0x21b   : > { %2614 = vst [vmem:[%s3813_s22 + $0x28] sm:$0xff] %v2584_v41   ;;  %v1557_v38 = vpop.permute.xlu2 %1556  ;;  %v1570_v49 = vmul.f32 %v1551_v33, %v3912_v44  ;;  %v3936_v33 = vld [vmem:[#allocation2 + $0x78] sm:$0xff] }
 0x21c   : > { %v1573_v41 = vmul.f32 %v1557_v38, %v3927_v22  ;;  %4367 = vst [vmem:[#allocation24_spill] sm:$0xff] %v3936_v33 }
 0x21d   : > { %v1586_v11 = vadd.f32 %v1570_v49, %v1522_v3  ;;  %v1525_v49 = vmul.f32 %v3936_v33, %v3788_v26 }
 0x21e   : > { %v1315_v13 = vpop.f32.mrf.mxu0  ;;  %v1364_v28 = vpop.f32.mrf.mxu1 }
 0x21f   : > { %v1602_v7 = vpack.c.bf16 %v1586_v11, %v1586_v11  ;;  %v3940_v3 = vadd.f32 %v1364_v28, %v1315_v13  ;;  %v1589_v26 = vadd.f32 %v1573_v41, %v1525_v49  ;;  %v3959_v13 = vld [vmem:[%s4322_s4 + $0x58] sm:$0xff] }
 0x220   : > { %4369 = vst [vmem:[#allocation26_spill] sm:$0xff] %v3959_v13 }
 0x222   : > { %v1549_v27 = vpop.permute.xlu0 %1548 }
 0x223   : > { %v1553_v47 = vpop.permute.xlu2 %1552  ;;  %v1569_v33 = vmul.f32 %v1549_v27, %v3959_v13 }
 0x224   : > { %v1571_v8 = vmul.f32 %v1553_v47, %v3922_v15  ;;  %v3954_v47 = vld [vmem:[%s4322_s4 + $0x70] sm:$0xff] }
 0x225   : > { %4368 = vst [vmem:[#allocation25_spill] sm:$0xff] %v3954_v47 }
 0x226   : > { %v1587_v48 = vadd.f32 %v1571_v8, %v1523_v52  ;;  %v1317_v29 = vpop.f32.mrf.mxu0  ;;  %v1366_v42 = vpop.f32.mrf.mxu1  ;;  %v3963_v8 = vld [vmem:[#allocation2 + $0x70] sm:$0xff] }
 0x227   : > { %v3949_v21 = vadd.f32 %v1366_v42, %v1317_v29  ;;  %4370 = vst [vmem:[#allocation27_spill] sm:$0xff] %v3963_v8 }
 0x228   : > { %v2549_v38 = vpack.c.bf16 %v1587_v48, %v1586_v11  ;;  %v1603_v52 = vpack.c.bf16 %v1587_v48, %v1587_v48  ;;  %v3966_v11 = vunpack.c.l.b16 %v1602_v7  ;;  %v1524_v48 = vmul.f32 %v3963_v8, %v3774_v51 }
 0x229   : > { %v2589_v28 = vpack.c.bf16 %v3949_v21, %v3940_v3  ;;  %v1605_v7 = vpack.c.bf16 %v1589_v26, %v1589_v26 }
 0x22a   : > { %2608 = vst [vmem:[%s3947_s23 + $0x30] sm:$0xff] %v2549_v38   ;;  %v1555_v29 = vpop.permute.xlu1 %1554  ;;  %v1539_v42 = vpop.permute.xlu0 %1538  ;;  %v3968_v22 = vunpack.c.l.b16 %v1603_v52  ;;  %v3977_v38 = vld [vmem:[#allocation2 + $0x58] sm:$0xff] }
 0x22b   : > { %2615 = vst [vmem:[%s3813_s22 + $0x30] sm:$0xff] %v2589_v28   ;;  %v1572_v41 = vmul.f32 %v1555_v29, %v3954_v47  ;;  %v1543_v49 = vpop.permute.xlu2 %1542  ;;  %v1521_v52 = vmul.f32 %v3977_v38, %v3766_v56  ;;  %v3984_v28 = vld [vmem:[%s4322_s4 + $0x30] sm:$0xff]  ;;  %v3995_v56 = vld [vmem:[%s4322_s4 + $0x38] sm:$0xff] }
 0x22c   : > { %4371 = vst [vmem:[#allocation28_spill] sm:$0xff] %v3977_v38  ;;  %v1564_v8 = vmul.f32 %v1539_v42, %v3984_v28 }
 0x22d   : > { %v1588_v17 = vadd.f32 %v1572_v41, %v1524_v48  ;;  %v1585_v27 = vadd.f32 %v1569_v33, %v1521_v52  ;;  %v3997_v41 = vld [vmem:[#allocation2 + $0x50] sm:$0xff]  ;;  %v4004_v52 = vld [vmem:[#allocation2 + $0x38] sm:$0xff] }
 0x22e   : > { %v1320_v18 = vpop.f32.mrf.mxu0  ;;  %v1369_v9 = vpop.f32.mrf.mxu1  ;;  %v4002_v33 = vld [vmem:[#allocation2 + $0x30] sm:$0xff]  ;;  %v1517_v42 = vmul.f32 %v4004_v52, %v3830_v62 }
 0x22f   : > { %v2554_v51 = vpack.c.bf16 %v1589_v26, %v1588_v17  ;;  %v1604_v29 = vpack.c.bf16 %v1588_v17, %v1588_v17  ;;  %v1653_v26 = vunpack.c.l.b16 %v1605_v7  ;;  %v1370_v44 = vadd.f32 %v1369_v9, %v1320_v18 }
 0x230   : > { %v1516_v7 = vmul.f32 %v4002_v33, %v3734_v34  ;;  %v1601_v14 = vpack.c.bf16 %v1585_v27, %v1585_v27 }
 0x231   : > { %2609 = vst [vmem:[%s3947_s23 + $0x38] sm:$0xff] %v2554_v51   ;;  %v1652_v48 = vunpack.c.l.b16 %v1604_v29  ;;  %v1520_v51 = vmul.f32 %v3997_v41, %v3786_v43  ;;  %v4017_v43 = vld [vmem:[%s4322_s4 + $0x40] sm:$0xff] }
 0x232   : > { %v1547_v47 = vpop.permute.xlu1 %1546  ;;  %v4000_v17 = vpop.permute.xlu0 %1536  ;;  %v4019_v9 = vadd.f32 %v1564_v8, %v1516_v7  ;;  %v4030_v8 = vld [vmem:[%s4322_s4 + $0x48] sm:$0xff] }
 0x233   : > { %v1568_v36 = vmul.f32 %v1547_v47, %v3989_v58  ;;  %v1541_v6 = vpop.permute.xlu2 %1540  ;;  %v1661_v29 = vpack.c.b16 %v1653_v26, %v1652_v48  ;;  %v1869_v48 = vpack.c.bf16 %v1370_v44, %v1370_v44  ;;  %4372 = vst [vmem:[#allocation29_spill] sm:$0xff] %v4030_v8  ;;  %v4034_v7 = vld [vmem:[#allocation2 + $0x48] sm:$0xff] }
 0x234   : > { %v1565_v32 = vmul.f32 %v1541_v6, %v3995_v56  ;;  %4373 = vst [vmem:[#allocation30_spill] sm:$0xff] %v4034_v7 }
 0x235   : > { %v1584_v35 = vadd.f32 %v1568_v36, %v1520_v51  ;;  %1670 = vmatpush.bf16.xpose.msrb.mxu2 %v1661_v29  ;;  %v1868_v36 = vpack.c.bf16 %v3949_v21, %v3949_v21  ;;  %v4032_v29 = vld [vmem:[#allocation2 + $0x40] sm:$0xff]  ;;  %v1901_v39 = vunpack.c.l.b16 %v1869_v48  ;;  %v4055_v48 = vld [vmem:[%s4322_s4 + $0x28] sm:$0xff] }
 0x236   : > { %v4021_v18 = vadd.f32 %v1565_v32, %v1517_v42  ;;  %v1322_v47 = vpop.f32.mrf.mxu0  ;;  %v1371_v34 = vpop.f32.mrf.mxu1  ;;  %v1649_v32 = vunpack.c.l.b16 %v1601_v14  ;;  %v1867_v14 = vpack.c.bf16 %v3940_v3, %v3940_v3  ;;  %v4374_v3 = vpack.c.b16 %v3968_v22, %v3966_v11  ;;  %v4069_v11 = vld [vmem:[#allocation2 + $0x28] sm:$0xff] }
 0x237   : > { %v2544_v26 = vpack.c.bf16 %v1585_v27, %v1584_v35  ;;  %v1372_v62 = vadd.f32 %v1371_v34, %v1322_v47  ;;  %v1600_v6 = vpack.c.bf16 %v1584_v35, %v1584_v35  ;;  %v1566_v27 = vmul.f32 %v1543_v49, %v4017_v43 }
 0x238   : > { %v2534_v51 = vpack.c.bf16 %v4021_v18, %v4019_v9  ;;  %v1518_v47 = vmul.f32 %v4032_v29, %v3746_v30  ;;  %v1519_v34 = vmul.f32 %v4034_v7, %v3799_v46  ;;  %v1900_v30 = vunpack.c.l.b16 %v1868_v36 }
 0x239   : > { %2607 = vst [vmem:[%s3947_s23 + $0x28] sm:$0xff] %v2544_v26   ;;  %v1870_v35 = vpack.c.bf16 %v1372_v62, %v1372_v62  ;;  %v2594_v42 = vpack.c.bf16 %v1372_v62, %v1370_v44  ;;  %v1648_v21 = vunpack.c.l.b16 %v1600_v6  ;;  %v1866_v62 = vpack.c.bf16 %v3904_v40, %v3904_v40  ;;  %v4062_v40 = vld [vmem:[%s4322_s4] sm:$0xff] }
 0x23a   : > { %2605 = vst [vmem:[%s3947_s23 + $0x18] sm:$0xff] %v2534_v51   ;;  %v1545_v13 = vpop.permute.xlu1 %1544  ;;  %v1527_v38 = vpop.permute.xlu0 %1526  ;;  %v1582_v6 = vadd.f32 %v1566_v27, %v1518_v47  ;;  %v1864_v22 = vpack.c.bf16 %v3891_v54, %v3891_v54  ;;  %v4077_v27 = vld [vmem:[%s4322_s4 + $0x8] sm:$0xff] }
 0x23b   : > { %v1902_v15 = vunpack.c.l.b16 %v1870_v35  ;;  %2616 = vst [vmem:[%s3813_s22 + $0x38] sm:$0xff] %v2594_v42   ;;  %v1567_v49 = vmul.f32 %v1545_v13, %v4030_v8  ;;  %v1531_v26 = vpop.permute.xlu2 %1530  ;;  %v1659_v44 = vpack.c.b16 %v1649_v32, %v1648_v21  ;;  %v1865_v13 = vpack.c.bf16 %v3902_v53, %v3902_v53 }
 0x23c   : > { %v1899_v32 = vunpack.c.l.b16 %v1867_v14  ;;  %v1898_v36 = vunpack.c.l.b16 %v1866_v62  ;;  %v1563_v53 = vmul.f32 %v4000_v17, %v4055_v48  ;;  %v1515_v21 = vmul.f32 %v4069_v11, %v3784_v55  ;;  %v4087_v17 = vld [vmem:[#allocation2 + $0x8] sm:$0xff] }
 0x23d   : > { %v1583_v46 = vadd.f32 %v1567_v49, %v1519_v34  ;;  %1671 = vmatpush.bf16.xpose.msrb.mxu2 %v4374_v3  ;;  %v1910_v51 = vpack.c.b16 %v1902_v15, %v1901_v39  ;;  %v1394_v39 = vld [vmem:[%s4322_s4 + $0x20] sm:$0xff]  ;;  %v1558_v47 = vmul.f32 %v1527_v38, %v4062_v40  ;;  %v1863_v62 = vpack.c.bf16 %v3889_v63, %v3889_v63 }
 0x23e   : > { %v1378_v15 = vld [vmem:[#allocation2 + $0x20] sm:$0xff]  ;;  %v1909_v42 = vpack.c.b16 %v1900_v30, %v1899_v32  ;;  %v1897_v3 = vunpack.c.l.b16 %v1865_v13  ;;  %v1511_v38 = vmul.f32 %v4087_v17, %v3853_v16  ;;  %v1896_v32 = vunpack.c.l.b16 %v1864_v22  ;;  %v4099_v13 = vld [vmem:[%s4322_s4 + $0x10] sm:$0xff] }
 0x23f   : > { %v2539_v35 = vpack.c.bf16 %v1583_v46, %v1582_v6  ;;  %1919 = vmatpush.bf16.msrb.mxu3 %v1910_v51  ;;  %v1514_v54 = vmul.f32 %v1378_v15, %v3722_v50  ;;  %v4085_v49 = vld [vmem:[#allocation2] sm:$0xff]  ;;  %v1599_v50 = vpack.c.bf16 %v1583_v46, %v1583_v46  ;;  %v1579_v8 = vadd.f32 %v1563_v53, %v1515_v21 }
 0x240   : > { %v1510_v55 = vmul.f32 %v4085_v49, %v3698_v10  ;;  %v1598_v63 = vpack.c.bf16 %v1582_v6, %v1582_v6  ;;  %v1895_v16 = vunpack.c.l.b16 %v1863_v62  ;;  %v4112_v6 = vld [vmem:[#allocation2 + $0x10] sm:$0xff]  ;;  %v1410_v62 = vmul.f32 %v1378_v15, %v3718_v45 }
 0x241   : > { %2606 = vst [vmem:[%s3947_s23 + $0x20] sm:$0xff] %v2539_v35   ;;  %v1596_v45 = vpack.c.bf16 %v4019_v9, %v4019_v9  ;;  %v4376_v15 = vpack.c.b16 %v3880_v57, %v3878_v19  ;;  %v1411_v19 = vmul.f32 %v4069_v11, %v3724_v37 }
 0x242   : > { %v1535_v34 = vpop.permute.xlu1 %1534  ;;  %v4083_v14 = vpop.permute.xlu0 %1424  ;;  %v4101_v46 = vadd.f32 %v1558_v47, %v1510_v55  ;;  %v1907_v21 = vpack.c.b16 %v1896_v32, %v1895_v16  ;;  %v1646_v47 = vunpack.c.l.b16 %v1598_v63 }
 0x243   : > { %4375 = vst [vmem:[#allocation31_spill] sm:$0xff] %v4083_v14  ;;  %v1562_v51 = vmul.f32 %v1535_v34, %v1394_v39  ;;  %v1529_v30 = vpop.permute.xlu2 %1528  ;;  %1920 = vmatpush.bf16.msrb.mxu3 %v1909_v42  ;;  %v1908_v14 = vpack.c.b16 %v1898_v36, %v1897_v3  ;;  %v1647_v42 = vunpack.c.l.b16 %v1599_v50  ;;  %v4114_v36 = vld [vmem:[#allocation2 + $0x18] sm:$0xff]  ;;  %v1512_v34 = vmul.f32 %v4112_v6, %v3710_v0 }
 0x244   : > { %v1559_v35 = vmul.f32 %v1529_v30, %v4077_v27 }
 0x245   : > { %v1578_v7 = vadd.f32 %v1562_v51, %v1514_v54  ;;  %1672 = vmatpush.bf16.xpose.msrb.mxu2 %v1659_v44  ;;  %v4110_v44 = vld [vmem:[%s4322_s4 + $0x18] sm:$0xff]  ;;  %v1560_v54 = vmul.f32 %v1531_v26, %v4099_v13  ;;  %v1658_v55 = vpack.c.b16 %v1647_v42, %v1646_v47 }
 0x246   : > { %v4103_v10 = vadd.f32 %v1559_v35, %v1511_v38  ;;  %v1597_v38 = vpack.c.bf16 %v4021_v18, %v4021_v18  ;;  %v1413_v18 = vmul.f32 %v4004_v52, %v3736_v31  ;;  %v4378_v31 = vpack.c.b16 %v3840_v59, %v3838_v61 }
 0x247   : > { %v2529_v22 = vpack.c.bf16 %v1579_v8, %v1578_v7  ;;  %1921 = vmatpush.bf16.msrb.mxu3 %v1908_v14  ;;  %v1513_v14 = vmul.f32 %v4114_v36, %v3826_v1  ;;  %v1576_v0 = vadd.f32 %v1560_v54, %v1512_v34  ;;  %v4377_v54 = vpack.c.b16 %v3863_v25, %v3861_v5 }
 0x248   : > { %v2519_v53 = vpack.c.bf16 %v4103_v10, %v4101_v46  ;;  %v1645_v63 = vunpack.c.l.b16 %v1597_v38  ;;  %v1595_v34 = vpack.c.bf16 %v1579_v8, %v1579_v8  ;;  %v1416_v8 = vmul.f32 %v3997_v41, %v3750_v2 }
 0x249   : > { %2604 = vst [vmem:[%s3947_s23 + $0x10] sm:$0xff] %v2529_v22   ;;  %v4379_v61 = vpack.c.b16 %v3811_v24, %v3809_v20  ;;  %v1419_v20 = vmul.f32 %v3929_v4, %v3762_v60  ;;  %v1590_v60 = vpack.c.bf16 %v4101_v46, %v4101_v46 }
 0x24a   : > { %2520 = vst [vmem:[%s3947_s23] sm:$0xff] %v2519_v53   ;;  %v1533_v3 = vpop.permute.xlu1 %1532  ;;  %v1431_v51 = vpop.permute.xlu0 %1430  ;;  %v1643_v25 = vunpack.c.l.b16 %v1595_v34 }
 0x24b   : > { %v1561_v30 = vmul.f32 %v1533_v3, %v4110_v44  ;;  %v4125_v50 = vpop.permute.xlu2 %1426  ;;  %v1458_v26 = vmul.f32 %v1431_v51, %v1394_v39  ;;  %1922 = vmatpush.bf16.msrb.mxu3 %v1907_v21  ;;  %v1644_v39 = vunpack.c.l.b16 %v1596_v45  ;;  %v1594_v21 = vpack.c.bf16 %v1578_v7, %v1578_v7 }
 0x24c   : > { %v1414_v51 = vmul.f32 %v4032_v29, %v3742_v23  ;;  %v4380_v23 = vld [vmem:[#allocation22_spill] sm:$0xff]  ;;  %v1638_v34 = vunpack.c.l.b16 %v1590_v60 }
 0x24d   : > { %v1577_v32 = vadd.f32 %v1561_v30, %v1513_v14  ;;  %v1474_v35 = vadd.f32 %v1458_v26, %v1410_v62  ;;  %1673 = vmatpush.bf16.xpose.msrb.mxu2 %v1658_v55  ;;  %v1657_v9 = vpack.c.b16 %v1645_v63, %v1644_v39  ;;  %v1592_v55 = vpack.c.bf16 %v1576_v0, %v1576_v0  ;;  %v4383_v39 = vld [vmem:[#allocation26_spill] sm:$0xff] }
 0x24f   : > { %v2524_v1 = vpack.c.bf16 %v1577_v32, %v1576_v0  ;;  %1923 = vmatpush.bf16.msrb.mxu3 %v4376_v15  ;;  %v4147_v52 = vmul.f32 0.088388346, %v1474_v35  ;;  %v1593_v3 = vpack.c.bf16 %v1577_v32, %v1577_v32  ;;  %v1640_v2 = vunpack.c.l.b16 %v1592_v55  ;;  %v4382_v15 = vld [vmem:[#allocation28_spill] sm:$0xff] }
 0x250   : > { %v1591_v0 = vpack.c.bf16 %v4103_v10, %v4103_v10 }
 0x251   : > { %2603 = vst [vmem:[%s3947_s23 + $0x8] sm:$0xff] %v2524_v1   ;;  %v1641_v35 = vunpack.c.l.b16 %v1593_v3  ;;  %v4381_v1 = vld [vmem:[#allocation16_spill] sm:$0xff]  ;;  %s2077_s23 = sshll.u32 %s3813_s22, 4  ;;  %s2078_s23 = int_to_ptr.vmem [resolvable:$true] %s2077_s23 }
 0x252   : > { %v1423_v16 = vpop.permute.xlu1 %1422  ;;  %v1437_v22 = vpop.permute.xlu0 %1436  ;;  %v1417_v63 = vmul.f32 %v4382_v15, %v4381_v1  ;;  %v1456_v1 = vmul.f32 %v4125_v50, %v4099_v13  ;;  %v4395_v15 = vld [vmem:[#allocation18_spill] sm:$0xff] }
 0x253   : > { %v1433_v42 = vpop.permute.xlu2 %1432  ;;  %v1461_v53 = vmul.f32 %v1437_v22, %v3995_v56  ;;  %1924 = vmatpush.bf16.msrb.mxu3 %v4377_v54  ;;  %v1642_v56 = vunpack.c.l.b16 %v1594_v21  ;;  %v1454_v4 = vmul.f32 %v1423_v16, %v4062_v40  ;;  %v4384_v54 = vld [vmem:[#allocation11_spill] sm:$0xff] }
 0x254   : > { %v1459_v57 = vmul.f32 %v1433_v42, %v4055_v48  ;;  %v1406_v10 = vmul.f32 %v4085_v49, %v4384_v54  ;;  %v4387_v16 = vld [vmem:[#allocation15_spill] sm:$0xff] }
 0x255   : > { %v1477_v47 = vadd.f32 %v1461_v53, %v1413_v18  ;;  %1674 = vmatpush.bf16.xpose.msrb.mxu2 %v1657_v9  ;;  %v1656_v59 = vpack.c.b16 %v1643_v25, %v1642_v56  ;;  %v1639_v53 = vunpack.c.l.b16 %v1591_v0  ;;  %v4385_v9 = vld [vmem:[#allocation31_spill] sm:$0xff] }
 0x256   : > { %v1475_v14 = vadd.f32 %v1459_v57, %v1411_v19  ;;  %v1455_v21 = vmul.f32 %v4385_v9, %v4077_v27  ;;  %v1470_v46 = vadd.f32 %v1454_v4, %v1406_v10 }
 0x257   : > { %1925 = vmatpush.bf16.msrb.mxu3 %v4378_v31  ;;  %v1493_v18 = vmul.f32 0.088388346, %v1477_v47  ;;  %v4386_v31 = vld [vmem:[#allocation12_spill] sm:$0xff]  ;;  %v4388_v47 = vld [vmem:[#allocation30_spill] sm:$0xff] }
 0x258   : > { %v4149_v5 = vmul.f32 0.088388346, %v1475_v14  ;;  %v1407_v56 = vmul.f32 %v4087_v17, %v4386_v31  ;;  %v1486_v27 = vmul.f32 0.088388346, %v1470_v46  ;;  %v4390_v17 = vld [vmem:[#allocation17_spill] sm:$0xff]  ;;  %v1607_v31 = vld [vmem:[#allocation5 + $0x8] sm:$0xff] }
 0x25a   : > { %v4151_v7 = vpop.permute.xlu1 %1428  ;;  %v1443_v62 = vpop.permute.xlu0 %1442  ;;  %v1504_v37 = vpack.c.bf16 %v4149_v5, %v4147_v52  ;;  %v1471_v49 = vadd.f32 %v1455_v21, %v1407_v56  ;;  %v1609_v52 = vld [vmem:[#allocation5 + $0x18] sm:$0xff] }
 0x25b   : > { %v1439_v48 = vpop.permute.xlu2 %1438  ;;  %v1464_v11 = vmul.f32 %v1443_v62, %v3989_v58  ;;  %1926 = vmatpush.bf16.msrb.mxu3 %v4379_v61  ;;  %v1412_v58 = vmul.f32 %v4002_v33, %v3730_v12  ;;  %v1415_v62 = vmul.f32 %v4388_v47, %v4387_v16 }
 0x25c   : > { %v1462_v30 = vmul.f32 %v1439_v48, %v4017_v43  ;;  %v1655_v43 = vpack.c.b16 %v1641_v35, %v1640_v2  ;;  %v4391_v35 = vld [vmem:[#allocation21_spill] sm:$0xff] }
 0x25d   : > { %v1480_v26 = vadd.f32 %v1464_v11, %v1416_v8  ;;  %1675 = vmatpush.bf16.xpose.msrb.mxu2 %v1656_v59  ;;  %v4389_v8 = vld [vmem:[#allocation29_spill] sm:$0xff]  ;;  %v1654_v11 = vpack.c.b16 %v1639_v53, %v1638_v34  ;;  %v1418_v2 = vmul.f32 %v4391_v35, %v4390_v17  ;;  %v1615_v17 = vld [vmem:[#allocation5 + $0x48] sm:$0xff] }
 0x25e   : > { %v1478_v38 = vadd.f32 %v1462_v30, %v1414_v51  ;;  %v1487_v51 = vmul.f32 0.088388346, %v1471_v49  ;;  %v1612_v49 = vld [vmem:[#allocation5 + $0x30] sm:$0xff] }
 0x25f   : > { %v1496_v19 = vmul.f32 0.088388346, %v1480_v26 }
 0x260   : > { %v1494_v59 = vmul.f32 0.088388346, %v1478_v38  ;;  %v1502_v55 = vpack.c.bf16 %v1487_v51, %v1486_v27 }
 0x262   : > { %v1435_v24 = vpop.permute.xlu1 %1434  ;;  %v1449_v41 = vpop.permute.xlu0 %1448 }
 0x263   : > { %v1460_v32 = vmul.f32 %v1435_v24, %v3984_v28  ;;  %v1445_v45 = vpop.permute.xlu2 %1444  ;;  %v1467_v29 = vmul.f32 %v1449_v41, %v4380_v23  ;;  %v4393_v23 = vld [vmem:[#allocation25_spill] sm:$0xff] }
 0x264   : > { %v1465_v22 = vmul.f32 %v1445_v45, %v4383_v39 }
 0x265   : > { %v1476_v12 = vadd.f32 %v1460_v32, %v1412_v58  ;;  %v1483_v33 = vadd.f32 %v1467_v29, %v1419_v20  ;;  %1676 = vmatpush.bf16.xpose.msrb.mxu2 %v1655_v43  ;;  %v4392_v58 = vld [vmem:[#allocation20_spill] sm:$0xff]  ;;  %v1457_v32 = vmul.f32 %v4151_v7, %v4110_v44  ;;  %v4394_v43 = vld [vmem:[#allocation14_spill] sm:$0xff]  ;;  %v4398_v44 = vld [vmem:[#allocation19_spill] sm:$0xff] }
 0x266   : > { %v1481_v28 = vadd.f32 %v1465_v22, %v1417_v63  ;;  %v1409_v0 = vmul.f32 %v4114_v36, %v4394_v43  ;;  %v4396_v63 = vld [vmem:[#allocation27_spill] sm:$0xff]  ;;  %v4399_v7 = vld [vmem:[#allocation24_spill] sm:$0xff] }
 0x267   : > { %v1492_v42 = vmul.f32 0.088388346, %v1476_v12  ;;  %v1499_v45 = vmul.f32 0.088388346, %v1483_v33  ;;  %v1420_v39 = vmul.f32 %v4396_v63, %v4395_v15  ;;  %v4397_v12 = vld [vmem:[#allocation13_spill] sm:$0xff]  ;;  %v1421_v33 = vmul.f32 %v4399_v7, %v4398_v44  ;;  %v1619_v43 = vld [vmem:[#allocation5 + $0x68] sm:$0xff] }
 0x268   : > { %v1497_v57 = vmul.f32 0.088388346, %v1481_v28  ;;  %v1408_v60 = vmul.f32 %v4112_v6, %v4397_v12  ;;  %v1473_v4 = vadd.f32 %v1457_v32, %v1409_v0  ;;  %v1606_v6 = vld [vmem:[#allocation5] sm:$0xff]  ;;  %v1620_v15 = vld [vmem:[#allocation5 + $0x70] sm:$0xff]  ;;  %v1621_v12 = vld [vmem:[#allocation5 + $0x78] sm:$0xff] }
 0x269   : > { %v1505_v14 = vpack.c.bf16 %v1493_v18, %v1492_v42  ;;  %v4400_v42 = vld [vmem:[#allocation23_spill] sm:$0xff] }
 0x26a   : > { %v1441_v25 = vpop.permute.xlu1 %1440  ;;  %v1507_v40 = vpack.c.bf16 %v1497_v57, %v1496_v19  ;;  %v1472_v54 = vadd.f32 %v1456_v1, %v1408_v60  ;;  %v1489_v10 = vmul.f32 0.088388346, %v1473_v4 }
 0x26b   : > { %v1463_v48 = vmul.f32 %v1441_v25, %v4389_v8  ;;  %v1451_v24 = vpop.permute.xlu2 %1450  ;;  %v1608_v25 = vld [vmem:[#allocation5 + $0x10] sm:$0xff]  ;;  %v1611_v8 = vld [vmem:[#allocation5 + $0x28] sm:$0xff] }
 0x26c   : > { %v1468_v29 = vmul.f32 %v1451_v24, %v4393_v23  ;;  %v1488_v50 = vmul.f32 0.088388346, %v1472_v54  ;;  %v1618_v23 = vld [vmem:[#allocation5 + $0x60] sm:$0xff] }
 0x26d   : > { %v1479_v61 = vadd.f32 %v1463_v48, %v1415_v62  ;;  %1677 = vmatpush.bf16.xpose.msrb.mxu2 %v1654_v11 }
 0x26e   : > { %v1484_v18 = vadd.f32 %v1468_v29, %v1420_v39  ;;  %v1503_v19 = vpack.c.bf16 %v1489_v10, %v1488_v50 }
 0x26f   : > { %v1495_v3 = vmul.f32 0.088388346, %v1479_v61 }
 0x270   : > { %v1500_v9 = vmul.f32 0.088388346, %v1484_v18 }
 0x271   : > { %v1506_v30 = vpack.c.bf16 %v1495_v3, %v1494_v59  ;;  %v1613_v59 = vld [vmem:[#allocation5 + $0x38] sm:$0xff] }
 0x272   : > { %v1447_v26 = vpop.permute.xlu1 %1446 }
 0x273   : > { %v1466_v20 = vmul.f32 %v1447_v26, %v4392_v58  ;;  %v1616_v58 = vld [vmem:[#allocation5 + $0x50] sm:$0xff] }
 0x274   : > { %1678 = vmatmul.bf16.vlgmr.msrb.gmra.mxu2 %v1502_v55 }
 0x275   : > { %v1482_v41 = vadd.f32 %v1466_v20, %v1418_v2 }
 0x277   : > { %v1498_v38 = vmul.f32 0.088388346, %v1482_v41  ;;  %v1617_v41 = vld [vmem:[#allocation5 + $0x58] sm:$0xff] }
 0x279   : > { %v1508_v22 = vpack.c.bf16 %v1499_v45, %v1498_v38 }
 0x27a   : > { %v1453_v28 = vpop.permute.xlu1 %1452 }
 0x27b   : > { %v1469_v53 = vmul.f32 %v1453_v28, %v4400_v42 }
 0x27d   : > { %v1485_v36 = vadd.f32 %v1469_v53, %v1421_v33 }
 0x27f   : > { %v1501_v13 = vmul.f32 0.088388346, %v1485_v36 }
 0x281   : > { %v1509_v21 = vpack.c.bf16 %v1501_v13, %v1500_v9 }
 0x284   : > { %1683 = vmatmul.bf16.gmra.mxu2 %v1503_v19 }
 0x294   : > { %1688 = vmatmul.bf16.gmra.mxu2 %v1504_v37 }
 0x2a4   : > { %1693 = vmatmul.bf16.gmra.mxu2 %v1505_v14  ;;  %v1610_v14 = vld [vmem:[#allocation5 + $0x20] sm:$0xff] }
 0x2b4   : > { %1698 = vmatmul.bf16.gmra.mxu2 %v1506_v30  ;;  %v1614_v30 = vld [vmem:[#allocation5 + $0x40] sm:$0xff] }
 0x2c4   : > { %1703 = vmatmul.bf16.gmra.mxu2 %v1507_v40 }
 0x2d4   : > { %1708 = vmatmul.bf16.gmra.mxu2 %v1508_v22 }
 0x2e4   : > { %1713 = vmatmul.bf16.gmra.mxu2 %v1509_v21 }
 0x2f7   : > { %v1679_v57 = vpop.f32.mrf.mxu2 }
 0x2f8   : > { %v1680_v34 = vadd.f32 %v1679_v57, %v1606_v6 }
 0x2fa   : > { %1719 = vmax.xlane.f32.xlu0 %v1680_v34 }
 0x2ff   : > { %v1681_v56 = vpop.f32.mrf.mxu2 }
 0x300   : > { %v4207_v46 = vadd.f32 %v1681_v56, %v1607_v31 }
 0x302   : > { %1721 = vmax.xlane.f32.xlu2 %v4207_v46 }
 0x307   : > { %v1684_v16 = vpop.f32.mrf.mxu2 }
 0x308   : > { %v4210_v47 = vadd.f32 %v1684_v16, %v1608_v25 }
 0x30a   : > { %1723 = vmax.xlane.f32.xlu1 %v4210_v47 }
 0x30f   : > { %v1686_v5 = vpop.f32.mrf.mxu2 }
 0x310   : > { %v4213_v37 = vadd.f32 %v1686_v5, %v1609_v52 }
 0x312   : > { %1725 = vmax.xlane.f32.xlu0 %v4213_v37 }
 0x317   : > { %v1689_v40 = vpop.f32.mrf.mxu2 }
 0x318   : > { %v4216_v62 = vadd.f32 %v1689_v40, %v1610_v14 }
 0x31a   : > { %1727 = vmax.xlane.f32.xlu2 %v4216_v62 }
 0x31f   : > { %v1691_v48 = vpop.f32.mrf.mxu2 }
 0x320   : > { %v4219_v11 = vadd.f32 %v1691_v48, %v1611_v8 }
 0x322   : > { %1729 = vmax.xlane.f32.xlu1 %v4219_v11 }
 0x327   : > { %v1694_v61 = vpop.f32.mrf.mxu2 }
 0x328   : > { %v4222_v27 = vadd.f32 %v1694_v61, %v1612_v49 }
 0x32a   : > { %1731 = vmax.xlane.f32.xlu0 %v4222_v27 }
 0x32f   : > { %v1696_v3 = vpop.f32.mrf.mxu2 }
 0x330   : > { %v4225_v51 = vadd.f32 %v1696_v3, %v1613_v59 }
 0x332   : > { %1733 = vmax.xlane.f32.xlu2 %v4225_v51 }
 0x337   : > { %v1699_v26 = vpop.f32.mrf.mxu2 }
 0x338   : > { %v4228_v55 = vadd.f32 %v1699_v26, %v1614_v30 }
 0x33a   : > { %1735 = vmax.xlane.f32.xlu1 %v4228_v55 }
 0x33f   : > { %v1701_v35 = vpop.f32.mrf.mxu2 }
 0x340   : > { %v4231_v2 = vadd.f32 %v1701_v35, %v1615_v17 }
 0x342   : > { %1737 = vmax.xlane.f32.xlu0 %v4231_v2 }
 0x347   : > { %v1704_v20 = vpop.f32.mrf.mxu2 }
 0x348   : > { %v4234_v24 = vadd.f32 %v1704_v20, %v1616_v58 }
 0x34a   : > { %1739 = vmax.xlane.f32.xlu2 %v4234_v24 }
 0x34f   : > { %v1706_v32 = vpop.f32.mrf.mxu2 }
 0x350   : > { %v4237_v45 = vadd.f32 %v1706_v32, %v1617_v41 }
 0x352   : > { %1741 = vmax.xlane.f32.xlu1 %v4237_v45 }
 0x357   : > { %v1709_v29 = vpop.f32.mrf.mxu2 }
 0x358   : > { %v4240_v38 = vadd.f32 %v1709_v29, %v1618_v23 }
 0x35a   : > { %1743 = vmax.xlane.f32.xlu0 %v4240_v38 }
 0x35f   : > { %v1711_v0 = vpop.f32.mrf.mxu2 }
 0x360   : > { %v4243_v1 = vadd.f32 %v1711_v0, %v1619_v43 }
 0x362   : > { %1745 = vmax.xlane.f32.xlu2 %v4243_v1 }
 0x367   : > { %v1714_v63 = vpop.f32.mrf.mxu2 }
 0x368   : > { %v4246_v39 = vadd.f32 %v1714_v63, %v1620_v15 }
 0x36a   : > { %1747 = vmax.xlane.f32.xlu1 %v4246_v39 }
 0x36d   : > { %v1720_v22 = vpop.xlane.xlu0 %1719 }
 0x36e   : > { %v1751_v60 = vsub.f32 %v1680_v34, %v1720_v22 }
 0x36f   : > { %v1716_v4 = vpop.f32.mrf.mxu2 }
 0x370   : > { %v1767_v28 = vmul.f32 1.442695, %v1751_v60  ;;  %v4249_v44 = vadd.f32 %v1716_v4, %v1621_v12 }
 0x372   : > { %2717 = vpow2.f32 %v1767_v28  ;;  %1749 = vmax.xlane.f32.xlu0 %v4249_v44 }
 0x375   : > { %v1722_v7 = vpop.xlane.xlu2 %1721 }
 0x376   : > { %v1752_v33 = vsub.f32 %v4207_v46, %v1722_v7 }
 0x378   : > { %v2718_v18 = vpop.eup %2717  ;;  %v1769_v42 = vmul.f32 1.442695, %v1752_v33 }
 0x379   : > { %1799 = vadd.xlane.f32.xlu2 %v2718_v18 }
 0x37a   : > { %2719 = vpow2.f32 %v1769_v42 }
 0x37d   : > { %v1724_v53 = vpop.xlane.xlu1 %1723 }
 0x37e   : > { %v1753_v54 = vsub.f32 %v4210_v47, %v1724_v53 }
 0x380   : > { %v2720_v36 = vpop.eup %2719  ;;  %v1771_v10 = vmul.f32 1.442695, %v1753_v54 }
 0x381   : > { %1801 = vadd.xlane.f32.xlu1 %v2720_v36  ;;  %v1847_v9 = vpack.c.bf16 %v2720_v36, %v2718_v18 }
 0x382   : > { %2721 = vpow2.f32 %v1771_v10 }
 0x383   : > { %1927 = vmatmul.bf16.vlgmr.msrb.gmra.mxu3 %v1847_v9 }
 0x385   : > { %v1726_v13 = vpop.xlane.xlu0 %1725 }
 0x386   : > { %v1754_v50 = vsub.f32 %v4213_v37, %v1726_v13 }
 0x388   : > { %v2722_v21 = vpop.eup %2721  ;;  %v1773_v19 = vmul.f32 1.442695, %v1754_v50 }
 0x389   : > { %1803 = vadd.xlane.f32.xlu0 %v2722_v21 }
 0x38a   : > { %2723 = vpow2.f32 %v1773_v19 }
 0x38d   : > { %v1728_v6 = vpop.xlane.xlu2 %1727 }
 0x38e   : > { %v1755_v57 = vsub.f32 %v4216_v62, %v1728_v6 }
 0x390   : > { %v2724_v34 = vpop.eup %2723  ;;  %v1775_v31 = vmul.f32 1.442695, %v1755_v57 }
 0x391   : > { %1805 = vadd.xlane.f32.xlu2 %v2724_v34  ;;  %v1848_v56 = vpack.c.bf16 %v2724_v34, %v2722_v21 }
 0x392   : > { %2725 = vpow2.f32 %v1775_v31 }
 0x393   : > { %1932 = vmatmul.bf16.gmra.mxu3 %v1848_v56 }
 0x395   : > { %v1730_v46 = vpop.xlane.xlu1 %1729 }
 0x396   : > { %v1756_v25 = vsub.f32 %v4219_v11, %v1730_v46 }
 0x398   : > { %v2726_v16 = vpop.eup %2725  ;;  %v1777_v47 = vmul.f32 1.442695, %v1756_v25 }
 0x399   : > { %1807 = vadd.xlane.f32.xlu1 %v2726_v16 }
 0x39a   : > { %2727 = vpow2.f32 %v1777_v47 }
 0x39d   : > { %v1732_v52 = vpop.xlane.xlu0 %1731 }
 0x39e   : > { %v1757_v5 = vsub.f32 %v4222_v27, %v1732_v52 }
 0x3a0   : > { %v2728_v37 = vpop.eup %2727  ;;  %v1779_v14 = vmul.f32 1.442695, %v1757_v5 }
 0x3a1   : > { %1809 = vadd.xlane.f32.xlu0 %v2728_v37  ;;  %v1849_v40 = vpack.c.bf16 %v2728_v37, %v2726_v16 }
 0x3a2   : > { %2729 = vpow2.f32 %v1779_v14 }
 0x3a3   : > { %1937 = vmatmul.bf16.gmra.mxu3 %v1849_v40 }
 0x3a5   : > { %v1734_v62 = vpop.xlane.xlu2 %1733 }
 0x3a6   : > { %v1758_v8 = vsub.f32 %v4225_v51, %v1734_v62 }
 0x3a8   : > { %v2730_v48 = vpop.eup %2729  ;;  %v1781_v49 = vmul.f32 1.442695, %v1758_v8 }
 0x3a9   : > { %1811 = vadd.xlane.f32.xlu2 %v2730_v48 }
 0x3aa   : > { %2731 = vpow2.f32 %v1781_v49 }
 0x3ad   : > { %v1736_v11 = vpop.xlane.xlu1 %1735 }
 0x3ae   : > { %v1759_v61 = vsub.f32 %v4228_v55, %v1736_v11 }
 0x3b0   : > { %v2732_v59 = vpop.eup %2731  ;;  %v1783_v3 = vmul.f32 1.442695, %v1759_v61 }
 0x3b1   : > { %1813 = vadd.xlane.f32.xlu1 %v2732_v59  ;;  %v1850_v27 = vpack.c.bf16 %v2732_v59, %v2730_v48 }
 0x3b2   : > { %2733 = vpow2.f32 %v1783_v3 }
 0x3b3   : > { %1942 = vmatmul.bf16.gmra.mxu3 %v1850_v27 }
 0x3b5   : > { %v1738_v30 = vpop.xlane.xlu0 %1737 }
 0x3b6   : > { %v1760_v26 = vsub.f32 %v4231_v2, %v1738_v30 }
 0x3b8   : > { %v2734_v17 = vpop.eup %2733  ;;  %v1785_v35 = vmul.f32 1.442695, %v1760_v26 }
 0x3b9   : > { %1815 = vadd.xlane.f32.xlu0 %v2734_v17 }
 0x3ba   : > { %2735 = vpow2.f32 %v1785_v35 }
 0x3bd   : > { %v1740_v51 = vpop.xlane.xlu2 %1739 }
 0x3be   : > { %v1761_v58 = vsub.f32 %v4234_v24, %v1740_v51 }
 0x3c0   : > { %v2736_v20 = vpop.eup %2735  ;;  %v1787_v41 = vmul.f32 1.442695, %v1761_v58 }
 0x3c1   : > { %1817 = vadd.xlane.f32.xlu2 %v2736_v20  ;;  %v1851_v55 = vpack.c.bf16 %v2736_v20, %v2734_v17 }
 0x3c2   : > { %2737 = vpow2.f32 %v1787_v41 }
 0x3c3   : > { %1947 = vmatmul.bf16.gmra.mxu3 %v1851_v55 }
 0x3c5   : > { %v1742_v32 = vpop.xlane.xlu1 %1741 }
 0x3c6   : > { %v1762_v23 = vsub.f32 %v4237_v45, %v1742_v32 }
 0x3c8   : > { %v2738_v29 = vpop.eup %2737  ;;  %v1789_v43 = vmul.f32 1.442695, %v1762_v23 }
 0x3c9   : > { %1819 = vadd.xlane.f32.xlu1 %v2738_v29 }
 0x3ca   : > { %2739 = vpow2.f32 %v1789_v43 }
 0x3cd   : > { %v1744_v2 = vpop.xlane.xlu0 %1743 }
 0x3ce   : > { %v1763_v0 = vsub.f32 %v4240_v38, %v1744_v2 }
 0x3d0   : > { %v2740_v15 = vpop.eup %2739  ;;  %v1791_v63 = vmul.f32 1.442695, %v1763_v0 }
 0x3d1   : > { %1821 = vadd.xlane.f32.xlu0 %v2740_v15  ;;  %v1852_v24 = vpack.c.bf16 %v2740_v15, %v2738_v29 }
 0x3d2   : > { %2741 = vpow2.f32 %v1791_v63 }
 0x3d3   : > { %1952 = vmatmul.bf16.gmra.mxu3 %v1852_v24 }
 0x3d5   : > { %v1746_v22 = vpop.xlane.xlu2 %1745 }
 0x3d6   : > { %v1764_v12 = vsub.f32 %v4243_v1, %v1746_v22 }
 0x3d8   : > { %v2742_v60 = vpop.eup %2741  ;;  %v1793_v4 = vmul.f32 1.442695, %v1764_v12 }
 0x3d9   : > { %1823 = vadd.xlane.f32.xlu2 %v2742_v60 }
 0x3da   : > { %2743 = vpow2.f32 %v1793_v4 }
 0x3dd   : > { %v1748_v45 = vpop.xlane.xlu1 %1747 }
 0x3de   : > { %v1765_v28 = vsub.f32 %v4246_v39, %v1748_v45 }
 0x3e0   : > { %v2744_v7 = vpop.eup %2743  ;;  %v1795_v33 = vmul.f32 1.442695, %v1765_v28 }
 0x3e1   : > { %1825 = vadd.xlane.f32.xlu1 %v2744_v7  ;;  %v1853_v38 = vpack.c.bf16 %v2744_v7, %v2742_v60 }
 0x3e2   : > { %2745 = vpow2.f32 %v1795_v33 }
 0x3e3   : > { %1957 = vmatmul.bf16.gmra.mxu3 %v1853_v38 }
 0x3e5   : > { %v1750_v18 = vpop.xlane.xlu0 %1749 }
 0x3e6   : > { %v1766_v42 = vsub.f32 %v4249_v44, %v1750_v18 }
 0x3e8   : > { %v2746_v53 = vpop.eup %2745  ;;  %v1797_v1 = vmul.f32 1.442695, %v1766_v42 }
 0x3e9   : > { %1827 = vadd.xlane.f32.xlu0 %v2746_v53 }
 0x3ea   : > { %2747 = vpow2.f32 %v1797_v1 }
 0x3ec   : > { %v1800_v36 = vpop.xlane.xlu2 %1799 }
 0x3f0   : > { %v2748_v54 = vpop.eup %2747 }
 0x3f1   : > { %1829 = vadd.xlane.f32.xlu2 %v2748_v54  ;;  %v1854_v39 = vpack.c.bf16 %v2748_v54, %v2746_v53 }
 0x3f3   : > { %1962 = vmatmul.bf16.gmra.mxu3 %v1854_v39 }
 0x3f4   : > { %v1802_v44 = vpop.xlane.xlu1 %1801 }
 0x3f5   : > { %2872 = shalt.err (!%p2869_p8)
}
 0x3f6   : > { %s2923_s17 = smov 4   ;;  %s4401_s19 = smov 64   ;;  %2749 = vrcp.f32 %v1800_v36 }
 0x3f7   : > { %2626 = dma.vmem_to_hbm [thread:$0]  (%p3007_p5), %s2078_s23, 1024, %s2080_s26, %s2059_s10, %s4401_s19, %s4401_s19, %s2923_s17   ;;  %2751 = vrcp.f32 %v1802_v44 }
 0x3f8   : > { %s4402_s0 = sshll.u32 %s3252_s13, 6 }
 0x3f9   : > { %s4291_s24 = scalar_lea.vmem %s4324_s6, %s4402_s0 }
 0x3fc   : > { %v2750_v9 = vpop.eup %2749  ;;  %v1804_v57 = vpop.xlane.xlu0 %1803 }
 0x3fd   : > { %v2752_v13 = vpop.eup %2751  ;;  %2753 = vrcp.f32 %v1804_v57 }
 0x403   : > { %v2754_v56 = vpop.eup %2753 }
 0x404   : > { %v1806_v34 = vpop.xlane.xlu2 %1805 }
 0x405   : > { %2755 = vrcp.f32 %v1806_v34 }
 0x406   : > { %v1928_v10 = vpop.f32.mrf.mxu3 }
 0x407   : > { %v1968_v21 = vmul.f32 %v2750_v9, %v1928_v10 }
 0x40b   : > { %v2756_v46 = vpop.eup %2755 }
 0x40c   : > { %v1808_v5 = vpop.xlane.xlu1 %1807 }
 0x40d   : > { %2757 = vrcp.f32 %v1808_v5 }
 0x40e   : > { %v1930_v50 = vpop.f32.mrf.mxu3 }
 0x40f   : > { %v1969_v19 = vmul.f32 %v2752_v13, %v1930_v50 }
 0x411   : > { %v2479_v6 = vpack.c.bf16 %v1969_v19, %v1968_v21 }
 0x413   : > { %2480 = vst [vmem:[%s4291_s24] sm:$0xff] %v2479_v6   ;;  %v2758_v40 = vpop.eup %2757 }
 0x414   : > { %v1810_v37 = vpop.xlane.xlu0 %1809 }
 0x415   : > { %2759 = vrcp.f32 %v1810_v37 }
 0x416   : > { %v1933_v31 = vpop.f32.mrf.mxu3 }
 0x417   : > { %v1970_v16 = vmul.f32 %v2754_v56, %v1933_v31 }
 0x41b   : > { %v2760_v62 = vpop.eup %2759 }
 0x41c   : > { %v1812_v61 = vpop.xlane.xlu2 %1811 }
 0x41d   : > { %2761 = vrcp.f32 %v1812_v61 }
 0x41e   : > { %v1935_v25 = vpop.f32.mrf.mxu3 }
 0x41f   : > { %v1971_v47 = vmul.f32 %v2756_v46, %v1935_v25 }
 0x421   : > { %v2484_v52 = vpack.c.bf16 %v1971_v47, %v1970_v16 }
 0x423   : > { %2596 = vst [vmem:[%s4291_s24 + $0x8] sm:$0xff] %v2484_v52   ;;  %v2762_v27 = vpop.eup %2761 }
 0x424   : > { %v1814_v59 = vpop.xlane.xlu1 %1813 }
 0x425   : > { %2763 = vrcp.f32 %v1814_v59 }
 0x426   : > { %v1938_v14 = vpop.f32.mrf.mxu3 }
 0x427   : > { %v1972_v48 = vmul.f32 %v2758_v40, %v1938_v14 }
 0x42b   : > { %v2764_v30 = vpop.eup %2763 }
 0x42c   : > { %v1816_v58 = vpop.xlane.xlu0 %1815 }
 0x42d   : > { %2765 = vrcp.f32 %v1816_v58 }
 0x42e   : > { %v1940_v8 = vpop.f32.mrf.mxu3 }
 0x42f   : > { %v1973_v49 = vmul.f32 %v2760_v62, %v1940_v8 }
 0x431   : > { %v2489_v11 = vpack.c.bf16 %v1973_v49, %v1972_v48 }
 0x433   : > { %2597 = vst [vmem:[%s4291_s24 + $0x10] sm:$0xff] %v2489_v11   ;;  %v2766_v55 = vpop.eup %2765 }
 0x434   : > { %v1818_v20 = vpop.xlane.xlu2 %1817 }
 0x435   : > { %2767 = vrcp.f32 %v1818_v20 }
 0x436   : > { %v1943_v3 = vpop.f32.mrf.mxu3 }
 0x437   : > { %v1974_v17 = vmul.f32 %v2762_v27, %v1943_v3 }
 0x43b   : > { %v2768_v32 = vpop.eup %2767 }
 0x43c   : > { %v1820_v0 = vpop.xlane.xlu1 %1819 }
 0x43d   : > { %2769 = vrcp.f32 %v1820_v0 }
 0x43e   : > { %v1945_v26 = vpop.f32.mrf.mxu3 }
 0x43f   : > { %v1975_v35 = vmul.f32 %v2764_v30, %v1945_v26 }
 0x441   : > { %v2494_v51 = vpack.c.bf16 %v1975_v35, %v1974_v17 }
 0x443   : > { %2598 = vst [vmem:[%s4291_s24 + $0x18] sm:$0xff] %v2494_v51   ;;  %v2770_v24 = vpop.eup %2769 }
 0x444   : > { %v1822_v15 = vpop.xlane.xlu0 %1821 }
 0x445   : > { %2771 = vrcp.f32 %v1822_v15 }
 0x446   : > { %v1948_v41 = vpop.f32.mrf.mxu3 }
 0x447   : > { %v1976_v29 = vmul.f32 %v2766_v55, %v1948_v41 }
 0x44b   : > { %v2772_v22 = vpop.eup %2771 }
 0x44c   : > { %v1824_v28 = vpop.xlane.xlu2 %1823 }
 0x44d   : > { %2773 = vrcp.f32 %v1824_v28 }
 0x44e   : > { %v1950_v23 = vpop.f32.mrf.mxu3 }
 0x44f   : > { %v1977_v43 = vmul.f32 %v2768_v32, %v1950_v23 }
 0x451   : > { %v2499_v2 = vpack.c.bf16 %v1977_v43, %v1976_v29 }
 0x453   : > { %2599 = vst [vmem:[%s4291_s24 + $0x20] sm:$0xff] %v2499_v2   ;;  %v2774_v38 = vpop.eup %2773 }
 0x454   : > { %v1826_v7 = vpop.xlane.xlu1 %1825 }
 0x455   : > { %2775 = vrcp.f32 %v1826_v7 }
 0x456   : > { %v1953_v63 = vpop.f32.mrf.mxu3 }
 0x457   : > { %v1978_v60 = vmul.f32 %v2770_v24, %v1953_v63 }
 0x45b   : > { %v2776_v18 = vpop.eup %2775 }
 0x45c   : > { %v1828_v39 = vpop.xlane.xlu0 %1827 }
 0x45d   : > { %2777 = vrcp.f32 %v1828_v39 }
 0x45e   : > { %v1955_v12 = vpop.f32.mrf.mxu3 }
 0x45f   : > { %v1979_v4 = vmul.f32 %v2772_v22, %v1955_v12 }
 0x461   : > { %v2504_v45 = vpack.c.bf16 %v1979_v4, %v1978_v60 }
 0x463   : > { %2600 = vst [vmem:[%s4291_s24 + $0x28] sm:$0xff] %v2504_v45   ;;  %v2778_v10 = vpop.eup %2777 }
 0x464   : > { %v1830_v36 = vpop.xlane.xlu2 %1829 }
 0x465   : > { %2779 = vrcp.f32 %v1830_v36 }
 0x466   : > { %v1958_v33 = vpop.f32.mrf.mxu3 }
 0x467   : > { %v1980_v53 = vmul.f32 %v2774_v38, %v1958_v33 }
 0x46b   : > { %v2780_v9 = vpop.eup %2779 }
 0x46e   : > { %v1960_v42 = vpop.f32.mrf.mxu3 }
 0x46f   : > { %v1981_v1 = vmul.f32 %v2776_v18, %v1960_v42 }
 0x471   : > { %v2509_v54 = vpack.c.bf16 %v1981_v1, %v1980_v53 }
 0x473   : > { %2601 = vst [vmem:[%s4291_s24 + $0x30] sm:$0xff] %v2509_v54  }
 0x476   : > { %v1963_v44 = vpop.f32.mrf.mxu3 }
 0x477   : > { %v1982_v50 = vmul.f32 %v2778_v10, %v1963_v44 }
 0x47e   : > { %v1965_v13 = vpop.f32.mrf.mxu3 }
 0x47f   : > { %v1983_v21 = vmul.f32 %v2780_v9, %v1965_v13 }
 0x481   : > { %v2514_v19 = vpack.c.bf16 %v1983_v21, %v1982_v50 }
 0x483   : > { %2602 = vst [vmem:[%s4291_s24 + $0x38] sm:$0xff] %v2514_v19  }
 0x484 PF: > { %p2643_p5 = scmp.ge.s32.totalorder %s2915_s30, 2  ;;  %s2110_s15 = sand.u32 1, %s2903_s27  }
 0x485   : > { %s2111_s13 = scalar_lea.sflag [#allocation4], %s2110_s15 }
 0x486   : > { %p2636_p9 = pnand %p2643_p5, %p3011_p6 }
 0x488   : > { %p2637_p10 = pneg %p2636_p9 }
 0x48a   : > { %2898 = dma.done.wait (%p2637_p10), %s2111_s13, 1024  }
 0x48b   : > { %2900 = vsyncadd (%p2637_p10), %s2111_s13, 4294966272  ;;  %p21_p11 = scmp.ge.s32.totalorder %s2994_s11, 4   ;;  %s4403_s27 = smov %s2907_s28 }
 0x48c   : > { %s4404_s28 = smov %s2911_s29  ;;  %s4405_s29 = smov %s3005_s14 }
 0x48d   : > { %s4406_s30 = smov %s2994_s11  ;;  %23 = sbr.rel (!%p21_p11) target bundleno = 7 (0x7), region = 112 }
 0x492   :  { %2117 = vsyncpa [#allocation3], 1 }
 0x493   :  { %2119 = vsyncpa [#allocation3 + $0x1], 1 }
 0x494   :  { %2120 = vsyncpa [#allocation6], 1 }
 0x495   :  { %2121 = vsyncpa [#allocation4], 1 }
 0x496   :  { %2123 = vsyncpa [#allocation4 + $0x1], 1 }

// kernel: llama2_split1_forward.5
= control target key start
LH: loop header
LB: loop body
LE: loop exit
PB: predicated region body
PF: predicated region fallthrough
CT: control target
= control target key end

     0   :  { %s5244_s0 = inlined_call_operand.vmem [shape: f32[128,256], index: 0, kind: input, shape index: {}]   ;;  %s5245_s1 = inlined_call_operand.vmem [shape: bf16[2,128,128], index: 1, kind: input, shape index: {}]   ;;  %s5246_s2 = inlined_call_operand.hbm [shape: bf16[2,128,256], index: 2, kind: input, shape index: {}]   ;;  %s5247_s3 = inlined_call_operand.vmem [shape: f32[1,256], index: 3, kind: input, shape index: {}]   ;;  %s5248_s4 = inlined_call_operand.hbm [shape: bf16[256,512], index: 4, kind: input, shape index: {}]   ;;  %s5249_s5 = inlined_call_operand.hbm [shape: bf16[256,512], index: 5, kind: input, shape index: {}]   ;;  %s5250_s6 = inlined_call_operand.hbm [shape: bf16[512,256], index: 6, kind: input, shape index: {}]   ;;  %s5251_s7 = inlined_call_operand.vmem [shape: f32[128,256], index: 7, kind: output, shape index: {}]  }
   0x1   :  { %5262 = sst [smem:[#allocation29_spill]] %s5244_s0 }
   0x2   :  { %5263 = sst [smem:[#allocation30_spill]] %s5245_s1 }
   0x3   :  { %5264 = sst [smem:[#allocation31_spill]] %s5246_s2 }
   0x4   :  { %5265 = sst [smem:[#allocation32_spill]] %s5247_s3 }
   0x5   :  { %5266 = sst [smem:[#allocation33_spill]] %s5248_s4 }
   0x6   :  { %5267 = sst [smem:[#allocation34_spill]] %s5251_s7 }
   0x7   :  { %12 = vsyncpa [#allocation7], 0 }
   0x8   :  { %13 = vsyncpa [#allocation9], 0 }
   0x9   :  { %15 = vsyncpa [#allocation9 + $0x1], 0 }
   0xa   :  { %16 = vsyncpa [#allocation12], 0 }
   0xb   :  { %18 = vsyncpa [#allocation12 + $0x1], 0  ;;  %s4030_s24 = smov 0   ;;  %s4032_s25 = smov 0  }
   0xc   :  { %s4034_s26 = smov 0   ;;  %s4036_s27 = smov 0  }
   0xd   :  { %s4038_s28 = smov 0   ;;  %s4040_s29 = smov 0  }
   0xe   :  { %s4042_s30 = smov 0   ;;  %s4044_s8 = smov 0  }
   0xf   :  { %s4046_s9 = smov 0   ;;  %s4048_s10 = smov 0  }
  0x10 LB: > { %5268 = sst [smem:[#allocation16_spill]] %s3952_s26  ;;  %s5252_s11 = sadd.s32 4294967295, %s3980_s10   ;;  %s3980_s10 = sphi %s4048_s10, %s24_s10   ;;  %s3976_s9 = sphi %s4046_s9, %s5352_s9   ;;  %s3972_s8 = sphi %s4044_s8, %s5356_s8   ;;  %s3968_s30 = sphi %s4042_s30, %s5350_s30   ;;  %s3964_s29 = sphi %s4040_s29, %s5355_s29   ;;  %s3960_s28 = sphi %s4038_s28, %s5349_s28   ;;  %s3956_s27 = sphi %s4036_s27, %s5348_s27   ;;  %s3952_s26 = sphi %s4034_s26, %s5347_s26   ;;  %s3948_s25 = sphi %s4032_s25, %s5354_s25   ;;  %s3944_s24 = sphi %s4030_s24, %s5353_s24  }
  0x11   : > { %5269 = sst [smem:[#allocation17_spill]] %s3960_s28  ;;  %s33_s12 = sadd.s32 1, %s3972_s8 }
  0x12   : > { %5270 = sst [smem:[#allocation18_spill]] %s3964_s29  ;;  %p34_p0 = scmp.ge.s32.totalorder %s33_s12, 2 }
  0x13   : > { %5271 = sst [smem:[#allocation19_spill]] %s3968_s30  ;;  %s36_s13 = sadd.s32 1, %s3976_s9 }
  0x14   : > { %5272 = sst [smem:[#allocation20_spill]] %s3976_s9  ;;  %s69_s14 = sadd.s32 1, %s3960_s28 }
  0x15   : > { %p76_p1 = scmp.ne.s32.totalorder %s3960_s28, %s3956_s27  ;;  %s5358_s12 = smov (%p34_p0, %s33_s12), 0 }
  0x16   : > { %5273 = sst [smem:[#allocation21_spill]] %s5358_s12  ;;  %s5360_s13 = smov (!%p34_p0, %s36_s13), %s3976_s9 }
  0x17   : > { %p77_p2 = scmp.eq.s32.totalorder %s3980_s10, 0  ;;  %s134_s15 = ssub.s32 %s3972_s8, %s5358_s12 }
  0x18   : > { %p38_p3 = scmp.ge.s32.totalorder %s5360_s13, 2  ;;  %p135_p4 = scmp.eq.s32.totalorder %s134_s15, 0 }
  0x19   : > { %p4092_p5 = por %p77_p2, %p76_p1  ;;  %s137_s17 = sadd.s32 1, %s3952_s26 }
  0x1a   : > { %s5362_s13 = smov (%p38_p3, %s5360_s13), 0  ;;  %p144_p6 = scmp.ne.s32.totalorder %s3952_s26, %s3948_s25 }
  0x1b   : > { %5275 = sst [smem:[#allocation22_spill]] %s5362_s13  ;;  %s66_s19 = ssub.s32 %s3976_s9, %s5362_s13 }
  0x1c   : > { %s4100_s18 = scalar_select %p135_p4, %s3952_s26, %s137_s17  }
  0x1d   : > { %p67_p7 = scmp.eq.s32.totalorder %s66_s19, 0  ;;  %p150_p8 = scmp.ne.s32.totalorder %s3948_s25, %s3944_s24 }
  0x1e   : > { %5276 = sst [smem:[#allocation23_spill]] %s4100_s18  ;;  %p4108_p9 = por %p144_p6, %p77_p2 }
  0x1f   : > { %p4114_p10 = scmp.eq.s32.totalorder %s5252_s11, 0  ;;  %p2807_p12 = scmp.ge.s32.totalorder %s3980_s10, 1 }
  0x20   : > { %s4119_s22 = scalar_select %p67_p7, %s3960_s28, %s69_s14  }
  0x21   : > { %p4123_p11 = por %p4114_p10, %p150_p8  ;;  %p239_p13 = scmp.lt.s32.totalorder %s3980_s10, 5 }
  0x22   : > { %5279 = sst [smem:[#allocation24_spill]] %s4119_s22  ;;  %s3982_s11 = smov [#allocation6]  }
  0x23   : > { %s5281_s2 = sld [smem:[#allocation31_spill]]  ;;  %p4132_p0 = pnand %p2807_p12, %p239_p13 }
  0x24   : > { %s252_s13 = sshll.u32 %s3982_s11, 4  ;;  %s3983_s14 = smov 128   ;;  %s253_s13 = int_to_ptr.vmem [resolvable:$true] %s252_s13 }
  0x25   : > { %p3600_p1 = pneg %p4132_p0  ;;  %s3984_s12 = smov 8  }
  0x26   : > { %p2809_p3 = scmp.ge.s32.totalorder %s3980_s10, 4 }
  0x27   : > { %p3601_p2 = pnand %p3600_p1, %p4114_p10 }
  0x28   : > { %265 = sbr.rel (%p2809_p3) target bundleno = 78 (0x4e), region = 24 }
  0x29   : > { %s250_s17 = sshll.u32 %s5281_s2, 4  ;;  %s251_s17 = int_to_ptr.hbm [resolvable:$true] %s250_s17 }
  0x2a   : > { %3603 = dma.hbm_to_vmem [thread:$0]  (!%p3601_p2), %s251_s17, 4096, %s253_s13, [#allocation7], %s3983_s14, %s3983_s14, %s3984_s12  }
  0x2d   : > { %278 = sbr.rel (!%p4092_p5) target bundleno = 63 (0x3f), region = 32  ;;  %s280_s24 = sand.u32 (%p4092_p5), 1, %s3960_s28  }
  0x2e   : > { %s3439_s15 = sshll.u32 (%p4092_p5), %s3976_s9, 5  ;;  %s2810_s11 = sshll.u32 (%p4092_p5), %s280_s24, 6 }
  0x2f   : > { %s5283_s1 = sld [smem:[#allocation30_spill]] (%p4092_p5)  ;;  %s282_s3 = scalar_lea.vmem (%p4092_p5), [#allocation5], %s2810_s11 }
  0x35   : > { %s285_s18 = scalar_lea.vmem %s5283_s1, %s3439_s15 }
  0x36   : > { %v302_v0 = vld [vmem:[%s285_s18] sm:$0xff]   ;;  %v306_v1 = vld [vmem:[%s285_s18 + $0x8] sm:$0xff]   ;;  %v310_v2 = vld [vmem:[%s285_s18 + $0x10] sm:$0xff]  }
  0x37   : > { %303 = vst [vmem:[%s282_s3] sm:$0xff] %v302_v0   ;;  %v314_v3 = vld [vmem:[%s285_s18 + $0x18] sm:$0xff]   ;;  %v318_v4 = vld [vmem:[%s285_s18 + $0x40] sm:$0xff]   ;;  %v322_v5 = vld [vmem:[%s285_s18 + $0x48] sm:$0xff]  }
  0x38   : > { %307 = vst [vmem:[%s282_s3 + $0x8] sm:$0xff] %v306_v1   ;;  %v326_v6 = vld [vmem:[%s285_s18 + $0x50] sm:$0xff]   ;;  %v330_v7 = vld [vmem:[%s285_s18 + $0x58] sm:$0xff]  }
  0x39   : > { %311 = vst [vmem:[%s282_s3 + $0x10] sm:$0xff] %v310_v2  }
  0x3a   : > { %315 = vst [vmem:[%s282_s3 + $0x18] sm:$0xff] %v314_v3  }
  0x3b   : > { %319 = vst [vmem:[%s282_s3 + $0x20] sm:$0xff] %v318_v4  }
  0x3c   : > { %323 = vst [vmem:[%s282_s3 + $0x28] sm:$0xff] %v322_v5  }
  0x3d   : > { %327 = vst [vmem:[%s282_s3 + $0x30] sm:$0xff] %v326_v6  }
  0x3e   : > { %331 = vst [vmem:[%s282_s3 + $0x38] sm:$0xff] %v330_v7  }
  0x3f PF: > { %s390_s2 = sand.u32 1, %s3980_s10   ;;  %s392_s12 = sand.u32 1, %s3952_s26  }
  0x40   : > { %s2813_s13 = sshll.u32 %s392_s12, 8  ;;  %s3440_s16 = sshll.u32 %s3972_s8, 3 }
  0x41   : > { %s5284_s4 = sld [smem:[#allocation33_spill]]  ;;  %s394_s24 = scalar_lea.vmem [#allocation8], %s2813_s13 }
  0x42   : > { %s402_s15 = sshll.u32 %s394_s24, 4  ;;  %s391_s3 = scalar_lea.sflag [#allocation9], %s390_s2  ;;  %s403_s15 = int_to_ptr.vmem [resolvable:$true] %s402_s15 }
  0x43   : > { %s3985_s11 = smov 256   ;;  %s3986_s1 = smov 128  }
  0x44   : > { %s3987_s9 = smov 8   ;;  %s421_s29 = scalar_lea.hbm %s5249_s5, %s3440_s16 }
  0x45   : > { %s422_s22 = sshll.u32 %s421_s29, 4  ;;  %s416_s17 = scalar_lea.vmem [#allocation10], %s2813_s13  ;;  %s423_s22 = int_to_ptr.hbm [resolvable:$true] %s422_s22 }
  0x46   : > { %s438_s24 = scalar_lea.vmem [#allocation11], %s2813_s13  ;;  %s435_s26 = scalar_lea.sflag [#allocation12], %s392_s12 }
  0x47   : > { %s399_s14 = scalar_lea.hbm %s5284_s4, %s3440_s16  ;;  %s424_s4 = sshll.u32 %s416_s17, 4  ;;  %s425_s4 = int_to_ptr.vmem [resolvable:$true] %s424_s4 }
  0x48   : > { %s400_s18 = sshll.u32 %s399_s14, 4  ;;  %s3443_s14 = sshll.u32 %s3972_s8, 8  ;;  %s401_s18 = int_to_ptr.hbm [resolvable:$true] %s400_s18 }
  0x49   : > { %3592 = dma.hbm_to_vmem [thread:$0]  (%p4108_p9), %s401_s18, 4096, %s403_s15, %s391_s3, %s3985_s11, %s3986_s1, %s3987_s9  }
  0x4a   : > { %3593 = dma.hbm_to_vmem [thread:$0]  (%p4108_p9), %s423_s22, 4096, %s425_s4, %s391_s3, %s3985_s11, %s3986_s1, %s3987_s9  }
  0x4b   : > { %s447_s2 = sshll.u32 %s438_s24, 4  ;;  %s444_s30 = scalar_lea.hbm %s5250_s6, %s3443_s14  ;;  %s448_s2 = int_to_ptr.vmem [resolvable:$true] %s447_s2 }
  0x4c   : > { %s445_s15 = sshll.u32 %s444_s30, 4  ;;  %s446_s15 = int_to_ptr.hbm [resolvable:$true] %s445_s15 }
  0x4d   : > { %3594 = dma.hbm_to_vmem [thread:$0]  (%p4108_p9), %s446_s15, 4096, %s448_s2, %s435_s26, %s3986_s1, %s3986_s1, %s3987_s9  }
  0x4e PF: > { %459 = sbr.rel (%p4132_p0) target bundleno = 946 (0x3b2), region = 85 }
  0x53   : > { %s462_s4 = sand.u32 1, %s3956_s27  }
  0x54   : > { %s2824_s28 = sshll.u32 %s462_s4, 6 }
  0x55   : > { %s4170_s29 = scalar_lea.vmem [#allocation5], %s2824_s28 }
  0x56   : > { %3931 = dma.done.wait (%p4114_p10), [#allocation7], 4096  }
  0x57   : > { %3933 = vsyncadd (%p4114_p10), [#allocation7], 4294963200  ;;  %s5285_s0 = sadd.s32 4294967295, %s3980_s10   ;;  %s475_s7 = sand.u32 1, %s3948_s25  }
  0x58   : > { %s473_s1 = sand.u32 1, %s5285_s0   ;;  %s2826_s30 = sshll.u32 %s475_s7, 8 }
  0x59   : > { %s474_s9 = scalar_lea.sflag [#allocation9], %s473_s1  ;;  %s4179_s20 = scalar_lea.vmem [#allocation8], %s2826_s30 }
  0x5a   : > { %3935 = dma.done.wait (%p4123_p11), %s474_s9, 8192  }
  0x5b   : > { %3937 = vsyncadd (%p4123_p11), %s474_s9, 4294959104  ;;  %s4185_s27 = scalar_lea.vmem [#allocation10], %s2826_s30  ;;  %s494_s21 = scalar_lea.sflag [#allocation12], %s475_s7 }
  0x5c   : > { %s4187_s19 = scalar_lea.vmem [#allocation11], %s2826_s30 }
  0x5d   : > { %3939 = dma.done.wait (%p4123_p11), %s494_s21, 4096  }
  0x5e   : > { %3941 = vsyncadd (%p4123_p11), %s494_s21, 4294963200  ;;  %s5286_s12 = sld [smem:[#allocation19_spill]] }
  0x5f   : > { %s5287_s11 = sld [smem:[#allocation29_spill]] }
  0x60   : > { %s5288_s24 = sld [smem:[#allocation34_spill]] }
  0x61   : > { %s5289_s15 = sld [smem:[#allocation18_spill]] }
  0x64   : > { %s2829_s13 = sshll.u32 %s5286_s12, 3 }
  0x65   : > { %p551_p4 = scmp.lt.s32.totalorder %s2829_s13, 15 }
  0x67   : > { %s5364_s13 = smov (!%p551_p4, %s2829_s13), 15  ;;  %p2835_p5 = scmp.ne.s32.totalorder %s5289_s15, 0 }
  0x68   : > { %s3444_s16 = sshll.u32 %s5364_s13, 4  ;;  %s5290_s4 = sld [smem:[#allocation32_spill]] (!%p2835_p5) }
  0x69   : > { %s4197_s22 = scalar_lea.vmem %s5287_s11, %s3444_s16  ;;  %s4202_s2 = scalar_lea.vmem %s5288_s24, %s3444_s16 }
  0x6a   : > { %571 = sbr.rel (%p2835_p5) target bundleno = 488 (0x1e8), region = 109 }
  0x6f   : > { %v2918_v8 = vld [vmem:[#allocation6 + $0xf0] sm:$0xf]  ;;  %v3485_v9 = vld [vmem:[#allocation6 + $0xf4] sm:$0xf0]  ;;  %v3484_v10 = vld [vmem:[#allocation6 + $0xf4] sm:$0xf] }
  0x70   : > { %v2919_v11 = vor.u32 %v3485_v9, %v2918_v8  ;;  %v2920_v12 = vld [vmem:[#allocation6 + $0xf8] sm:$0xf0]  ;;  %v2998_v13 = vld [vmem:[#allocation6 + $0x70] sm:$0xf]  ;;  %v3465_v14 = vld [vmem:[#allocation6 + $0x74] sm:$0xf0] }
  0x71   : > { %v2923_v15 = vor.u32 %v3484_v10, %v2920_v12  ;;  %v2999_v16 = vor.u32 %v3465_v14, %v2998_v13  ;;  %v3464_v17 = vld [vmem:[#allocation6 + $0x74] sm:$0xf]  ;;  %v3000_v18 = vld [vmem:[#allocation6 + $0x78] sm:$0xf0]  ;;  %v2910_v19 = vld [vmem:[#allocation6 + $0xe0] sm:$0xf] }
  0x72   : > { %726 = vmatpush.bf16.msra.mxu0 %v2919_v11  ;;  %v3003_v20 = vor.u32 %v3464_v17, %v3000_v18  ;;  %v3483_v21 = vld [vmem:[#allocation6 + $0xe4] sm:$0xf0]  ;;  %v3482_v22 = vld [vmem:[#allocation6 + $0xe4] sm:$0xf]  ;;  %v2912_v23 = vld [vmem:[#allocation6 + $0xe8] sm:$0xf0] }
  0x73   : > { %755 = vmatpush.bf16.msra.mxu1 %v2923_v15  ;;  %888 = vmatpush.bf16.msra.mxu2 %v2999_v16  ;;  %v2911_v24 = vor.u32 %v3483_v21, %v2910_v19  ;;  %v2915_v25 = vor.u32 %v3482_v22, %v2912_v23  ;;  %v2990_v26 = vld [vmem:[#allocation6 + $0x60] sm:$0xf]  ;;  %v3463_v27 = vld [vmem:[#allocation6 + $0x64] sm:$0xf0]  ;;  %v3462_v28 = vld [vmem:[#allocation6 + $0x64] sm:$0xf] }
  0x74   : > { %917 = vmatpush.bf16.msra.mxu3 %v3003_v20  ;;  %v2991_v29 = vor.u32 %v3463_v27, %v2990_v26  ;;  %v2992_v30 = vld [vmem:[#allocation6 + $0x68] sm:$0xf0]  ;;  %v2902_v31 = vld [vmem:[#allocation6 + $0xd0] sm:$0xf]  ;;  %v3481_v32 = vld [vmem:[#allocation6 + $0xd4] sm:$0xf0] }
  0x75   : > { %v2995_v33 = vor.u32 %v3462_v28, %v2992_v30  ;;  %v3480_v34 = vld [vmem:[#allocation6 + $0xd4] sm:$0xf]  ;;  %v2904_v35 = vld [vmem:[#allocation6 + $0xd8] sm:$0xf0]  ;;  %v2982_v36 = vld [vmem:[#allocation6 + $0x50] sm:$0xf]  ;;  %v2903_v37 = vor.u32 %v3481_v32, %v2902_v31 }
  0x76   : > { %727 = vmatpush.bf16.msra.mxu0 %v2911_v24  ;;  %v3461_v38 = vld [vmem:[#allocation6 + $0x54] sm:$0xf0]  ;;  %v3460_v39 = vld [vmem:[#allocation6 + $0x54] sm:$0xf]  ;;  %v2984_v40 = vld [vmem:[#allocation6 + $0x58] sm:$0xf0]  ;;  %v2907_v41 = vor.u32 %v3480_v34, %v2904_v35 }
  0x77   : > { %756 = vmatpush.bf16.msra.mxu1 %v2915_v25  ;;  %889 = vmatpush.bf16.msra.mxu2 %v2991_v29  ;;  %v2983_v42 = vor.u32 %v3461_v38, %v2982_v36  ;;  %v2894_v43 = vld [vmem:[#allocation6 + $0xc0] sm:$0xf]  ;;  %v3479_v44 = vld [vmem:[#allocation6 + $0xc4] sm:$0xf0]  ;;  %v3478_v45 = vld [vmem:[#allocation6 + $0xc4] sm:$0xf]  ;;  %v2987_v46 = vor.u32 %v3460_v39, %v2984_v40 }
  0x78   : > { %918 = vmatpush.bf16.msra.mxu3 %v2995_v33  ;;  %v2896_v47 = vld [vmem:[#allocation6 + $0xc8] sm:$0xf0]  ;;  %v2974_v48 = vld [vmem:[#allocation6 + $0x40] sm:$0xf]  ;;  %v3459_v49 = vld [vmem:[#allocation6 + $0x44] sm:$0xf0]  ;;  %v2895_v52 = vor.u32 %v3479_v44, %v2894_v43 }
  0x79   : > { %v3458_v50 = vld [vmem:[#allocation6 + $0x44] sm:$0xf]  ;;  %v2976_v51 = vld [vmem:[#allocation6 + $0x48] sm:$0xf0]  ;;  %v2899_v53 = vor.u32 %v3478_v45, %v2896_v47  ;;  %v2975_v54 = vor.u32 %v3459_v49, %v2974_v48  ;;  %v2886_v55 = vld [vmem:[#allocation6 + $0xb0] sm:$0xf] }
  0x7a   : > { %728 = vmatpush.bf16.msra.mxu0 %v2903_v37  ;;  %v3477_v56 = vld [vmem:[#allocation6 + $0xb4] sm:$0xf0]  ;;  %v3476_v57 = vld [vmem:[#allocation6 + $0xb4] sm:$0xf]  ;;  %v2979_v58 = vor.u32 %v3458_v50, %v2976_v51  ;;  %v2888_v59 = vld [vmem:[#allocation6 + $0xb8] sm:$0xf0] }
  0x7b   : > { %757 = vmatpush.bf16.msra.mxu1 %v2907_v41  ;;  %890 = vmatpush.bf16.msra.mxu2 %v2983_v42  ;;  %v2966_v60 = vld [vmem:[#allocation6 + $0x30] sm:$0xf]  ;;  %v3457_v61 = vld [vmem:[#allocation6 + $0x34] sm:$0xf0]  ;;  %v3456_v62 = vld [vmem:[#allocation6 + $0x34] sm:$0xf]  ;;  %v2887_v0 = vor.u32 %v3477_v56, %v2886_v55  ;;  %v2891_v1 = vor.u32 %v3476_v57, %v2888_v59 }
  0x7c   : > { %919 = vmatpush.bf16.msra.mxu3 %v2987_v46  ;;  %v2968_v63 = vld [vmem:[#allocation6 + $0x38] sm:$0xf0]  ;;  %v2967_v2 = vor.u32 %v3457_v61, %v2966_v60  ;;  %v2878_v3 = vld [vmem:[#allocation6 + $0xa0] sm:$0xf]  ;;  %v3475_v4 = vld [vmem:[#allocation6 + $0xa4] sm:$0xf0] }
  0x7d   : > { %v3474_v5 = vld [vmem:[#allocation6 + $0xa4] sm:$0xf]  ;;  %v2971_v6 = vor.u32 %v3456_v62, %v2968_v63  ;;  %v2880_v7 = vld [vmem:[#allocation6 + $0xa8] sm:$0xf0]  ;;  %v2958_v8 = vld [vmem:[#allocation6 + $0x20] sm:$0xf]  ;;  %v2879_v12 = vor.u32 %v3475_v4, %v2878_v3 }
  0x7e   : > { %729 = vmatpush.bf16.msra.mxu0 %v2895_v52  ;;  %v3455_v9 = vld [vmem:[#allocation6 + $0x24] sm:$0xf0]  ;;  %v3454_v10 = vld [vmem:[#allocation6 + $0x24] sm:$0xf]  ;;  %v2960_v11 = vld [vmem:[#allocation6 + $0x28] sm:$0xf0]  ;;  %v2883_v13 = vor.u32 %v3474_v5, %v2880_v7 }
  0x7f   : > { %758 = vmatpush.bf16.msra.mxu1 %v2899_v53  ;;  %891 = vmatpush.bf16.msra.mxu2 %v2975_v54  ;;  %v2959_v14 = vor.u32 %v3455_v9, %v2958_v8  ;;  %v2870_v15 = vld [vmem:[#allocation6 + $0x90] sm:$0xf]  ;;  %v3473_v16 = vld [vmem:[#allocation6 + $0x94] sm:$0xf0]  ;;  %v3472_v17 = vld [vmem:[#allocation6 + $0x94] sm:$0xf]  ;;  %v2963_v18 = vor.u32 %v3454_v10, %v2960_v11 }
  0x80   : > { %920 = vmatpush.bf16.msra.mxu3 %v2979_v58  ;;  %v2872_v19 = vld [vmem:[#allocation6 + $0x98] sm:$0xf0]  ;;  %v2950_v20 = vld [vmem:[#allocation6 + $0x10] sm:$0xf]  ;;  %v3453_v21 = vld [vmem:[#allocation6 + $0x14] sm:$0xf0]  ;;  %v2871_v24 = vor.u32 %v3473_v16, %v2870_v15 }
  0x81   : > { %v3452_v22 = vld [vmem:[#allocation6 + $0x14] sm:$0xf]  ;;  %v2952_v23 = vld [vmem:[#allocation6 + $0x18] sm:$0xf0]  ;;  %v2875_v25 = vor.u32 %v3472_v17, %v2872_v19  ;;  %v2951_v26 = vor.u32 %v3453_v21, %v2950_v20  ;;  %v2862_v27 = vld [vmem:[#allocation6 + $0x80] sm:$0xf] }
  0x82   : > { %730 = vmatpush.bf16.msra.mxu0 %v2887_v0  ;;  %v3471_v28 = vld [vmem:[#allocation6 + $0x84] sm:$0xf0]  ;;  %v3470_v29 = vld [vmem:[#allocation6 + $0x84] sm:$0xf]  ;;  %v2955_v30 = vor.u32 %v3452_v22, %v2952_v23  ;;  %v2864_v31 = vld [vmem:[#allocation6 + $0x88] sm:$0xf0] }
  0x83   : > { %759 = vmatpush.bf16.msra.mxu1 %v2891_v1  ;;  %892 = vmatpush.bf16.msra.mxu2 %v2967_v2  ;;  %v2942_v32 = vld [vmem:[#allocation6] sm:$0xf]  ;;  %v3451_v33 = vld [vmem:[#allocation6 + $0x4] sm:$0xf0]  ;;  %v3450_v34 = vld [vmem:[#allocation6 + $0x4] sm:$0xf]  ;;  %v2863_v36 = vor.u32 %v3471_v28, %v2862_v27  ;;  %v2867_v37 = vor.u32 %v3470_v29, %v2864_v31 }
  0x84   : > { %921 = vmatpush.bf16.msra.mxu3 %v2971_v6  ;;  %v2944_v35 = vld [vmem:[#allocation6 + $0x8] sm:$0xf0]  ;;  %v2943_v38 = vor.u32 %v3451_v33, %v2942_v32  ;;  %v3466_v40 = vld [vmem:[%s4170_s29 + $0x20] sm:$0xff]  ;;  %v3468_v44 = vld [vmem:[%s4170_s29 + $0x30] sm:$0xff] }
  0x85   : > { %v2947_v39 = vor.u32 %v3450_v34, %v2944_v35  ;;  %v3446_v41 = vld [vmem:[%s4170_s29] sm:$0xff]  ;;  %v3467_v42 = vld [vmem:[%s4170_s29 + $0x28] sm:$0xff]  ;;  %v3448_v45 = vld [vmem:[%s4170_s29 + $0x10] sm:$0xff] }
  0x86   : > { %731 = vmatpush.bf16.msra.mxu0 %v2879_v12  ;;  %v3447_v43 = vld [vmem:[%s4170_s29 + $0x8] sm:$0xff]  ;;  %v3469_v46 = vld [vmem:[%s4170_s29 + $0x38] sm:$0xff]  ;;  %v946_v51 = vld [vmem:[%s4197_s22] sm:$0xff] }
  0x87   : > { %760 = vmatpush.bf16.msra.mxu1 %v2883_v13  ;;  %893 = vmatpush.bf16.msra.mxu2 %v2959_v14  ;;  %v3449_v47 = vld [vmem:[%s4170_s29 + $0x18] sm:$0xff]  ;;  %v947_v54 = vld [vmem:[%s4197_s22 + $0x8] sm:$0xff]  ;;  %v948_v63 = vld [vmem:[%s4197_s22 + $0x10] sm:$0xff] }
  0x88   : > { %922 = vmatpush.bf16.msra.mxu3 %v2963_v18  ;;  %v949_v3 = vld [vmem:[%s4197_s22 + $0x18] sm:$0xff]  ;;  %v950_v12 = vld [vmem:[%s4197_s22 + $0x20] sm:$0xff]  ;;  %v951_v16 = vld [vmem:[%s4197_s22 + $0x28] sm:$0xff] }
  0x89   : > { %v953_v29 = vld [vmem:[%s4197_s22 + $0x38] sm:$0xff] }
  0x8a   : > { %732 = vmatpush.bf16.msra.mxu0 %v2871_v24 }
  0x8b   : > { %761 = vmatpush.bf16.msra.mxu1 %v2875_v25  ;;  %894 = vmatpush.bf16.msra.mxu2 %v2951_v26  ;;  %v952_v25 = vld [vmem:[%s4197_s22 + $0x30] sm:$0xff] }
  0x8c   : > { %923 = vmatpush.bf16.msra.mxu3 %v2955_v30 }
  0x8e   : > { %733 = vmatpush.bf16.msra.mxu0 %v2863_v36 }
  0x8f   : > { %762 = vmatpush.bf16.msra.mxu1 %v2867_v37  ;;  %895 = vmatpush.bf16.msra.mxu2 %v2943_v38  ;;  %v954_v38 = vld [vmem:[%s4197_s22 + $0x40] sm:$0xff] }
  0x90   : > { %924 = vmatpush.bf16.msra.mxu3 %v2947_v39 }
  0x91   : > { %734 = vmatmul.bf16.vlgmr.msra.gmra.mxu0 %v3466_v40 }
  0x92   : > { %763 = vmatmul.bf16.vlgmr.msra.gmra.mxu1 %v3466_v40  ;;  %896 = vmatmul.bf16.vlgmr.msra.gmra.mxu2 %v3446_v41 }
  0x93   : > { %925 = vmatmul.bf16.vlgmr.msra.gmra.mxu3 %v3446_v41 }
  0xa1   : > { %739 = vmatmul.bf16.gmra.mxu0 %v3467_v42 }
  0xa2   : > { %768 = vmatmul.bf16.gmra.mxu1 %v3467_v42  ;;  %901 = vmatmul.bf16.gmra.mxu2 %v3447_v43  ;;  %v955_v42 = vld [vmem:[%s4197_s22 + $0x48] sm:$0xff] }
  0xa3   : > { %930 = vmatmul.bf16.gmra.mxu3 %v3447_v43 }
  0xb1   : > { %744 = vmatmul.bf16.gmra.mxu0 %v3468_v44 }
  0xb2   : > { %773 = vmatmul.bf16.gmra.mxu1 %v3468_v44  ;;  %906 = vmatmul.bf16.gmra.mxu2 %v3448_v45 }
  0xb3   : > { %935 = vmatmul.bf16.gmra.mxu3 %v3448_v45 }
  0xc1   : > { %749 = vmatmul.bf16.gmra.mxu0 %v3469_v46 }
  0xc2   : > { %778 = vmatmul.bf16.gmra.mxu1 %v3469_v46  ;;  %911 = vmatmul.bf16.gmra.mxu2 %v3449_v47 }
  0xc3   : > { %940 = vmatmul.bf16.gmra.mxu3 %v3449_v47 }
 0x10e   : > { %v735_v48 = vpop.f32.mrf.mxu0 }
 0x10f   : > { %v764_v49 = vpop.f32.mrf.mxu1 }
 0x115   : > { %v897_v50 = vpop.f32.mrf.mxu2 }
 0x116   : > { %v898_v52 = vadd.f32 %v897_v50, %v735_v48  ;;  %v926_v53 = vpop.f32.mrf.mxu3  ;;  %v737_v55 = vpop.f32.mrf.mxu0 }
 0x117   : > { %v927_v56 = vadd.f32 %v926_v53, %v764_v49  ;;  %v766_v57 = vpop.f32.mrf.mxu1 }
 0x118   : > { %v4215_v58 = vadd.f32 %v946_v51, %v898_v52  ;;  %v956_v51 = vld [vmem:[%s4197_s22 + $0x50] sm:$0xff] }
 0x119   : > { %v4217_v59 = vadd.f32 %v947_v54, %v927_v56 }
 0x11a   : > { %978 = vst [vmem:[#allocation2 + $0x30] sm:$0xff] %v4215_v58  ;;  %v994_v60 = vmul.f32 %v4215_v58, %v4215_v58 }
 0x11b   : > { %979 = vst [vmem:[#allocation2] sm:$0xff] %v4217_v59  ;;  %v995_v61 = vmul.f32 %v4217_v59, %v4217_v59 }
 0x11d   : > { %v899_v62 = vpop.f32.mrf.mxu2  ;;  %v1010_v0 = vadd.f32 %v995_v61, %v994_v60 }
 0x11e   : > { %v900_v1 = vadd.f32 %v899_v62, %v737_v55  ;;  %v928_v2 = vpop.f32.mrf.mxu3  ;;  %v740_v4 = vpop.f32.mrf.mxu0  ;;  %v957_v55 = vld [vmem:[%s4197_s22 + $0x58] sm:$0xff] }
 0x11f   : > { %v929_v5 = vadd.f32 %v928_v2, %v766_v57  ;;  %1011 = vadd.xlane.f32.xlu0 %v1010_v0  ;;  %v769_v6 = vpop.f32.mrf.mxu1  ;;  %v958_v2 = vld [vmem:[%s4197_s22 + $0x60] sm:$0xff] }
 0x120   : > { %v4227_v7 = vadd.f32 %v948_v63, %v900_v1 }
 0x121   : > { %v4229_v8 = vadd.f32 %v949_v3, %v929_v5 }
 0x122   : > { %980 = vst [vmem:[#allocation2 + $0x58] sm:$0xff] %v4227_v7  ;;  %v996_v9 = vmul.f32 %v4227_v7, %v4227_v7 }
 0x123   : > { %981 = vst [vmem:[#allocation2 + $0x18] sm:$0xff] %v4229_v8  ;;  %v997_v10 = vmul.f32 %v4229_v8, %v4229_v8 }
 0x125   : > { %v902_v11 = vpop.f32.mrf.mxu2  ;;  %v1013_v13 = vadd.f32 %v997_v10, %v996_v9 }
 0x126   : > { %v903_v14 = vadd.f32 %v902_v11, %v740_v4  ;;  %v931_v15 = vpop.f32.mrf.mxu3  ;;  %v742_v17 = vpop.f32.mrf.mxu0 }
 0x127   : > { %v932_v18 = vadd.f32 %v931_v15, %v769_v6  ;;  %1014 = vadd.xlane.f32.xlu0 %v1013_v13  ;;  %v771_v19 = vpop.f32.mrf.mxu1  ;;  %v959_v6 = vld [vmem:[%s4197_s22 + $0x68] sm:$0xff] }
 0x128   : > { %v4239_v20 = vadd.f32 %v950_v12, %v903_v14 }
 0x129   : > { %v4241_v21 = vadd.f32 %v951_v16, %v932_v18  ;;  %v960_v16 = vld [vmem:[%s4197_s22 + $0x70] sm:$0xff] }
 0x12a   : > { %982 = vst [vmem:[#allocation2 + $0x50] sm:$0xff] %v4239_v20  ;;  %v998_v22 = vmul.f32 %v4239_v20, %v4239_v20 }
 0x12b   : > { %983 = vst [vmem:[#allocation2 + $0x68] sm:$0xff] %v4241_v21  ;;  %v999_v23 = vmul.f32 %v4241_v21, %v4241_v21 }
 0x12d   : > { %v904_v24 = vpop.f32.mrf.mxu2  ;;  %v1016_v26 = vadd.f32 %v999_v23, %v998_v22  ;;  %v961_v23 = vld [vmem:[%s4197_s22 + $0x78] sm:$0xff] }
 0x12e   : > { %v905_v27 = vadd.f32 %v904_v24, %v742_v17  ;;  %v933_v28 = vpop.f32.mrf.mxu3  ;;  %v745_v31 = vpop.f32.mrf.mxu0 }
 0x12f   : > { %v934_v30 = vadd.f32 %v933_v28, %v771_v19  ;;  %1017 = vadd.xlane.f32.xlu1 %v1016_v26  ;;  %v774_v33 = vpop.f32.mrf.mxu1 }
 0x130   : > { %v4251_v32 = vadd.f32 %v952_v25, %v905_v27 }
 0x131   : > { %v4253_v34 = vadd.f32 %v953_v29, %v934_v30  ;;  %v3988_v30 = vmov 256.0  }
 0x132   : > { %984 = vst [vmem:[#allocation2 + $0x8] sm:$0xff] %v4251_v32  ;;  %v1000_v35 = vmul.f32 %v4251_v32, %v4251_v32  ;;  %3694 = vrcp.f32 %v3988_v30 }
 0x133   : > { %985 = vst [vmem:[#allocation2 + $0x48] sm:$0xff] %v4253_v34  ;;  %v1001_v36 = vmul.f32 %v4253_v34, %v4253_v34 }
 0x135   : > { %v907_v37 = vpop.f32.mrf.mxu2  ;;  %v1019_v39 = vadd.f32 %v1001_v36, %v1000_v35 }
 0x136   : > { %v908_v40 = vadd.f32 %v907_v37, %v745_v31  ;;  %v936_v41 = vpop.f32.mrf.mxu3  ;;  %v747_v46 = vpop.f32.mrf.mxu0 }
 0x137   : > { %v937_v43 = vadd.f32 %v936_v41, %v774_v33  ;;  %1020 = vadd.xlane.f32.xlu1 %v1019_v39  ;;  %v776_v47 = vpop.f32.mrf.mxu1 }
 0x138   : > { %v4263_v44 = vadd.f32 %v954_v38, %v908_v40  ;;  %v3695_v31 = vpop.eup %3694 }
 0x139   : > { %v4265_v45 = vadd.f32 %v955_v42, %v937_v43  ;;  %v1035_v33 = vmul.f32 256.0, %v3695_v31  ;;  %vm1039_vm0 = vweird.f32 %v3695_v31 }
 0x13a   : > { %986 = vst [vmem:[#allocation2 + $0x40] sm:$0xff] %v4263_v44  ;;  %v1002_v48 = vmul.f32 %v4263_v44, %v4263_v44 }
 0x13b   : > { %987 = vst [vmem:[#allocation2 + $0x20] sm:$0xff] %v4265_v45  ;;  %v1003_v49 = vmul.f32 %v4265_v45, %v4265_v45  ;;  %v1036_v35 = vsub.f32 1.0, %v1035_v33 }
 0x13d   : > { %v909_v50 = vpop.f32.mrf.mxu2  ;;  %v1022_v52 = vadd.f32 %v1003_v49, %v1002_v48  ;;  %v1037_v36 = vmul.f32 %v3695_v31, %v1036_v35 }
 0x13e   : > { %v910_v53 = vadd.f32 %v909_v50, %v747_v46  ;;  %v938_v54 = vpop.f32.mrf.mxu3  ;;  %v750_v62 = vpop.f32.mrf.mxu0 }
 0x13f   : > { %v939_v56 = vadd.f32 %v938_v54, %v776_v47  ;;  %1023 = vadd.xlane.f32.xlu2 %v1022_v52  ;;  %v779_v0 = vpop.f32.mrf.mxu1  ;;  %v1038_v37 = vadd.f32 %v3695_v31, %v1037_v36 }
 0x140   : > { %v4275_v57 = vadd.f32 %v956_v51, %v910_v53  ;;  %v1153_v53 = vld [vmem:[%s5290_s4] sm:$0x3] }
 0x141   : > { %v4277_v60 = vadd.f32 %v957_v55, %v939_v56  ;;  %v4309_v38 = vsel %vm1039_vm0, %v3695_v31, %v1038_v37 }
 0x142   : > { %988 = vst [vmem:[#allocation2 + $0x10] sm:$0xff] %v4275_v57  ;;  %v1004_v61 = vmul.f32 %v4275_v57, %v4275_v57 }
 0x143   : > { %989 = vst [vmem:[#allocation2 + $0x38] sm:$0xff] %v4277_v60  ;;  %v1005_v63 = vmul.f32 %v4277_v60, %v4277_v60 }
 0x145   : > { %v912_v1 = vpop.f32.mrf.mxu2  ;;  %v1025_v3 = vadd.f32 %v1005_v63, %v1004_v61  ;;  %v4317_v63 = vperm.slane %v1153_v53, 0 }
 0x146   : > { %v913_v4 = vadd.f32 %v912_v1, %v750_v62  ;;  %v941_v5 = vpop.f32.mrf.mxu3  ;;  %v752_v14 = vpop.f32.mrf.mxu0 }
 0x147   : > { %v942_v9 = vadd.f32 %v941_v5, %v779_v0  ;;  %1026 = vadd.xlane.f32.xlu2 %v1025_v3  ;;  %v781_v18 = vpop.f32.mrf.mxu1  ;;  %v4319_v0 = vperm.slane %v1153_v53, 1 }
 0x148   : > { %v4287_v10 = vadd.f32 %v958_v2, %v913_v4 }
 0x149   : > { %v4289_v11 = vadd.f32 %v959_v6, %v942_v9 }
 0x14a   : > { %990 = vst [vmem:[#allocation2 + $0x60] sm:$0xff] %v4287_v10  ;;  %v1006_v12 = vmul.f32 %v4287_v10, %v4287_v10 }
 0x14b   : > { %991 = vst [vmem:[#allocation2 + $0x70] sm:$0xff] %v4289_v11  ;;  %v1007_v13 = vmul.f32 %v4289_v11, %v4289_v11 }
 0x14d   : > { %v914_v15 = vpop.f32.mrf.mxu2  ;;  %v1028_v17 = vadd.f32 %v1007_v13, %v1006_v12 }
 0x14e   : > { %v915_v19 = vadd.f32 %v914_v15, %v752_v14  ;;  %v943_v22 = vpop.f32.mrf.mxu3 }
 0x14f   : > { %v944_v24 = vadd.f32 %v943_v22, %v781_v18  ;;  %1029 = vadd.xlane.f32.xlu0 %v1028_v17 }
 0x150   : > { %v4299_v25 = vadd.f32 %v960_v16, %v915_v19 }
 0x151   : > { %v4301_v26 = vadd.f32 %v961_v23, %v944_v24 }
 0x152   : > { %992 = vst [vmem:[#allocation2 + $0x78] sm:$0xff] %v4299_v25  ;;  %v1008_v27 = vmul.f32 %v4299_v25, %v4299_v25 }
 0x153   : > { %993 = vst [vmem:[#allocation2 + $0x28] sm:$0xff] %v4301_v26  ;;  %v1009_v28 = vmul.f32 %v4301_v26, %v4301_v26 }
 0x155   : > { %v1031_v29 = vadd.f32 %v1009_v28, %v1008_v27 }
 0x157   : > { %1032 = vadd.xlane.f32.xlu1 %v1031_v29 }
 0x192   : > { %v1012_v39 = vpop.xlane.xlu0 %1011 }
 0x193   : > { %v1041_v40 = vmul.f32 %v4309_v38, %v1012_v39 }
 0x195   : > { %v1049_v41 = vadd.f32 1e-05, %v1041_v40 }
 0x197   : > { %3696 = vrsqrt.f32 %v1049_v41  ;;  %vm1063_vm2 = vweird.f32 %v1049_v41 }
 0x19a   : > { %v1015_v42 = vpop.xlane.xlu0 %1014 }
 0x19b   : > { %v1042_v43 = vmul.f32 %v4309_v38, %v1015_v42 }
 0x19d   : > { %v3697_v46 = vpop.eup %3696  ;;  %v1050_v47 = vadd.f32 1e-05, %v1042_v43 }
 0x19e   : > { %v1058_v48 = vmul.f32 %v3697_v46, %v1049_v41  ;;  %vm1064_vm1 = vweird.f32 %v3697_v46 }
 0x19f   : > { %3698 = vrsqrt.f32 %v1050_v47  ;;  %vm1065_vm3 = vmor %vm1063_vm2, %vm1064_vm1  ;;  %vm1073_vm5 = vweird.f32 %v1050_v47 }
 0x1a0   : > { %v1059_v49 = vmul.f32 %v3697_v46, %v1058_v48 }
 0x1a2   : > { %v1060_v50 = vmul.f32 0.5, %v1059_v49  ;;  %v1018_v51 = vpop.xlane.xlu1 %1017 }
 0x1a3   : > { %v1043_v52 = vmul.f32 %v4309_v38, %v1018_v51 }
 0x1a4   : > { %v1061_v54 = vsub.f32 1.5, %v1060_v50 }
 0x1a5   : > { %v3699_v55 = vpop.eup %3698  ;;  %v1051_v56 = vadd.f32 1e-05, %v1043_v52 }
 0x1a6   : > { %v1062_v61 = vmul.f32 %v3697_v46, %v1061_v54  ;;  %v1068_v62 = vmul.f32 %v3699_v55, %v1050_v47  ;;  %vm1074_vm4 = vweird.f32 %v3699_v55 }
 0x1a7   : > { %3700 = vrsqrt.f32 %v1051_v56  ;;  %vm1075_vm6 = vmor %vm1073_vm5, %vm1074_vm4  ;;  %vm1083_vm8 = vweird.f32 %v1051_v56 }
 0x1a8   : > { %v1066_v1 = vsel %vm1065_vm3, %v3697_v46, %v1062_v61  ;;  %v1069_v2 = vmul.f32 %v3699_v55, %v1068_v62 }
 0x1a9   : > { %v1137_v3 = vmul.f32 %v1066_v1, %v4215_v58  ;;  %v1138_v4 = vmul.f32 %v1066_v1, %v4217_v59 }
 0x1aa   : > { %v1070_v5 = vmul.f32 0.5, %v1069_v2  ;;  %v1021_v6 = vpop.xlane.xlu1 %1020 }
 0x1ab   : > { %v1159_v9 = vmul.f32 %v4317_v63, %v1137_v3  ;;  %v1160_v12 = vmul.f32 %v4319_v0, %v1138_v4  ;;  %v1044_v13 = vmul.f32 %v4309_v38, %v1021_v6 }
 0x1ac   : > { %v1071_v14 = vsub.f32 1.5, %v1070_v5 }
 0x1ad   : > { %v3701_v15 = vpop.eup %3700  ;;  %v1175_v16 = vpack.c.bf16 %v1160_v12, %v1159_v9  ;;  %v1052_v17 = vadd.f32 1e-05, %v1044_v13 }
 0x1ae   : > { %v1072_v18 = vmul.f32 %v3699_v55, %v1071_v14  ;;  %v1078_v19 = vmul.f32 %v3701_v15, %v1051_v56  ;;  %vm1084_vm7 = vweird.f32 %v3701_v15  ;;  %v3989_v14 = vmov 0.0  }
 0x1af   : > { %1183 = vst [vmem:[#allocation3] sm:$0xff] %v1175_v16  ;;  %3702 = vrsqrt.f32 %v1052_v17  ;;  %vm1085_vm9 = vmor %vm1083_vm8, %vm1084_vm7  ;;  %vm1093_vm11 = vweird.f32 %v1052_v17 }
 0x1b0   : > { %v1076_v58 = vsel %vm1075_vm6, %v3699_v55, %v1072_v18  ;;  %v1079_v59 = vmul.f32 %v3701_v15, %v1078_v19  ;;  %1191 = vst [vmem:[#allocation4 + $0x28] sm:$0xff] %v3989_v14 }
 0x1b1   : > { %v1139_v22 = vmul.f32 %v1076_v58, %v4227_v7  ;;  %v1140_v23 = vmul.f32 %v1076_v58, %v4229_v8  ;;  %1192 = vst [vmem:[#allocation4 + $0x68] sm:$0xff] %v3989_v14 }
 0x1b2   : > { %v1080_v24 = vmul.f32 0.5, %v1079_v59  ;;  %v1024_v27 = vpop.xlane.xlu2 %1023  ;;  %1193 = vst [vmem:[#allocation4 + $0x10] sm:$0xff] %v3989_v14 }
 0x1b3   : > { %v1161_v28 = vmul.f32 %v4317_v63, %v1139_v22  ;;  %v1162_v29 = vmul.f32 %v4319_v0, %v1140_v23  ;;  %v1045_v30 = vmul.f32 %v4309_v38, %v1024_v27  ;;  %1194 = vst [vmem:[#allocation4 + $0x40] sm:$0xff] %v3989_v14 }
 0x1b4   : > { %v1081_v31 = vsub.f32 1.5, %v1080_v24  ;;  %1195 = vst [vmem:[#allocation4 + $0x48] sm:$0xff] %v3989_v14 }
 0x1b5   : > { %v3703_v33 = vpop.eup %3702  ;;  %v1176_v35 = vpack.c.bf16 %v1162_v29, %v1161_v28  ;;  %v1053_v36 = vadd.f32 1e-05, %v1045_v30  ;;  %1196 = vst [vmem:[#allocation4 + $0x30] sm:$0xff] %v3989_v14 }
 0x1b6   : > { %v1082_v37 = vmul.f32 %v3701_v15, %v1081_v31  ;;  %v1088_v39 = vmul.f32 %v3703_v33, %v1052_v17  ;;  %vm1094_vm10 = vweird.f32 %v3703_v33  ;;  %1197 = vst [vmem:[#allocation4 + $0x70] sm:$0xff] %v3989_v14 }
 0x1b7   : > { %1184 = vst [vmem:[#allocation3 + $0x8] sm:$0xff] %v1176_v35  ;;  %3704 = vrsqrt.f32 %v1053_v36  ;;  %vm1095_vm12 = vmor %vm1093_vm11, %vm1094_vm10  ;;  %vm1103_vm14 = vweird.f32 %v1053_v36 }
 0x1b8   : > { %v1086_v7 = vsel %vm1085_vm9, %v3701_v15, %v1082_v37  ;;  %v1089_v8 = vmul.f32 %v3703_v33, %v1088_v39  ;;  %1198 = vst [vmem:[#allocation4 + $0x38] sm:$0xff] %v3989_v14 }
 0x1b9   : > { %v1141_v40 = vmul.f32 %v1086_v7, %v4239_v20  ;;  %v1142_v41 = vmul.f32 %v1086_v7, %v4241_v21  ;;  %1199 = vst [vmem:[#allocation4 + $0x20] sm:$0xff] %v3989_v14 }
 0x1ba   : > { %v1090_v42 = vmul.f32 0.5, %v1089_v8  ;;  %v1027_v43 = vpop.xlane.xlu2 %1026  ;;  %1200 = vst [vmem:[#allocation4 + $0x78] sm:$0xff] %v3989_v14 }
 0x1bb   : > { %v1163_v46 = vmul.f32 %v4317_v63, %v1141_v40  ;;  %v1164_v47 = vmul.f32 %v4319_v0, %v1142_v41  ;;  %v1046_v48 = vmul.f32 %v4309_v38, %v1027_v43  ;;  %1201 = vst [vmem:[#allocation4 + $0x18] sm:$0xff] %v3989_v14 }
 0x1bc   : > { %v1091_v49 = vsub.f32 1.5, %v1090_v42  ;;  %1202 = vst [vmem:[#allocation4 + $0x58] sm:$0xff] %v3989_v14 }
 0x1bd   : > { %v3705_v50 = vpop.eup %3704  ;;  %v1177_v51 = vpack.c.bf16 %v1164_v47, %v1163_v46  ;;  %v1054_v52 = vadd.f32 1e-05, %v1046_v48  ;;  %1203 = vst [vmem:[#allocation4] sm:$0xff] %v3989_v14 }
 0x1be   : > { %v1092_v53 = vmul.f32 %v3703_v33, %v1091_v49  ;;  %v1098_v54 = vmul.f32 %v3705_v50, %v1053_v36  ;;  %vm1104_vm13 = vweird.f32 %v3705_v50  ;;  %1204 = vst [vmem:[#allocation4 + $0x8] sm:$0xff] %v3989_v14 }
 0x1bf   : > { %1185 = vst [vmem:[#allocation3 + $0x10] sm:$0xff] %v1177_v51  ;;  %3706 = vrsqrt.f32 %v1054_v52  ;;  %vm1105_vm15 = vmor %vm1103_vm14, %vm1104_vm13  ;;  %vm1113_vm1 = vweird.f32 %v1054_v52 }
 0x1c0   : > { %v1096_v20 = vsel %vm1095_vm12, %v3703_v33, %v1092_v53  ;;  %v1099_v21 = vmul.f32 %v3705_v50, %v1098_v54  ;;  %1205 = vst [vmem:[#allocation4 + $0x60] sm:$0xff] %v3989_v14 }
 0x1c1   : > { %v1143_v55 = vmul.f32 %v1096_v20, %v4251_v32  ;;  %v1144_v56 = vmul.f32 %v1096_v20, %v4253_v34  ;;  %1206 = vst [vmem:[#allocation4 + $0x50] sm:$0xff] %v3989_v14 }
 0x1c2   : > { %v1100_v61 = vmul.f32 0.5, %v1099_v21  ;;  %v1030_v62 = vpop.xlane.xlu0 %1029 }
 0x1c3   : > { %v1165_v1 = vmul.f32 %v4317_v63, %v1143_v55  ;;  %v1166_v2 = vmul.f32 %v4319_v0, %v1144_v56  ;;  %v1047_v3 = vmul.f32 %v4309_v38, %v1030_v62 }
 0x1c4   : > { %v1101_v4 = vsub.f32 1.5, %v1100_v61 }
 0x1c5   : > { %v3707_v5 = vpop.eup %3706  ;;  %v1178_v6 = vpack.c.bf16 %v1166_v2, %v1165_v1  ;;  %v1055_v9 = vadd.f32 1e-05, %v1047_v3 }
 0x1c6   : > { %v1102_v12 = vmul.f32 %v3705_v50, %v1101_v4  ;;  %v1108_v13 = vmul.f32 %v3707_v5, %v1054_v52  ;;  %vm1114_vm0 = vweird.f32 %v3707_v5 }
 0x1c7   : > { %1186 = vst [vmem:[#allocation3 + $0x18] sm:$0xff] %v1178_v6  ;;  %3708 = vrsqrt.f32 %v1055_v9  ;;  %vm1115_vm2 = vmor %vm1113_vm1, %vm1114_vm0  ;;  %vm1123_vm4 = vweird.f32 %v1055_v9 }
 0x1c8   : > { %v1106_v32 = vsel %vm1105_vm15, %v3705_v50, %v1102_v12  ;;  %v1109_v34 = vmul.f32 %v3707_v5, %v1108_v13 }
 0x1c9   : > { %v1145_v15 = vmul.f32 %v1106_v32, %v4263_v44  ;;  %v1146_v16 = vmul.f32 %v1106_v32, %v4265_v45 }
 0x1ca   : > { %v1110_v17 = vmul.f32 0.5, %v1109_v34  ;;  %v1033_v18 = vpop.xlane.xlu1 %1032 }
 0x1cb   : > { %v1167_v19 = vmul.f32 %v4317_v63, %v1145_v15  ;;  %v1168_v58 = vmul.f32 %v4319_v0, %v1146_v16  ;;  %v1048_v59 = vmul.f32 %v4309_v38, %v1033_v18 }
 0x1cc   : > { %v1111_v22 = vsub.f32 1.5, %v1110_v17 }
 0x1cd   : > { %v3709_v23 = vpop.eup %3708  ;;  %v1179_v24 = vpack.c.bf16 %v1168_v58, %v1167_v19  ;;  %v1056_v27 = vadd.f32 1e-05, %v1048_v59 }
 0x1ce   : > { %v1112_v44 = vmul.f32 %v3707_v5, %v1111_v22  ;;  %v1118_v45 = vmul.f32 %v3709_v23, %v1055_v9  ;;  %vm1124_vm3 = vweird.f32 %v3709_v23 }
 0x1cf   : > { %1187 = vst [vmem:[#allocation3 + $0x20] sm:$0xff] %v1179_v24  ;;  %3710 = vrsqrt.f32 %v1056_v27  ;;  %vm1125_vm5 = vmor %vm1123_vm4, %vm1124_vm3  ;;  %vm1133_vm7 = vweird.f32 %v1056_v27 }
 0x1d0   : > { %v1116_v28 = vsel %vm1115_vm2, %v3707_v5, %v1112_v44  ;;  %v1119_v29 = vmul.f32 %v3709_v23, %v1118_v45 }
 0x1d1   : > { %v1147_v38 = vmul.f32 %v1116_v28, %v4275_v57  ;;  %v1148_v30 = vmul.f32 %v1116_v28, %v4277_v60 }
 0x1d2   : > { %v1120_v31 = vmul.f32 0.5, %v1119_v29 }
 0x1d3   : > { %v1169_v33 = vmul.f32 %v4317_v63, %v1147_v38  ;;  %v1170_v35 = vmul.f32 %v4319_v0, %v1148_v30 }
 0x1d4   : > { %v1121_v36 = vsub.f32 1.5, %v1120_v31 }
 0x1d5   : > { %v3711_v37 = vpop.eup %3710  ;;  %v1180_v39 = vpack.c.bf16 %v1170_v35, %v1169_v33 }
 0x1d6   : > { %v1122_v7 = vmul.f32 %v3709_v23, %v1121_v36  ;;  %v1128_v8 = vmul.f32 %v3711_v37, %v1056_v27  ;;  %vm1134_vm6 = vweird.f32 %v3711_v37 }
 0x1d7   : > { %1188 = vst [vmem:[#allocation3 + $0x28] sm:$0xff] %v1180_v39  ;;  %vm1135_vm8 = vmor %vm1133_vm7, %vm1134_vm6 }
 0x1d8   : > { %v1126_v57 = vsel %vm1125_vm5, %v3709_v23, %v1122_v7  ;;  %v1129_v60 = vmul.f32 %v3711_v37, %v1128_v8 }
 0x1d9   : > { %v1149_v40 = vmul.f32 %v1126_v57, %v4287_v10  ;;  %v1150_v41 = vmul.f32 %v1126_v57, %v4289_v11 }
 0x1da   : > { %v1130_v42 = vmul.f32 0.5, %v1129_v60 }
 0x1db   : > { %v1171_v43 = vmul.f32 %v4317_v63, %v1149_v40  ;;  %v1172_v46 = vmul.f32 %v4319_v0, %v1150_v41 }
 0x1dc   : > { %v1131_v47 = vsub.f32 1.5, %v1130_v42 }
 0x1dd   : > { %v1181_v48 = vpack.c.bf16 %v1172_v46, %v1171_v43 }
 0x1de   : > { %v1132_v49 = vmul.f32 %v3711_v37, %v1131_v47 }
 0x1df   : > { %1189 = vst [vmem:[#allocation3 + $0x30] sm:$0xff] %v1181_v48 }
 0x1e0   : > { %v1136_v50 = vsel %vm1135_vm8, %v3711_v37, %v1132_v49 }
 0x1e1   : > { %v1151_v51 = vmul.f32 %v1136_v50, %v4299_v25  ;;  %v1152_v10 = vmul.f32 %v1136_v50, %v4301_v26 }
 0x1e3   : > { %v1173_v11 = vmul.f32 %v4317_v63, %v1151_v51  ;;  %v1174_v52 = vmul.f32 %v4319_v0, %v1152_v10 }
 0x1e5   : > { %v1182_v53 = vpack.c.bf16 %v1174_v52, %v1173_v11 }
 0x1e7   : > { %1190 = vst [vmem:[#allocation3 + $0x38] sm:$0xff] %v1182_v53 }
 0x1e8 PF: > { %v3094_v25 = vld [vmem:[%s4179_s20 + $0x70] sm:$0xf]  ;;  %v3509_v26 = vld [vmem:[%s4179_s20 + $0x74] sm:$0xf0]  ;;  %v3508_v20 = vld [vmem:[%s4179_s20 + $0x74] sm:$0xf] }
 0x1e9   : > { %v3158_v63 = vld [vmem:[%s4179_s20 + $0xf0] sm:$0xf]  ;;  %v3095_v54 = vor.u32 %v3509_v26, %v3094_v25  ;;  %v3525_v0 = vld [vmem:[%s4179_s20 + $0xf4] sm:$0xf0]  ;;  %v3096_v21 = vld [vmem:[%s4179_s20 + $0x78] sm:$0xf0] }
 0x1ea   : > { %v3159_v55 = vor.u32 %v3525_v0, %v3158_v63  ;;  %v3099_v56 = vor.u32 %v3508_v20, %v3096_v21  ;;  %v3524_v61 = vld [vmem:[%s4179_s20 + $0xf4] sm:$0xf]  ;;  %v3160_v62 = vld [vmem:[%s4179_s20 + $0xf8] sm:$0xf0]  ;;  %v3086_v1 = vld [vmem:[%s4179_s20 + $0x60] sm:$0xf] }
 0x1eb   : > { %1447 = vmatpush.bf16.msra.mxu0 %v3095_v54  ;;  %v3163_v2 = vor.u32 %v3524_v61, %v3160_v62  ;;  %v3507_v3 = vld [vmem:[%s4179_s20 + $0x64] sm:$0xf0]  ;;  %v3150_v4 = vld [vmem:[%s4179_s20 + $0xe0] sm:$0xf]  ;;  %v3506_v12 = vld [vmem:[%s4179_s20 + $0x64] sm:$0xf] }
 0x1ec   : > { %v3523_v5 = vld [vmem:[%s4179_s20 + $0xe4] sm:$0xf0]  ;;  %1476 = vmatpush.bf16.msra.mxu1 %v3159_v55  ;;  %1505 = vmatpush.bf16.msra.mxu2 %v3099_v56  ;;  %v3087_v6 = vor.u32 %v3507_v3, %v3086_v1  ;;  %v3088_v13 = vld [vmem:[%s4179_s20 + $0x68] sm:$0xf0]  ;;  %v3522_v32 = vld [vmem:[%s4179_s20 + $0xe4] sm:$0xf] }
 0x1ed   : > { %v3151_v9 = vor.u32 %v3523_v5, %v3150_v4  ;;  %1534 = vmatpush.bf16.msra.mxu3 %v3163_v2  ;;  %v3091_v34 = vor.u32 %v3506_v12, %v3088_v13  ;;  %v3152_v14 = vld [vmem:[%s4179_s20 + $0xe8] sm:$0xf0]  ;;  %v3078_v15 = vld [vmem:[%s4179_s20 + $0x50] sm:$0xf]  ;;  %v3505_v16 = vld [vmem:[%s4179_s20 + $0x54] sm:$0xf0] }
 0x1ee   : > { %v3155_v17 = vor.u32 %v3522_v32, %v3152_v14  ;;  %v3142_v18 = vld [vmem:[%s4179_s20 + $0xd0] sm:$0xf]  ;;  %v3521_v19 = vld [vmem:[%s4179_s20 + $0xd4] sm:$0xf0]  ;;  %v3504_v58 = vld [vmem:[%s4179_s20 + $0x54] sm:$0xf]  ;;  %v3079_v59 = vor.u32 %v3505_v16, %v3078_v15 }
 0x1ef   : > { %1448 = vmatpush.bf16.msra.mxu0 %v3087_v6  ;;  %v3080_v22 = vld [vmem:[%s4179_s20 + $0x58] sm:$0xf0]  ;;  %v3520_v23 = vld [vmem:[%s4179_s20 + $0xd4] sm:$0xf]  ;;  %v3143_v27 = vor.u32 %v3521_v19, %v3142_v18  ;;  %v3070_v45 = vld [vmem:[%s4179_s20 + $0x40] sm:$0xf] }
 0x1f0   : > { %v3144_v24 = vld [vmem:[%s4179_s20 + $0xd8] sm:$0xf0]  ;;  %1477 = vmatpush.bf16.msra.mxu1 %v3151_v9  ;;  %1506 = vmatpush.bf16.msra.mxu2 %v3091_v34  ;;  %v3083_v44 = vor.u32 %v3504_v58, %v3080_v22  ;;  %v3503_v28 = vld [vmem:[%s4179_s20 + $0x44] sm:$0xf0]  ;;  %v3134_v29 = vld [vmem:[%s4179_s20 + $0xc0] sm:$0xf] }
 0x1f1   : > { %1535 = vmatpush.bf16.msra.mxu3 %v3155_v17  ;;  %v3147_v38 = vor.u32 %v3520_v23, %v3144_v24  ;;  %v3519_v30 = vld [vmem:[%s4179_s20 + $0xc4] sm:$0xf0]  ;;  %v3502_v31 = vld [vmem:[%s4179_s20 + $0x44] sm:$0xf]  ;;  %v3072_v33 = vld [vmem:[%s4179_s20 + $0x48] sm:$0xf0]  ;;  %v3071_v37 = vor.u32 %v3503_v28, %v3070_v45 }
 0x1f2   : > { %v3518_v35 = vld [vmem:[%s4179_s20 + $0xc4] sm:$0xf]  ;;  %v3136_v36 = vld [vmem:[%s4179_s20 + $0xc8] sm:$0xf0]  ;;  %v3135_v39 = vor.u32 %v3519_v30, %v3134_v29  ;;  %v3075_v7 = vor.u32 %v3502_v31, %v3072_v33  ;;  %v3062_v8 = vld [vmem:[%s4179_s20 + $0x30] sm:$0xf] }
 0x1f3   : > { %1449 = vmatpush.bf16.msra.mxu0 %v3079_v59  ;;  %v3501_v57 = vld [vmem:[%s4179_s20 + $0x34] sm:$0xf0]  ;;  %v3126_v60 = vld [vmem:[%s4179_s20 + $0xb0] sm:$0xf]  ;;  %v3139_v40 = vor.u32 %v3518_v35, %v3136_v36  ;;  %v3500_v42 = vld [vmem:[%s4179_s20 + $0x34] sm:$0xf] }
 0x1f4   : > { %1478 = vmatpush.bf16.msra.mxu1 %v3143_v27  ;;  %1507 = vmatpush.bf16.msra.mxu2 %v3083_v44  ;;  %v3517_v41 = vld [vmem:[%s4179_s20 + $0xb4] sm:$0xf0]  ;;  %v3064_v43 = vld [vmem:[%s4179_s20 + $0x38] sm:$0xf0]  ;;  %v3516_v46 = vld [vmem:[%s4179_s20 + $0xb4] sm:$0xf]  ;;  %v3063_v48 = vor.u32 %v3501_v57, %v3062_v8 }
 0x1f5   : > { %1536 = vmatpush.bf16.msra.mxu3 %v3147_v38  ;;  %v3128_v47 = vld [vmem:[%s4179_s20 + $0xb8] sm:$0xf0]  ;;  %v3127_v49 = vor.u32 %v3517_v41, %v3126_v60  ;;  %v3067_v50 = vor.u32 %v3500_v42, %v3064_v43  ;;  %v3054_v51 = vld [vmem:[%s4179_s20 + $0x20] sm:$0xf]  ;;  %v3499_v10 = vld [vmem:[%s4179_s20 + $0x24] sm:$0xf0] }
 0x1f6   : > { %v3118_v11 = vld [vmem:[%s4179_s20 + $0xa0] sm:$0xf]  ;;  %v3131_v52 = vor.u32 %v3516_v46, %v3128_v47  ;;  %v3515_v53 = vld [vmem:[%s4179_s20 + $0xa4] sm:$0xf0]  ;;  %v3498_v25 = vld [vmem:[%s4179_s20 + $0x24] sm:$0xf]  ;;  %v3055_v0 = vor.u32 %v3499_v10, %v3054_v51 }
 0x1f7   : > { %1450 = vmatpush.bf16.msra.mxu0 %v3071_v37  ;;  %v3056_v26 = vld [vmem:[%s4179_s20 + $0x28] sm:$0xf0]  ;;  %v3514_v63 = vld [vmem:[%s4179_s20 + $0xa4] sm:$0xf]  ;;  %v3119_v20 = vor.u32 %v3515_v53, %v3118_v11  ;;  %v3046_v55 = vld [vmem:[%s4179_s20 + $0x10] sm:$0xf] }
 0x1f8   : > { %1479 = vmatpush.bf16.msra.mxu1 %v3135_v39  ;;  %1508 = vmatpush.bf16.msra.mxu2 %v3075_v7  ;;  %v3120_v54 = vld [vmem:[%s4179_s20 + $0xa8] sm:$0xf0]  ;;  %v3059_v21 = vor.u32 %v3498_v25, %v3056_v26  ;;  %v3497_v56 = vld [vmem:[%s4179_s20 + $0x14] sm:$0xf0]  ;;  %v3110_v61 = vld [vmem:[%s4179_s20 + $0x90] sm:$0xf] }
 0x1f9   : > { %1537 = vmatpush.bf16.msra.mxu3 %v3139_v40  ;;  %v3123_v62 = vor.u32 %v3514_v63, %v3120_v54  ;;  %v3513_v1 = vld [vmem:[%s4179_s20 + $0x94] sm:$0xf0]  ;;  %v3496_v2 = vld [vmem:[%s4179_s20 + $0x14] sm:$0xf]  ;;  %v3048_v3 = vld [vmem:[%s4179_s20 + $0x18] sm:$0xf0]  ;;  %v3047_v6 = vor.u32 %v3497_v56, %v3046_v55 }
 0x1fa   : > { %v3512_v4 = vld [vmem:[%s4179_s20 + $0x94] sm:$0xf]  ;;  %v3112_v5 = vld [vmem:[%s4179_s20 + $0x98] sm:$0xf0]  ;;  %v3038_v9 = vld [vmem:[%s4179_s20] sm:$0xf]  ;;  %v3111_v13 = vor.u32 %v3513_v1, %v3110_v61  ;;  %v3051_v32 = vor.u32 %v3496_v2, %v3048_v3 }
 0x1fb   : > { %1451 = vmatpush.bf16.msra.mxu0 %v3063_v48  ;;  %v3495_v12 = vld [vmem:[%s4179_s20 + $0x4] sm:$0xf0]  ;;  %v3102_v34 = vld [vmem:[%s4179_s20 + $0x80] sm:$0xf]  ;;  %v3494_v15 = vld [vmem:[%s4179_s20 + $0x4] sm:$0xf]  ;;  %v3115_v16 = vor.u32 %v3512_v4, %v3112_v5 }
 0x1fc   : > { %1480 = vmatpush.bf16.msra.mxu1 %v3127_v49  ;;  %1509 = vmatpush.bf16.msra.mxu2 %v3067_v50  ;;  %v3511_v14 = vld [vmem:[%s4179_s20 + $0x84] sm:$0xf0]  ;;  %v3040_v17 = vld [vmem:[%s4179_s20 + $0x8] sm:$0xf0]  ;;  %v3510_v18 = vld [vmem:[%s4179_s20 + $0x84] sm:$0xf]  ;;  %v3039_v23 = vor.u32 %v3495_v12, %v3038_v9 }
 0x1fd   : > { %1538 = vmatpush.bf16.msra.mxu3 %v3131_v52  ;;  %v3104_v19 = vld [vmem:[%s4179_s20 + $0x88] sm:$0xf0]  ;;  %v3006_v58 = vld [vmem:[#allocation3] sm:$0xf]  ;;  %v3540_v59 = vld [vmem:[%s4185_s27 + $0x74] sm:$0xf]  ;;  %v3103_v45 = vor.u32 %v3511_v14, %v3102_v34  ;;  %v3043_v28 = vor.u32 %v3494_v15, %v3040_v17 }
 0x1fe   : > { %v3224_v22 = vld [vmem:[%s4185_s27 + $0x78] sm:$0xf0]  ;;  %v3487_v24 = vld [vmem:[#allocation3 + $0x4] sm:$0xf0]  ;;  %v3556_v27 = vld [vmem:[%s4185_s27 + $0xf4] sm:$0xf]  ;;  %v3107_v30 = vor.u32 %v3510_v18, %v3104_v19 }
 0x1ff   : > { %1452 = vmatpush.bf16.msra.mxu0 %v3055_v0  ;;  %v3288_v44 = vld [vmem:[%s4185_s27 + $0xf8] sm:$0xf0]  ;;  %v3486_v29 = vld [vmem:[#allocation3 + $0x4] sm:$0xf]  ;;  %v3008_v38 = vld [vmem:[#allocation3 + $0x8] sm:$0xf0]  ;;  %v3227_v31 = vor.u32 %v3540_v59, %v3224_v22  ;;  %v4429_v37 = vor.u32 %v3487_v24, %v3006_v58 }
 0x200   : > { %1481 = vmatpush.bf16.msra.mxu1 %v3119_v20  ;;  %1510 = vmatpush.bf16.msra.mxu2 %v3059_v21  ;;  %v3222_v33 = vld [vmem:[%s4185_s27 + $0x70] sm:$0xf]  ;;  %v3541_v35 = vld [vmem:[%s4185_s27 + $0x74] sm:$0xf0]  ;;  %v3291_v39 = vor.u32 %v3556_v27, %v3288_v44  ;;  %v3538_v8 = vld [vmem:[%s4185_s27 + $0x64] sm:$0xf]  ;;  %v4434_v60 = vor.u32 %v3486_v29, %v3008_v38 }
 0x201   : > { %1539 = vmatpush.bf16.msra.mxu3 %v3123_v62  ;;  %v3286_v36 = vld [vmem:[%s4185_s27 + $0xf0] sm:$0xf]  ;;  %v3557_v7 = vld [vmem:[%s4185_s27 + $0xf4] sm:$0xf0]  ;;  %v3216_v57 = vld [vmem:[%s4185_s27 + $0x68] sm:$0xf0]  ;;  %v3223_v42 = vor.u32 %v3541_v35, %v3222_v33 }
 0x202   : > { %v3554_v40 = vld [vmem:[%s4185_s27 + $0xe4] sm:$0xf]  ;;  %v3280_v41 = vld [vmem:[%s4185_s27 + $0xe8] sm:$0xf0]  ;;  %v3287_v43 = vor.u32 %v3557_v7, %v3286_v36  ;;  %v3219_v46 = vor.u32 %v3538_v8, %v3216_v57  ;;  %v3214_v47 = vld [vmem:[%s4185_s27 + $0x60] sm:$0xf] }
 0x203   : > { %1453 = vmatpush.bf16.msra.mxu0 %v3047_v6  ;;  %v3539_v48 = vld [vmem:[%s4185_s27 + $0x64] sm:$0xf0]  ;;  %v3278_v49 = vld [vmem:[%s4185_s27 + $0xe0] sm:$0xf]  ;;  %v3283_v50 = vor.u32 %v3554_v40, %v3280_v41  ;;  %v3536_v10 = vld [vmem:[%s4185_s27 + $0x54] sm:$0xf] }
 0x204   : > { %1482 = vmatpush.bf16.msra.mxu1 %v3111_v13  ;;  %1511 = vmatpush.bf16.msra.mxu2 %v3051_v32  ;;  %v3555_v51 = vld [vmem:[%s4185_s27 + $0xe4] sm:$0xf0]  ;;  %v3208_v11 = vld [vmem:[%s4185_s27 + $0x58] sm:$0xf0]  ;;  %v3552_v52 = vld [vmem:[%s4185_s27 + $0xd4] sm:$0xf]  ;;  %v3215_v25 = vor.u32 %v3539_v48, %v3214_v47 }
 0x205   : > { %1540 = vmatpush.bf16.msra.mxu3 %v3115_v16  ;;  %v3272_v53 = vld [vmem:[%s4185_s27 + $0xd8] sm:$0xf0]  ;;  %v3279_v26 = vor.u32 %v3555_v51, %v3278_v49  ;;  %v3211_v63 = vor.u32 %v3536_v10, %v3208_v11  ;;  %v3206_v54 = vld [vmem:[%s4185_s27 + $0x50] sm:$0xf]  ;;  %v3537_v0 = vld [vmem:[%s4185_s27 + $0x54] sm:$0xf0] }
 0x206   : > { %v3270_v20 = vld [vmem:[%s4185_s27 + $0xd0] sm:$0xf]  ;;  %v3275_v21 = vor.u32 %v3552_v52, %v3272_v53  ;;  %v3553_v55 = vld [vmem:[%s4185_s27 + $0xd4] sm:$0xf0]  ;;  %v3534_v56 = vld [vmem:[%s4185_s27 + $0x44] sm:$0xf]  ;;  %v3207_v2 = vor.u32 %v3537_v0, %v3206_v54 }
 0x207   : > { %1454 = vmatpush.bf16.msra.mxu0 %v3039_v23  ;;  %v3200_v61 = vld [vmem:[%s4185_s27 + $0x48] sm:$0xf0]  ;;  %v3550_v62 = vld [vmem:[%s4185_s27 + $0xc4] sm:$0xf]  ;;  %v3014_v3 = vld [vmem:[#allocation3 + $0x10] sm:$0xf]  ;;  %v3271_v4 = vor.u32 %v3553_v55, %v3270_v20 }
 0x208   : > { %1483 = vmatpush.bf16.msra.mxu1 %v3103_v45  ;;  %1512 = vmatpush.bf16.msra.mxu2 %v3043_v28  ;;  %v3264_v1 = vld [vmem:[%s4185_s27 + $0xc8] sm:$0xf0]  ;;  %v3203_v5 = vor.u32 %v3534_v56, %v3200_v61  ;;  %v3198_v6 = vld [vmem:[%s4185_s27 + $0x40] sm:$0xf]  ;;  %v3535_v9 = vld [vmem:[%s4185_s27 + $0x44] sm:$0xf0] }
 0x209   : > { %1541 = vmatpush.bf16.msra.mxu3 %v3107_v30  ;;  %v3262_v12 = vld [vmem:[%s4185_s27 + $0xc0] sm:$0xf]  ;;  %v3267_v13 = vor.u32 %v3550_v62, %v3264_v1  ;;  %v3551_v32 = vld [vmem:[%s4185_s27 + $0xc4] sm:$0xf0]  ;;  %v3532_v34 = vld [vmem:[%s4185_s27 + $0x34] sm:$0xf]  ;;  %v3199_v58 = vor.u32 %v3535_v9, %v3198_v6 }
 0x20a   : > { %1455 = vmatmul.bf16.vlgmr.msra.gmra.mxu0 %v4429_v37  ;;  %v3192_v14 = vld [vmem:[%s4185_s27 + $0x38] sm:$0xf0]  ;;  %v3489_v15 = vld [vmem:[#allocation3 + $0x14] sm:$0xf0]  ;;  %v3548_v16 = vld [vmem:[%s4185_s27 + $0xb4] sm:$0xf]  ;;  %v3263_v59 = vor.u32 %v3551_v32, %v3262_v12 }
 0x20b   : > { %1484 = vmatmul.bf16.vlgmr.msra.gmra.mxu1 %v4434_v60  ;;  %1513 = vmatmul.bf16.vlgmr.msra.gmra.mxu2 %v4429_v37  ;;  %v3256_v17 = vld [vmem:[%s4185_s27 + $0xb8] sm:$0xf0]  ;;  %v3488_v18 = vld [vmem:[#allocation3 + $0x14] sm:$0xf]  ;;  %v3195_v22 = vor.u32 %v3532_v34, %v3192_v14  ;;  %v3190_v23 = vld [vmem:[%s4185_s27 + $0x30] sm:$0xf]  ;;  %v4469_v44 = vor.u32 %v3489_v15, %v3014_v3 }
 0x20c   : > { %1813 = vmatpush.bf16.msrb.mxu2 %v3227_v31  ;;  %1542 = vmatmul.bf16.vlgmr.msra.gmra.mxu3 %v4434_v60  ;;  %v3016_v19 = vld [vmem:[#allocation3 + $0x18] sm:$0xf0]  ;;  %v3533_v24 = vld [vmem:[%s4185_s27 + $0x34] sm:$0xf0]  ;;  %v3254_v27 = vld [vmem:[%s4185_s27 + $0xb0] sm:$0xf]  ;;  %v3259_v45 = vor.u32 %v3548_v16, %v3256_v17 }
 0x20d   : > { %1842 = vmatpush.bf16.msrb.mxu3 %v3291_v39  ;;  %1755 = vmatpush.bf16.msrb.mxu0 %v3223_v42  ;;  %v3549_v28 = vld [vmem:[%s4185_s27 + $0xb4] sm:$0xf0]  ;;  %v3530_v29 = vld [vmem:[%s4185_s27 + $0x24] sm:$0xf]  ;;  %v3184_v38 = vld [vmem:[%s4185_s27 + $0x28] sm:$0xf0]  ;;  %v4474_v30 = vor.u32 %v3488_v18, %v3016_v19  ;;  %v3191_v35 = vor.u32 %v3533_v24, %v3190_v23 }
 0x20e   : > { %1784 = vmatpush.bf16.msrb.mxu1 %v3287_v43  ;;  %v3546_v31 = vld [vmem:[%s4185_s27 + $0xa4] sm:$0xf]  ;;  %v3248_v33 = vld [vmem:[%s4185_s27 + $0xa8] sm:$0xf0]  ;;  %v3255_v36 = vor.u32 %v3549_v28, %v3254_v27  ;;  %v3187_v39 = vor.u32 %v3530_v29, %v3184_v38  ;;  %v3182_v7 = vld [vmem:[%s4185_s27 + $0x20] sm:$0xf] }
 0x20f   : > { %v3531_v8 = vld [vmem:[%s4185_s27 + $0x24] sm:$0xf0]  ;;  %v3251_v57 = vor.u32 %v3546_v31, %v3248_v33  ;;  %v3246_v40 = vld [vmem:[%s4185_s27 + $0xa0] sm:$0xf]  ;;  %v3528_v43 = vld [vmem:[%s4185_s27 + $0x14] sm:$0xf] }
 0x210   : > { %1814 = vmatpush.bf16.msrb.mxu2 %v3219_v46  ;;  %v3547_v41 = vld [vmem:[%s4185_s27 + $0xa4] sm:$0xf0]  ;;  %v3183_v42 = vor.u32 %v3531_v8, %v3182_v7  ;;  %v3176_v46 = vld [vmem:[%s4185_s27 + $0x18] sm:$0xf0]  ;;  %v3544_v47 = vld [vmem:[%s4185_s27 + $0x94] sm:$0xf] }
 0x211   : > { %1843 = vmatpush.bf16.msrb.mxu3 %v3283_v50  ;;  %1756 = vmatpush.bf16.msrb.mxu0 %v3215_v25  ;;  %v3247_v48 = vor.u32 %v3547_v41, %v3246_v40  ;;  %v3179_v49 = vor.u32 %v3528_v43, %v3176_v46  ;;  %v3240_v50 = vld [vmem:[%s4185_s27 + $0x98] sm:$0xf0]  ;;  %v3174_v51 = vld [vmem:[%s4185_s27 + $0x10] sm:$0xf]  ;;  %v3529_v10 = vld [vmem:[%s4185_s27 + $0x14] sm:$0xf0] }
 0x212   : > { %1785 = vmatpush.bf16.msrb.mxu1 %v3279_v26  ;;  %v3243_v11 = vor.u32 %v3544_v47, %v3240_v50  ;;  %v3238_v52 = vld [vmem:[%s4185_s27 + $0x90] sm:$0xf]  ;;  %v3545_v53 = vld [vmem:[%s4185_s27 + $0x94] sm:$0xf0]  ;;  %v3526_v25 = vld [vmem:[%s4185_s27 + $0x4] sm:$0xf]  ;;  %v3175_v0 = vor.u32 %v3529_v10, %v3174_v51 }
 0x213   : > { %v3168_v26 = vld [vmem:[%s4185_s27 + $0x8] sm:$0xf0]  ;;  %v3239_v20 = vor.u32 %v3545_v53, %v3238_v52  ;;  %v3166_v55 = vld [vmem:[%s4185_s27] sm:$0xf]  ;;  %v3527_v56 = vld [vmem:[%s4185_s27 + $0x4] sm:$0xf0] }
 0x214   : > { %1815 = vmatpush.bf16.msrb.mxu2 %v3211_v63  ;;  %v3542_v63 = vld [vmem:[%s4185_s27 + $0x84] sm:$0xf]  ;;  %v3232_v54 = vld [vmem:[%s4185_s27 + $0x88] sm:$0xf0]  ;;  %v3230_v62 = vld [vmem:[%s4185_s27 + $0x80] sm:$0xf]  ;;  %v3167_v6 = vor.u32 %v3527_v56, %v3166_v55 }
 0x215   : > { %1844 = vmatpush.bf16.msrb.mxu3 %v3275_v21  ;;  %1757 = vmatpush.bf16.msrb.mxu0 %v3207_v2  ;;  %v3171_v21 = vor.u32 %v3526_v25, %v3168_v26  ;;  %v3235_v61 = vor.u32 %v3542_v63, %v3232_v54  ;;  %v3543_v1 = vld [vmem:[%s4185_s27 + $0x84] sm:$0xf0]  ;;  %v3022_v2 = vld [vmem:[#allocation3 + $0x20] sm:$0xf]  ;;  %v3030_v32 = vld [vmem:[#allocation3 + $0x30] sm:$0xf] }
 0x216   : > { %1786 = vmatpush.bf16.msrb.mxu1 %v3271_v4  ;;  %v3491_v3 = vld [vmem:[#allocation3 + $0x24] sm:$0xf0]  ;;  %v3490_v4 = vld [vmem:[#allocation3 + $0x24] sm:$0xf]  ;;  %v3231_v9 = vor.u32 %v3543_v1, %v3230_v62  ;;  %v3493_v34 = vld [vmem:[#allocation3 + $0x34] sm:$0xf0] }
 0x217   : > { %v3023_v12 = vor.u32 %v3491_v3, %v3022_v2  ;;  %v3492_v14 = vld [vmem:[#allocation3 + $0x34] sm:$0xf]  ;;  %v3032_v15 = vld [vmem:[#allocation3 + $0x38] sm:$0xf0]  ;;  %v3031_v16 = vor.u32 %v3493_v34, %v3030_v32  ;;  %v3570_v40 = vld [vmem:[%s4187_s19 + $0x64] sm:$0xf] }
 0x218   : > { %1816 = vmatpush.bf16.msrb.mxu2 %v3203_v5  ;;  %v3024_v5 = vld [vmem:[#allocation3 + $0x28] sm:$0xf0]  ;;  %v3035_v17 = vor.u32 %v3492_v14, %v3032_v15  ;;  %v3588_v29 = vld [vmem:[%s4187_s19 + $0xf4] sm:$0xf]  ;;  %v3432_v38 = vld [vmem:[%s4187_s19 + $0xf8] sm:$0xf0] }
 0x219   : > { %1845 = vmatpush.bf16.msrb.mxu3 %v3267_v13  ;;  %1758 = vmatpush.bf16.msrb.mxu0 %v3199_v58  ;;  %v3027_v13 = vor.u32 %v3490_v4, %v3024_v5  ;;  %v3360_v41 = vld [vmem:[%s4187_s19 + $0x68] sm:$0xf0]  ;;  %v3430_v47 = vld [vmem:[%s4187_s19 + $0xf0] sm:$0xf]  ;;  %v3358_v50 = vld [vmem:[%s4187_s19 + $0x60] sm:$0xf] }
 0x21a   : > { %1787 = vmatpush.bf16.msrb.mxu1 %v3263_v59  ;;  %1460 = vmatmul.bf16.gmra.mxu0 %v4469_v44  ;;  %v3571_v51 = vld [vmem:[%s4187_s19 + $0x64] sm:$0xf0]  ;;  %v3363_v52 = vor.u32 %v3570_v40, %v3360_v41  ;;  %v3586_v53 = vld [vmem:[%s4187_s19 + $0xe4] sm:$0xf]  ;;  %v3424_v25 = vld [vmem:[%s4187_s19 + $0xe8] sm:$0xf0] }
 0x21b   : > { %1489 = vmatmul.bf16.gmra.mxu1 %v4474_v30  ;;  %1518 = vmatmul.bf16.gmra.mxu2 %v4469_v44  ;;  %v3359_v26 = vor.u32 %v3571_v51, %v3358_v50  ;;  %v3427_v63 = vor.u32 %v3586_v53, %v3424_v25  ;;  %v3422_v56 = vld [vmem:[%s4187_s19 + $0xe0] sm:$0xf]  ;;  %v3352_v14 = vld [vmem:[%s4187_s19 + $0x58] sm:$0xf0]  ;;  %v3584_v15 = vld [vmem:[%s4187_s19 + $0xd4] sm:$0xf] }
 0x21c   : > { %1817 = vmatpush.bf16.msrb.mxu2 %v3195_v22  ;;  %1547 = vmatmul.bf16.gmra.mxu3 %v4474_v30  ;;  %v3566_v40 = vld [vmem:[%s4187_s19 + $0x44] sm:$0xf]  ;;  %v3344_v41 = vld [vmem:[%s4187_s19 + $0x48] sm:$0xf0]  ;;  %v3342_v53 = vld [vmem:[%s4187_s19 + $0x40] sm:$0xf] }
 0x21d   : > { %1846 = vmatpush.bf16.msrb.mxu3 %v3259_v45  ;;  %1759 = vmatpush.bf16.msrb.mxu0 %v3191_v35  ;;  %v3368_v45 = vld [vmem:[%s4187_s19 + $0x78] sm:$0xf0]  ;;  %v3366_v35 = vld [vmem:[%s4187_s19 + $0x70] sm:$0xf]  ;;  %v3347_v51 = vor.u32 %v3566_v40, %v3344_v41  ;;  %v3567_v25 = vld [vmem:[%s4187_s19 + $0x44] sm:$0xf0] }
 0x21e   : > { %1788 = vmatpush.bf16.msrb.mxu1 %v3255_v36  ;;  %v3573_v36 = vld [vmem:[%s4187_s19 + $0x74] sm:$0xf0]  ;;  %s5345_s28 = sld [smem:[#allocation18_spill]] }
 0x21f   : > { %v3367_v46 = vor.u32 %v3573_v36, %v3366_v35 }
 0x220   : > { %1818 = vmatpush.bf16.msrb.mxu2 %v3187_v39 }
 0x221   : > { %1847 = vmatpush.bf16.msrb.mxu3 %v3251_v57  ;;  %1760 = vmatpush.bf16.msrb.mxu0 %v3183_v42 }
 0x222   : > { %1789 = vmatpush.bf16.msrb.mxu1 %v3247_v48  ;;  %v3589_v48 = vld [vmem:[%s4187_s19 + $0xf4] sm:$0xf0] }
 0x224   : > { %1819 = vmatpush.bf16.msrb.mxu2 %v3179_v49  ;;  %p3436_p6 = scmp.ne.s32.totalorder %s5345_s28, 1 }
 0x225   : > { %1848 = vmatpush.bf16.msrb.mxu3 %v3243_v11  ;;  %1761 = vmatpush.bf16.msrb.mxu0 %v3175_v0  ;;  %v3431_v11 = vor.u32 %v3589_v48, %v3430_v47  ;;  %v3582_v48 = vld [vmem:[%s4187_s19 + $0xc4] sm:$0xf] }
 0x226   : > { %1790 = vmatpush.bf16.msrb.mxu1 %v3239_v20 }
 0x228   : > { %1820 = vmatpush.bf16.msrb.mxu2 %v3171_v21 }
 0x229   : > { %1849 = vmatpush.bf16.msrb.mxu3 %v3235_v61  ;;  %1762 = vmatpush.bf16.msrb.mxu0 %v3167_v6  ;;  %v3587_v61 = vld [vmem:[%s4187_s19 + $0xe4] sm:$0xf0] }
 0x22a   : > { %1791 = vmatpush.bf16.msrb.mxu1 %v3231_v9  ;;  %1465 = vmatmul.bf16.gmra.mxu0 %v3023_v12  ;;  %v3423_v3 = vor.u32 %v3587_v61, %v3422_v56  ;;  %v3406_v56 = vld [vmem:[%s4187_s19 + $0xc0] sm:$0xf]  ;;  %v3564_v61 = vld [vmem:[%s4187_s19 + $0x34] sm:$0xf] }
 0x22b   : > { %1494 = vmatmul.bf16.gmra.mxu1 %v3027_v13  ;;  %1523 = vmatmul.bf16.gmra.mxu2 %v3023_v12 }
 0x22c   : > { %1552 = vmatmul.bf16.gmra.mxu3 %v3027_v13 }
 0x22d   : > { %2423 = vmatpush.bf16.msra.mxu0 %v3367_v46 }
 0x22e   : > { %2452 = vmatpush.bf16.msra.mxu1 %v3431_v11 }
 0x231   : > { %2424 = vmatpush.bf16.msra.mxu0 %v3359_v26 }
 0x232   : > { %2453 = vmatpush.bf16.msra.mxu1 %v3423_v3 }
 0x23a   : > { %1470 = vmatmul.bf16.gmra.mxu0 %v3031_v16 }
 0x23b   : > { %1499 = vmatmul.bf16.gmra.mxu1 %v3035_v17  ;;  %1528 = vmatmul.bf16.gmra.mxu2 %v3031_v16 }
 0x23c   : > { %1557 = vmatmul.bf16.gmra.mxu3 %v3035_v17 }
 0x24a   : > { %1763 = vmatmul.bf16.vlgmr.msrb.gmra.mxu0 %v4429_v37 }
 0x24b   : > { %1792 = vmatmul.bf16.vlgmr.msrb.gmra.mxu1 %v4434_v60  ;;  %1821 = vmatmul.bf16.vlgmr.msrb.gmra.mxu2 %v4429_v37 }
 0x24c   : > { %1850 = vmatmul.bf16.vlgmr.msrb.gmra.mxu3 %v4434_v60 }
 0x25a   : > { %1768 = vmatmul.bf16.gmra.mxu0 %v4469_v44 }
 0x25b   : > { %1797 = vmatmul.bf16.gmra.mxu1 %v4474_v30  ;;  %1826 = vmatmul.bf16.gmra.mxu2 %v4469_v44  ;;  %v3572_v44 = vld [vmem:[%s4187_s19 + $0x74] sm:$0xf] }
 0x25c   : > { %1855 = vmatmul.bf16.gmra.mxu3 %v4474_v30  ;;  %v3371_v28 = vor.u32 %v3572_v44, %v3368_v45  ;;  %v3435_v30 = vor.u32 %v3588_v29, %v3432_v38  ;;  %v3414_v44 = vld [vmem:[%s4187_s19 + $0xd0] sm:$0xf]  ;;  %v3585_v45 = vld [vmem:[%s4187_s19 + $0xd4] sm:$0xf0] }
 0x25d   : > { %v3415_v36 = vor.u32 %v3585_v45, %v3414_v44 }
 0x25e   : > { %2481 = vmatpush.bf16.msra.mxu2 %v3371_v28  ;;  %2510 = vmatpush.bf16.msra.mxu3 %v3435_v30 }
 0x25f   : > { %2454 = vmatpush.bf16.msra.mxu1 %v3415_v36 }
 0x262   : > { %2482 = vmatpush.bf16.msra.mxu2 %v3363_v52  ;;  %2511 = vmatpush.bf16.msra.mxu3 %v3427_v63 }
 0x26a   : > { %1773 = vmatmul.bf16.gmra.mxu0 %v3023_v12 }
 0x26b   : > { %1802 = vmatmul.bf16.gmra.mxu1 %v3027_v13  ;;  %1831 = vmatmul.bf16.gmra.mxu2 %v3023_v12 }
 0x26c   : > { %1860 = vmatmul.bf16.gmra.mxu3 %v3027_v13  ;;  %v3568_v13 = vld [vmem:[%s4187_s19 + $0x54] sm:$0xf] }
 0x27a   : > { %1778 = vmatmul.bf16.gmra.mxu0 %v3031_v16 }
 0x27b   : > { %1807 = vmatmul.bf16.gmra.mxu1 %v3035_v17  ;;  %1836 = vmatmul.bf16.gmra.mxu2 %v3031_v16  ;;  %v3416_v16 = vld [vmem:[%s4187_s19 + $0xd8] sm:$0xf0] }
 0x27c   : > { %1865 = vmatmul.bf16.gmra.mxu3 %v3035_v17 }
 0x287   : > { %v1456_v37 = vpop.f32.mrf.mxu0 }
 0x288   : > { %v1485_v60 = vpop.f32.mrf.mxu1 }
 0x289   : > { %v4518_v31 = vadd.f32 %v1485_v60, %v1456_v37 }
 0x28b   : > { %v3292_v42 = vmul.f32 -1.442695, %v4518_v31 }
 0x28d   : > { %3712 = vpow2.f32 %v3292_v42 }
 0x28e   : > { %v1514_v18 = vpop.f32.mrf.mxu2 }
 0x28f   : > { %v1543_v19 = vpop.f32.mrf.mxu3  ;;  %v1458_v58 = vpop.f32.mrf.mxu0 }
 0x290   : > { %v1487_v59 = vpop.f32.mrf.mxu1  ;;  %v4520_v33 = vadd.f32 %v1543_v19, %v1514_v18  ;;  %v3355_v18 = vor.u32 %v3568_v13, %v3352_v14  ;;  %v3419_v19 = vor.u32 %v3584_v15, %v3416_v16  ;;  %v3583_v13 = vld [vmem:[%s4187_s19 + $0xc4] sm:$0xf0]  ;;  %v3580_v14 = vld [vmem:[%s4187_s19 + $0xb4] sm:$0xf]  ;;  %v3400_v15 = vld [vmem:[%s4187_s19 + $0xb8] sm:$0xf0] }
 0x291   : > { %v4524_v39 = vadd.f32 %v1487_v59, %v1458_v58  ;;  %v3350_v58 = vld [vmem:[%s4187_s19 + $0x50] sm:$0xf] }
 0x292   : > { %v3293_v49 = vmul.f32 -1.442695, %v4520_v33  ;;  %2483 = vmatpush.bf16.msra.mxu2 %v3355_v18  ;;  %2512 = vmatpush.bf16.msra.mxu3 %v3419_v19 }
 0x293   : > { %v3294_v10 = vmul.f32 -1.442695, %v4524_v39  ;;  %v3713_v62 = vpop.eup %3712 }
 0x294   : > { %3714 = vpow2.f32 %v3293_v49  ;;  %v4546_v5 = vadd.f32 1.0, %v3713_v62  ;;  %v3408_v49 = vld [vmem:[%s4187_s19 + $0xc8] sm:$0xf0]  ;;  %v3336_v62 = vld [vmem:[%s4187_s19 + $0x38] sm:$0xf0] }
 0x295   : > { %3716 = vpow2.f32 %v3294_v10  ;;  %v3411_v52 = vor.u32 %v3582_v48, %v3408_v49  ;;  %v3339_v36 = vor.u32 %v3564_v61, %v3336_v62 }
 0x296   : > { %v1516_v22 = vpop.f32.mrf.mxu2  ;;  %2484 = vmatpush.bf16.msra.mxu2 %v3347_v51  ;;  %v1946_v63 = vand.u32 2147483648, %v4546_v5  ;;  %v1944_v19 = vand.u32 2147483647, %v4546_v5  ;;  %vm1940_vm9 = vweird.f32 %v4546_v5 }
 0x297   : > { %v1545_v23 = vpop.f32.mrf.mxu3  ;;  %v4510_v24 = vpop.f32.mrf.mxu0  ;;  %2513 = vmatpush.bf16.msra.mxu3 %v3411_v52 }
 0x298   : > { %v4512_v27 = vpop.f32.mrf.mxu1  ;;  %v4537_v54 = vadd.f32 %v1545_v23, %v1516_v22  ;;  %v3569_v23 = vld [vmem:[%s4187_s19 + $0x54] sm:$0xf0]  ;;  %v1947_v40 = vor.u32 1.1754944e-38, %v1946_v63  ;;  %vm4643_vm11 = vcmp.eq.f32.partialorder %v1944_v19, 8.507059e+37 }
 0x299   : > { %v4567_v37 = vadd.f32 %v4512_v27, %v4510_v24  ;;  %v3351_v35 = vor.u32 %v3569_v23, %v3350_v58 }
 0x29a   : > { %v3295_v1 = vmul.f32 -1.442695, %v4537_v54  ;;  %v3715_v2 = vpop.eup %3714  ;;  %2485 = vmatpush.bf16.msra.mxu2 %v3339_v36 }
 0x29b   : > { %v3717_v4 = vpop.eup %3716  ;;  %v4550_v9 = vadd.f32 1.0, %v3715_v2  ;;  %v3296_v24 = vmul.f32 -1.442695, %v4567_v37  ;;  %2425 = vmatpush.bf16.msra.mxu0 %v3351_v35  ;;  %v3407_v35 = vor.u32 %v3583_v13, %v3406_v56 }
 0x29c   : > { %3718 = vpow2.f32 %v3295_v1  ;;  %v4552_v12 = vadd.f32 1.0, %v3717_v4  ;;  %v3343_v4 = vor.u32 %v3567_v25, %v3342_v53 }
 0x29d   : > { %3720 = vrcp.f32 %v4546_v5  ;;  %v1959_v44 = vand.u32 2147483647, %v4550_v9  ;;  %v1961_v45 = vand.u32 2147483648, %v4550_v9  ;;  %2455 = vmatpush.bf16.msra.mxu1 %v3407_v35  ;;  %vm1955_vm0 = vweird.f32 %v4550_v9 }
 0x29e   : > { %v1519_v7 = vpop.f32.mrf.mxu2  ;;  %3722 = vrcp.f32 %v4550_v9  ;;  %v1976_v53 = vand.u32 2147483648, %v4552_v12  ;;  %vm1970_vm1 = vweird.f32 %v4552_v12 }
 0x29f   : > { %v1548_v8 = vpop.f32.mrf.mxu3  ;;  %v1463_v57 = vpop.f32.mrf.mxu0  ;;  %3724 = vrcp.f32 %v4552_v12  ;;  %2426 = vmatpush.bf16.msra.mxu0 %v3343_v4  ;;  %v1962_v52 = vor.u32 1.1754944e-38, %v1961_v45  ;;  %vm4662_vm13 = vcmp.eq.f32.partialorder %v1959_v44, 8.507059e+37 }
 0x2a0   : > { %v1492_v43 = vpop.f32.mrf.mxu1  ;;  %v4569_v60 = vadd.f32 %v1548_v8, %v1519_v7  ;;  %3726 = vpow2.f32 %v3296_v24 }
 0x2a1   : > { %v4574_v22 = vadd.f32 %v1492_v43, %v1463_v57 }
 0x2a2   : > { %v3719_v59 = vpop.eup %3718  ;;  %v3297_v27 = vmul.f32 -1.442695, %v4569_v60 }
 0x2a3   : > { %v4583_v29 = vpop.eup %3720  ;;  %v4585_v38 = vadd.f32 1.0, %v3719_v59  ;;  %v3298_v57 = vmul.f32 -1.442695, %v4574_v22 }
 0x2a4   : > { %v4598_v43 = vpop.eup %3722  ;;  %v1936_v47 = vmul.f32 %v4583_v29, %v4546_v5  ;;  %3728 = vpow2.f32 %v3297_v27  ;;  %vm1941_vm10 = vweird.f32 %v4583_v29 }
 0x2a5   : > { %v4600_v46 = vpop.eup %3724  ;;  %3730 = vrcp.f32 %v4585_v38  ;;  %v1951_v10 = vmul.f32 %v4598_v43, %v4550_v9  ;;  %vm1956_vm12 = vweird.f32 %v4598_v43  ;;  %v1989_v13 = vand.u32 2147483647, %v4585_v38  ;;  %vm4694_vm15 = vmor %vm1940_vm9, %vm1941_vm10  ;;  %v3392_v9 = vld [vmem:[%s4187_s19 + $0xa8] sm:$0xf0] }
 0x2a6   : > { %v1521_v0 = vpop.f32.mrf.mxu2  ;;  %3732 = vpow2.f32 %v3298_v57  ;;  %v1966_v11 = vmul.f32 %v4600_v46, %v4552_v12  ;;  %v1937_v26 = vsub.f32 1.0, %v1936_v47  ;;  %v3403_v57 = vor.u32 %v3580_v14, %v3400_v15  ;;  %v3334_v14 = vld [vmem:[%s4187_s19 + $0x30] sm:$0xf]  ;;  %v3565_v15 = vld [vmem:[%s4187_s19 + $0x34] sm:$0xf0]  ;;  %vm4712_vm2 = vmor %vm1955_vm0, %vm1956_vm12 }
 0x2a7   : > { %v1550_v20 = vpop.f32.mrf.mxu3  ;;  %v4539_v21 = vpop.f32.mrf.mxu0  ;;  %v1952_v58 = vsub.f32 1.0, %v1951_v10  ;;  %v1974_v10 = vand.u32 2147483647, %v4552_v12  ;;  %vm1971_vm14 = vweird.f32 %v4600_v46  ;;  %v1977_v12 = vor.u32 1.1754944e-38, %v1976_v53 }
 0x2a8   : > { %v4541_v55 = vpop.f32.mrf.mxu1  ;;  %v4587_v30 = vadd.f32 %v1550_v20, %v1521_v0  ;;  %v3727_v20 = vpop.eup %3726  ;;  %v1967_v59 = vsub.f32 1.0, %v1966_v11  ;;  %v1938_v27 = vmul.f32 %v4583_v29, %v1937_v26  ;;  %2514 = vmatpush.bf16.msra.mxu3 %v3403_v57  ;;  %vm4725_vm4 = vmor %vm1970_vm1, %vm1971_vm14  ;;  %v1991_v57 = vand.u32 2147483648, %v4585_v38 }
 0x2a9   : > { %v4635_v24 = vadd.f32 1.0, %v3727_v20  ;;  %v4656_v25 = vadd.f32 %v4541_v55, %v4539_v21  ;;  %vm4716_vm3 = vcmp.eq.f32.partialorder %v1974_v10, 8.507059e+37  ;;  %vm4743_vm5 = vcmp.eq.f32.partialorder %v1989_v13, 8.507059e+37 }
 0x2aa   : > { %v3299_v50 = vmul.f32 -1.442695, %v4587_v30  ;;  %v3729_v3 = vpop.eup %3728  ;;  %v1968_v51 = vmul.f32 %v4600_v46, %v1967_v59  ;;  %v1939_v63 = vadd.f32 %v4583_v29, %v1938_v27  ;;  %v3581_v59 = vld [vmem:[%s4187_s19 + $0xb4] sm:$0xf0]  ;;  %v3335_v27 = vor.u32 %v3565_v15, %v3334_v14 }
 0x2ab   : > { %v4629_v18 = vpop.eup %3730  ;;  %v4641_v47 = vadd.f32 1.0, %v3729_v3  ;;  %v1992_v14 = vor.u32 1.1754944e-38, %v1991_v57  ;;  %v2004_v15 = vand.u32 2147483647, %v4635_v24  ;;  %vm1985_vm7 = vweird.f32 %v4585_v38 }
 0x2ac   : > { %3734 = vpow2.f32 %v3299_v50  ;;  %v3733_v23 = vpop.eup %3732  ;;  %v1981_v41 = vmul.f32 %v4629_v18, %v4585_v38  ;;  %v1953_v50 = vmul.f32 %v4598_v43, %v1952_v58  ;;  %v3398_v58 = vld [vmem:[%s4187_s19 + $0xb0] sm:$0xf]  ;;  %v1943_v5 = vsel %vm4694_vm15, %v4583_v29, %v1939_v63  ;;  %2427 = vmatpush.bf16.msra.mxu0 %v3335_v27 }
 0x2ad   : > { %v4650_v11 = vadd.f32 1.0, %v3733_v23  ;;  %3736 = vrcp.f32 %v4635_v24  ;;  %vm1986_vm6 = vweird.f32 %v4629_v18  ;;  %v2021_v20 = vand.u32 2147483648, %v4641_v47  ;;  %v3578_v23 = vld [vmem:[%s4187_s19 + $0xa4] sm:$0xf] }
 0x2ae   : > { %v4548_v6 = vpop.f32.mrf.mxu2  ;;  %v1982_v61 = vsub.f32 1.0, %v1981_v41  ;;  %3738 = vrcp.f32 %v4641_v47  ;;  %v3399_v41 = vor.u32 %v3581_v59, %v3398_v58  ;;  %vm4791_vm8 = vmor %vm1985_vm7, %vm1986_vm6  ;;  %vm2000_vm9 = vweird.f32 %v4635_v24 }
 0x2af   : > { %v4555_v32 = vpop.f32.mrf.mxu3  ;;  %v4557_v34 = vpop.f32.mrf.mxu0  ;;  %3740 = vrcp.f32 %v4650_v11  ;;  %v2036_v27 = vand.u32 2147483648, %v4650_v11  ;;  %vm2015_vm12 = vweird.f32 %v4641_v47  ;;  %vm4874_vm14 = vcmp.eq.f32.partialorder %v2004_v15, 8.507059e+37 }
 0x2b0   : > { %v4562_v17 = vpop.f32.mrf.mxu1  ;;  %v4680_v3 = vadd.f32 %v4555_v32, %v4548_v6  ;;  %v3300_v6 = vmul.f32 -1.442695, %v4656_v25  ;;  %v1983_v29 = vmul.f32 %v4629_v18, %v1982_v61  ;;  %2456 = vmatpush.bf16.msra.mxu1 %v3399_v41 }
 0x2b1   : > { %v4669_v56 = vadd.f32 %v4562_v17, %v4557_v34  ;;  %v1954_v34 = vadd.f32 %v4598_v43, %v1953_v50  ;;  %v1969_v17 = vadd.f32 %v4600_v46, %v1968_v51  ;;  %v1948_v50 = vsel %vm4643_vm11, %v1947_v40, %v1943_v5  ;;  %v3328_v5 = vld [vmem:[%s4187_s19 + $0x28] sm:$0xf0] }
 0x2b2   : > { %v3735_v48 = vpop.eup %3734  ;;  %5295 = vst [vmem:[#allocation25_spill] sm:$0xff] %v4680_v3  ;;  %v3301_v45 = vmul.f32 -1.442695, %v4680_v3  ;;  %v2006_v40 = vand.u32 2147483648, %v4635_v24  ;;  %v4775_v58 = vmul.f32 %v1948_v50, %v4518_v31  ;;  %v3395_v50 = vor.u32 %v3578_v23, %v3392_v9  ;;  %v3376_v3 = vld [vmem:[%s4187_s19 + $0x88] sm:$0xf0] }
 0x2b3   : > { %v4676_v62 = vadd.f32 1.0, %v3735_v48  ;;  %v1958_v35 = vsel %vm4712_vm2, %v4598_v43, %v1954_v34  ;;  %v1973_v36 = vsel %vm4725_vm4, %v4600_v46, %v1969_v17  ;;  %v1984_v17 = vadd.f32 %v4629_v18, %v1983_v29 }
 0x2b4   : > { %v1963_v61 = vsel %vm4662_vm13, %v1962_v52, %v1958_v35  ;;  %v1978_v34 = vsel %vm4716_vm3, %v1977_v12, %v1973_v36  ;;  %v4795_v44 = vor.u32 1.1754944e-38, %v2006_v40  ;;  %v4811_v40 = vor.u32 1.1754944e-38, %v2021_v20  ;;  %2515 = vmatpush.bf16.msra.mxu3 %v3395_v50  ;;  %v3320_v50 = vld [vmem:[%s4187_s19 + $0x18] sm:$0xf0] }
 0x2b5   : > { %3742 = vrcp.f32 %v4676_v62  ;;  %v4784_v12 = vmul.f32 %v1963_v61, %v4520_v33  ;;  %v1988_v33 = vsel %vm4791_vm8, %v4629_v18, %v1984_v17  ;;  %v3563_v18 = vld [vmem:[%s4187_s19 + $0x24] sm:$0xf0]  ;;  %v3390_v17 = vld [vmem:[%s4187_s19 + $0xa0] sm:$0xf]  ;;  %vm2030_vm13 = vweird.f32 %v4650_v11 }
 0x2b6   : > { %v4581_v28 = vpop.f32.mrf.mxu2  ;;  %3744 = vpow2.f32 %v3300_v6  ;;  %v3562_v6 = vld [vmem:[%s4187_s19 + $0x24] sm:$0xf]  ;;  %vm2045_vm6 = vweird.f32 %v4676_v62 }
 0x2b7   : > { %v4589_v7 = vpop.f32.mrf.mxu3  ;;  %v4591_v8 = vpop.f32.mrf.mxu0  ;;  %v3331_v41 = vor.u32 %v3562_v6, %v3328_v5  ;;  %v1993_v6 = vsel %vm4743_vm5, %v1992_v14, %v1988_v33 }
 0x2b8   : > { %v4596_v42 = vpop.f32.mrf.mxu1  ;;  %v4703_v32 = vadd.f32 %v4589_v7, %v4581_v28  ;;  %v3302_v28 = vmul.f32 -1.442695, %v4669_v56  ;;  %v4721_v7 = vpop.eup %3736 }
 0x2b9   : > { %v4739_v48 = vpop.eup %3738  ;;  %v1996_v46 = vmul.f32 %v4721_v7, %v4635_v24  ;;  %vm2001_vm10 = vweird.f32 %v4721_v7  ;;  %2486 = vmatpush.bf16.msra.mxu2 %v3331_v41 }
 0x2ba   : > { %5298 = vst [vmem:[#allocation26_spill] sm:$0xff] %v4703_v32  ;;  %v3303_v10 = vmul.f32 -1.442695, %v4703_v32  ;;  %v4750_v53 = vpop.eup %3740  ;;  %3746 = vpow2.f32 %v3302_v28  ;;  %v2011_v19 = vmul.f32 %v4739_v48, %v4641_v47  ;;  %v4787_v28 = vmul.f32 %v1978_v34, %v4524_v39  ;;  %v3577_v39 = vld [vmem:[%s4187_s19 + $0x94] sm:$0xf0]  ;;  %vm4918_vm0 = vmor %vm2000_vm9, %vm2001_vm10 }
 0x2bb   : > { %3748 = vpow2.f32 %v3301_v45  ;;  %v4772_v52 = vpop.eup %3742  ;;  %v2026_v59 = vmul.f32 %v4750_v53, %v4650_v11  ;;  %v1997_v38 = vsub.f32 1.0, %v1996_v46  ;;  %v4815_v34 = vadd.f32 %v4596_v42, %v4591_v8  ;;  %v3312_v45 = vld [vmem:[%s4187_s19 + $0x8] sm:$0xf0] }
 0x2bc   : > { %3750 = vpow2.f32 %v3303_v10  ;;  %v3745_v29 = vpop.eup %3744  ;;  %v2012_v36 = vsub.f32 1.0, %v2011_v19  ;;  %v4806_v57 = vmul.f32 %v4772_v52, %v4676_v62  ;;  %v3326_v10 = vld [vmem:[%s4187_s19 + $0x20] sm:$0xf]  ;;  %v3579_v19 = vld [vmem:[%s4187_s19 + $0xa4] sm:$0xf0]  ;;  %vm2016_vm11 = vweird.f32 %v4739_v48 }
 0x2bd   : > { %v2027_v61 = vsub.f32 1.0, %v2026_v59  ;;  %5309 = vst [vmem:[#allocation27_spill] sm:$0xff] %v4815_v34  ;;  %v1998_v5 = vmul.f32 %v4721_v7, %v1997_v38  ;;  %v4825_v23 = vadd.f32 1.0, %v3745_v29  ;;  %v4832_v59 = vor.u32 1.1754944e-38, %v2036_v27  ;;  %vm4933_vm1 = vmor %vm2015_vm12, %vm2016_vm11 }
 0x2be   : > { %v4615_v0 = vpop.f32.mrf.mxu2  ;;  %v3327_v9 = vor.u32 %v3563_v18, %v3326_v10  ;;  %v2013_v29 = vmul.f32 %v4739_v48, %v2012_v36  ;;  %v2042_v33 = vsub.f32 1.0, %v4806_v57  ;;  %v3391_v27 = vor.u32 %v3579_v19, %v3390_v17  ;;  %v3576_v57 = vld [vmem:[%s4187_s19 + $0x94] sm:$0xf]  ;;  %v3384_v18 = vld [vmem:[%s4187_s19 + $0x98] sm:$0xf0] }
 0x2bf   : > { %v4620_v1 = vpop.f32.mrf.mxu3  ;;  %v4622_v2 = vpop.f32.mrf.mxu0  ;;  %v3304_v10 = vmul.f32 -1.442695, %v4815_v34  ;;  %3752 = vrcp.f32 %v4825_v23  ;;  %vm2031_vm15 = vweird.f32 %v4750_v53  ;;  %vm2046_vm3 = vweird.f32 %v4772_v52 }
 0x2c0   : > { %v4627_v16 = vpop.f32.mrf.mxu1  ;;  %v3747_v35 = vpop.eup %3746  ;;  %2428 = vmatpush.bf16.msra.mxu0 %v3327_v9  ;;  %2457 = vmatpush.bf16.msra.mxu1 %v3391_v27  ;;  %v4891_v15 = vadd.f32 %v4739_v48, %v2013_v29  ;;  %v3387_v9 = vor.u32 %v3576_v57, %v3384_v18  ;;  %v3382_v27 = vld [vmem:[%s4187_s19 + $0x90] sm:$0xf]  ;;  %vm4956_vm2 = vmor %vm2030_vm13, %vm2031_vm15  ;;  %vm2060_vm9 = vweird.f32 %v4825_v23 }
 0x2c1   : > { %v3749_v46 = vpop.eup %3748  ;;  %v4834_v51 = vadd.f32 1.0, %v3747_v35  ;;  %v4838_v14 = vadd.f32 %v4627_v16, %v4622_v2  ;;  %v3560_v35 = vld [vmem:[%s4187_s19 + $0x14] sm:$0xf]  ;;  %v4850_v2 = vmul.f32 %v1993_v6, %v4537_v54  ;;  %v2028_v16 = vmul.f32 %v4750_v53, %v2027_v61  ;;  %v4887_v6 = vld [vmem:[%s4187_s19 + $0x4] sm:$0xf0]  ;;  %vm4990_vm7 = vmor %vm2045_vm6, %vm2046_vm3 }
 0x2c2   : > { %v3751_v42 = vpop.eup %3750  ;;  %v4845_v41 = vadd.f32 1.0, %v3749_v46  ;;  %v4861_v46 = vadd.f32 %v4721_v7, %v1998_v5  ;;  %v4868_v61 = vadd.f32 %v4620_v1, %v4615_v0  ;;  %v4884_v1 = vld [vmem:[%s4187_s19] sm:$0xf]  ;;  %v3558_v5 = vld [vmem:[%s4187_s19 + $0x4] sm:$0xf]  ;;  %2516 = vmatpush.bf16.msra.mxu3 %v3387_v9 }
 0x2c3   : > { %5310 = vst [vmem:[#allocation28_spill] sm:$0xff] %v4838_v14  ;;  %v4864_v54 = vadd.f32 1.0, %v3751_v42  ;;  %3754 = vrcp.f32 %v4834_v51  ;;  %v3306_v19 = vmul.f32 -1.442695, %v4838_v14  ;;  %v3323_v42 = vor.u32 %v3560_v35, %v3320_v50  ;;  %v3574_v14 = vld [vmem:[%s4187_s19 + $0x84] sm:$0xf] }
 0x2c4   : > { %3756 = vrcp.f32 %v4845_v41  ;;  %v4898_v34 = vadd.f32 %v4750_v53, %v2028_v16  ;;  %v3305_v29 = vmul.f32 -1.442695, %v4868_v61  ;;  %vm2090_vm13 = vweird.f32 %v4834_v51 }
 0x2c5   : > { %3758 = vpow2.f32 %v3304_v10  ;;  %2487 = vmatpush.bf16.msra.mxu2 %v3323_v42  ;;  %v2003_v42 = vsel %vm4918_vm0, %v4721_v7, %v4861_v46  ;;  %vm2075_vm15 = vweird.f32 %v4845_v41 }
 0x2c6   : > { %v4658_v26 = vpop.f32.mrf.mxu2  ;;  %3760 = vrcp.f32 %v4864_v54  ;;  %v2033_v7 = vsel %vm4956_vm2, %v4750_v53, %v4898_v34  ;;  %v2008_v53 = vsel %vm4874_vm14, %v4795_v44, %v2003_v42  ;;  %v2049_v34 = vand.u32 2147483647, %v4676_v62 }
 0x2c7   : > { %v4671_v21 = vpop.f32.mrf.mxu3  ;;  %v4673_v55 = vpop.f32.mrf.mxu0  ;;  %3762 = vpow2.f32 %v3306_v19  ;;  %v3575_v19 = vld [vmem:[%s4187_s19 + $0x84] sm:$0xf0] }
 0x2c8   : > { %v4682_v4 = vpop.f32.mrf.mxu1  ;;  %v4856_v36 = vadd.f32 %v4671_v21, %v4658_v26  ;;  %v3318_v26 = vld [vmem:[%s4187_s19 + $0x10] sm:$0xf]  ;;  %v3561_v21 = vld [vmem:[%s4187_s19 + $0x14] sm:$0xf0]  ;;  %vm2050_vm8 = vcmp.eq.f32.partialorder %v2049_v34, 8.507059e+37 }
 0x2c9   : > { %v1794_v0 = vadd.f32 %v4682_v4, %v4673_v55  ;;  %v2043_v55 = vmul.f32 %v4772_v52, %v2042_v33  ;;  %v3319_v50 = vor.u32 %v3561_v21, %v3318_v26  ;;  %v4927_v26 = vpop.eup %3752 }
 0x2ca   : > { %v3307_v4 = vmul.f32 -1.442695, %v4856_v36  ;;  %vm2061_vm10 = vweird.f32 %v4927_v26 }
 0x2cb   : > { %v2191_v57 = vmul.f32 %v4775_v58, %v1794_v0  ;;  %2429 = vmatpush.bf16.msra.mxu0 %v3319_v50  ;;  %v3311_v58 = vor.u32 %v4887_v6, %v4884_v1  ;;  %v4942_v0 = vpop.eup %3754  ;;  %v2044_v1 = vadd.f32 %v4772_v52, %v2043_v55  ;;  %v2179_v50 = vmul.f32 %v2008_v53, %v4567_v37  ;;  %vm5070_vm2 = vmor %vm2060_vm9, %vm2061_vm10 }
 0x2cc   : > { %3764 = vpow2.f32 %v3307_v4  ;;  %v2086_v9 = vmul.f32 %v4942_v0, %v4834_v51  ;;  %vm2091_vm12 = vweird.f32 %v4942_v0  ;;  %v2096_v53 = vand.u32 2147483648, %v4834_v51 }
 0x2cd   : > { %3766 = vpow2.f32 %v3305_v29  ;;  %vm5058_vm0 = vmor %vm2090_vm13, %vm2091_vm12 }
 0x2ce   : > { %v4748_v43 = vpop.f32.mrf.mxu2 }
 0x2cf   : > { %v4756_v49 = vpop.f32.mrf.mxu3  ;;  %v4758_v63 = vpop.f32.mrf.mxu0  ;;  %2430 = vmatpush.bf16.msra.mxu0 %v3311_v58 }
 0x2d0   : > { %v4765_v13 = vpop.f32.mrf.mxu1 }
 0x2d1   : > { %v1796_v35 = vadd.f32 %v4765_v13, %v4758_v63  ;;  %v1852_v63 = vadd.f32 %v4756_v49, %v4748_v43  ;;  %v3383_v13 = vor.u32 %v3577_v39, %v3382_v27  ;;  %v3315_v43 = vor.u32 %v3558_v5, %v3312_v45  ;;  %v3374_v39 = vld [vmem:[%s4187_s19 + $0x80] sm:$0xf] }
 0x2d2   : > { %v3379_v49 = vor.u32 %v3574_v14, %v3376_v3  ;;  %v4962_v14 = vpop.eup %3756 }
 0x2d3   : > { %v2193_v21 = vmul.f32 %v4787_v28, %v1796_v35  ;;  %v2018_v28 = vsel %vm4933_vm1, %v4739_v48, %v4891_v15  ;;  %2458 = vmatpush.bf16.msra.mxu1 %v3383_v13  ;;  %2488 = vmatpush.bf16.msra.mxu2 %v3315_v43  ;;  %v3759_v46 = vpop.eup %3758  ;;  %v2192_v6 = vmul.f32 %v4784_v12, %v1852_v63  ;;  %v2051_v15 = vand.u32 2147483648, %v4676_v62 }
 0x2d4   : > { %2517 = vmatpush.bf16.msra.mxu3 %v3379_v49  ;;  %v4972_v5 = vpop.eup %3760  ;;  %v5319_v12 = vand.u32 2147483647, %v4641_v47  ;;  %v2056_v47 = vmul.f32 %v4927_v26, %v4825_v23  ;;  %v2087_v63 = vsub.f32 1.0, %v2086_v9  ;;  %v5012_v58 = vadd.f32 1.0, %v3759_v46 }
 0x2d5   : > { %v2223_v48 = vpack.c.bf16 %v2193_v21, %v2191_v57  ;;  %v3763_v27 = vpop.eup %3762  ;;  %v2052_v57 = vor.u32 1.1754944e-38, %v2051_v15  ;;  %vm2076_vm14 = vweird.f32 %v4962_v14  ;;  %vm2106_vm1 = vweird.f32 %v4972_v5 }
 0x2d6   : > { %v4819_v31 = vpop.f32.mrf.mxu2  ;;  %vm2020_vm4 = vcmp.eq.f32.partialorder %v5319_v12, 8.507059e+37  ;;  %v3765_v35 = vpop.eup %3764  ;;  %v5004_v13 = vadd.f32 1.0, %v3763_v27  ;;  %vm5084_vm3 = vmor %vm2075_vm15, %vm2076_vm14  ;;  %vm2120_vm9 = vweird.f32 %v5012_v58 }
 0x2d7   : > { %v4827_v20 = vpop.f32.mrf.mxu3  ;;  %v4829_v8 = vpop.f32.mrf.mxu0  ;;  %2489 = vmatmul.bf16.vlgmr.msra.gmra.mxu2 %v2223_v48  ;;  %v2023_v17 = vsel %vm2020_vm4, %v4811_v40, %v2018_v28  ;;  %v2048_v40 = vsel %vm4990_vm7, %v4772_v52, %v2044_v1  ;;  %2431 = vmatmul.bf16.vlgmr.msra.gmra.mxu0 %v2223_v48  ;;  %v5016_v42 = vadd.f32 1.0, %v3765_v35  ;;  %v2081_v35 = vand.u32 2147483648, %v4845_v41 }
 0x2d8   : > { %v4840_v38 = vpop.f32.mrf.mxu1  ;;  %v1854_v45 = vadd.f32 %v4827_v20, %v4819_v31  ;;  %v3375_v20 = vor.u32 %v3575_v19, %v3374_v39  ;;  %v3767_v10 = vpop.eup %3766  ;;  %v2180_v37 = vmul.f32 %v2023_v17, %v4569_v60  ;;  %v2053_v49 = vsel %vm2050_vm8, %v2052_v57, %v2048_v40 }
 0x2d9   : > { %v2057_v39 = vsub.f32 1.0, %v2056_v47  ;;  %v5018_v3 = vadd.f32 1.0, %v3767_v10  ;;  %v2064_v60 = vand.u32 2147483647, %v4825_v23  ;;  %3768 = vrcp.f32 %v5004_v13 }
 0x2da   : > { %v2194_v31 = vmul.f32 %v4850_v2, %v1854_v45  ;;  %v5320_v2 = vand.u32 2147483647, %v4650_v11  ;;  %2459 = vmatpush.bf16.msra.mxu1 %v3375_v20  ;;  %v2071_v11 = vmul.f32 %v4962_v14, %v4845_v41  ;;  %v1799_v45 = vadd.f32 %v4840_v38, %v4829_v8 }
 0x2db   : > { %3770 = vrcp.f32 %v5012_v58  ;;  %v2058_v8 = vmul.f32 %v4927_v26, %v2057_v39  ;;  %v2066_v38 = vand.u32 2147483648, %v4825_v23  ;;  %vm5041_vm11 = vcmp.eq.f32.partialorder %v2064_v60, 8.507059e+37 }
 0x2dc   : > { %vm2035_vm5 = vcmp.eq.f32.partialorder %v5320_v2, 8.507059e+37  ;;  %v2224_v55 = vpack.c.bf16 %v2194_v31, %v2192_v6  ;;  %v2072_v19 = vsub.f32 1.0, %v2071_v11  ;;  %3772 = vrcp.f32 %v5016_v42 }
 0x2dd   : > { %v2038_v4 = vsel %vm2035_vm5, %v4832_v59, %v2033_v7  ;;  %v2101_v59 = vmul.f32 %v4972_v5, %v4864_v54  ;;  %3774 = vrcp.f32 %v5018_v3  ;;  %v2195_v31 = vmul.f32 %v2179_v50, %v1799_v45 }
 0x2de   : > { %v4904_v32 = vpop.f32.mrf.mxu2  ;;  %2518 = vmatmul.bf16.vlgmr.msra.gmra.mxu3 %v2224_v55  ;;  %2460 = vmatmul.bf16.vlgmr.msra.gmra.mxu1 %v2224_v55  ;;  %v2181_v52 = vmul.f32 %v2038_v4, %v4574_v22  ;;  %v2088_v22 = vmul.f32 %v4942_v0, %v2087_v63  ;;  %v2073_v1 = vmul.f32 %v4962_v14, %v2072_v19  ;;  %v2094_v2 = vand.u32 2147483647, %v4834_v51 }
 0x2df   : > { %v4910_v16 = vpop.f32.mrf.mxu3  ;;  %v4912_v33 = vpop.f32.mrf.mxu0  ;;  %v2102_v28 = vsub.f32 1.0, %v2101_v59  ;;  %v2059_v27 = vadd.f32 %v4927_v26, %v2058_v8  ;;  %v2111_v40 = vand.u32 2147483648, %v4864_v54  ;;  %v2097_v10 = vor.u32 1.1754944e-38, %v2096_v53 }
 0x2e0   : > { %v4925_v18 = vpop.f32.mrf.mxu1  ;;  %v5049_v9 = vpop.eup %3768  ;;  %v2074_v12 = vadd.f32 %v4962_v14, %v2073_v1  ;;  %vm2105_vm4 = vweird.f32 %v4864_v54  ;;  %v2109_v57 = vand.u32 2147483647, %v4864_v54  ;;  %vm2095_vm5 = vcmp.eq.f32.partialorder %v2094_v2, 8.507059e+37 }
 0x2e1   : > { %v1801_v43 = vadd.f32 %v4925_v18, %v4912_v33  ;;  %v2182_v33 = vmul.f32 %v2053_v49, %v4587_v30  ;;  %v1857_v18 = vadd.f32 %v4910_v16, %v4904_v32  ;;  %v2103_v30 = vmul.f32 %v4972_v5, %v2102_v28  ;;  %v5055_v17 = vpop.eup %3770  ;;  %vm5100_vm6 = vmor %vm2105_vm4, %vm2106_vm1 }
 0x2e2   : > { %v2089_v16 = vadd.f32 %v4942_v0, %v2088_v22  ;;  %v5064_v11 = vpop.eup %3772  ;;  %v2063_v63 = vsel %vm5070_vm2, %v4927_v26, %v2059_v27  ;;  %v2116_v54 = vmul.f32 %v5055_v17, %v5012_v58  ;;  %v2067_v49 = vor.u32 1.1754944e-38, %v2066_v38  ;;  %v5334_v27 = vld [vmem:[#allocation25_spill] sm:$0xff] }
 0x2e3   : > { %v2197_v48 = vmul.f32 %v2181_v52, %v1801_v43  ;;  %v2196_v34 = vmul.f32 %v2180_v37, %v1857_v18  ;;  %v2104_v29 = vadd.f32 %v4972_v5, %v2103_v30  ;;  %v5080_v59 = vpop.eup %3774  ;;  %v2078_v37 = vsel %vm5084_vm3, %v4962_v14, %v2074_v12  ;;  %v2213_v52 = vld [vmem:[#allocation4 + $0x70] sm:$0xff] }
 0x2e4   : > { %v2093_v50 = vsel %vm5058_vm0, %v4942_v0, %v2089_v16  ;;  %v2161_v14 = vmul.f32 %v5064_v11, %v5016_v42  ;;  %v2082_v19 = vor.u32 1.1754944e-38, %v2081_v35  ;;  %v2112_v28 = vor.u32 1.1754944e-38, %v2111_v40  ;;  %v5333_v16 = vld [vmem:[#allocation26_spill] sm:$0xff] }
 0x2e5   : > { %v2225_v15 = vpack.c.bf16 %v2197_v48, %v2195_v31  ;;  %v2098_v39 = vsel %vm2095_vm5, %v2097_v10, %v2093_v50  ;;  %v2108_v26 = vsel %vm5100_vm6, %v4972_v5, %v2104_v29  ;;  %v2131_v45 = vmul.f32 %v5080_v59, %v5018_v3 }
 0x2e6   : > { %v1829_v44 = vpop.f32.mrf.mxu2  ;;  %vm2110_vm8 = vcmp.eq.f32.partialorder %v2109_v57, 8.507059e+37  ;;  %v2185_v5 = vmul.f32 %v2098_v39, %v4669_v56  ;;  %v2117_v48 = vsub.f32 1.0, %v2116_v54  ;;  %v2162_v8 = vsub.f32 1.0, %v2161_v14 }
 0x2e7   : > { %v1858_v62 = vpop.f32.mrf.mxu3  ;;  %v5006_v24 = vpop.f32.mrf.mxu0  ;;  %2494 = vmatmul.bf16.gmra.mxu2 %v2225_v15  ;;  %2436 = vmatmul.bf16.gmra.mxu0 %v2225_v15  ;;  %v2113_v18 = vsel %vm2110_vm8, %v2112_v28, %v2108_v26  ;;  %v2132_v31 = vsub.f32 1.0, %v2131_v45  ;;  %vm2151_vm10 = vweird.f32 %v5049_v9  ;;  %vm2150_vm12 = vweird.f32 %v5004_v13 }
 0x2e8   : > { %v5008_v21 = vpop.f32.mrf.mxu1  ;;  %v1859_v7 = vadd.f32 %v1858_v62, %v1829_v44  ;;  %v2079_v62 = vand.u32 2147483647, %v4845_v41  ;;  %v2146_v41 = vmul.f32 %v5049_v9, %v5004_v13  ;;  %v2186_v53 = vmul.f32 %v2113_v18, %v5333_v16  ;;  %vm5148_vm15 = vmor %vm2150_vm12, %vm2151_vm10 }
 0x2e9   : > { %v1804_v38 = vadd.f32 %v5008_v21, %v5006_v24  ;;  %v2163_v21 = vmul.f32 %v5064_v11, %v2162_v8  ;;  %v2133_v4 = vmul.f32 %v5080_v59, %v2132_v31  ;;  %v2156_v51 = vand.u32 2147483648, %v5004_v13  ;;  %v5344_v8 = vld [vmem:[#allocation27_spill] sm:$0xff] }
 0x2ea   : > { %v2198_v20 = vmul.f32 %v2182_v33, %v1859_v7  ;;  %vm2080_vm7 = vcmp.eq.f32.partialorder %v2079_v62, 8.507059e+37  ;;  %v2068_v7 = vsel %vm5041_vm11, %v2067_v49, %v2063_v63  ;;  %v2147_v60 = vsub.f32 1.0, %v2146_v41 }
 0x2eb   : > { %v2083_v33 = vsel %vm2080_vm7, %v2082_v19, %v2078_v37  ;;  %v2183_v30 = vmul.f32 %v2068_v7, %v4656_v25  ;;  %v2118_v25 = vmul.f32 %v5055_v17, %v2117_v48  ;;  %vm2121_vm11 = vweird.f32 %v5055_v17 }
 0x2ec   : > { %v2226_v47 = vpack.c.bf16 %v2198_v20, %v2196_v34  ;;  %v2148_v34 = vmul.f32 %v5049_v9, %v2147_v60  ;;  %v2184_v12 = vmul.f32 %v2083_v33, %v5334_v27  ;;  %v2164_v35 = vadd.f32 %v5064_v11, %v2163_v21  ;;  %vm5155_vm0 = vmor %vm2120_vm9, %vm2121_vm11 }
 0x2ed   : > { %v2119_v62 = vadd.f32 %v5055_v17, %v2118_v25  ;;  %vm2166_vm13 = vweird.f32 %v5064_v11  ;;  %v2124_v40 = vand.u32 2147483647, %v5012_v58  ;;  %v2126_v23 = vand.u32 2147483648, %v5012_v58 }
 0x2ee   : > { %v5030_v46 = vpop.f32.mrf.mxu2  ;;  %2523 = vmatmul.bf16.gmra.mxu3 %v2226_v47  ;;  %2465 = vmatmul.bf16.gmra.mxu1 %v2226_v47  ;;  %v2149_v29 = vadd.f32 %v5049_v9, %v2148_v34  ;;  %v2154_v47 = vand.u32 2147483647, %v5004_v13  ;;  %vm2136_vm14 = vweird.f32 %v5080_v59  ;;  %v2171_v57 = vand.u32 2147483648, %v5016_v42 }
 0x2ef   : > { %v5036_v6 = vpop.f32.mrf.mxu3  ;;  %v1776_v55 = vpop.f32.mrf.mxu0  ;;  %v2134_v41 = vadd.f32 %v5080_v59, %v2133_v4  ;;  %vm2165_vm1 = vweird.f32 %v5016_v42  ;;  %v2169_v63 = vand.u32 2147483647, %v5016_v42  ;;  %vm2135_vm2 = vweird.f32 %v5018_v3 }
 0x2f0   : > { %v1805_v44 = vpop.f32.mrf.mxu1  ;;  %v1862_v56 = vadd.f32 %v5036_v6, %v5030_v46  ;;  %v2141_v37 = vand.u32 2147483648, %v5018_v3  ;;  %v2157_v58 = vor.u32 1.1754944e-38, %v2156_v51  ;;  %vm5169_vm3 = vmor %vm2165_vm1, %vm2166_vm13  ;;  %v2139_v42 = vand.u32 2147483647, %v5018_v3 }
 0x2f1   : > { %v1806_v22 = vadd.f32 %v1805_v44, %v1776_v55  ;;  %v2199_v55 = vmul.f32 %v2183_v30, %v1804_v38  ;;  %vm2155_vm4 = vcmp.eq.f32.partialorder %v2154_v47, 8.507059e+37  ;;  %v2168_v49 = vsel %vm5169_vm3, %v5064_v11, %v2164_v35  ;;  %vm5182_vm5 = vmor %vm2135_vm2, %vm2136_vm14  ;;  %v2210_v47 = vld [vmem:[#allocation4 + $0x40] sm:$0xff] }
 0x2f2   : > { %v2200_v46 = vmul.f32 %v2184_v12, %v1862_v56  ;;  %v2127_v39 = vor.u32 1.1754944e-38, %v2126_v23  ;;  %v2172_v19 = vor.u32 1.1754944e-38, %v2171_v57  ;;  %vm2125_vm6 = vcmp.eq.f32.partialorder %v2124_v40, 8.507059e+37  ;;  %v2211_v40 = vld [vmem:[#allocation4 + $0x48] sm:$0xff] }
 0x2f3   : > { %v2201_v15 = vmul.f32 %v2185_v5, %v1806_v22  ;;  %v2138_v3 = vsel %vm5182_vm5, %v5080_v59, %v2134_v41  ;;  %vm2170_vm7 = vcmp.eq.f32.partialorder %v2169_v63, 8.507059e+37  ;;  %v2142_v7 = vor.u32 1.1754944e-38, %v2141_v37  ;;  %v5343_v22 = vld [vmem:[#allocation28_spill] sm:$0xff]  ;;  %v2212_v41 = vld [vmem:[#allocation4 + $0x30] sm:$0xff] }
 0x2f4   : > { %v2173_v60 = vsel %vm2170_vm7, %v2172_v19, %v2168_v49  ;;  %vm2140_vm8 = vcmp.eq.f32.partialorder %v2139_v42, 8.507059e+37  ;;  %v2214_v49 = vld [vmem:[#allocation4 + $0x38] sm:$0xff] }
 0x2f5   : > { %v2227_v6 = vpack.c.bf16 %v2201_v15, %v2199_v55  ;;  %v2143_v48 = vsel %vm2140_vm8, %v2142_v7, %v2138_v3  ;;  %v2216_v7 = vld [vmem:[#allocation4 + $0x78] sm:$0xff] }
 0x2f6   : > { %v1834_v0 = vpop.f32.mrf.mxu2  ;;  %v2188_v31 = vmul.f32 %v2143_v48, %v4868_v61 }
 0x2f7   : > { %v1863_v43 = vpop.f32.mrf.mxu3  ;;  %v5119_v20 = vpop.f32.mrf.mxu0  ;;  %2499 = vmatmul.bf16.gmra.mxu2 %v2227_v6  ;;  %2441 = vmatmul.bf16.gmra.mxu0 %v2227_v6 }
 0x2f8   : > { %v1864_v1 = vadd.f32 %v1863_v43, %v1834_v0  ;;  %v5121_v32 = vpop.f32.mrf.mxu1  ;;  %v2153_v0 = vsel %vm5148_vm15, %v5049_v9, %v2149_v29  ;;  %v2123_v9 = vsel %vm5155_vm0, %v5055_v17, %v2119_v62 }
 0x2f9   : > { %v2158_v14 = vsel %vm2155_vm4, %v2157_v58, %v2153_v0  ;;  %v2128_v45 = vsel %vm2125_vm6, %v2127_v39, %v2123_v9  ;;  %v1809_v5 = vadd.f32 %v5121_v32, %v5119_v20  ;;  %v2207_v32 = vld [vmem:[#allocation4 + $0x28] sm:$0xff] }
 0x2fa   : > { %v2202_v44 = vmul.f32 %v2186_v53, %v1864_v1  ;;  %v2189_v33 = vmul.f32 %v2158_v14, %v5343_v22  ;;  %v2187_v38 = vmul.f32 %v2128_v45, %v5344_v8  ;;  %v2190_v1 = vmul.f32 %v2173_v60, %v4856_v36 }
 0x2fc   : > { %v2228_v50 = vpack.c.bf16 %v2202_v44, %v2200_v46  ;;  %v2203_v16 = vmul.f32 %v2187_v38, %v1809_v5  ;;  %v2209_v44 = vld [vmem:[#allocation4 + $0x10] sm:$0xff] }
 0x2fe   : > { %v5128_v2 = vpop.f32.mrf.mxu2  ;;  %2528 = vmatmul.bf16.gmra.mxu3 %v2228_v50  ;;  %2470 = vmatmul.bf16.gmra.mxu1 %v2228_v50 }
 0x2ff   : > { %v5130_v24 = vpop.f32.mrf.mxu3  ;;  %v1781_v54 = vpop.f32.mrf.mxu0 }
 0x300   : > { %v1810_v43 = vpop.f32.mrf.mxu1  ;;  %v1867_v59 = vadd.f32 %v5130_v24, %v5128_v2  ;;  %v2208_v2 = vld [vmem:[#allocation4 + $0x68] sm:$0xff] }
 0x301   : > { %v1811_v11 = vadd.f32 %v1810_v43, %v1781_v54 }
 0x302   : > { %v2204_v34 = vmul.f32 %v2188_v31, %v1867_v59  ;;  %v2218_v59 = vld [vmem:[#allocation4 + $0x58] sm:$0xff] }
 0x303   : > { %v2205_v30 = vmul.f32 %v2189_v33, %v1811_v11 }
 0x305   : > { %v2229_v56 = vpack.c.bf16 %v2205_v30, %v2203_v16 }
 0x306   : > { %v1839_v17 = vpop.f32.mrf.mxu2 }
 0x307   : > { %v1868_v28 = vpop.f32.mrf.mxu3  ;;  %2504 = vmatmul.bf16.gmra.mxu2 %v2229_v56  ;;  %2446 = vmatmul.bf16.gmra.mxu0 %v2229_v56 }
 0x308   : > { %v1869_v18 = vadd.f32 %v1868_v28, %v1839_v17  ;;  %v2215_v17 = vld [vmem:[#allocation4 + $0x20] sm:$0xff] }
 0x30a   : > { %v2206_v53 = vmul.f32 %v2190_v1, %v1869_v18  ;;  %v2217_v18 = vld [vmem:[#allocation4 + $0x18] sm:$0xff] }
 0x30c   : > { %v2230_v15 = vpack.c.bf16 %v2206_v53, %v2204_v34  ;;  %v2219_v34 = vld [vmem:[#allocation4] sm:$0xff] }
 0x30e   : > { %2533 = vmatmul.bf16.gmra.mxu3 %v2230_v15  ;;  %2475 = vmatmul.bf16.gmra.mxu1 %v2230_v15 }
 0x354   : > { %v2432_v20 = vpop.f32.mrf.mxu0 }
 0x35a   : > { %v2490_v25 = vpop.f32.mrf.mxu2 }
 0x35b   : > { %v2461_v27 = vpop.f32.mrf.mxu1 }
 0x35c   : > { %v2462_v12 = vadd.f32 %v2461_v27, %v2432_v20  ;;  %v2434_v61 = vpop.f32.mrf.mxu0  ;;  %v2220_v27 = vld [vmem:[#allocation4 + $0x8] sm:$0xff] }
 0x35e   : > { %v2539_v36 = vadd.f32 %v2462_v12, %v2207_v32 }
 0x360   : > { %2555 = vst [vmem:[#allocation4 + $0x28] sm:$0xff] %v2539_v36 }
 0x361   : > { %v2519_v24 = vpop.f32.mrf.mxu3 }
 0x362   : > { %v2520_v21 = vadd.f32 %v2519_v24, %v2490_v25  ;;  %v2492_v6 = vpop.f32.mrf.mxu2  ;;  %v2221_v24 = vld [vmem:[#allocation4 + $0x60] sm:$0xff] }
 0x363   : > { %v2463_v4 = vpop.f32.mrf.mxu1 }
 0x364   : > { %v2540_v55 = vadd.f32 %v2520_v21, %v2208_v2  ;;  %v2464_v29 = vadd.f32 %v2463_v4, %v2434_v61  ;;  %v2437_v35 = vpop.f32.mrf.mxu0  ;;  %v2222_v4 = vld [vmem:[#allocation4 + $0x50] sm:$0xff] }
 0x366   : > { %2556 = vst [vmem:[#allocation4 + $0x68] sm:$0xff] %v2540_v55  ;;  %v2541_v46 = vadd.f32 %v2464_v29, %v2209_v44 }
 0x368   : > { %2557 = vst [vmem:[#allocation4 + $0x10] sm:$0xff] %v2541_v46 }
 0x369   : > { %v2521_v51 = vpop.f32.mrf.mxu3 }
 0x36a   : > { %v2522_v62 = vadd.f32 %v2521_v51, %v2492_v6  ;;  %v2495_v13 = vpop.f32.mrf.mxu2 }
 0x36b   : > { %v2466_v23 = vpop.f32.mrf.mxu1 }
 0x36c   : > { %v2542_v50 = vadd.f32 %v2522_v62, %v2210_v47  ;;  %v2467_v10 = vadd.f32 %v2466_v23, %v2437_v35  ;;  %v2439_v37 = vpop.f32.mrf.mxu0 }
 0x36e   : > { %2558 = vst [vmem:[#allocation4 + $0x40] sm:$0xff] %v2542_v50  ;;  %v2543_v57 = vadd.f32 %v2467_v10, %v2211_v40 }
 0x370   : > { %2559 = vst [vmem:[#allocation4 + $0x48] sm:$0xff] %v2543_v57 }
 0x371   : > { %v2524_v0 = vpop.f32.mrf.mxu3 }
 0x372   : > { %v2525_v63 = vadd.f32 %v2524_v0, %v2495_v13  ;;  %v2497_v42 = vpop.f32.mrf.mxu2 }
 0x373   : > { %v2468_v54 = vpop.f32.mrf.mxu1 }
 0x374   : > { %v2544_v58 = vadd.f32 %v2525_v63, %v2212_v41  ;;  %v2469_v43 = vadd.f32 %v2468_v54, %v2439_v37  ;;  %v2442_v14 = vpop.f32.mrf.mxu0 }
 0x376   : > { %2560 = vst [vmem:[#allocation4 + $0x30] sm:$0xff] %v2544_v58  ;;  %v2545_v9 = vadd.f32 %v2469_v43, %v2213_v52 }
 0x378   : > { %2561 = vst [vmem:[#allocation4 + $0x70] sm:$0xff] %v2545_v9 }
 0x379   : > { %v2526_v39 = vpop.f32.mrf.mxu3 }
 0x37a   : > { %v2527_v26 = vadd.f32 %v2526_v39, %v2497_v42  ;;  %v2500_v45 = vpop.f32.mrf.mxu2 }
 0x37b   : > { %v2471_v28 = vpop.f32.mrf.mxu1 }
 0x37c   : > { %v2546_v19 = vadd.f32 %v2527_v26, %v2214_v49  ;;  %v2472_v3 = vadd.f32 %v2471_v28, %v2442_v14  ;;  %v2444_v33 = vpop.f32.mrf.mxu0 }
 0x37e   : > { %2562 = vst [vmem:[#allocation4 + $0x38] sm:$0xff] %v2546_v19  ;;  %v2547_v11 = vadd.f32 %v2472_v3, %v2215_v17 }
 0x380   : > { %2563 = vst [vmem:[#allocation4 + $0x20] sm:$0xff] %v2547_v11 }
 0x381   : > { %v2529_v60 = vpop.f32.mrf.mxu3 }
 0x382   : > { %v2530_v22 = vadd.f32 %v2529_v60, %v2500_v45  ;;  %v2502_v1 = vpop.f32.mrf.mxu2 }
 0x383   : > { %v2473_v48 = vpop.f32.mrf.mxu1 }
 0x384   : > { %v2548_v5 = vadd.f32 %v2530_v22, %v2216_v7  ;;  %v2474_v8 = vadd.f32 %v2473_v48, %v2444_v33  ;;  %v2447_v16 = vpop.f32.mrf.mxu0 }
 0x386   : > { %2564 = vst [vmem:[#allocation4 + $0x78] sm:$0xff] %v2548_v5  ;;  %v2549_v38 = vadd.f32 %v2474_v8, %v2217_v18 }
 0x388   : > { %2565 = vst [vmem:[#allocation4 + $0x18] sm:$0xff] %v2549_v38 }
 0x389   : > { %v2531_v30 = vpop.f32.mrf.mxu3 }
 0x38a   : > { %v2532_v31 = vadd.f32 %v2531_v30, %v2502_v1  ;;  %v2505_v32 = vpop.f32.mrf.mxu2 }
 0x38b   : > { %v2476_v56 = vpop.f32.mrf.mxu1 }
 0x38c   : > { %v2550_v53 = vadd.f32 %v2532_v31, %v2218_v59  ;;  %v2477_v15 = vadd.f32 %v2476_v56, %v2447_v16  ;;  %v2449_v25 = vpop.f32.mrf.mxu0 }
 0x38e   : > { %2566 = vst [vmem:[#allocation4 + $0x58] sm:$0xff] %v2550_v53  ;;  %v2551_v20 = vadd.f32 %v2477_v15, %v2219_v34 }
 0x390   : > { %2567 = vst [vmem:[#allocation4] sm:$0xff] %v2551_v20 }
 0x391   : > { %v2534_v12 = vpop.f32.mrf.mxu3 }
 0x392   : > { %v2535_v36 = vadd.f32 %v2534_v12, %v2505_v32  ;;  %v2507_v44 = vpop.f32.mrf.mxu2 }
 0x393   : > { %v2478_v21 = vpop.f32.mrf.mxu1 }
 0x394   : > { %v2552_v2 = vadd.f32 %v2535_v36, %v2220_v27  ;;  %v2479_v61 = vadd.f32 %v2478_v21, %v2449_v25 }
 0x396   : > { %2568 = vst [vmem:[#allocation4 + $0x8] sm:$0xff] %v2552_v2  ;;  %v2553_v55 = vadd.f32 %v2479_v61, %v2221_v24 }
 0x398   : > { %2569 = vst [vmem:[#allocation4 + $0x60] sm:$0xff] %v2553_v55 }
 0x399   : > { %v2536_v29 = vpop.f32.mrf.mxu3 }
 0x39a   : > { %v2537_v46 = vadd.f32 %v2536_v29, %v2507_v44  ;;  %2574 = sbr.rel (%p3436_p6) target bundleno = 946 (0x3b2), region = 113 }
 0x39c   : > { %v2554_v6 = vadd.f32 %v2537_v46, %v2222_v4 }
 0x39e   : > { %2570 = vst [vmem:[#allocation4 + $0x50] sm:$0xff] %v2554_v6 }
 0x39f   : > { %v2575_v47 = vld [vmem:[#allocation2 + $0x30] sm:$0xff]  ;;  %v2591_v51 = vld [vmem:[#allocation4 + $0x28] sm:$0xff]  ;;  %v2576_v62 = vld [vmem:[#allocation2] sm:$0xff] }
 0x3a0   : > { %v2607_v35 = vadd.f32 %v2591_v51, %v2575_v47  ;;  %v2592_v50 = vld [vmem:[#allocation4 + $0x68] sm:$0xff]  ;;  %v2577_v40 = vld [vmem:[#allocation2 + $0x58] sm:$0xff]  ;;  %v2593_v23 = vld [vmem:[#allocation4 + $0x10] sm:$0xff] }
 0x3a1   : > { %v2608_v10 = vadd.f32 %v2592_v50, %v2576_v62  ;;  %v2609_v57 = vadd.f32 %v2593_v23, %v2577_v40  ;;  %v2578_v13 = vld [vmem:[#allocation2 + $0x18] sm:$0xff]  ;;  %v2594_v41 = vld [vmem:[#allocation4 + $0x40] sm:$0xff]  ;;  %v2579_v0 = vld [vmem:[#allocation2 + $0x50] sm:$0xff] }
 0x3a2   : > { %2623 = vst [vmem:[%s4202_s2] sm:$0xff] %v2607_v35  ;;  %v2610_v63 = vadd.f32 %v2594_v41, %v2578_v13  ;;  %v2595_v37 = vld [vmem:[#allocation4 + $0x48] sm:$0xff]  ;;  %v2596_v52 = vld [vmem:[#allocation4 + $0x30] sm:$0xff]  ;;  %v2598_v26 = vld [vmem:[#allocation4 + $0x38] sm:$0xff] }
 0x3a3   : > { %v2580_v58 = vld [vmem:[#allocation2 + $0x68] sm:$0xff]  ;;  %2624 = vst [vmem:[%s4202_s2 + $0x8] sm:$0xff] %v2608_v10  ;;  %v2611_v54 = vadd.f32 %v2595_v37, %v2579_v0  ;;  %v2597_v42 = vld [vmem:[#allocation4 + $0x70] sm:$0xff]  ;;  %v2583_v14 = vld [vmem:[#allocation2 + $0x40] sm:$0xff] }
 0x3a4   : > { %v2612_v43 = vadd.f32 %v2596_v52, %v2580_v58  ;;  %v2581_v9 = vld [vmem:[#allocation2 + $0x8] sm:$0xff]  ;;  %2625 = vst [vmem:[%s4202_s2 + $0x10] sm:$0xff] %v2609_v57  ;;  %v2599_v19 = vld [vmem:[#allocation4 + $0x20] sm:$0xff]  ;;  %v2600_v3 = vld [vmem:[#allocation4 + $0x78] sm:$0xff] }
 0x3a5   : > { %v2582_v49 = vld [vmem:[#allocation2 + $0x48] sm:$0xff]  ;;  %v2613_v39 = vadd.f32 %v2597_v42, %v2581_v9  ;;  %2626 = vst [vmem:[%s4202_s2 + $0x18] sm:$0xff] %v2610_v63  ;;  %v2584_v28 = vld [vmem:[#allocation2 + $0x20] sm:$0xff]  ;;  %v2585_v11 = vld [vmem:[#allocation2 + $0x10] sm:$0xff]  ;;  %v2615_v45 = vadd.f32 %v2599_v19, %v2583_v14 }
 0x3a6   : > { %v2614_v17 = vadd.f32 %v2598_v26, %v2582_v49  ;;  %2627 = vst [vmem:[%s4202_s2 + $0x20] sm:$0xff] %v2611_v54  ;;  %v2601_v7 = vld [vmem:[#allocation4 + $0x18] sm:$0xff]  ;;  %v2616_v33 = vadd.f32 %v2600_v3, %v2584_v28  ;;  %v2587_v5 = vld [vmem:[#allocation2 + $0x60] sm:$0xff]  ;;  %v2588_v8 = vld [vmem:[#allocation2 + $0x70] sm:$0xff] }
 0x3a7   : > { %v2586_v60 = vld [vmem:[#allocation2 + $0x38] sm:$0xff]  ;;  %2628 = vst [vmem:[%s4202_s2 + $0x28] sm:$0xff] %v2612_v43  ;;  %v2603_v18 = vld [vmem:[#allocation4] sm:$0xff]  ;;  %v2617_v48 = vadd.f32 %v2601_v7, %v2585_v11  ;;  %v2604_v38 = vld [vmem:[#allocation4 + $0x8] sm:$0xff] }
 0x3a8   : > { %v2602_v22 = vld [vmem:[#allocation4 + $0x58] sm:$0xff]  ;;  %2629 = vst [vmem:[%s4202_s2 + $0x30] sm:$0xff] %v2613_v39  ;;  %v2605_v30 = vld [vmem:[#allocation4 + $0x60] sm:$0xff]  ;;  %v2619_v31 = vadd.f32 %v2603_v18, %v2587_v5  ;;  %v2590_v16 = vld [vmem:[#allocation2 + $0x28] sm:$0xff]  ;;  %v2620_v34 = vadd.f32 %v2604_v38, %v2588_v8 }
 0x3a9   : > { %2630 = vst [vmem:[%s4202_s2 + $0x38] sm:$0xff] %v2614_v17  ;;  %v2618_v1 = vadd.f32 %v2602_v22, %v2586_v60  ;;  %v2589_v59 = vld [vmem:[#allocation2 + $0x78] sm:$0xff]  ;;  %v2606_v53 = vld [vmem:[#allocation4 + $0x50] sm:$0xff] }
 0x3aa   : > { %2631 = vst [vmem:[%s4202_s2 + $0x40] sm:$0xff] %v2615_v45  ;;  %v2621_v56 = vadd.f32 %v2605_v30, %v2589_v59  ;;  %v2622_v15 = vadd.f32 %v2606_v53, %v2590_v16 }
 0x3ab   : > { %2632 = vst [vmem:[%s4202_s2 + $0x48] sm:$0xff] %v2616_v33 }
 0x3ac   : > { %2633 = vst [vmem:[%s4202_s2 + $0x50] sm:$0xff] %v2617_v48 }
 0x3ad   : > { %2634 = vst [vmem:[%s4202_s2 + $0x58] sm:$0xff] %v2618_v1 }
 0x3ae   : > { %2635 = vst [vmem:[%s4202_s2 + $0x60] sm:$0xff] %v2619_v31 }
 0x3af   : > { %2636 = vst [vmem:[%s4202_s2 + $0x68] sm:$0xff] %v2620_v34 }
 0x3b0   : > { %2637 = vst [vmem:[%s4202_s2 + $0x70] sm:$0xff] %v2621_v56 }
 0x3b1   : > { %2638 = vst [vmem:[%s4202_s2 + $0x78] sm:$0xff] %v2622_v15 }
 0x3b2 PF: > { %s24_s10 = sadd.s32 1, %s3980_s10   ;;  %s5346_s29 = sld [smem:[#allocation16_spill]] }
 0x3b3   : > { %p21_p7 = scmp.ge.s32.totalorder %s24_s10, 6   ;;  %s5347_s26 = sld [smem:[#allocation23_spill]] }
 0x3b4   : > { %s5348_s27 = sld [smem:[#allocation17_spill]]  ;;  %s5353_s24 = smov %s3948_s25 }
 0x3b5   : > { %s5349_s28 = sld [smem:[#allocation24_spill]] }
 0x3b6   : > { %s5350_s30 = sld [smem:[#allocation20_spill]] }
 0x3b7   : > { %s5351_s0 = sld [smem:[#allocation21_spill]] }
 0x3b8   : > { %s5352_s9 = sld [smem:[#allocation22_spill]]  ;;  %s5354_s25 = smov %s5346_s29 }
 0x3b9   : > { %s5355_s29 = smov %s3972_s8  ;;  %23 = sbr.rel (!%p21_p7) target bundleno = 16 (0x10), region = 179 }
 0x3bd   : > { %s5356_s8 = smov %s5351_s0 }
 0x3be   :  { %2663 = vsyncpa [#allocation7], 1 }
 0x3bf   :  { %2665 = vsyncpa [#allocation7 + $0x1], 1 }
 0x3c0   :  { %2666 = vsyncpa [#allocation9], 1 }
 0x3c1   :  { %2668 = vsyncpa [#allocation9 + $0x1], 1 }
 0x3c2   :  { %2669 = vsyncpa [#allocation12], 1 }
 0x3c3   :  { %2671 = vsyncpa [#allocation12 + $0x1], 1 }

// kernel: llama2_split1_forward.7
= control target key start
LH: loop header
LB: loop body
LE: loop exit
PB: predicated region body
PF: predicated region fallthrough
CT: control target
= control target key end

     0   :  { %s5700_s0 = inlined_call_operand.vmem [shape: f32[128,256], index: 0, kind: input, shape index: {}]   ;;  %s5701_s1 = inlined_call_operand.vmem [shape: bf16[2,128,128], index: 1, kind: input, shape index: {}]   ;;  %s5702_s2 = inlined_call_operand.vmem [shape: bf16[2,128,256], index: 2, kind: input, shape index: {}]   ;;  %s5703_s3 = inlined_call_operand.vmem [shape: f32[1,256], index: 3, kind: input, shape index: {}]   ;;  %s5704_s4 = inlined_call_operand.vmem [shape: bf16[256,512], index: 4, kind: input, shape index: {}]   ;;  %s5705_s5 = inlined_call_operand.vmem [shape: bf16[256,512], index: 5, kind: input, shape index: {}]   ;;  %s5706_s6 = inlined_call_operand.vmem [shape: bf16[512,256], index: 6, kind: input, shape index: {}]   ;;  %s5707_s7 = inlined_call_operand.hbm [shape: f32[128,256], index: 7, kind: output, shape index: {}]  }
   0x1   :  { %5717 = sst [smem:[#allocation22_spill]] %s5701_s1 }
   0x2   :  { %5718 = sst [smem:[#allocation23_spill]] %s5704_s4 }
   0x3   :  { %5719 = sst [smem:[#allocation24_spill]] %s5705_s5 }
   0x4   :  { %12 = vsyncpa [#allocation9], 0 }
   0x5   :  { %14 = vsyncpa [#allocation9 + $0x1], 0  ;;  %s4162_s24 = smov 0   ;;  %s4164_s25 = smov 0  }
   0x6   :  { %s4166_s26 = smov 0   ;;  %s4168_s27 = smov 0  }
   0x7   :  { %s4170_s28 = smov 0   ;;  %s4172_s29 = smov 0  }
   0x8   :  { %s4174_s30 = smov 0   ;;  %s4176_s8 = smov 0  }
   0x9   :  { %s4178_s9 = smov 0   ;;  %s4180_s10 = smov 0  }
   0xa LB: > { %5720 = sst [smem:[#allocation11_spill]] %s4096_s28  ;;  %s3034_s11 = sadd.s32 4294967295, %s4116_s10   ;;  %s4116_s10 = sphi %s4180_s10, %s20_s10   ;;  %s4112_s9 = sphi %s4178_s9, %s5794_s9   ;;  %s4108_s8 = sphi %s4176_s8, %s5793_s8   ;;  %s4104_s30 = sphi %s4174_s30, %s5792_s30   ;;  %s4100_s29 = sphi %s4172_s29, %s5791_s29   ;;  %s4096_s28 = sphi %s4170_s28, %s5790_s28   ;;  %s4092_s27 = sphi %s4168_s27, %s5798_s27   ;;  %s4088_s26 = sphi %s4166_s26, %s5797_s26   ;;  %s4084_s25 = sphi %s4164_s25, %s5796_s25   ;;  %s4080_s24 = sphi %s4162_s24, %s5795_s24  }
   0xb   : > { %5721 = sst [smem:[#allocation12_spill]] %s4108_s8  ;;  %s3035_s12 = sadd.s32 4294967294, %s4116_s10  }
   0xc   : > { %5722 = sst [smem:[#allocation13_spill]] %s4112_s9  ;;  %s29_s13 = sadd.s32 1, %s4108_s8 }
   0xd   : > { %s32_s14 = sadd.s32 1, %s4112_s9  ;;  %p30_p0 = scmp.ge.s32.totalorder %s29_s13, 2 }
   0xe   : > { %s65_s15 = sadd.s32 1, %s4096_s28  ;;  %p72_p1 = scmp.ne.s32.totalorder %s4096_s28, %s4092_s27 }
   0xf   : > { %p73_p2 = scmp.eq.s32.totalorder %s4116_s10, 0  ;;  %s5800_s13 = smov (%p30_p0, %s29_s13), 0 }
  0x10   : > { %5723 = sst [smem:[#allocation14_spill]] %s5800_s13  ;;  %s5802_s14 = smov (!%p30_p0, %s32_s14), %s4112_s9 }
  0x11   : > { %p4226_p3 = por %p73_p2, %p72_p1  ;;  %s130_s17 = ssub.s32 %s4108_s8, %s5800_s13 }
  0x12   : > { %p34_p4 = scmp.ge.s32.totalorder %s5802_s14, 2  ;;  %p131_p5 = scmp.eq.s32.totalorder %s130_s17, 0 }
  0x13   : > { %s133_s18 = sadd.s32 1, %s4088_s26  ;;  %p140_p6 = scmp.ne.s32.totalorder %s4088_s26, %s4084_s25 }
  0x14   : > { %s5804_s14 = smov (%p34_p4, %s5802_s14), 0  ;;  %p222_p9 = scmp.eq.s32.totalorder %s3034_s11, 3 }
  0x15   : > { %5725 = sst [smem:[#allocation15_spill]] %s5804_s14  ;;  %s62_s20 = ssub.s32 %s4112_s9, %s5804_s14 }
  0x16   : > { %s4238_s19 = scalar_select %p131_p5, %s4088_s26, %s133_s18  }
  0x17   : > { %p4242_p7 = por %p140_p6, %p73_p2  ;;  %p63_p8 = scmp.eq.s32.totalorder %s62_s20, 0 }
  0x18   : > { %5726 = sst [smem:[#allocation16_spill]] %s4238_s19  ;;  %p227_p10 = scmp.ne.s32.totalorder %s4092_s27, %s4080_s24 }
  0x19   : > { %p228_p11 = scmp.eq.s32.totalorder %s3035_s12, 3  ;;  %p4254_p12 = por %p222_p9, %p72_p1 }
  0x1a   : > { %s4249_s22 = scalar_select %p63_p8, %s4096_s28, %s65_s15  }
  0x1b   : > { %p4258_p13 = por %p228_p11, %p227_p10  ;;  %p3037_p0 = scmp.ge.s32.totalorder %s4116_s10, 4 }
  0x1c   : > { %5728 = sst [smem:[#allocation17_spill]] %s4249_s22 }
  0x1d   : > { %250 = sbr.rel (%p3037_p0) target bundleno = 136 (0x88), region = 24 }
  0x22   : > { %263 = sbr.rel (!%p4226_p3) target bundleno = 52 (0x34), region = 32  ;;  %s265_s11 = sand.u32 (%p4226_p3), 1, %s4096_s28  }
  0x23   : > { %s3682_s12 = sshll.u32 (%p4226_p3), %s4112_s9, 5  ;;  %s3038_s15 = sshll.u32 (%p4226_p3), %s265_s11, 6 }
  0x24   : > { %s5731_s1 = sld [smem:[#allocation22_spill]] (%p4226_p3)  ;;  %s267_s13 = scalar_lea.vmem (%p4226_p3), [#allocation5], %s3038_s15 }
  0x2a   : > { %s270_s14 = scalar_lea.vmem %s5731_s1, %s3682_s12 }
  0x2b   : > { %v287_v0 = vld [vmem:[%s270_s14] sm:$0xff]   ;;  %v291_v1 = vld [vmem:[%s270_s14 + $0x8] sm:$0xff]   ;;  %v295_v2 = vld [vmem:[%s270_s14 + $0x10] sm:$0xff]  }
  0x2c   : > { %288 = vst [vmem:[%s267_s13] sm:$0xff] %v287_v0   ;;  %v299_v3 = vld [vmem:[%s270_s14 + $0x18] sm:$0xff]   ;;  %v303_v4 = vld [vmem:[%s270_s14 + $0x40] sm:$0xff]   ;;  %v307_v5 = vld [vmem:[%s270_s14 + $0x48] sm:$0xff]  }
  0x2d   : > { %292 = vst [vmem:[%s267_s13 + $0x8] sm:$0xff] %v291_v1   ;;  %v311_v6 = vld [vmem:[%s270_s14 + $0x50] sm:$0xff]   ;;  %v315_v7 = vld [vmem:[%s270_s14 + $0x58] sm:$0xff]  }
  0x2e   : > { %296 = vst [vmem:[%s267_s13 + $0x10] sm:$0xff] %v295_v2  }
  0x2f   : > { %300 = vst [vmem:[%s267_s13 + $0x18] sm:$0xff] %v299_v3  }
  0x30   : > { %304 = vst [vmem:[%s267_s13 + $0x20] sm:$0xff] %v303_v4  }
  0x31   : > { %308 = vst [vmem:[%s267_s13 + $0x28] sm:$0xff] %v307_v5  }
  0x32   : > { %312 = vst [vmem:[%s267_s13 + $0x30] sm:$0xff] %v311_v6  }
  0x33   : > { %316 = vst [vmem:[%s267_s13 + $0x38] sm:$0xff] %v315_v7  }
  0x34 PF: > { %374 = sbr.rel (!%p4242_p7) target bundleno = 94 (0x5e), region = 73  ;;  %s376_s16 = sand.u32 (%p4242_p7), 1, %s4088_s26  }
  0x35   : > { %s3683_s11 = sshll.u32 (%p4242_p7), %s4108_s8, 3  ;;  %s3041_s12 = sshll.u32 (%p4242_p7), %s376_s16, 8 }
  0x36   : > { %s5732_s4 = sld [smem:[#allocation23_spill]] (%p4242_p7)  ;;  %s4282_s13 = scalar_lea.vmem (%p4242_p7), [#allocation6], %s3041_s12 }
  0x3c   : > { %s4277_s20 = scalar_lea.vmem %s5732_s4, %s3683_s11 }
  0x3d   : > { %v472_v8 = vld [vmem:[%s4277_s20] sm:$0xff]  ;;  %v474_v9 = vld [vmem:[%s4277_s20 + $0x10] sm:$0xff] }
  0x3e   : > { %v476_v10 = vld [vmem:[%s4277_s20 + $0x20] sm:$0xff]  ;;  %473 = vst [vmem:[%s4282_s13] sm:$0xff] %v472_v8  ;;  %v478_v11 = vld [vmem:[%s4277_s20 + $0x30] sm:$0xff] }
  0x3f   : > { %475 = vst [vmem:[%s4282_s13 + $0x8] sm:$0xff] %v474_v9  ;;  %v480_v12 = vld [vmem:[%s4277_s20 + $0x40] sm:$0xff]  ;;  %v482_v13 = vld [vmem:[%s4277_s20 + $0x50] sm:$0xff] }
  0x40   : > { %477 = vst [vmem:[%s4282_s13 + $0x10] sm:$0xff] %v476_v10  ;;  %v484_v14 = vld [vmem:[%s4277_s20 + $0x60] sm:$0xff]  ;;  %v486_v15 = vld [vmem:[%s4277_s20 + $0x70] sm:$0xff] }
  0x41   : > { %479 = vst [vmem:[%s4282_s13 + $0x18] sm:$0xff] %v478_v11  ;;  %v488_v16 = vld [vmem:[%s4277_s20 + $0x80] sm:$0xff]  ;;  %v490_v17 = vld [vmem:[%s4277_s20 + $0x90] sm:$0xff] }
  0x42   : > { %481 = vst [vmem:[%s4282_s13 + $0x20] sm:$0xff] %v480_v12  ;;  %v492_v18 = vld [vmem:[%s4277_s20 + $0xa0] sm:$0xff]  ;;  %v494_v19 = vld [vmem:[%s4277_s20 + $0xb0] sm:$0xff] }
  0x43   : > { %483 = vst [vmem:[%s4282_s13 + $0x28] sm:$0xff] %v482_v13  ;;  %v496_v20 = vld [vmem:[%s4277_s20 + $0xc0] sm:$0xff]  ;;  %v498_v21 = vld [vmem:[%s4277_s20 + $0xd0] sm:$0xff] }
  0x44   : > { %485 = vst [vmem:[%s4282_s13 + $0x30] sm:$0xff] %v484_v14  ;;  %v500_v22 = vld [vmem:[%s4277_s20 + $0xe0] sm:$0xff]  ;;  %v502_v23 = vld [vmem:[%s4277_s20 + $0xf0] sm:$0xff] }
  0x45   : > { %487 = vst [vmem:[%s4282_s13 + $0x38] sm:$0xff] %v486_v15  ;;  %v504_v24 = vld [vmem:[%s4277_s20 + $0x100] sm:$0xff]  ;;  %v506_v25 = vld [vmem:[%s4277_s20 + $0x110] sm:$0xff] }
  0x46   : > { %489 = vst [vmem:[%s4282_s13 + $0x40] sm:$0xff] %v488_v16  ;;  %v508_v26 = vld [vmem:[%s4277_s20 + $0x120] sm:$0xff]  ;;  %v510_v27 = vld [vmem:[%s4277_s20 + $0x130] sm:$0xff] }
  0x47   : > { %491 = vst [vmem:[%s4282_s13 + $0x48] sm:$0xff] %v490_v17  ;;  %v512_v28 = vld [vmem:[%s4277_s20 + $0x140] sm:$0xff]  ;;  %v514_v29 = vld [vmem:[%s4277_s20 + $0x150] sm:$0xff] }
  0x48   : > { %493 = vst [vmem:[%s4282_s13 + $0x50] sm:$0xff] %v492_v18  ;;  %v516_v30 = vld [vmem:[%s4277_s20 + $0x160] sm:$0xff]  ;;  %v518_v31 = vld [vmem:[%s4277_s20 + $0x170] sm:$0xff] }
  0x49   : > { %495 = vst [vmem:[%s4282_s13 + $0x58] sm:$0xff] %v494_v19  ;;  %v520_v32 = vld [vmem:[%s4277_s20 + $0x180] sm:$0xff]  ;;  %v522_v33 = vld [vmem:[%s4277_s20 + $0x190] sm:$0xff] }
  0x4a   : > { %497 = vst [vmem:[%s4282_s13 + $0x60] sm:$0xff] %v496_v20  ;;  %v524_v34 = vld [vmem:[%s4277_s20 + $0x1a0] sm:$0xff]  ;;  %v526_v35 = vld [vmem:[%s4277_s20 + $0x1b0] sm:$0xff] }
  0x4b   : > { %499 = vst [vmem:[%s4282_s13 + $0x68] sm:$0xff] %v498_v21  ;;  %v528_v36 = vld [vmem:[%s4277_s20 + $0x1c0] sm:$0xff]  ;;  %v530_v37 = vld [vmem:[%s4277_s20 + $0x1d0] sm:$0xff] }
  0x4c   : > { %501 = vst [vmem:[%s4282_s13 + $0x70] sm:$0xff] %v500_v22  ;;  %v532_v38 = vld [vmem:[%s4277_s20 + $0x1e0] sm:$0xff]  ;;  %v534_v39 = vld [vmem:[%s4277_s20 + $0x1f0] sm:$0xff] }
  0x4d   : > { %503 = vst [vmem:[%s4282_s13 + $0x78] sm:$0xff] %v502_v23 }
  0x4e   : > { %505 = vst [vmem:[%s4282_s13 + $0x80] sm:$0xff] %v504_v24 }
  0x4f   : > { %507 = vst [vmem:[%s4282_s13 + $0x88] sm:$0xff] %v506_v25 }
  0x50   : > { %509 = vst [vmem:[%s4282_s13 + $0x90] sm:$0xff] %v508_v26 }
  0x51   : > { %511 = vst [vmem:[%s4282_s13 + $0x98] sm:$0xff] %v510_v27 }
  0x52   : > { %513 = vst [vmem:[%s4282_s13 + $0xa0] sm:$0xff] %v512_v28 }
  0x53   : > { %515 = vst [vmem:[%s4282_s13 + $0xa8] sm:$0xff] %v514_v29 }
  0x54   : > { %517 = vst [vmem:[%s4282_s13 + $0xb0] sm:$0xff] %v516_v30 }
  0x55   : > { %519 = vst [vmem:[%s4282_s13 + $0xb8] sm:$0xff] %v518_v31 }
  0x56   : > { %521 = vst [vmem:[%s4282_s13 + $0xc0] sm:$0xff] %v520_v32 }
  0x57   : > { %523 = vst [vmem:[%s4282_s13 + $0xc8] sm:$0xff] %v522_v33 }
  0x58   : > { %525 = vst [vmem:[%s4282_s13 + $0xd0] sm:$0xff] %v524_v34 }
  0x59   : > { %527 = vst [vmem:[%s4282_s13 + $0xd8] sm:$0xff] %v526_v35 }
  0x5a   : > { %529 = vst [vmem:[%s4282_s13 + $0xe0] sm:$0xff] %v528_v36 }
  0x5b   : > { %531 = vst [vmem:[%s4282_s13 + $0xe8] sm:$0xff] %v530_v37 }
  0x5c   : > { %533 = vst [vmem:[%s4282_s13 + $0xf0] sm:$0xff] %v532_v38 }
  0x5d   : > { %535 = vst [vmem:[%s4282_s13 + $0xf8] sm:$0xff] %v534_v39 }
  0x5e PF: > { %541 = sbr.rel (!%p4242_p7) target bundleno = 136 (0x88), region = 111  ;;  %s543_s14 = sand.u32 (%p4242_p7), 1, %s4088_s26  }
  0x5f   : > { %s3684_s16 = sshll.u32 (%p4242_p7), %s4108_s8, 3  ;;  %s3044_s11 = sshll.u32 (%p4242_p7), %s543_s14, 8 }
  0x60   : > { %s5733_s5 = sld [smem:[#allocation24_spill]] (%p4242_p7)  ;;  %s4357_s21 = scalar_lea.vmem (%p4242_p7), [#allocation7], %s3044_s11 }
  0x66   : > { %s4352_s18 = scalar_lea.vmem %s5733_s5, %s3684_s16 }
  0x67   : > { %v639_v40 = vld [vmem:[%s4352_s18] sm:$0xff]  ;;  %v641_v41 = vld [vmem:[%s4352_s18 + $0x10] sm:$0xff] }
  0x68   : > { %v643_v42 = vld [vmem:[%s4352_s18 + $0x20] sm:$0xff]  ;;  %640 = vst [vmem:[%s4357_s21] sm:$0xff] %v639_v40  ;;  %v645_v43 = vld [vmem:[%s4352_s18 + $0x30] sm:$0xff] }
  0x69   : > { %642 = vst [vmem:[%s4357_s21 + $0x8] sm:$0xff] %v641_v41  ;;  %v647_v44 = vld [vmem:[%s4352_s18 + $0x40] sm:$0xff]  ;;  %v649_v45 = vld [vmem:[%s4352_s18 + $0x50] sm:$0xff] }
  0x6a   : > { %644 = vst [vmem:[%s4357_s21 + $0x10] sm:$0xff] %v643_v42  ;;  %v651_v46 = vld [vmem:[%s4352_s18 + $0x60] sm:$0xff]  ;;  %v653_v47 = vld [vmem:[%s4352_s18 + $0x70] sm:$0xff] }
  0x6b   : > { %646 = vst [vmem:[%s4357_s21 + $0x18] sm:$0xff] %v645_v43  ;;  %v655_v48 = vld [vmem:[%s4352_s18 + $0x80] sm:$0xff]  ;;  %v657_v49 = vld [vmem:[%s4352_s18 + $0x90] sm:$0xff] }
  0x6c   : > { %648 = vst [vmem:[%s4357_s21 + $0x20] sm:$0xff] %v647_v44  ;;  %v659_v50 = vld [vmem:[%s4352_s18 + $0xa0] sm:$0xff]  ;;  %v661_v51 = vld [vmem:[%s4352_s18 + $0xb0] sm:$0xff] }
  0x6d   : > { %650 = vst [vmem:[%s4357_s21 + $0x28] sm:$0xff] %v649_v45  ;;  %v663_v52 = vld [vmem:[%s4352_s18 + $0xc0] sm:$0xff]  ;;  %v665_v53 = vld [vmem:[%s4352_s18 + $0xd0] sm:$0xff] }
  0x6e   : > { %652 = vst [vmem:[%s4357_s21 + $0x30] sm:$0xff] %v651_v46  ;;  %v667_v54 = vld [vmem:[%s4352_s18 + $0xe0] sm:$0xff]  ;;  %v669_v55 = vld [vmem:[%s4352_s18 + $0xf0] sm:$0xff] }
  0x6f   : > { %654 = vst [vmem:[%s4357_s21 + $0x38] sm:$0xff] %v653_v47  ;;  %v671_v56 = vld [vmem:[%s4352_s18 + $0x100] sm:$0xff]  ;;  %v673_v57 = vld [vmem:[%s4352_s18 + $0x110] sm:$0xff] }
  0x70   : > { %656 = vst [vmem:[%s4357_s21 + $0x40] sm:$0xff] %v655_v48  ;;  %v675_v58 = vld [vmem:[%s4352_s18 + $0x120] sm:$0xff]  ;;  %v677_v59 = vld [vmem:[%s4352_s18 + $0x130] sm:$0xff] }
  0x71   : > { %658 = vst [vmem:[%s4357_s21 + $0x48] sm:$0xff] %v657_v49  ;;  %v679_v60 = vld [vmem:[%s4352_s18 + $0x140] sm:$0xff]  ;;  %v681_v61 = vld [vmem:[%s4352_s18 + $0x150] sm:$0xff] }
  0x72   : > { %660 = vst [vmem:[%s4357_s21 + $0x50] sm:$0xff] %v659_v50  ;;  %v683_v62 = vld [vmem:[%s4352_s18 + $0x160] sm:$0xff]  ;;  %v685_v63 = vld [vmem:[%s4352_s18 + $0x170] sm:$0xff] }
  0x73   : > { %662 = vst [vmem:[%s4357_s21 + $0x58] sm:$0xff] %v661_v51  ;;  %v687_v0 = vld [vmem:[%s4352_s18 + $0x180] sm:$0xff]  ;;  %v689_v1 = vld [vmem:[%s4352_s18 + $0x190] sm:$0xff] }
  0x74   : > { %664 = vst [vmem:[%s4357_s21 + $0x60] sm:$0xff] %v663_v52  ;;  %v691_v2 = vld [vmem:[%s4352_s18 + $0x1a0] sm:$0xff]  ;;  %v693_v3 = vld [vmem:[%s4352_s18 + $0x1b0] sm:$0xff] }
  0x75   : > { %666 = vst [vmem:[%s4357_s21 + $0x68] sm:$0xff] %v665_v53  ;;  %v695_v4 = vld [vmem:[%s4352_s18 + $0x1c0] sm:$0xff]  ;;  %v697_v5 = vld [vmem:[%s4352_s18 + $0x1d0] sm:$0xff] }
  0x76   : > { %668 = vst [vmem:[%s4357_s21 + $0x70] sm:$0xff] %v667_v54  ;;  %v699_v6 = vld [vmem:[%s4352_s18 + $0x1e0] sm:$0xff]  ;;  %v701_v7 = vld [vmem:[%s4352_s18 + $0x1f0] sm:$0xff] }
  0x77   : > { %670 = vst [vmem:[%s4357_s21 + $0x78] sm:$0xff] %v669_v55 }
  0x78   : > { %672 = vst [vmem:[%s4357_s21 + $0x80] sm:$0xff] %v671_v56 }
  0x79   : > { %674 = vst [vmem:[%s4357_s21 + $0x88] sm:$0xff] %v673_v57 }
  0x7a   : > { %676 = vst [vmem:[%s4357_s21 + $0x90] sm:$0xff] %v675_v58 }
  0x7b   : > { %678 = vst [vmem:[%s4357_s21 + $0x98] sm:$0xff] %v677_v59 }
  0x7c   : > { %680 = vst [vmem:[%s4357_s21 + $0xa0] sm:$0xff] %v679_v60 }
  0x7d   : > { %682 = vst [vmem:[%s4357_s21 + $0xa8] sm:$0xff] %v681_v61 }
  0x7e   : > { %684 = vst [vmem:[%s4357_s21 + $0xb0] sm:$0xff] %v683_v62 }
  0x7f   : > { %686 = vst [vmem:[%s4357_s21 + $0xb8] sm:$0xff] %v685_v63 }
  0x80   : > { %688 = vst [vmem:[%s4357_s21 + $0xc0] sm:$0xff] %v687_v0 }
  0x81   : > { %690 = vst [vmem:[%s4357_s21 + $0xc8] sm:$0xff] %v689_v1 }
  0x82   : > { %692 = vst [vmem:[%s4357_s21 + $0xd0] sm:$0xff] %v691_v2 }
  0x83   : > { %694 = vst [vmem:[%s4357_s21 + $0xd8] sm:$0xff] %v693_v3 }
  0x84   : > { %696 = vst [vmem:[%s4357_s21 + $0xe0] sm:$0xff] %v695_v4 }
  0x85   : > { %698 = vst [vmem:[%s4357_s21 + $0xe8] sm:$0xff] %v697_v5 }
  0x86   : > { %700 = vst [vmem:[%s4357_s21 + $0xf0] sm:$0xff] %v699_v6 }
  0x87   : > { %702 = vst [vmem:[%s4357_s21 + $0xf8] sm:$0xff] %v701_v7 }
  0x88 PF: > { %p3047_p1 = scmp.ge.s32.totalorder %s4116_s10, 1  ;;  %p717_p2 = scmp.lt.s32.totalorder %s4116_s10, 5 }
  0x8a   : > { %p718_p3 = pnand %p3047_p1, %p717_p2 }
  0x8c   : > { %721 = sbr.rel (%p718_p3) target bundleno = 1012 (0x3f4), region = 153 }
  0x91   : > { %s4423_s20 = sand.u32 1, %s4092_s27   ;;  %s731_s13 = sand.u32 1, %s4084_s25  }
  0x92   : > { %s3048_s14 = sshll.u32 %s4423_s20, 6  ;;  %s3049_s16 = sshll.u32 %s731_s13, 8 }
  0x93   : > { %s3051_s11 = sshll.u32 %s4423_s20, 7  ;;  %s3052_s12 = sshll.u32 %s4104_s30, 3 }
  0x94   : > { %p790_p4 = scmp.lt.s32.totalorder %s3052_s12, 15  ;;  %s3055_s15 = sshll.u32 %s4100_s29, 5 }
  0x95   : > { %p800_p5 = scmp.lt.s32.totalorder %s3055_s15, 63  ;;  %s4440_s13 = scalar_lea.vmem [#allocation5], %s3048_s14 }
  0x96   : > { %s5806_s12 = smov (!%p790_p4, %s3052_s12), 15  ;;  %s4442_s22 = scalar_lea.vmem [#allocation6], %s3049_s16 }
  0x97   : > { %s5808_s15 = smov (!%p800_p5, %s3055_s15), 63  ;;  %s3685_s18 = sshll.u32 %s5806_s12, 4 }
  0x98   : > { %s4433_s4 = scalar_lea.vmem %s5700_s0, %s3685_s18  ;;  %s3686_s5 = sshll.u32 %s5808_s15, 3 }
  0x99   : > { %s4438_s25 = scalar_lea.vmem %s5706_s6, %s3686_s5  ;;  %s4444_s28 = scalar_lea.vmem [#allocation7], %s3049_s16 }
  0x9a   : > { %s4446_s19 = scalar_lea.vmem [#allocation8], %s3051_s11  ;;  %p3058_p6 = scmp.ne.s32.totalorder %s4100_s29, 0 }
  0x9c   : > { %810 = sbr.rel (%p3058_p6) target bundleno = 538 (0x21a), region = 169 }
  0xa1   : > { %v3157_v8 = vld [vmem:[%s5702_s2 + $0xf0] sm:$0xf]  ;;  %v3726_v9 = vld [vmem:[%s5702_s2 + $0xf4] sm:$0xf0]  ;;  %v3725_v10 = vld [vmem:[%s5702_s2 + $0xf4] sm:$0xf] }
  0xa2   : > { %v3158_v11 = vor.u32 %v3726_v9, %v3157_v8  ;;  %v3159_v12 = vld [vmem:[%s5702_s2 + $0xf8] sm:$0xf0]  ;;  %v3237_v13 = vld [vmem:[%s5702_s2 + $0x70] sm:$0xf]  ;;  %v3706_v14 = vld [vmem:[%s5702_s2 + $0x74] sm:$0xf0] }
  0xa3   : > { %v3162_v15 = vor.u32 %v3725_v10, %v3159_v12  ;;  %v3238_v16 = vor.u32 %v3706_v14, %v3237_v13  ;;  %v3705_v17 = vld [vmem:[%s5702_s2 + $0x74] sm:$0xf]  ;;  %v3239_v18 = vld [vmem:[%s5702_s2 + $0x78] sm:$0xf0]  ;;  %v3149_v19 = vld [vmem:[%s5702_s2 + $0xe0] sm:$0xf] }
  0xa4   : > { %965 = vmatpush.bf16.msra.mxu0 %v3158_v11  ;;  %v3242_v20 = vor.u32 %v3705_v17, %v3239_v18  ;;  %v3724_v21 = vld [vmem:[%s5702_s2 + $0xe4] sm:$0xf0]  ;;  %v3723_v22 = vld [vmem:[%s5702_s2 + $0xe4] sm:$0xf]  ;;  %v3151_v23 = vld [vmem:[%s5702_s2 + $0xe8] sm:$0xf0] }
  0xa5   : > { %994 = vmatpush.bf16.msra.mxu1 %v3162_v15  ;;  %1127 = vmatpush.bf16.msra.mxu2 %v3238_v16  ;;  %v3150_v24 = vor.u32 %v3724_v21, %v3149_v19  ;;  %v3154_v25 = vor.u32 %v3723_v22, %v3151_v23  ;;  %v3229_v26 = vld [vmem:[%s5702_s2 + $0x60] sm:$0xf]  ;;  %v3704_v27 = vld [vmem:[%s5702_s2 + $0x64] sm:$0xf0]  ;;  %v3703_v28 = vld [vmem:[%s5702_s2 + $0x64] sm:$0xf] }
  0xa6   : > { %1156 = vmatpush.bf16.msra.mxu3 %v3242_v20  ;;  %v3230_v29 = vor.u32 %v3704_v27, %v3229_v26  ;;  %v3231_v30 = vld [vmem:[%s5702_s2 + $0x68] sm:$0xf0]  ;;  %v3141_v31 = vld [vmem:[%s5702_s2 + $0xd0] sm:$0xf]  ;;  %v3722_v32 = vld [vmem:[%s5702_s2 + $0xd4] sm:$0xf0] }
  0xa7   : > { %v3234_v33 = vor.u32 %v3703_v28, %v3231_v30  ;;  %v3721_v34 = vld [vmem:[%s5702_s2 + $0xd4] sm:$0xf]  ;;  %v3143_v35 = vld [vmem:[%s5702_s2 + $0xd8] sm:$0xf0]  ;;  %v3221_v36 = vld [vmem:[%s5702_s2 + $0x50] sm:$0xf]  ;;  %v3142_v37 = vor.u32 %v3722_v32, %v3141_v31 }
  0xa8   : > { %966 = vmatpush.bf16.msra.mxu0 %v3150_v24  ;;  %v3702_v38 = vld [vmem:[%s5702_s2 + $0x54] sm:$0xf0]  ;;  %v3701_v39 = vld [vmem:[%s5702_s2 + $0x54] sm:$0xf]  ;;  %v3223_v40 = vld [vmem:[%s5702_s2 + $0x58] sm:$0xf0]  ;;  %v3146_v41 = vor.u32 %v3721_v34, %v3143_v35 }
  0xa9   : > { %995 = vmatpush.bf16.msra.mxu1 %v3154_v25  ;;  %1128 = vmatpush.bf16.msra.mxu2 %v3230_v29  ;;  %v3222_v42 = vor.u32 %v3702_v38, %v3221_v36  ;;  %v3133_v43 = vld [vmem:[%s5702_s2 + $0xc0] sm:$0xf]  ;;  %v3720_v44 = vld [vmem:[%s5702_s2 + $0xc4] sm:$0xf0]  ;;  %v3719_v45 = vld [vmem:[%s5702_s2 + $0xc4] sm:$0xf]  ;;  %v3226_v46 = vor.u32 %v3701_v39, %v3223_v40 }
  0xaa   : > { %1157 = vmatpush.bf16.msra.mxu3 %v3234_v33  ;;  %v3135_v47 = vld [vmem:[%s5702_s2 + $0xc8] sm:$0xf0]  ;;  %v3213_v48 = vld [vmem:[%s5702_s2 + $0x40] sm:$0xf]  ;;  %v3700_v49 = vld [vmem:[%s5702_s2 + $0x44] sm:$0xf0]  ;;  %v3134_v52 = vor.u32 %v3720_v44, %v3133_v43 }
  0xab   : > { %v3699_v50 = vld [vmem:[%s5702_s2 + $0x44] sm:$0xf]  ;;  %v3215_v51 = vld [vmem:[%s5702_s2 + $0x48] sm:$0xf0]  ;;  %v3138_v53 = vor.u32 %v3719_v45, %v3135_v47  ;;  %v3214_v54 = vor.u32 %v3700_v49, %v3213_v48  ;;  %v3125_v55 = vld [vmem:[%s5702_s2 + $0xb0] sm:$0xf] }
  0xac   : > { %967 = vmatpush.bf16.msra.mxu0 %v3142_v37  ;;  %v3718_v56 = vld [vmem:[%s5702_s2 + $0xb4] sm:$0xf0]  ;;  %v3717_v57 = vld [vmem:[%s5702_s2 + $0xb4] sm:$0xf]  ;;  %v3218_v58 = vor.u32 %v3699_v50, %v3215_v51  ;;  %v3127_v59 = vld [vmem:[%s5702_s2 + $0xb8] sm:$0xf0] }
  0xad   : > { %996 = vmatpush.bf16.msra.mxu1 %v3146_v41  ;;  %1129 = vmatpush.bf16.msra.mxu2 %v3222_v42  ;;  %v3205_v60 = vld [vmem:[%s5702_s2 + $0x30] sm:$0xf]  ;;  %v3698_v61 = vld [vmem:[%s5702_s2 + $0x34] sm:$0xf0]  ;;  %v3697_v62 = vld [vmem:[%s5702_s2 + $0x34] sm:$0xf]  ;;  %v3126_v0 = vor.u32 %v3718_v56, %v3125_v55  ;;  %v3130_v1 = vor.u32 %v3717_v57, %v3127_v59 }
  0xae   : > { %1158 = vmatpush.bf16.msra.mxu3 %v3226_v46  ;;  %v3207_v63 = vld [vmem:[%s5702_s2 + $0x38] sm:$0xf0]  ;;  %v3206_v2 = vor.u32 %v3698_v61, %v3205_v60  ;;  %v3117_v3 = vld [vmem:[%s5702_s2 + $0xa0] sm:$0xf]  ;;  %v3716_v4 = vld [vmem:[%s5702_s2 + $0xa4] sm:$0xf0] }
  0xaf   : > { %v3715_v5 = vld [vmem:[%s5702_s2 + $0xa4] sm:$0xf]  ;;  %v3210_v6 = vor.u32 %v3697_v62, %v3207_v63  ;;  %v3119_v7 = vld [vmem:[%s5702_s2 + $0xa8] sm:$0xf0]  ;;  %v3197_v8 = vld [vmem:[%s5702_s2 + $0x20] sm:$0xf]  ;;  %v3118_v12 = vor.u32 %v3716_v4, %v3117_v3 }
  0xb0   : > { %968 = vmatpush.bf16.msra.mxu0 %v3134_v52  ;;  %v3696_v9 = vld [vmem:[%s5702_s2 + $0x24] sm:$0xf0]  ;;  %v3695_v10 = vld [vmem:[%s5702_s2 + $0x24] sm:$0xf]  ;;  %v3199_v11 = vld [vmem:[%s5702_s2 + $0x28] sm:$0xf0]  ;;  %v3122_v13 = vor.u32 %v3715_v5, %v3119_v7 }
  0xb1   : > { %997 = vmatpush.bf16.msra.mxu1 %v3138_v53  ;;  %1130 = vmatpush.bf16.msra.mxu2 %v3214_v54  ;;  %v3198_v14 = vor.u32 %v3696_v9, %v3197_v8  ;;  %v3109_v15 = vld [vmem:[%s5702_s2 + $0x90] sm:$0xf]  ;;  %v3714_v16 = vld [vmem:[%s5702_s2 + $0x94] sm:$0xf0]  ;;  %v3713_v17 = vld [vmem:[%s5702_s2 + $0x94] sm:$0xf]  ;;  %v3202_v18 = vor.u32 %v3695_v10, %v3199_v11 }
  0xb2   : > { %1159 = vmatpush.bf16.msra.mxu3 %v3218_v58  ;;  %v3111_v19 = vld [vmem:[%s5702_s2 + $0x98] sm:$0xf0]  ;;  %v3189_v20 = vld [vmem:[%s5702_s2 + $0x10] sm:$0xf]  ;;  %v3694_v21 = vld [vmem:[%s5702_s2 + $0x14] sm:$0xf0]  ;;  %v3110_v24 = vor.u32 %v3714_v16, %v3109_v15 }
  0xb3   : > { %v3693_v22 = vld [vmem:[%s5702_s2 + $0x14] sm:$0xf]  ;;  %v3191_v23 = vld [vmem:[%s5702_s2 + $0x18] sm:$0xf0]  ;;  %v3114_v25 = vor.u32 %v3713_v17, %v3111_v19  ;;  %v3190_v26 = vor.u32 %v3694_v21, %v3189_v20  ;;  %v3101_v27 = vld [vmem:[%s5702_s2 + $0x80] sm:$0xf] }
  0xb4   : > { %969 = vmatpush.bf16.msra.mxu0 %v3126_v0  ;;  %v3712_v28 = vld [vmem:[%s5702_s2 + $0x84] sm:$0xf0]  ;;  %v3711_v29 = vld [vmem:[%s5702_s2 + $0x84] sm:$0xf]  ;;  %v3194_v30 = vor.u32 %v3693_v22, %v3191_v23  ;;  %v3103_v31 = vld [vmem:[%s5702_s2 + $0x88] sm:$0xf0] }
  0xb5   : > { %998 = vmatpush.bf16.msra.mxu1 %v3130_v1  ;;  %1131 = vmatpush.bf16.msra.mxu2 %v3206_v2  ;;  %v3181_v32 = vld [vmem:[%s5702_s2] sm:$0xf]  ;;  %v3692_v33 = vld [vmem:[%s5702_s2 + $0x4] sm:$0xf0]  ;;  %v3691_v34 = vld [vmem:[%s5702_s2 + $0x4] sm:$0xf]  ;;  %v3102_v36 = vor.u32 %v3712_v28, %v3101_v27  ;;  %v3106_v37 = vor.u32 %v3711_v29, %v3103_v31 }
  0xb6   : > { %1160 = vmatpush.bf16.msra.mxu3 %v3210_v6  ;;  %v3183_v35 = vld [vmem:[%s5702_s2 + $0x8] sm:$0xf0]  ;;  %v3182_v38 = vor.u32 %v3692_v33, %v3181_v32  ;;  %v3707_v40 = vld [vmem:[%s4440_s13 + $0x20] sm:$0xff]  ;;  %v3709_v44 = vld [vmem:[%s4440_s13 + $0x30] sm:$0xff] }
  0xb7   : > { %v3186_v39 = vor.u32 %v3691_v34, %v3183_v35  ;;  %v3687_v41 = vld [vmem:[%s4440_s13] sm:$0xff]  ;;  %v3708_v42 = vld [vmem:[%s4440_s13 + $0x28] sm:$0xff]  ;;  %v3689_v45 = vld [vmem:[%s4440_s13 + $0x10] sm:$0xff] }
  0xb8   : > { %970 = vmatpush.bf16.msra.mxu0 %v3118_v12  ;;  %v3688_v43 = vld [vmem:[%s4440_s13 + $0x8] sm:$0xff]  ;;  %v3710_v46 = vld [vmem:[%s4440_s13 + $0x38] sm:$0xff]  ;;  %v1185_v51 = vld [vmem:[%s4433_s4] sm:$0xff] }
  0xb9   : > { %999 = vmatpush.bf16.msra.mxu1 %v3122_v13  ;;  %1132 = vmatpush.bf16.msra.mxu2 %v3198_v14  ;;  %v3690_v47 = vld [vmem:[%s4440_s13 + $0x18] sm:$0xff]  ;;  %v1186_v54 = vld [vmem:[%s4433_s4 + $0x8] sm:$0xff]  ;;  %v1187_v63 = vld [vmem:[%s4433_s4 + $0x10] sm:$0xff] }
  0xba   : > { %1161 = vmatpush.bf16.msra.mxu3 %v3202_v18  ;;  %v1188_v3 = vld [vmem:[%s4433_s4 + $0x18] sm:$0xff]  ;;  %v1189_v12 = vld [vmem:[%s4433_s4 + $0x20] sm:$0xff]  ;;  %v1190_v16 = vld [vmem:[%s4433_s4 + $0x28] sm:$0xff] }
  0xbb   : > { %v1192_v29 = vld [vmem:[%s4433_s4 + $0x38] sm:$0xff] }
  0xbc   : > { %971 = vmatpush.bf16.msra.mxu0 %v3110_v24 }
  0xbd   : > { %1000 = vmatpush.bf16.msra.mxu1 %v3114_v25  ;;  %1133 = vmatpush.bf16.msra.mxu2 %v3190_v26  ;;  %v1191_v25 = vld [vmem:[%s4433_s4 + $0x30] sm:$0xff] }
  0xbe   : > { %1162 = vmatpush.bf16.msra.mxu3 %v3194_v30 }
  0xc0   : > { %972 = vmatpush.bf16.msra.mxu0 %v3102_v36 }
  0xc1   : > { %1001 = vmatpush.bf16.msra.mxu1 %v3106_v37  ;;  %1134 = vmatpush.bf16.msra.mxu2 %v3182_v38  ;;  %v1193_v38 = vld [vmem:[%s4433_s4 + $0x40] sm:$0xff] }
  0xc2   : > { %1163 = vmatpush.bf16.msra.mxu3 %v3186_v39 }
  0xc3   : > { %973 = vmatmul.bf16.vlgmr.msra.gmra.mxu0 %v3707_v40 }
  0xc4   : > { %1002 = vmatmul.bf16.vlgmr.msra.gmra.mxu1 %v3707_v40  ;;  %1135 = vmatmul.bf16.vlgmr.msra.gmra.mxu2 %v3687_v41 }
  0xc5   : > { %1164 = vmatmul.bf16.vlgmr.msra.gmra.mxu3 %v3687_v41 }
  0xd3   : > { %978 = vmatmul.bf16.gmra.mxu0 %v3708_v42 }
  0xd4   : > { %1007 = vmatmul.bf16.gmra.mxu1 %v3708_v42  ;;  %1140 = vmatmul.bf16.gmra.mxu2 %v3688_v43  ;;  %v1194_v42 = vld [vmem:[%s4433_s4 + $0x48] sm:$0xff] }
  0xd5   : > { %1169 = vmatmul.bf16.gmra.mxu3 %v3688_v43 }
  0xe3   : > { %983 = vmatmul.bf16.gmra.mxu0 %v3709_v44 }
  0xe4   : > { %1012 = vmatmul.bf16.gmra.mxu1 %v3709_v44  ;;  %1145 = vmatmul.bf16.gmra.mxu2 %v3689_v45 }
  0xe5   : > { %1174 = vmatmul.bf16.gmra.mxu3 %v3689_v45 }
  0xf3   : > { %988 = vmatmul.bf16.gmra.mxu0 %v3710_v46 }
  0xf4   : > { %1017 = vmatmul.bf16.gmra.mxu1 %v3710_v46  ;;  %1150 = vmatmul.bf16.gmra.mxu2 %v3690_v47 }
  0xf5   : > { %1179 = vmatmul.bf16.gmra.mxu3 %v3690_v47 }
 0x140   : > { %v974_v48 = vpop.f32.mrf.mxu0 }
 0x141   : > { %v1003_v49 = vpop.f32.mrf.mxu1 }
 0x147   : > { %v1136_v50 = vpop.f32.mrf.mxu2 }
 0x148   : > { %v1137_v52 = vadd.f32 %v1136_v50, %v974_v48  ;;  %v1165_v53 = vpop.f32.mrf.mxu3  ;;  %v976_v55 = vpop.f32.mrf.mxu0 }
 0x149   : > { %v1166_v56 = vadd.f32 %v1165_v53, %v1003_v49  ;;  %v1005_v57 = vpop.f32.mrf.mxu1 }
 0x14a   : > { %v4651_v58 = vadd.f32 %v1185_v51, %v1137_v52  ;;  %v1195_v51 = vld [vmem:[%s4433_s4 + $0x50] sm:$0xff] }
 0x14b   : > { %v4653_v59 = vadd.f32 %v1186_v54, %v1166_v56 }
 0x14c   : > { %1217 = vst [vmem:[#allocation2 + $0x30] sm:$0xff] %v4651_v58  ;;  %v1233_v60 = vmul.f32 %v4651_v58, %v4651_v58 }
 0x14d   : > { %1218 = vst [vmem:[#allocation2] sm:$0xff] %v4653_v59  ;;  %v1234_v61 = vmul.f32 %v4653_v59, %v4653_v59 }
 0x14f   : > { %v1138_v62 = vpop.f32.mrf.mxu2  ;;  %v1249_v0 = vadd.f32 %v1234_v61, %v1233_v60 }
 0x150   : > { %v1139_v1 = vadd.f32 %v1138_v62, %v976_v55  ;;  %v1167_v2 = vpop.f32.mrf.mxu3  ;;  %v979_v4 = vpop.f32.mrf.mxu0  ;;  %v1196_v55 = vld [vmem:[%s4433_s4 + $0x58] sm:$0xff] }
 0x151   : > { %v1168_v5 = vadd.f32 %v1167_v2, %v1005_v57  ;;  %1250 = vadd.xlane.f32.xlu0 %v1249_v0  ;;  %v1008_v6 = vpop.f32.mrf.mxu1  ;;  %v1197_v2 = vld [vmem:[%s4433_s4 + $0x60] sm:$0xff] }
 0x152   : > { %v4663_v7 = vadd.f32 %v1187_v63, %v1139_v1 }
 0x153   : > { %v4665_v8 = vadd.f32 %v1188_v3, %v1168_v5 }
 0x154   : > { %1219 = vst [vmem:[#allocation2 + $0x58] sm:$0xff] %v4663_v7  ;;  %v1235_v9 = vmul.f32 %v4663_v7, %v4663_v7 }
 0x155   : > { %1220 = vst [vmem:[#allocation2 + $0x18] sm:$0xff] %v4665_v8  ;;  %v1236_v10 = vmul.f32 %v4665_v8, %v4665_v8 }
 0x157   : > { %v1141_v11 = vpop.f32.mrf.mxu2  ;;  %v1252_v13 = vadd.f32 %v1236_v10, %v1235_v9 }
 0x158   : > { %v1142_v14 = vadd.f32 %v1141_v11, %v979_v4  ;;  %v1170_v15 = vpop.f32.mrf.mxu3  ;;  %v981_v17 = vpop.f32.mrf.mxu0 }
 0x159   : > { %v1171_v18 = vadd.f32 %v1170_v15, %v1008_v6  ;;  %1253 = vadd.xlane.f32.xlu0 %v1252_v13  ;;  %v1010_v19 = vpop.f32.mrf.mxu1  ;;  %v1198_v6 = vld [vmem:[%s4433_s4 + $0x68] sm:$0xff] }
 0x15a   : > { %v4675_v20 = vadd.f32 %v1189_v12, %v1142_v14 }
 0x15b   : > { %v4677_v21 = vadd.f32 %v1190_v16, %v1171_v18  ;;  %v1199_v16 = vld [vmem:[%s4433_s4 + $0x70] sm:$0xff] }
 0x15c   : > { %1221 = vst [vmem:[#allocation2 + $0x50] sm:$0xff] %v4675_v20  ;;  %v1237_v22 = vmul.f32 %v4675_v20, %v4675_v20 }
 0x15d   : > { %1222 = vst [vmem:[#allocation2 + $0x68] sm:$0xff] %v4677_v21  ;;  %v1238_v23 = vmul.f32 %v4677_v21, %v4677_v21 }
 0x15f   : > { %v1143_v24 = vpop.f32.mrf.mxu2  ;;  %v1255_v26 = vadd.f32 %v1238_v23, %v1237_v22  ;;  %v1200_v23 = vld [vmem:[%s4433_s4 + $0x78] sm:$0xff] }
 0x160   : > { %v1144_v27 = vadd.f32 %v1143_v24, %v981_v17  ;;  %v1172_v28 = vpop.f32.mrf.mxu3  ;;  %v984_v31 = vpop.f32.mrf.mxu0 }
 0x161   : > { %v1173_v30 = vadd.f32 %v1172_v28, %v1010_v19  ;;  %1256 = vadd.xlane.f32.xlu1 %v1255_v26  ;;  %v1013_v33 = vpop.f32.mrf.mxu1 }
 0x162   : > { %v4687_v32 = vadd.f32 %v1191_v25, %v1144_v27 }
 0x163   : > { %v4689_v34 = vadd.f32 %v1192_v29, %v1173_v30  ;;  %v4118_v30 = vmov 256.0  }
 0x164   : > { %1223 = vst [vmem:[#allocation2 + $0x8] sm:$0xff] %v4687_v32  ;;  %v1239_v35 = vmul.f32 %v4687_v32, %v4687_v32  ;;  %3924 = vrcp.f32 %v4118_v30 }
 0x165   : > { %1224 = vst [vmem:[#allocation2 + $0x48] sm:$0xff] %v4689_v34  ;;  %v1240_v36 = vmul.f32 %v4689_v34, %v4689_v34 }
 0x167   : > { %v1146_v37 = vpop.f32.mrf.mxu2  ;;  %v1258_v39 = vadd.f32 %v1240_v36, %v1239_v35 }
 0x168   : > { %v1147_v40 = vadd.f32 %v1146_v37, %v984_v31  ;;  %v1175_v41 = vpop.f32.mrf.mxu3  ;;  %v986_v46 = vpop.f32.mrf.mxu0 }
 0x169   : > { %v1176_v43 = vadd.f32 %v1175_v41, %v1013_v33  ;;  %1259 = vadd.xlane.f32.xlu1 %v1258_v39  ;;  %v1015_v47 = vpop.f32.mrf.mxu1 }
 0x16a   : > { %v4699_v44 = vadd.f32 %v1193_v38, %v1147_v40  ;;  %v3925_v31 = vpop.eup %3924 }
 0x16b   : > { %v4701_v45 = vadd.f32 %v1194_v42, %v1176_v43  ;;  %v1274_v33 = vmul.f32 256.0, %v3925_v31  ;;  %vm1278_vm0 = vweird.f32 %v3925_v31 }
 0x16c   : > { %1225 = vst [vmem:[#allocation2 + $0x40] sm:$0xff] %v4699_v44  ;;  %v1241_v48 = vmul.f32 %v4699_v44, %v4699_v44 }
 0x16d   : > { %1226 = vst [vmem:[#allocation2 + $0x20] sm:$0xff] %v4701_v45  ;;  %v1242_v49 = vmul.f32 %v4701_v45, %v4701_v45  ;;  %v1275_v35 = vsub.f32 1.0, %v1274_v33 }
 0x16f   : > { %v1148_v50 = vpop.f32.mrf.mxu2  ;;  %v1261_v52 = vadd.f32 %v1242_v49, %v1241_v48  ;;  %v1276_v36 = vmul.f32 %v3925_v31, %v1275_v35 }
 0x170   : > { %v1149_v53 = vadd.f32 %v1148_v50, %v986_v46  ;;  %v1177_v54 = vpop.f32.mrf.mxu3  ;;  %v989_v62 = vpop.f32.mrf.mxu0 }
 0x171   : > { %v1178_v56 = vadd.f32 %v1177_v54, %v1015_v47  ;;  %1262 = vadd.xlane.f32.xlu2 %v1261_v52  ;;  %v1018_v0 = vpop.f32.mrf.mxu1  ;;  %v1277_v37 = vadd.f32 %v3925_v31, %v1276_v36 }
 0x172   : > { %v4711_v57 = vadd.f32 %v1195_v51, %v1149_v53  ;;  %v1392_v53 = vld [vmem:[%s5703_s3] sm:$0x3] }
 0x173   : > { %v4713_v60 = vadd.f32 %v1196_v55, %v1178_v56  ;;  %v4745_v38 = vsel %vm1278_vm0, %v3925_v31, %v1277_v37 }
 0x174   : > { %1227 = vst [vmem:[#allocation2 + $0x10] sm:$0xff] %v4711_v57  ;;  %v1243_v61 = vmul.f32 %v4711_v57, %v4711_v57 }
 0x175   : > { %1228 = vst [vmem:[#allocation2 + $0x38] sm:$0xff] %v4713_v60  ;;  %v1244_v63 = vmul.f32 %v4713_v60, %v4713_v60 }
 0x177   : > { %v1151_v1 = vpop.f32.mrf.mxu2  ;;  %v1264_v3 = vadd.f32 %v1244_v63, %v1243_v61  ;;  %v4753_v63 = vperm.slane %v1392_v53, 0 }
 0x178   : > { %v1152_v4 = vadd.f32 %v1151_v1, %v989_v62  ;;  %v1180_v5 = vpop.f32.mrf.mxu3  ;;  %v991_v14 = vpop.f32.mrf.mxu0 }
 0x179   : > { %v1181_v9 = vadd.f32 %v1180_v5, %v1018_v0  ;;  %1265 = vadd.xlane.f32.xlu2 %v1264_v3  ;;  %v1020_v18 = vpop.f32.mrf.mxu1  ;;  %v4755_v0 = vperm.slane %v1392_v53, 1 }
 0x17a   : > { %v4723_v10 = vadd.f32 %v1197_v2, %v1152_v4 }
 0x17b   : > { %v4725_v11 = vadd.f32 %v1198_v6, %v1181_v9 }
 0x17c   : > { %1229 = vst [vmem:[#allocation2 + $0x60] sm:$0xff] %v4723_v10  ;;  %v1245_v12 = vmul.f32 %v4723_v10, %v4723_v10 }
 0x17d   : > { %1230 = vst [vmem:[#allocation2 + $0x70] sm:$0xff] %v4725_v11  ;;  %v1246_v13 = vmul.f32 %v4725_v11, %v4725_v11 }
 0x17f   : > { %v1153_v15 = vpop.f32.mrf.mxu2  ;;  %v1267_v17 = vadd.f32 %v1246_v13, %v1245_v12 }
 0x180   : > { %v1154_v19 = vadd.f32 %v1153_v15, %v991_v14  ;;  %v1182_v22 = vpop.f32.mrf.mxu3 }
 0x181   : > { %v1183_v24 = vadd.f32 %v1182_v22, %v1020_v18  ;;  %1268 = vadd.xlane.f32.xlu0 %v1267_v17 }
 0x182   : > { %v4735_v25 = vadd.f32 %v1199_v16, %v1154_v19 }
 0x183   : > { %v4737_v26 = vadd.f32 %v1200_v23, %v1183_v24 }
 0x184   : > { %1231 = vst [vmem:[#allocation2 + $0x78] sm:$0xff] %v4735_v25  ;;  %v1247_v27 = vmul.f32 %v4735_v25, %v4735_v25 }
 0x185   : > { %1232 = vst [vmem:[#allocation2 + $0x28] sm:$0xff] %v4737_v26  ;;  %v1248_v28 = vmul.f32 %v4737_v26, %v4737_v26 }
 0x187   : > { %v1270_v29 = vadd.f32 %v1248_v28, %v1247_v27 }
 0x189   : > { %1271 = vadd.xlane.f32.xlu1 %v1270_v29 }
 0x1c4   : > { %v1251_v39 = vpop.xlane.xlu0 %1250 }
 0x1c5   : > { %v1280_v40 = vmul.f32 %v4745_v38, %v1251_v39 }
 0x1c7   : > { %v1288_v41 = vadd.f32 1e-05, %v1280_v40 }
 0x1c9   : > { %3926 = vrsqrt.f32 %v1288_v41  ;;  %vm1302_vm2 = vweird.f32 %v1288_v41 }
 0x1cc   : > { %v1254_v42 = vpop.xlane.xlu0 %1253 }
 0x1cd   : > { %v1281_v43 = vmul.f32 %v4745_v38, %v1254_v42 }
 0x1cf   : > { %v3927_v46 = vpop.eup %3926  ;;  %v1289_v47 = vadd.f32 1e-05, %v1281_v43 }
 0x1d0   : > { %v1297_v48 = vmul.f32 %v3927_v46, %v1288_v41  ;;  %vm1303_vm1 = vweird.f32 %v3927_v46 }
 0x1d1   : > { %3928 = vrsqrt.f32 %v1289_v47  ;;  %vm1304_vm3 = vmor %vm1302_vm2, %vm1303_vm1  ;;  %vm1312_vm5 = vweird.f32 %v1289_v47 }
 0x1d2   : > { %v1298_v49 = vmul.f32 %v3927_v46, %v1297_v48 }
 0x1d4   : > { %v1299_v50 = vmul.f32 0.5, %v1298_v49  ;;  %v1257_v51 = vpop.xlane.xlu1 %1256 }
 0x1d5   : > { %v1282_v52 = vmul.f32 %v4745_v38, %v1257_v51 }
 0x1d6   : > { %v1300_v54 = vsub.f32 1.5, %v1299_v50 }
 0x1d7   : > { %v3929_v55 = vpop.eup %3928  ;;  %v1290_v56 = vadd.f32 1e-05, %v1282_v52 }
 0x1d8   : > { %v1301_v61 = vmul.f32 %v3927_v46, %v1300_v54  ;;  %v1307_v62 = vmul.f32 %v3929_v55, %v1289_v47  ;;  %vm1313_vm4 = vweird.f32 %v3929_v55 }
 0x1d9   : > { %3930 = vrsqrt.f32 %v1290_v56  ;;  %vm1314_vm6 = vmor %vm1312_vm5, %vm1313_vm4  ;;  %vm1322_vm8 = vweird.f32 %v1290_v56 }
 0x1da   : > { %v1305_v1 = vsel %vm1304_vm3, %v3927_v46, %v1301_v61  ;;  %v1308_v2 = vmul.f32 %v3929_v55, %v1307_v62 }
 0x1db   : > { %v1376_v3 = vmul.f32 %v1305_v1, %v4651_v58  ;;  %v1377_v4 = vmul.f32 %v1305_v1, %v4653_v59 }
 0x1dc   : > { %v1309_v5 = vmul.f32 0.5, %v1308_v2  ;;  %v1260_v6 = vpop.xlane.xlu1 %1259 }
 0x1dd   : > { %v1398_v9 = vmul.f32 %v4753_v63, %v1376_v3  ;;  %v1399_v12 = vmul.f32 %v4755_v0, %v1377_v4  ;;  %v1283_v13 = vmul.f32 %v4745_v38, %v1260_v6 }
 0x1de   : > { %v1310_v14 = vsub.f32 1.5, %v1309_v5 }
 0x1df   : > { %v3931_v15 = vpop.eup %3930  ;;  %v1414_v16 = vpack.c.bf16 %v1399_v12, %v1398_v9  ;;  %v1291_v17 = vadd.f32 1e-05, %v1283_v13 }
 0x1e0   : > { %v1311_v18 = vmul.f32 %v3929_v55, %v1310_v14  ;;  %v1317_v19 = vmul.f32 %v3931_v15, %v1290_v56  ;;  %vm1323_vm7 = vweird.f32 %v3931_v15  ;;  %v4119_v14 = vmov 0.0  }
 0x1e1   : > { %1422 = vst [vmem:[#allocation3] sm:$0xff] %v1414_v16  ;;  %3932 = vrsqrt.f32 %v1291_v17  ;;  %vm1324_vm9 = vmor %vm1322_vm8, %vm1323_vm7  ;;  %vm1332_vm11 = vweird.f32 %v1291_v17 }
 0x1e2   : > { %v1315_v58 = vsel %vm1314_vm6, %v3929_v55, %v1311_v18  ;;  %v1318_v59 = vmul.f32 %v3931_v15, %v1317_v19  ;;  %1430 = vst [vmem:[#allocation4 + $0x28] sm:$0xff] %v4119_v14 }
 0x1e3   : > { %v1378_v22 = vmul.f32 %v1315_v58, %v4663_v7  ;;  %v1379_v23 = vmul.f32 %v1315_v58, %v4665_v8  ;;  %1431 = vst [vmem:[#allocation4 + $0x68] sm:$0xff] %v4119_v14 }
 0x1e4   : > { %v1319_v24 = vmul.f32 0.5, %v1318_v59  ;;  %v1263_v27 = vpop.xlane.xlu2 %1262  ;;  %1432 = vst [vmem:[#allocation4 + $0x10] sm:$0xff] %v4119_v14 }
 0x1e5   : > { %v1400_v28 = vmul.f32 %v4753_v63, %v1378_v22  ;;  %v1401_v29 = vmul.f32 %v4755_v0, %v1379_v23  ;;  %v1284_v30 = vmul.f32 %v4745_v38, %v1263_v27  ;;  %1433 = vst [vmem:[#allocation4 + $0x40] sm:$0xff] %v4119_v14 }
 0x1e6   : > { %v1320_v31 = vsub.f32 1.5, %v1319_v24  ;;  %1434 = vst [vmem:[#allocation4 + $0x48] sm:$0xff] %v4119_v14 }
 0x1e7   : > { %v3933_v33 = vpop.eup %3932  ;;  %v1415_v35 = vpack.c.bf16 %v1401_v29, %v1400_v28  ;;  %v1292_v36 = vadd.f32 1e-05, %v1284_v30  ;;  %1435 = vst [vmem:[#allocation4 + $0x30] sm:$0xff] %v4119_v14 }
 0x1e8   : > { %v1321_v37 = vmul.f32 %v3931_v15, %v1320_v31  ;;  %v1327_v39 = vmul.f32 %v3933_v33, %v1291_v17  ;;  %vm1333_vm10 = vweird.f32 %v3933_v33  ;;  %1436 = vst [vmem:[#allocation4 + $0x70] sm:$0xff] %v4119_v14 }
 0x1e9   : > { %1423 = vst [vmem:[#allocation3 + $0x8] sm:$0xff] %v1415_v35  ;;  %3934 = vrsqrt.f32 %v1292_v36  ;;  %vm1334_vm12 = vmor %vm1332_vm11, %vm1333_vm10  ;;  %vm1342_vm14 = vweird.f32 %v1292_v36 }
 0x1ea   : > { %v1325_v7 = vsel %vm1324_vm9, %v3931_v15, %v1321_v37  ;;  %v1328_v8 = vmul.f32 %v3933_v33, %v1327_v39  ;;  %1437 = vst [vmem:[#allocation4 + $0x38] sm:$0xff] %v4119_v14 }
 0x1eb   : > { %v1380_v40 = vmul.f32 %v1325_v7, %v4675_v20  ;;  %v1381_v41 = vmul.f32 %v1325_v7, %v4677_v21  ;;  %1438 = vst [vmem:[#allocation4 + $0x20] sm:$0xff] %v4119_v14 }
 0x1ec   : > { %v1329_v42 = vmul.f32 0.5, %v1328_v8  ;;  %v1266_v43 = vpop.xlane.xlu2 %1265  ;;  %1439 = vst [vmem:[#allocation4 + $0x78] sm:$0xff] %v4119_v14 }
 0x1ed   : > { %v1402_v46 = vmul.f32 %v4753_v63, %v1380_v40  ;;  %v1403_v47 = vmul.f32 %v4755_v0, %v1381_v41  ;;  %v1285_v48 = vmul.f32 %v4745_v38, %v1266_v43  ;;  %1440 = vst [vmem:[#allocation4 + $0x18] sm:$0xff] %v4119_v14 }
 0x1ee   : > { %v1330_v49 = vsub.f32 1.5, %v1329_v42  ;;  %1441 = vst [vmem:[#allocation4 + $0x58] sm:$0xff] %v4119_v14 }
 0x1ef   : > { %v3935_v50 = vpop.eup %3934  ;;  %v1416_v51 = vpack.c.bf16 %v1403_v47, %v1402_v46  ;;  %v1293_v52 = vadd.f32 1e-05, %v1285_v48  ;;  %1442 = vst [vmem:[#allocation4] sm:$0xff] %v4119_v14 }
 0x1f0   : > { %v1331_v53 = vmul.f32 %v3933_v33, %v1330_v49  ;;  %v1337_v54 = vmul.f32 %v3935_v50, %v1292_v36  ;;  %vm1343_vm13 = vweird.f32 %v3935_v50  ;;  %1443 = vst [vmem:[#allocation4 + $0x8] sm:$0xff] %v4119_v14 }
 0x1f1   : > { %1424 = vst [vmem:[#allocation3 + $0x10] sm:$0xff] %v1416_v51  ;;  %3936 = vrsqrt.f32 %v1293_v52  ;;  %vm1344_vm15 = vmor %vm1342_vm14, %vm1343_vm13  ;;  %vm1352_vm1 = vweird.f32 %v1293_v52 }
 0x1f2   : > { %v1335_v20 = vsel %vm1334_vm12, %v3933_v33, %v1331_v53  ;;  %v1338_v21 = vmul.f32 %v3935_v50, %v1337_v54  ;;  %1444 = vst [vmem:[#allocation4 + $0x60] sm:$0xff] %v4119_v14 }
 0x1f3   : > { %v1382_v55 = vmul.f32 %v1335_v20, %v4687_v32  ;;  %v1383_v56 = vmul.f32 %v1335_v20, %v4689_v34  ;;  %1445 = vst [vmem:[#allocation4 + $0x50] sm:$0xff] %v4119_v14 }
 0x1f4   : > { %v1339_v61 = vmul.f32 0.5, %v1338_v21  ;;  %v1269_v62 = vpop.xlane.xlu0 %1268 }
 0x1f5   : > { %v1404_v1 = vmul.f32 %v4753_v63, %v1382_v55  ;;  %v1405_v2 = vmul.f32 %v4755_v0, %v1383_v56  ;;  %v1286_v3 = vmul.f32 %v4745_v38, %v1269_v62 }
 0x1f6   : > { %v1340_v4 = vsub.f32 1.5, %v1339_v61 }
 0x1f7   : > { %v3937_v5 = vpop.eup %3936  ;;  %v1417_v6 = vpack.c.bf16 %v1405_v2, %v1404_v1  ;;  %v1294_v9 = vadd.f32 1e-05, %v1286_v3 }
 0x1f8   : > { %v1341_v12 = vmul.f32 %v3935_v50, %v1340_v4  ;;  %v1347_v13 = vmul.f32 %v3937_v5, %v1293_v52  ;;  %vm1353_vm0 = vweird.f32 %v3937_v5 }
 0x1f9   : > { %1425 = vst [vmem:[#allocation3 + $0x18] sm:$0xff] %v1417_v6  ;;  %3938 = vrsqrt.f32 %v1294_v9  ;;  %vm1354_vm2 = vmor %vm1352_vm1, %vm1353_vm0  ;;  %vm1362_vm4 = vweird.f32 %v1294_v9 }
 0x1fa   : > { %v1345_v32 = vsel %vm1344_vm15, %v3935_v50, %v1341_v12  ;;  %v1348_v34 = vmul.f32 %v3937_v5, %v1347_v13 }
 0x1fb   : > { %v1384_v15 = vmul.f32 %v1345_v32, %v4699_v44  ;;  %v1385_v16 = vmul.f32 %v1345_v32, %v4701_v45 }
 0x1fc   : > { %v1349_v17 = vmul.f32 0.5, %v1348_v34  ;;  %v1272_v18 = vpop.xlane.xlu1 %1271 }
 0x1fd   : > { %v1406_v19 = vmul.f32 %v4753_v63, %v1384_v15  ;;  %v1407_v58 = vmul.f32 %v4755_v0, %v1385_v16  ;;  %v1287_v59 = vmul.f32 %v4745_v38, %v1272_v18 }
 0x1fe   : > { %v1350_v22 = vsub.f32 1.5, %v1349_v17 }
 0x1ff   : > { %v3939_v23 = vpop.eup %3938  ;;  %v1418_v24 = vpack.c.bf16 %v1407_v58, %v1406_v19  ;;  %v1295_v27 = vadd.f32 1e-05, %v1287_v59 }
 0x200   : > { %v1351_v44 = vmul.f32 %v3937_v5, %v1350_v22  ;;  %v1357_v45 = vmul.f32 %v3939_v23, %v1294_v9  ;;  %vm1363_vm3 = vweird.f32 %v3939_v23 }
 0x201   : > { %1426 = vst [vmem:[#allocation3 + $0x20] sm:$0xff] %v1418_v24  ;;  %3940 = vrsqrt.f32 %v1295_v27  ;;  %vm1364_vm5 = vmor %vm1362_vm4, %vm1363_vm3  ;;  %vm1372_vm7 = vweird.f32 %v1295_v27 }
 0x202   : > { %v1355_v28 = vsel %vm1354_vm2, %v3937_v5, %v1351_v44  ;;  %v1358_v29 = vmul.f32 %v3939_v23, %v1357_v45 }
 0x203   : > { %v1386_v38 = vmul.f32 %v1355_v28, %v4711_v57  ;;  %v1387_v30 = vmul.f32 %v1355_v28, %v4713_v60 }
 0x204   : > { %v1359_v31 = vmul.f32 0.5, %v1358_v29 }
 0x205   : > { %v1408_v33 = vmul.f32 %v4753_v63, %v1386_v38  ;;  %v1409_v35 = vmul.f32 %v4755_v0, %v1387_v30 }
 0x206   : > { %v1360_v36 = vsub.f32 1.5, %v1359_v31 }
 0x207   : > { %v3941_v37 = vpop.eup %3940  ;;  %v1419_v39 = vpack.c.bf16 %v1409_v35, %v1408_v33 }
 0x208   : > { %v1361_v7 = vmul.f32 %v3939_v23, %v1360_v36  ;;  %v1367_v8 = vmul.f32 %v3941_v37, %v1295_v27  ;;  %vm1373_vm6 = vweird.f32 %v3941_v37 }
 0x209   : > { %1427 = vst [vmem:[#allocation3 + $0x28] sm:$0xff] %v1419_v39  ;;  %vm1374_vm8 = vmor %vm1372_vm7, %vm1373_vm6 }
 0x20a   : > { %v1365_v57 = vsel %vm1364_vm5, %v3939_v23, %v1361_v7  ;;  %v1368_v60 = vmul.f32 %v3941_v37, %v1367_v8 }
 0x20b   : > { %v1388_v40 = vmul.f32 %v1365_v57, %v4723_v10  ;;  %v1389_v41 = vmul.f32 %v1365_v57, %v4725_v11 }
 0x20c   : > { %v1369_v42 = vmul.f32 0.5, %v1368_v60 }
 0x20d   : > { %v1410_v43 = vmul.f32 %v4753_v63, %v1388_v40  ;;  %v1411_v46 = vmul.f32 %v4755_v0, %v1389_v41 }
 0x20e   : > { %v1370_v47 = vsub.f32 1.5, %v1369_v42 }
 0x20f   : > { %v1420_v48 = vpack.c.bf16 %v1411_v46, %v1410_v43 }
 0x210   : > { %v1371_v49 = vmul.f32 %v3941_v37, %v1370_v47 }
 0x211   : > { %1428 = vst [vmem:[#allocation3 + $0x30] sm:$0xff] %v1420_v48 }
 0x212   : > { %v1375_v50 = vsel %vm1374_vm8, %v3941_v37, %v1371_v49 }
 0x213   : > { %v1390_v51 = vmul.f32 %v1375_v50, %v4735_v25  ;;  %v1391_v10 = vmul.f32 %v1375_v50, %v4737_v26 }
 0x215   : > { %v1412_v11 = vmul.f32 %v4753_v63, %v1390_v51  ;;  %v1413_v52 = vmul.f32 %v4755_v0, %v1391_v10 }
 0x217   : > { %v1421_v53 = vpack.c.bf16 %v1413_v52, %v1412_v11 }
 0x219   : > { %1429 = vst [vmem:[#allocation3 + $0x38] sm:$0xff] %v1421_v53 }
 0x21a PF: > { %v3333_v25 = vld [vmem:[%s4442_s22 + $0x70] sm:$0xf]  ;;  %v3750_v26 = vld [vmem:[%s4442_s22 + $0x74] sm:$0xf0]  ;;  %v3749_v20 = vld [vmem:[%s4442_s22 + $0x74] sm:$0xf] }
 0x21b   : > { %v3397_v63 = vld [vmem:[%s4442_s22 + $0xf0] sm:$0xf]  ;;  %v3334_v54 = vor.u32 %v3750_v26, %v3333_v25  ;;  %v3766_v0 = vld [vmem:[%s4442_s22 + $0xf4] sm:$0xf0]  ;;  %v3335_v21 = vld [vmem:[%s4442_s22 + $0x78] sm:$0xf0] }
 0x21c   : > { %v3398_v55 = vor.u32 %v3766_v0, %v3397_v63  ;;  %v3338_v56 = vor.u32 %v3749_v20, %v3335_v21  ;;  %v3765_v61 = vld [vmem:[%s4442_s22 + $0xf4] sm:$0xf]  ;;  %v3399_v62 = vld [vmem:[%s4442_s22 + $0xf8] sm:$0xf0]  ;;  %v3325_v1 = vld [vmem:[%s4442_s22 + $0x60] sm:$0xf] }
 0x21d   : > { %1686 = vmatpush.bf16.msra.mxu0 %v3334_v54  ;;  %v3402_v2 = vor.u32 %v3765_v61, %v3399_v62  ;;  %v3748_v3 = vld [vmem:[%s4442_s22 + $0x64] sm:$0xf0]  ;;  %v3389_v4 = vld [vmem:[%s4442_s22 + $0xe0] sm:$0xf]  ;;  %v3747_v12 = vld [vmem:[%s4442_s22 + $0x64] sm:$0xf] }
 0x21e   : > { %v3764_v5 = vld [vmem:[%s4442_s22 + $0xe4] sm:$0xf0]  ;;  %1715 = vmatpush.bf16.msra.mxu1 %v3398_v55  ;;  %1744 = vmatpush.bf16.msra.mxu2 %v3338_v56  ;;  %v3326_v6 = vor.u32 %v3748_v3, %v3325_v1  ;;  %v3327_v13 = vld [vmem:[%s4442_s22 + $0x68] sm:$0xf0]  ;;  %v3763_v32 = vld [vmem:[%s4442_s22 + $0xe4] sm:$0xf] }
 0x21f   : > { %v3390_v9 = vor.u32 %v3764_v5, %v3389_v4  ;;  %1773 = vmatpush.bf16.msra.mxu3 %v3402_v2  ;;  %v3330_v34 = vor.u32 %v3747_v12, %v3327_v13  ;;  %v3391_v14 = vld [vmem:[%s4442_s22 + $0xe8] sm:$0xf0]  ;;  %v3317_v15 = vld [vmem:[%s4442_s22 + $0x50] sm:$0xf]  ;;  %v3746_v16 = vld [vmem:[%s4442_s22 + $0x54] sm:$0xf0] }
 0x220   : > { %v3394_v17 = vor.u32 %v3763_v32, %v3391_v14  ;;  %v3381_v18 = vld [vmem:[%s4442_s22 + $0xd0] sm:$0xf]  ;;  %v3762_v19 = vld [vmem:[%s4442_s22 + $0xd4] sm:$0xf0]  ;;  %v3745_v58 = vld [vmem:[%s4442_s22 + $0x54] sm:$0xf]  ;;  %v3318_v59 = vor.u32 %v3746_v16, %v3317_v15 }
 0x221   : > { %1687 = vmatpush.bf16.msra.mxu0 %v3326_v6  ;;  %v3319_v22 = vld [vmem:[%s4442_s22 + $0x58] sm:$0xf0]  ;;  %v3761_v23 = vld [vmem:[%s4442_s22 + $0xd4] sm:$0xf]  ;;  %v3382_v27 = vor.u32 %v3762_v19, %v3381_v18  ;;  %v3309_v45 = vld [vmem:[%s4442_s22 + $0x40] sm:$0xf] }
 0x222   : > { %v3383_v24 = vld [vmem:[%s4442_s22 + $0xd8] sm:$0xf0]  ;;  %1716 = vmatpush.bf16.msra.mxu1 %v3390_v9  ;;  %1745 = vmatpush.bf16.msra.mxu2 %v3330_v34  ;;  %v3322_v44 = vor.u32 %v3745_v58, %v3319_v22  ;;  %v3744_v28 = vld [vmem:[%s4442_s22 + $0x44] sm:$0xf0]  ;;  %v3373_v29 = vld [vmem:[%s4442_s22 + $0xc0] sm:$0xf] }
 0x223   : > { %1774 = vmatpush.bf16.msra.mxu3 %v3394_v17  ;;  %v3386_v38 = vor.u32 %v3761_v23, %v3383_v24  ;;  %v3760_v30 = vld [vmem:[%s4442_s22 + $0xc4] sm:$0xf0]  ;;  %v3743_v31 = vld [vmem:[%s4442_s22 + $0x44] sm:$0xf]  ;;  %v3311_v33 = vld [vmem:[%s4442_s22 + $0x48] sm:$0xf0]  ;;  %v3310_v37 = vor.u32 %v3744_v28, %v3309_v45 }
 0x224   : > { %v3759_v35 = vld [vmem:[%s4442_s22 + $0xc4] sm:$0xf]  ;;  %v3375_v36 = vld [vmem:[%s4442_s22 + $0xc8] sm:$0xf0]  ;;  %v3374_v39 = vor.u32 %v3760_v30, %v3373_v29  ;;  %v3314_v7 = vor.u32 %v3743_v31, %v3311_v33  ;;  %v3301_v8 = vld [vmem:[%s4442_s22 + $0x30] sm:$0xf] }
 0x225   : > { %1688 = vmatpush.bf16.msra.mxu0 %v3318_v59  ;;  %v3742_v57 = vld [vmem:[%s4442_s22 + $0x34] sm:$0xf0]  ;;  %v3365_v60 = vld [vmem:[%s4442_s22 + $0xb0] sm:$0xf]  ;;  %v3378_v40 = vor.u32 %v3759_v35, %v3375_v36  ;;  %v3741_v42 = vld [vmem:[%s4442_s22 + $0x34] sm:$0xf] }
 0x226   : > { %1717 = vmatpush.bf16.msra.mxu1 %v3382_v27  ;;  %1746 = vmatpush.bf16.msra.mxu2 %v3322_v44  ;;  %v3758_v41 = vld [vmem:[%s4442_s22 + $0xb4] sm:$0xf0]  ;;  %v3303_v43 = vld [vmem:[%s4442_s22 + $0x38] sm:$0xf0]  ;;  %v3757_v46 = vld [vmem:[%s4442_s22 + $0xb4] sm:$0xf]  ;;  %v3302_v48 = vor.u32 %v3742_v57, %v3301_v8 }
 0x227   : > { %1775 = vmatpush.bf16.msra.mxu3 %v3386_v38  ;;  %v3367_v47 = vld [vmem:[%s4442_s22 + $0xb8] sm:$0xf0]  ;;  %v3366_v49 = vor.u32 %v3758_v41, %v3365_v60  ;;  %v3306_v50 = vor.u32 %v3741_v42, %v3303_v43  ;;  %v3293_v51 = vld [vmem:[%s4442_s22 + $0x20] sm:$0xf]  ;;  %v3740_v10 = vld [vmem:[%s4442_s22 + $0x24] sm:$0xf0] }
 0x228   : > { %v3357_v11 = vld [vmem:[%s4442_s22 + $0xa0] sm:$0xf]  ;;  %v3370_v52 = vor.u32 %v3757_v46, %v3367_v47  ;;  %v3756_v53 = vld [vmem:[%s4442_s22 + $0xa4] sm:$0xf0]  ;;  %v3739_v25 = vld [vmem:[%s4442_s22 + $0x24] sm:$0xf]  ;;  %v3294_v0 = vor.u32 %v3740_v10, %v3293_v51 }
 0x229   : > { %1689 = vmatpush.bf16.msra.mxu0 %v3310_v37  ;;  %v3295_v26 = vld [vmem:[%s4442_s22 + $0x28] sm:$0xf0]  ;;  %v3755_v63 = vld [vmem:[%s4442_s22 + $0xa4] sm:$0xf]  ;;  %v3358_v20 = vor.u32 %v3756_v53, %v3357_v11  ;;  %v3285_v55 = vld [vmem:[%s4442_s22 + $0x10] sm:$0xf] }
 0x22a   : > { %1718 = vmatpush.bf16.msra.mxu1 %v3374_v39  ;;  %1747 = vmatpush.bf16.msra.mxu2 %v3314_v7  ;;  %v3359_v54 = vld [vmem:[%s4442_s22 + $0xa8] sm:$0xf0]  ;;  %v3298_v21 = vor.u32 %v3739_v25, %v3295_v26  ;;  %v3738_v56 = vld [vmem:[%s4442_s22 + $0x14] sm:$0xf0]  ;;  %v3349_v61 = vld [vmem:[%s4442_s22 + $0x90] sm:$0xf] }
 0x22b   : > { %1776 = vmatpush.bf16.msra.mxu3 %v3378_v40  ;;  %v3362_v62 = vor.u32 %v3755_v63, %v3359_v54  ;;  %v3754_v1 = vld [vmem:[%s4442_s22 + $0x94] sm:$0xf0]  ;;  %v3737_v2 = vld [vmem:[%s4442_s22 + $0x14] sm:$0xf]  ;;  %v3287_v3 = vld [vmem:[%s4442_s22 + $0x18] sm:$0xf0]  ;;  %v3286_v6 = vor.u32 %v3738_v56, %v3285_v55 }
 0x22c   : > { %v3753_v4 = vld [vmem:[%s4442_s22 + $0x94] sm:$0xf]  ;;  %v3351_v5 = vld [vmem:[%s4442_s22 + $0x98] sm:$0xf0]  ;;  %v3277_v9 = vld [vmem:[%s4442_s22] sm:$0xf]  ;;  %v3350_v13 = vor.u32 %v3754_v1, %v3349_v61  ;;  %v3290_v32 = vor.u32 %v3737_v2, %v3287_v3 }
 0x22d   : > { %1690 = vmatpush.bf16.msra.mxu0 %v3302_v48  ;;  %v3736_v12 = vld [vmem:[%s4442_s22 + $0x4] sm:$0xf0]  ;;  %v3341_v34 = vld [vmem:[%s4442_s22 + $0x80] sm:$0xf]  ;;  %v3735_v15 = vld [vmem:[%s4442_s22 + $0x4] sm:$0xf]  ;;  %v3354_v16 = vor.u32 %v3753_v4, %v3351_v5 }
 0x22e   : > { %1719 = vmatpush.bf16.msra.mxu1 %v3366_v49  ;;  %1748 = vmatpush.bf16.msra.mxu2 %v3306_v50  ;;  %v3752_v14 = vld [vmem:[%s4442_s22 + $0x84] sm:$0xf0]  ;;  %v3279_v17 = vld [vmem:[%s4442_s22 + $0x8] sm:$0xf0]  ;;  %v3751_v18 = vld [vmem:[%s4442_s22 + $0x84] sm:$0xf]  ;;  %v3278_v23 = vor.u32 %v3736_v12, %v3277_v9 }
 0x22f   : > { %1777 = vmatpush.bf16.msra.mxu3 %v3370_v52  ;;  %v3343_v19 = vld [vmem:[%s4442_s22 + $0x88] sm:$0xf0]  ;;  %v3245_v58 = vld [vmem:[#allocation3] sm:$0xf]  ;;  %v3781_v59 = vld [vmem:[%s4444_s28 + $0x74] sm:$0xf]  ;;  %v3342_v45 = vor.u32 %v3752_v14, %v3341_v34  ;;  %v3282_v28 = vor.u32 %v3735_v15, %v3279_v17 }
 0x230   : > { %v3463_v22 = vld [vmem:[%s4444_s28 + $0x78] sm:$0xf0]  ;;  %v3728_v24 = vld [vmem:[#allocation3 + $0x4] sm:$0xf0]  ;;  %v3797_v27 = vld [vmem:[%s4444_s28 + $0xf4] sm:$0xf]  ;;  %v3346_v30 = vor.u32 %v3751_v18, %v3343_v19 }
 0x231   : > { %1691 = vmatpush.bf16.msra.mxu0 %v3294_v0  ;;  %v3527_v44 = vld [vmem:[%s4444_s28 + $0xf8] sm:$0xf0]  ;;  %v3727_v29 = vld [vmem:[#allocation3 + $0x4] sm:$0xf]  ;;  %v3247_v38 = vld [vmem:[#allocation3 + $0x8] sm:$0xf0]  ;;  %v3466_v31 = vor.u32 %v3781_v59, %v3463_v22  ;;  %v4865_v37 = vor.u32 %v3728_v24, %v3245_v58 }
 0x232   : > { %1720 = vmatpush.bf16.msra.mxu1 %v3358_v20  ;;  %1749 = vmatpush.bf16.msra.mxu2 %v3298_v21  ;;  %v3461_v33 = vld [vmem:[%s4444_s28 + $0x70] sm:$0xf]  ;;  %v3782_v35 = vld [vmem:[%s4444_s28 + $0x74] sm:$0xf0]  ;;  %v3530_v39 = vor.u32 %v3797_v27, %v3527_v44  ;;  %v3779_v8 = vld [vmem:[%s4444_s28 + $0x64] sm:$0xf]  ;;  %v4870_v60 = vor.u32 %v3727_v29, %v3247_v38 }
 0x233   : > { %1778 = vmatpush.bf16.msra.mxu3 %v3362_v62  ;;  %v3525_v36 = vld [vmem:[%s4444_s28 + $0xf0] sm:$0xf]  ;;  %v3798_v7 = vld [vmem:[%s4444_s28 + $0xf4] sm:$0xf0]  ;;  %v3455_v57 = vld [vmem:[%s4444_s28 + $0x68] sm:$0xf0]  ;;  %v3462_v42 = vor.u32 %v3782_v35, %v3461_v33 }
 0x234   : > { %v3795_v40 = vld [vmem:[%s4444_s28 + $0xe4] sm:$0xf]  ;;  %v3519_v41 = vld [vmem:[%s4444_s28 + $0xe8] sm:$0xf0]  ;;  %v3526_v43 = vor.u32 %v3798_v7, %v3525_v36  ;;  %v3458_v46 = vor.u32 %v3779_v8, %v3455_v57  ;;  %v3453_v47 = vld [vmem:[%s4444_s28 + $0x60] sm:$0xf] }
 0x235   : > { %1692 = vmatpush.bf16.msra.mxu0 %v3286_v6  ;;  %v3780_v48 = vld [vmem:[%s4444_s28 + $0x64] sm:$0xf0]  ;;  %v3517_v49 = vld [vmem:[%s4444_s28 + $0xe0] sm:$0xf]  ;;  %v3522_v50 = vor.u32 %v3795_v40, %v3519_v41  ;;  %v3777_v10 = vld [vmem:[%s4444_s28 + $0x54] sm:$0xf] }
 0x236   : > { %1721 = vmatpush.bf16.msra.mxu1 %v3350_v13  ;;  %1750 = vmatpush.bf16.msra.mxu2 %v3290_v32  ;;  %v3796_v51 = vld [vmem:[%s4444_s28 + $0xe4] sm:$0xf0]  ;;  %v3447_v11 = vld [vmem:[%s4444_s28 + $0x58] sm:$0xf0]  ;;  %v3793_v52 = vld [vmem:[%s4444_s28 + $0xd4] sm:$0xf]  ;;  %v3454_v25 = vor.u32 %v3780_v48, %v3453_v47 }
 0x237   : > { %1779 = vmatpush.bf16.msra.mxu3 %v3354_v16  ;;  %v3511_v53 = vld [vmem:[%s4444_s28 + $0xd8] sm:$0xf0]  ;;  %v3518_v26 = vor.u32 %v3796_v51, %v3517_v49  ;;  %v3450_v63 = vor.u32 %v3777_v10, %v3447_v11  ;;  %v3445_v54 = vld [vmem:[%s4444_s28 + $0x50] sm:$0xf]  ;;  %v3778_v0 = vld [vmem:[%s4444_s28 + $0x54] sm:$0xf0] }
 0x238   : > { %v3509_v20 = vld [vmem:[%s4444_s28 + $0xd0] sm:$0xf]  ;;  %v3514_v21 = vor.u32 %v3793_v52, %v3511_v53  ;;  %v3794_v55 = vld [vmem:[%s4444_s28 + $0xd4] sm:$0xf0]  ;;  %v3775_v56 = vld [vmem:[%s4444_s28 + $0x44] sm:$0xf]  ;;  %v3446_v2 = vor.u32 %v3778_v0, %v3445_v54 }
 0x239   : > { %1693 = vmatpush.bf16.msra.mxu0 %v3278_v23  ;;  %v3439_v61 = vld [vmem:[%s4444_s28 + $0x48] sm:$0xf0]  ;;  %v3791_v62 = vld [vmem:[%s4444_s28 + $0xc4] sm:$0xf]  ;;  %v3253_v3 = vld [vmem:[#allocation3 + $0x10] sm:$0xf]  ;;  %v3510_v4 = vor.u32 %v3794_v55, %v3509_v20 }
 0x23a   : > { %1722 = vmatpush.bf16.msra.mxu1 %v3342_v45  ;;  %1751 = vmatpush.bf16.msra.mxu2 %v3282_v28  ;;  %v3503_v1 = vld [vmem:[%s4444_s28 + $0xc8] sm:$0xf0]  ;;  %v3442_v5 = vor.u32 %v3775_v56, %v3439_v61  ;;  %v3437_v6 = vld [vmem:[%s4444_s28 + $0x40] sm:$0xf]  ;;  %v3776_v9 = vld [vmem:[%s4444_s28 + $0x44] sm:$0xf0] }
 0x23b   : > { %1780 = vmatpush.bf16.msra.mxu3 %v3346_v30  ;;  %v3501_v12 = vld [vmem:[%s4444_s28 + $0xc0] sm:$0xf]  ;;  %v3506_v13 = vor.u32 %v3791_v62, %v3503_v1  ;;  %v3792_v32 = vld [vmem:[%s4444_s28 + $0xc4] sm:$0xf0]  ;;  %v3773_v34 = vld [vmem:[%s4444_s28 + $0x34] sm:$0xf]  ;;  %v3438_v58 = vor.u32 %v3776_v9, %v3437_v6 }
 0x23c   : > { %1694 = vmatmul.bf16.vlgmr.msra.gmra.mxu0 %v4865_v37  ;;  %v3431_v14 = vld [vmem:[%s4444_s28 + $0x38] sm:$0xf0]  ;;  %v3730_v15 = vld [vmem:[#allocation3 + $0x14] sm:$0xf0]  ;;  %v3789_v16 = vld [vmem:[%s4444_s28 + $0xb4] sm:$0xf]  ;;  %v3502_v59 = vor.u32 %v3792_v32, %v3501_v12 }
 0x23d   : > { %1723 = vmatmul.bf16.vlgmr.msra.gmra.mxu1 %v4870_v60  ;;  %1752 = vmatmul.bf16.vlgmr.msra.gmra.mxu2 %v4865_v37  ;;  %v3495_v17 = vld [vmem:[%s4444_s28 + $0xb8] sm:$0xf0]  ;;  %v3729_v18 = vld [vmem:[#allocation3 + $0x14] sm:$0xf]  ;;  %v3434_v22 = vor.u32 %v3773_v34, %v3431_v14  ;;  %v3429_v23 = vld [vmem:[%s4444_s28 + $0x30] sm:$0xf]  ;;  %v4905_v44 = vor.u32 %v3730_v15, %v3253_v3 }
 0x23e   : > { %2052 = vmatpush.bf16.msrb.mxu2 %v3466_v31  ;;  %1781 = vmatmul.bf16.vlgmr.msra.gmra.mxu3 %v4870_v60  ;;  %v3255_v19 = vld [vmem:[#allocation3 + $0x18] sm:$0xf0]  ;;  %v3774_v24 = vld [vmem:[%s4444_s28 + $0x34] sm:$0xf0]  ;;  %v3493_v27 = vld [vmem:[%s4444_s28 + $0xb0] sm:$0xf]  ;;  %v3498_v45 = vor.u32 %v3789_v16, %v3495_v17 }
 0x23f   : > { %2081 = vmatpush.bf16.msrb.mxu3 %v3530_v39  ;;  %1994 = vmatpush.bf16.msrb.mxu0 %v3462_v42  ;;  %v3790_v28 = vld [vmem:[%s4444_s28 + $0xb4] sm:$0xf0]  ;;  %v3771_v29 = vld [vmem:[%s4444_s28 + $0x24] sm:$0xf]  ;;  %v3423_v38 = vld [vmem:[%s4444_s28 + $0x28] sm:$0xf0]  ;;  %v4910_v30 = vor.u32 %v3729_v18, %v3255_v19  ;;  %v3430_v35 = vor.u32 %v3774_v24, %v3429_v23 }
 0x240   : > { %2023 = vmatpush.bf16.msrb.mxu1 %v3526_v43  ;;  %v3787_v31 = vld [vmem:[%s4444_s28 + $0xa4] sm:$0xf]  ;;  %v3487_v33 = vld [vmem:[%s4444_s28 + $0xa8] sm:$0xf0]  ;;  %v3494_v36 = vor.u32 %v3790_v28, %v3493_v27  ;;  %v3426_v39 = vor.u32 %v3771_v29, %v3423_v38  ;;  %v3421_v7 = vld [vmem:[%s4444_s28 + $0x20] sm:$0xf] }
 0x241   : > { %v3772_v8 = vld [vmem:[%s4444_s28 + $0x24] sm:$0xf0]  ;;  %v3490_v57 = vor.u32 %v3787_v31, %v3487_v33  ;;  %v3485_v40 = vld [vmem:[%s4444_s28 + $0xa0] sm:$0xf]  ;;  %v3769_v43 = vld [vmem:[%s4444_s28 + $0x14] sm:$0xf] }
 0x242   : > { %2053 = vmatpush.bf16.msrb.mxu2 %v3458_v46  ;;  %v3788_v41 = vld [vmem:[%s4444_s28 + $0xa4] sm:$0xf0]  ;;  %v3422_v42 = vor.u32 %v3772_v8, %v3421_v7  ;;  %v3415_v46 = vld [vmem:[%s4444_s28 + $0x18] sm:$0xf0]  ;;  %v3785_v47 = vld [vmem:[%s4444_s28 + $0x94] sm:$0xf] }
 0x243   : > { %2082 = vmatpush.bf16.msrb.mxu3 %v3522_v50  ;;  %1995 = vmatpush.bf16.msrb.mxu0 %v3454_v25  ;;  %v3486_v48 = vor.u32 %v3788_v41, %v3485_v40  ;;  %v3418_v49 = vor.u32 %v3769_v43, %v3415_v46  ;;  %v3479_v50 = vld [vmem:[%s4444_s28 + $0x98] sm:$0xf0]  ;;  %v3413_v51 = vld [vmem:[%s4444_s28 + $0x10] sm:$0xf]  ;;  %v3770_v10 = vld [vmem:[%s4444_s28 + $0x14] sm:$0xf0] }
 0x244   : > { %2024 = vmatpush.bf16.msrb.mxu1 %v3518_v26  ;;  %v3482_v11 = vor.u32 %v3785_v47, %v3479_v50  ;;  %v3477_v52 = vld [vmem:[%s4444_s28 + $0x90] sm:$0xf]  ;;  %v3786_v53 = vld [vmem:[%s4444_s28 + $0x94] sm:$0xf0]  ;;  %v3767_v25 = vld [vmem:[%s4444_s28 + $0x4] sm:$0xf]  ;;  %v3414_v0 = vor.u32 %v3770_v10, %v3413_v51 }
 0x245   : > { %v3407_v26 = vld [vmem:[%s4444_s28 + $0x8] sm:$0xf0]  ;;  %v3478_v20 = vor.u32 %v3786_v53, %v3477_v52  ;;  %v3405_v55 = vld [vmem:[%s4444_s28] sm:$0xf]  ;;  %v3768_v56 = vld [vmem:[%s4444_s28 + $0x4] sm:$0xf0] }
 0x246   : > { %2054 = vmatpush.bf16.msrb.mxu2 %v3450_v63  ;;  %v3783_v63 = vld [vmem:[%s4444_s28 + $0x84] sm:$0xf]  ;;  %v3471_v54 = vld [vmem:[%s4444_s28 + $0x88] sm:$0xf0]  ;;  %v3469_v62 = vld [vmem:[%s4444_s28 + $0x80] sm:$0xf]  ;;  %v3406_v6 = vor.u32 %v3768_v56, %v3405_v55 }
 0x247   : > { %2083 = vmatpush.bf16.msrb.mxu3 %v3514_v21  ;;  %1996 = vmatpush.bf16.msrb.mxu0 %v3446_v2  ;;  %v3410_v21 = vor.u32 %v3767_v25, %v3407_v26  ;;  %v3474_v61 = vor.u32 %v3783_v63, %v3471_v54  ;;  %v3784_v1 = vld [vmem:[%s4444_s28 + $0x84] sm:$0xf0]  ;;  %v3261_v2 = vld [vmem:[#allocation3 + $0x20] sm:$0xf]  ;;  %v3269_v32 = vld [vmem:[#allocation3 + $0x30] sm:$0xf] }
 0x248   : > { %2025 = vmatpush.bf16.msrb.mxu1 %v3510_v4  ;;  %v3732_v3 = vld [vmem:[#allocation3 + $0x24] sm:$0xf0]  ;;  %v3731_v4 = vld [vmem:[#allocation3 + $0x24] sm:$0xf]  ;;  %v3470_v9 = vor.u32 %v3784_v1, %v3469_v62  ;;  %v3734_v34 = vld [vmem:[#allocation3 + $0x34] sm:$0xf0] }
 0x249   : > { %v3262_v12 = vor.u32 %v3732_v3, %v3261_v2  ;;  %v3733_v14 = vld [vmem:[#allocation3 + $0x34] sm:$0xf]  ;;  %v3271_v15 = vld [vmem:[#allocation3 + $0x38] sm:$0xf0]  ;;  %v3270_v16 = vor.u32 %v3734_v34, %v3269_v32  ;;  %v3811_v40 = vld [vmem:[%s4438_s25 + $0x64] sm:$0xf] }
 0x24a   : > { %2055 = vmatpush.bf16.msrb.mxu2 %v3442_v5  ;;  %v3263_v5 = vld [vmem:[#allocation3 + $0x28] sm:$0xf0]  ;;  %v3274_v17 = vor.u32 %v3733_v14, %v3271_v15  ;;  %v3829_v29 = vld [vmem:[%s4438_s25 + $0xf4] sm:$0xf]  ;;  %v3671_v38 = vld [vmem:[%s4438_s25 + $0xf8] sm:$0xf0] }
 0x24b   : > { %2084 = vmatpush.bf16.msrb.mxu3 %v3506_v13  ;;  %1997 = vmatpush.bf16.msrb.mxu0 %v3438_v58  ;;  %v3266_v13 = vor.u32 %v3731_v4, %v3263_v5  ;;  %v3599_v41 = vld [vmem:[%s4438_s25 + $0x68] sm:$0xf0]  ;;  %v3669_v47 = vld [vmem:[%s4438_s25 + $0xf0] sm:$0xf]  ;;  %v3597_v50 = vld [vmem:[%s4438_s25 + $0x60] sm:$0xf] }
 0x24c   : > { %2026 = vmatpush.bf16.msrb.mxu1 %v3502_v59  ;;  %1699 = vmatmul.bf16.gmra.mxu0 %v4905_v44  ;;  %v3812_v51 = vld [vmem:[%s4438_s25 + $0x64] sm:$0xf0]  ;;  %v3602_v52 = vor.u32 %v3811_v40, %v3599_v41  ;;  %v3827_v53 = vld [vmem:[%s4438_s25 + $0xe4] sm:$0xf]  ;;  %v3663_v25 = vld [vmem:[%s4438_s25 + $0xe8] sm:$0xf0] }
 0x24d   : > { %1728 = vmatmul.bf16.gmra.mxu1 %v4910_v30  ;;  %1757 = vmatmul.bf16.gmra.mxu2 %v4905_v44  ;;  %v3598_v26 = vor.u32 %v3812_v51, %v3597_v50  ;;  %v3666_v63 = vor.u32 %v3827_v53, %v3663_v25  ;;  %v3661_v56 = vld [vmem:[%s4438_s25 + $0xe0] sm:$0xf]  ;;  %v3591_v14 = vld [vmem:[%s4438_s25 + $0x58] sm:$0xf0]  ;;  %v3825_v15 = vld [vmem:[%s4438_s25 + $0xd4] sm:$0xf] }
 0x24e   : > { %2056 = vmatpush.bf16.msrb.mxu2 %v3434_v22  ;;  %1786 = vmatmul.bf16.gmra.mxu3 %v4910_v30  ;;  %v3807_v40 = vld [vmem:[%s4438_s25 + $0x44] sm:$0xf]  ;;  %v3583_v41 = vld [vmem:[%s4438_s25 + $0x48] sm:$0xf0]  ;;  %v3581_v53 = vld [vmem:[%s4438_s25 + $0x40] sm:$0xf] }
 0x24f   : > { %2085 = vmatpush.bf16.msrb.mxu3 %v3498_v45  ;;  %1998 = vmatpush.bf16.msrb.mxu0 %v3430_v35  ;;  %v3607_v45 = vld [vmem:[%s4438_s25 + $0x78] sm:$0xf0]  ;;  %v3605_v35 = vld [vmem:[%s4438_s25 + $0x70] sm:$0xf]  ;;  %v3586_v51 = vor.u32 %v3807_v40, %v3583_v41  ;;  %v3808_v25 = vld [vmem:[%s4438_s25 + $0x44] sm:$0xf0] }
 0x250   : > { %2027 = vmatpush.bf16.msrb.mxu1 %v3494_v36  ;;  %v3814_v36 = vld [vmem:[%s4438_s25 + $0x74] sm:$0xf0]  ;;  %p3675_p7 = scmp.ne.s32.totalorder %s4100_s29, 1 }
 0x251   : > { %v3606_v46 = vor.u32 %v3814_v36, %v3605_v35 }
 0x252   : > { %2057 = vmatpush.bf16.msrb.mxu2 %v3426_v39 }
 0x253   : > { %2086 = vmatpush.bf16.msrb.mxu3 %v3490_v57  ;;  %1999 = vmatpush.bf16.msrb.mxu0 %v3422_v42 }
 0x254   : > { %2028 = vmatpush.bf16.msrb.mxu1 %v3486_v48  ;;  %v3830_v48 = vld [vmem:[%s4438_s25 + $0xf4] sm:$0xf0] }
 0x256   : > { %2058 = vmatpush.bf16.msrb.mxu2 %v3418_v49 }
 0x257   : > { %2087 = vmatpush.bf16.msrb.mxu3 %v3482_v11  ;;  %2000 = vmatpush.bf16.msrb.mxu0 %v3414_v0  ;;  %v3670_v11 = vor.u32 %v3830_v48, %v3669_v47  ;;  %v3823_v48 = vld [vmem:[%s4438_s25 + $0xc4] sm:$0xf] }
 0x258   : > { %2029 = vmatpush.bf16.msrb.mxu1 %v3478_v20 }
 0x25a   : > { %2059 = vmatpush.bf16.msrb.mxu2 %v3410_v21 }
 0x25b   : > { %2088 = vmatpush.bf16.msrb.mxu3 %v3474_v61  ;;  %2001 = vmatpush.bf16.msrb.mxu0 %v3406_v6  ;;  %v3828_v61 = vld [vmem:[%s4438_s25 + $0xe4] sm:$0xf0] }
 0x25c   : > { %2030 = vmatpush.bf16.msrb.mxu1 %v3470_v9  ;;  %1704 = vmatmul.bf16.gmra.mxu0 %v3262_v12  ;;  %v3662_v3 = vor.u32 %v3828_v61, %v3661_v56  ;;  %v3645_v56 = vld [vmem:[%s4438_s25 + $0xc0] sm:$0xf]  ;;  %v3805_v61 = vld [vmem:[%s4438_s25 + $0x34] sm:$0xf] }
 0x25d   : > { %1733 = vmatmul.bf16.gmra.mxu1 %v3266_v13  ;;  %1762 = vmatmul.bf16.gmra.mxu2 %v3262_v12 }
 0x25e   : > { %1791 = vmatmul.bf16.gmra.mxu3 %v3266_v13 }
 0x25f   : > { %2662 = vmatpush.bf16.msra.mxu0 %v3606_v46 }
 0x260   : > { %2691 = vmatpush.bf16.msra.mxu1 %v3670_v11 }
 0x263   : > { %2663 = vmatpush.bf16.msra.mxu0 %v3598_v26 }
 0x264   : > { %2692 = vmatpush.bf16.msra.mxu1 %v3662_v3 }
 0x26c   : > { %1709 = vmatmul.bf16.gmra.mxu0 %v3270_v16 }
 0x26d   : > { %1738 = vmatmul.bf16.gmra.mxu1 %v3274_v17  ;;  %1767 = vmatmul.bf16.gmra.mxu2 %v3270_v16 }
 0x26e   : > { %1796 = vmatmul.bf16.gmra.mxu3 %v3274_v17 }
 0x27c   : > { %2002 = vmatmul.bf16.vlgmr.msrb.gmra.mxu0 %v4865_v37 }
 0x27d   : > { %2031 = vmatmul.bf16.vlgmr.msrb.gmra.mxu1 %v4870_v60  ;;  %2060 = vmatmul.bf16.vlgmr.msrb.gmra.mxu2 %v4865_v37 }
 0x27e   : > { %2089 = vmatmul.bf16.vlgmr.msrb.gmra.mxu3 %v4870_v60 }
 0x28c   : > { %2007 = vmatmul.bf16.gmra.mxu0 %v4905_v44 }
 0x28d   : > { %2036 = vmatmul.bf16.gmra.mxu1 %v4910_v30  ;;  %2065 = vmatmul.bf16.gmra.mxu2 %v4905_v44  ;;  %v3813_v44 = vld [vmem:[%s4438_s25 + $0x74] sm:$0xf] }
 0x28e   : > { %2094 = vmatmul.bf16.gmra.mxu3 %v4910_v30  ;;  %v3610_v28 = vor.u32 %v3813_v44, %v3607_v45  ;;  %v3674_v30 = vor.u32 %v3829_v29, %v3671_v38  ;;  %v3653_v44 = vld [vmem:[%s4438_s25 + $0xd0] sm:$0xf]  ;;  %v3826_v45 = vld [vmem:[%s4438_s25 + $0xd4] sm:$0xf0] }
 0x28f   : > { %v3654_v36 = vor.u32 %v3826_v45, %v3653_v44 }
 0x290   : > { %2720 = vmatpush.bf16.msra.mxu2 %v3610_v28  ;;  %2749 = vmatpush.bf16.msra.mxu3 %v3674_v30 }
 0x291   : > { %2693 = vmatpush.bf16.msra.mxu1 %v3654_v36 }
 0x294   : > { %2721 = vmatpush.bf16.msra.mxu2 %v3602_v52  ;;  %2750 = vmatpush.bf16.msra.mxu3 %v3666_v63 }
 0x29c   : > { %2012 = vmatmul.bf16.gmra.mxu0 %v3262_v12 }
 0x29d   : > { %2041 = vmatmul.bf16.gmra.mxu1 %v3266_v13  ;;  %2070 = vmatmul.bf16.gmra.mxu2 %v3262_v12 }
 0x29e   : > { %2099 = vmatmul.bf16.gmra.mxu3 %v3266_v13  ;;  %v3809_v13 = vld [vmem:[%s4438_s25 + $0x54] sm:$0xf] }
 0x2ac   : > { %2017 = vmatmul.bf16.gmra.mxu0 %v3270_v16 }
 0x2ad   : > { %2046 = vmatmul.bf16.gmra.mxu1 %v3274_v17  ;;  %2075 = vmatmul.bf16.gmra.mxu2 %v3270_v16  ;;  %v3655_v16 = vld [vmem:[%s4438_s25 + $0xd8] sm:$0xf0] }
 0x2ae   : > { %2104 = vmatmul.bf16.gmra.mxu3 %v3274_v17 }
 0x2b9   : > { %v1695_v37 = vpop.f32.mrf.mxu0 }
 0x2ba   : > { %v1724_v60 = vpop.f32.mrf.mxu1 }
 0x2bb   : > { %v4954_v31 = vadd.f32 %v1724_v60, %v1695_v37 }
 0x2bd   : > { %v3531_v42 = vmul.f32 -1.442695, %v4954_v31 }
 0x2bf   : > { %3942 = vpow2.f32 %v3531_v42 }
 0x2c0   : > { %v1753_v18 = vpop.f32.mrf.mxu2 }
 0x2c1   : > { %v1782_v19 = vpop.f32.mrf.mxu3  ;;  %v1697_v58 = vpop.f32.mrf.mxu0 }
 0x2c2   : > { %v1726_v59 = vpop.f32.mrf.mxu1  ;;  %v4956_v33 = vadd.f32 %v1782_v19, %v1753_v18  ;;  %v3594_v18 = vor.u32 %v3809_v13, %v3591_v14  ;;  %v3658_v19 = vor.u32 %v3825_v15, %v3655_v16  ;;  %v3824_v13 = vld [vmem:[%s4438_s25 + $0xc4] sm:$0xf0]  ;;  %v3821_v14 = vld [vmem:[%s4438_s25 + $0xb4] sm:$0xf]  ;;  %v3639_v15 = vld [vmem:[%s4438_s25 + $0xb8] sm:$0xf0] }
 0x2c3   : > { %v4960_v39 = vadd.f32 %v1726_v59, %v1697_v58  ;;  %v3589_v58 = vld [vmem:[%s4438_s25 + $0x50] sm:$0xf] }
 0x2c4   : > { %v3532_v49 = vmul.f32 -1.442695, %v4956_v33  ;;  %2722 = vmatpush.bf16.msra.mxu2 %v3594_v18  ;;  %2751 = vmatpush.bf16.msra.mxu3 %v3658_v19 }
 0x2c5   : > { %v3533_v10 = vmul.f32 -1.442695, %v4960_v39  ;;  %v3943_v62 = vpop.eup %3942 }
 0x2c6   : > { %3944 = vpow2.f32 %v3532_v49  ;;  %v4982_v5 = vadd.f32 1.0, %v3943_v62  ;;  %v3647_v49 = vld [vmem:[%s4438_s25 + $0xc8] sm:$0xf0]  ;;  %v3575_v62 = vld [vmem:[%s4438_s25 + $0x38] sm:$0xf0] }
 0x2c7   : > { %3946 = vpow2.f32 %v3533_v10  ;;  %v3650_v52 = vor.u32 %v3823_v48, %v3647_v49  ;;  %v3578_v36 = vor.u32 %v3805_v61, %v3575_v62 }
 0x2c8   : > { %v1755_v22 = vpop.f32.mrf.mxu2  ;;  %2723 = vmatpush.bf16.msra.mxu2 %v3586_v51  ;;  %v2185_v63 = vand.u32 2147483648, %v4982_v5  ;;  %v2183_v19 = vand.u32 2147483647, %v4982_v5  ;;  %vm2179_vm9 = vweird.f32 %v4982_v5 }
 0x2c9   : > { %v1784_v23 = vpop.f32.mrf.mxu3  ;;  %v4946_v24 = vpop.f32.mrf.mxu0  ;;  %2752 = vmatpush.bf16.msra.mxu3 %v3650_v52 }
 0x2ca   : > { %v4948_v27 = vpop.f32.mrf.mxu1  ;;  %v4973_v54 = vadd.f32 %v1784_v23, %v1755_v22  ;;  %v3810_v23 = vld [vmem:[%s4438_s25 + $0x54] sm:$0xf0]  ;;  %v2186_v40 = vor.u32 1.1754944e-38, %v2185_v63  ;;  %vm5079_vm11 = vcmp.eq.f32.partialorder %v2183_v19, 8.507059e+37 }
 0x2cb   : > { %v5003_v37 = vadd.f32 %v4948_v27, %v4946_v24  ;;  %v3590_v35 = vor.u32 %v3810_v23, %v3589_v58 }
 0x2cc   : > { %v3534_v1 = vmul.f32 -1.442695, %v4973_v54  ;;  %v3945_v2 = vpop.eup %3944  ;;  %2724 = vmatpush.bf16.msra.mxu2 %v3578_v36 }
 0x2cd   : > { %v3947_v4 = vpop.eup %3946  ;;  %v4986_v9 = vadd.f32 1.0, %v3945_v2  ;;  %v3535_v24 = vmul.f32 -1.442695, %v5003_v37  ;;  %2664 = vmatpush.bf16.msra.mxu0 %v3590_v35  ;;  %v3646_v35 = vor.u32 %v3824_v13, %v3645_v56 }
 0x2ce   : > { %3948 = vpow2.f32 %v3534_v1  ;;  %v4988_v12 = vadd.f32 1.0, %v3947_v4  ;;  %v3582_v4 = vor.u32 %v3808_v25, %v3581_v53 }
 0x2cf   : > { %3950 = vrcp.f32 %v4982_v5  ;;  %v2198_v44 = vand.u32 2147483647, %v4986_v9  ;;  %v2200_v45 = vand.u32 2147483648, %v4986_v9  ;;  %2694 = vmatpush.bf16.msra.mxu1 %v3646_v35  ;;  %vm2194_vm0 = vweird.f32 %v4986_v9 }
 0x2d0   : > { %v1758_v7 = vpop.f32.mrf.mxu2  ;;  %3952 = vrcp.f32 %v4986_v9  ;;  %v2215_v53 = vand.u32 2147483648, %v4988_v12  ;;  %vm2209_vm1 = vweird.f32 %v4988_v12 }
 0x2d1   : > { %v1787_v8 = vpop.f32.mrf.mxu3  ;;  %v1702_v57 = vpop.f32.mrf.mxu0  ;;  %3954 = vrcp.f32 %v4988_v12  ;;  %2665 = vmatpush.bf16.msra.mxu0 %v3582_v4  ;;  %v2201_v52 = vor.u32 1.1754944e-38, %v2200_v45  ;;  %vm5098_vm13 = vcmp.eq.f32.partialorder %v2198_v44, 8.507059e+37 }
 0x2d2   : > { %v1731_v43 = vpop.f32.mrf.mxu1  ;;  %v5005_v60 = vadd.f32 %v1787_v8, %v1758_v7  ;;  %3956 = vpow2.f32 %v3535_v24 }
 0x2d3   : > { %v5010_v22 = vadd.f32 %v1731_v43, %v1702_v57 }
 0x2d4   : > { %v3949_v59 = vpop.eup %3948  ;;  %v3536_v27 = vmul.f32 -1.442695, %v5005_v60 }
 0x2d5   : > { %v5019_v29 = vpop.eup %3950  ;;  %v5021_v38 = vadd.f32 1.0, %v3949_v59  ;;  %v3537_v57 = vmul.f32 -1.442695, %v5010_v22 }
 0x2d6   : > { %v5034_v43 = vpop.eup %3952  ;;  %v2175_v47 = vmul.f32 %v5019_v29, %v4982_v5  ;;  %3958 = vpow2.f32 %v3536_v27  ;;  %vm2180_vm10 = vweird.f32 %v5019_v29 }
 0x2d7   : > { %v5036_v46 = vpop.eup %3954  ;;  %3960 = vrcp.f32 %v5021_v38  ;;  %v2190_v10 = vmul.f32 %v5034_v43, %v4986_v9  ;;  %vm2195_vm12 = vweird.f32 %v5034_v43  ;;  %v2228_v13 = vand.u32 2147483647, %v5021_v38  ;;  %vm5130_vm15 = vmor %vm2179_vm9, %vm2180_vm10  ;;  %v3631_v9 = vld [vmem:[%s4438_s25 + $0xa8] sm:$0xf0] }
 0x2d8   : > { %v1760_v0 = vpop.f32.mrf.mxu2  ;;  %3962 = vpow2.f32 %v3537_v57  ;;  %v2205_v11 = vmul.f32 %v5036_v46, %v4988_v12  ;;  %v2176_v26 = vsub.f32 1.0, %v2175_v47  ;;  %v3642_v57 = vor.u32 %v3821_v14, %v3639_v15  ;;  %v3573_v14 = vld [vmem:[%s4438_s25 + $0x30] sm:$0xf]  ;;  %v3806_v15 = vld [vmem:[%s4438_s25 + $0x34] sm:$0xf0]  ;;  %vm5148_vm2 = vmor %vm2194_vm0, %vm2195_vm12 }
 0x2d9   : > { %v1789_v20 = vpop.f32.mrf.mxu3  ;;  %v4975_v21 = vpop.f32.mrf.mxu0  ;;  %v2191_v58 = vsub.f32 1.0, %v2190_v10  ;;  %v2213_v10 = vand.u32 2147483647, %v4988_v12  ;;  %vm2210_vm14 = vweird.f32 %v5036_v46  ;;  %v2216_v12 = vor.u32 1.1754944e-38, %v2215_v53 }
 0x2da   : > { %v4977_v55 = vpop.f32.mrf.mxu1  ;;  %v5023_v30 = vadd.f32 %v1789_v20, %v1760_v0  ;;  %v3957_v20 = vpop.eup %3956  ;;  %v2206_v59 = vsub.f32 1.0, %v2205_v11  ;;  %v2177_v27 = vmul.f32 %v5019_v29, %v2176_v26  ;;  %2753 = vmatpush.bf16.msra.mxu3 %v3642_v57  ;;  %vm5161_vm4 = vmor %vm2209_vm1, %vm2210_vm14  ;;  %v2230_v57 = vand.u32 2147483648, %v5021_v38 }
 0x2db   : > { %v5071_v24 = vadd.f32 1.0, %v3957_v20  ;;  %v5092_v25 = vadd.f32 %v4977_v55, %v4975_v21  ;;  %vm5152_vm3 = vcmp.eq.f32.partialorder %v2213_v10, 8.507059e+37  ;;  %vm5179_vm5 = vcmp.eq.f32.partialorder %v2228_v13, 8.507059e+37 }
 0x2dc   : > { %v3538_v50 = vmul.f32 -1.442695, %v5023_v30  ;;  %v3959_v3 = vpop.eup %3958  ;;  %v2207_v51 = vmul.f32 %v5036_v46, %v2206_v59  ;;  %v2178_v63 = vadd.f32 %v5019_v29, %v2177_v27  ;;  %v3822_v59 = vld [vmem:[%s4438_s25 + $0xb4] sm:$0xf0]  ;;  %v3574_v27 = vor.u32 %v3806_v15, %v3573_v14 }
 0x2dd   : > { %v5065_v18 = vpop.eup %3960  ;;  %v5077_v47 = vadd.f32 1.0, %v3959_v3  ;;  %v2231_v14 = vor.u32 1.1754944e-38, %v2230_v57  ;;  %v2243_v15 = vand.u32 2147483647, %v5071_v24  ;;  %vm2224_vm7 = vweird.f32 %v5021_v38 }
 0x2de   : > { %3964 = vpow2.f32 %v3538_v50  ;;  %v3963_v23 = vpop.eup %3962  ;;  %v2220_v41 = vmul.f32 %v5065_v18, %v5021_v38  ;;  %v2192_v50 = vmul.f32 %v5034_v43, %v2191_v58  ;;  %v3637_v58 = vld [vmem:[%s4438_s25 + $0xb0] sm:$0xf]  ;;  %v2182_v5 = vsel %vm5130_vm15, %v5019_v29, %v2178_v63  ;;  %2666 = vmatpush.bf16.msra.mxu0 %v3574_v27 }
 0x2df   : > { %v5086_v11 = vadd.f32 1.0, %v3963_v23  ;;  %3966 = vrcp.f32 %v5071_v24  ;;  %vm2225_vm6 = vweird.f32 %v5065_v18  ;;  %v2260_v20 = vand.u32 2147483648, %v5077_v47  ;;  %v3819_v23 = vld [vmem:[%s4438_s25 + $0xa4] sm:$0xf] }
 0x2e0   : > { %v4984_v6 = vpop.f32.mrf.mxu2  ;;  %v2221_v61 = vsub.f32 1.0, %v2220_v41  ;;  %3968 = vrcp.f32 %v5077_v47  ;;  %v3638_v41 = vor.u32 %v3822_v59, %v3637_v58  ;;  %vm5227_vm8 = vmor %vm2224_vm7, %vm2225_vm6  ;;  %vm2239_vm9 = vweird.f32 %v5071_v24 }
 0x2e1   : > { %v4991_v32 = vpop.f32.mrf.mxu3  ;;  %v4993_v34 = vpop.f32.mrf.mxu0  ;;  %3970 = vrcp.f32 %v5086_v11  ;;  %v2275_v27 = vand.u32 2147483648, %v5086_v11  ;;  %vm2254_vm12 = vweird.f32 %v5077_v47  ;;  %vm5310_vm14 = vcmp.eq.f32.partialorder %v2243_v15, 8.507059e+37 }
 0x2e2   : > { %v4998_v17 = vpop.f32.mrf.mxu1  ;;  %v5116_v3 = vadd.f32 %v4991_v32, %v4984_v6  ;;  %v3539_v6 = vmul.f32 -1.442695, %v5092_v25  ;;  %v2222_v29 = vmul.f32 %v5065_v18, %v2221_v61  ;;  %2695 = vmatpush.bf16.msra.mxu1 %v3638_v41 }
 0x2e3   : > { %v5105_v56 = vadd.f32 %v4998_v17, %v4993_v34  ;;  %v2193_v34 = vadd.f32 %v5034_v43, %v2192_v50  ;;  %v2208_v17 = vadd.f32 %v5036_v46, %v2207_v51  ;;  %v2187_v50 = vsel %vm5079_vm11, %v2186_v40, %v2182_v5  ;;  %v3567_v5 = vld [vmem:[%s4438_s25 + $0x28] sm:$0xf0] }
 0x2e4   : > { %v3965_v48 = vpop.eup %3964  ;;  %5738 = vst [vmem:[#allocation18_spill] sm:$0xff] %v5116_v3  ;;  %v3540_v45 = vmul.f32 -1.442695, %v5116_v3  ;;  %v2245_v40 = vand.u32 2147483648, %v5071_v24  ;;  %v5211_v58 = vmul.f32 %v2187_v50, %v4954_v31  ;;  %v3634_v50 = vor.u32 %v3819_v23, %v3631_v9  ;;  %v3615_v3 = vld [vmem:[%s4438_s25 + $0x88] sm:$0xf0] }
 0x2e5   : > { %v5112_v62 = vadd.f32 1.0, %v3965_v48  ;;  %v2197_v35 = vsel %vm5148_vm2, %v5034_v43, %v2193_v34  ;;  %v2212_v36 = vsel %vm5161_vm4, %v5036_v46, %v2208_v17  ;;  %v2223_v17 = vadd.f32 %v5065_v18, %v2222_v29 }
 0x2e6   : > { %v2202_v61 = vsel %vm5098_vm13, %v2201_v52, %v2197_v35  ;;  %v2217_v34 = vsel %vm5152_vm3, %v2216_v12, %v2212_v36  ;;  %v5231_v44 = vor.u32 1.1754944e-38, %v2245_v40  ;;  %v5247_v40 = vor.u32 1.1754944e-38, %v2260_v20  ;;  %2754 = vmatpush.bf16.msra.mxu3 %v3634_v50  ;;  %v3559_v50 = vld [vmem:[%s4438_s25 + $0x18] sm:$0xf0] }
 0x2e7   : > { %3972 = vrcp.f32 %v5112_v62  ;;  %v5220_v12 = vmul.f32 %v2202_v61, %v4956_v33  ;;  %v2227_v33 = vsel %vm5227_vm8, %v5065_v18, %v2223_v17  ;;  %v3804_v18 = vld [vmem:[%s4438_s25 + $0x24] sm:$0xf0]  ;;  %v3629_v17 = vld [vmem:[%s4438_s25 + $0xa0] sm:$0xf]  ;;  %vm2269_vm13 = vweird.f32 %v5086_v11 }
 0x2e8   : > { %v5017_v28 = vpop.f32.mrf.mxu2  ;;  %3974 = vpow2.f32 %v3539_v6  ;;  %v3803_v6 = vld [vmem:[%s4438_s25 + $0x24] sm:$0xf]  ;;  %vm2284_vm6 = vweird.f32 %v5112_v62 }
 0x2e9   : > { %v5025_v7 = vpop.f32.mrf.mxu3  ;;  %v5027_v8 = vpop.f32.mrf.mxu0  ;;  %v3570_v41 = vor.u32 %v3803_v6, %v3567_v5  ;;  %v2232_v6 = vsel %vm5179_vm5, %v2231_v14, %v2227_v33 }
 0x2ea   : > { %v5032_v42 = vpop.f32.mrf.mxu1  ;;  %v5139_v32 = vadd.f32 %v5025_v7, %v5017_v28  ;;  %v3541_v28 = vmul.f32 -1.442695, %v5105_v56  ;;  %v5157_v7 = vpop.eup %3966 }
 0x2eb   : > { %v5175_v48 = vpop.eup %3968  ;;  %v2235_v46 = vmul.f32 %v5157_v7, %v5071_v24  ;;  %vm2240_vm10 = vweird.f32 %v5157_v7  ;;  %2725 = vmatpush.bf16.msra.mxu2 %v3570_v41 }
 0x2ec   : > { %5741 = vst [vmem:[#allocation19_spill] sm:$0xff] %v5139_v32  ;;  %v3542_v10 = vmul.f32 -1.442695, %v5139_v32  ;;  %v5186_v53 = vpop.eup %3970  ;;  %3976 = vpow2.f32 %v3541_v28  ;;  %v2250_v19 = vmul.f32 %v5175_v48, %v5077_v47  ;;  %v5223_v28 = vmul.f32 %v2217_v34, %v4960_v39  ;;  %v3818_v39 = vld [vmem:[%s4438_s25 + $0x94] sm:$0xf0]  ;;  %vm5354_vm0 = vmor %vm2239_vm9, %vm2240_vm10 }
 0x2ed   : > { %3978 = vpow2.f32 %v3540_v45  ;;  %v5208_v52 = vpop.eup %3972  ;;  %v2265_v59 = vmul.f32 %v5186_v53, %v5086_v11  ;;  %v2236_v38 = vsub.f32 1.0, %v2235_v46  ;;  %v5251_v34 = vadd.f32 %v5032_v42, %v5027_v8  ;;  %v3551_v45 = vld [vmem:[%s4438_s25 + $0x8] sm:$0xf0] }
 0x2ee   : > { %3980 = vpow2.f32 %v3542_v10  ;;  %v3975_v29 = vpop.eup %3974  ;;  %v2251_v36 = vsub.f32 1.0, %v2250_v19  ;;  %v5242_v57 = vmul.f32 %v5208_v52, %v5112_v62  ;;  %v3565_v10 = vld [vmem:[%s4438_s25 + $0x20] sm:$0xf]  ;;  %v3820_v19 = vld [vmem:[%s4438_s25 + $0xa4] sm:$0xf0]  ;;  %vm2255_vm11 = vweird.f32 %v5175_v48 }
 0x2ef   : > { %v2266_v61 = vsub.f32 1.0, %v2265_v59  ;;  %5752 = vst [vmem:[#allocation20_spill] sm:$0xff] %v5251_v34  ;;  %v2237_v5 = vmul.f32 %v5157_v7, %v2236_v38  ;;  %v5261_v23 = vadd.f32 1.0, %v3975_v29  ;;  %v5268_v59 = vor.u32 1.1754944e-38, %v2275_v27  ;;  %vm5369_vm1 = vmor %vm2254_vm12, %vm2255_vm11 }
 0x2f0   : > { %v5051_v0 = vpop.f32.mrf.mxu2  ;;  %v3566_v9 = vor.u32 %v3804_v18, %v3565_v10  ;;  %v2252_v29 = vmul.f32 %v5175_v48, %v2251_v36  ;;  %v2281_v33 = vsub.f32 1.0, %v5242_v57  ;;  %v3630_v27 = vor.u32 %v3820_v19, %v3629_v17  ;;  %v3817_v57 = vld [vmem:[%s4438_s25 + $0x94] sm:$0xf]  ;;  %v3623_v18 = vld [vmem:[%s4438_s25 + $0x98] sm:$0xf0] }
 0x2f1   : > { %v5056_v1 = vpop.f32.mrf.mxu3  ;;  %v5058_v2 = vpop.f32.mrf.mxu0  ;;  %v3543_v10 = vmul.f32 -1.442695, %v5251_v34  ;;  %3982 = vrcp.f32 %v5261_v23  ;;  %vm2270_vm15 = vweird.f32 %v5186_v53  ;;  %vm2285_vm3 = vweird.f32 %v5208_v52 }
 0x2f2   : > { %v5063_v16 = vpop.f32.mrf.mxu1  ;;  %v3977_v35 = vpop.eup %3976  ;;  %2667 = vmatpush.bf16.msra.mxu0 %v3566_v9  ;;  %2696 = vmatpush.bf16.msra.mxu1 %v3630_v27  ;;  %v5327_v15 = vadd.f32 %v5175_v48, %v2252_v29  ;;  %v3626_v9 = vor.u32 %v3817_v57, %v3623_v18  ;;  %v3621_v27 = vld [vmem:[%s4438_s25 + $0x90] sm:$0xf]  ;;  %vm5392_vm2 = vmor %vm2269_vm13, %vm2270_vm15  ;;  %vm2299_vm9 = vweird.f32 %v5261_v23 }
 0x2f3   : > { %v3979_v46 = vpop.eup %3978  ;;  %v5270_v51 = vadd.f32 1.0, %v3977_v35  ;;  %v5274_v14 = vadd.f32 %v5063_v16, %v5058_v2  ;;  %v3801_v35 = vld [vmem:[%s4438_s25 + $0x14] sm:$0xf]  ;;  %v5286_v2 = vmul.f32 %v2232_v6, %v4973_v54  ;;  %v2267_v16 = vmul.f32 %v5186_v53, %v2266_v61  ;;  %v5323_v6 = vld [vmem:[%s4438_s25 + $0x4] sm:$0xf0]  ;;  %vm5426_vm7 = vmor %vm2284_vm6, %vm2285_vm3 }
 0x2f4   : > { %v3981_v42 = vpop.eup %3980  ;;  %v5281_v41 = vadd.f32 1.0, %v3979_v46  ;;  %v5297_v46 = vadd.f32 %v5157_v7, %v2237_v5  ;;  %v5304_v61 = vadd.f32 %v5056_v1, %v5051_v0  ;;  %v5320_v1 = vld [vmem:[%s4438_s25] sm:$0xf]  ;;  %v3799_v5 = vld [vmem:[%s4438_s25 + $0x4] sm:$0xf]  ;;  %2755 = vmatpush.bf16.msra.mxu3 %v3626_v9 }
 0x2f5   : > { %5753 = vst [vmem:[#allocation21_spill] sm:$0xff] %v5274_v14  ;;  %v5300_v54 = vadd.f32 1.0, %v3981_v42  ;;  %3984 = vrcp.f32 %v5270_v51  ;;  %v3545_v19 = vmul.f32 -1.442695, %v5274_v14  ;;  %v3562_v42 = vor.u32 %v3801_v35, %v3559_v50  ;;  %v3815_v14 = vld [vmem:[%s4438_s25 + $0x84] sm:$0xf] }
 0x2f6   : > { %3986 = vrcp.f32 %v5281_v41  ;;  %v5334_v34 = vadd.f32 %v5186_v53, %v2267_v16  ;;  %v3544_v29 = vmul.f32 -1.442695, %v5304_v61  ;;  %vm2329_vm13 = vweird.f32 %v5270_v51 }
 0x2f7   : > { %3988 = vpow2.f32 %v3543_v10  ;;  %2726 = vmatpush.bf16.msra.mxu2 %v3562_v42  ;;  %v2242_v42 = vsel %vm5354_vm0, %v5157_v7, %v5297_v46  ;;  %vm2314_vm15 = vweird.f32 %v5281_v41 }
 0x2f8   : > { %v5094_v26 = vpop.f32.mrf.mxu2  ;;  %3990 = vrcp.f32 %v5300_v54  ;;  %v2272_v7 = vsel %vm5392_vm2, %v5186_v53, %v5334_v34  ;;  %v2247_v53 = vsel %vm5310_vm14, %v5231_v44, %v2242_v42  ;;  %v2288_v34 = vand.u32 2147483647, %v5112_v62 }
 0x2f9   : > { %v5107_v21 = vpop.f32.mrf.mxu3  ;;  %v5109_v55 = vpop.f32.mrf.mxu0  ;;  %3992 = vpow2.f32 %v3545_v19  ;;  %v3816_v19 = vld [vmem:[%s4438_s25 + $0x84] sm:$0xf0] }
 0x2fa   : > { %v5118_v4 = vpop.f32.mrf.mxu1  ;;  %v5292_v36 = vadd.f32 %v5107_v21, %v5094_v26  ;;  %v3557_v26 = vld [vmem:[%s4438_s25 + $0x10] sm:$0xf]  ;;  %v3802_v21 = vld [vmem:[%s4438_s25 + $0x14] sm:$0xf0]  ;;  %vm2289_vm8 = vcmp.eq.f32.partialorder %v2288_v34, 8.507059e+37 }
 0x2fb   : > { %v2033_v0 = vadd.f32 %v5118_v4, %v5109_v55  ;;  %v2282_v55 = vmul.f32 %v5208_v52, %v2281_v33  ;;  %v3558_v50 = vor.u32 %v3802_v21, %v3557_v26  ;;  %v5363_v26 = vpop.eup %3982 }
 0x2fc   : > { %v3546_v4 = vmul.f32 -1.442695, %v5292_v36  ;;  %vm2300_vm10 = vweird.f32 %v5363_v26 }
 0x2fd   : > { %v2430_v57 = vmul.f32 %v5211_v58, %v2033_v0  ;;  %2668 = vmatpush.bf16.msra.mxu0 %v3558_v50  ;;  %v3550_v58 = vor.u32 %v5323_v6, %v5320_v1  ;;  %v5378_v0 = vpop.eup %3984  ;;  %v2283_v1 = vadd.f32 %v5208_v52, %v2282_v55  ;;  %v2418_v50 = vmul.f32 %v2247_v53, %v5003_v37  ;;  %vm5506_vm2 = vmor %vm2299_vm9, %vm2300_vm10 }
 0x2fe   : > { %3994 = vpow2.f32 %v3546_v4  ;;  %v2325_v9 = vmul.f32 %v5378_v0, %v5270_v51  ;;  %vm2330_vm12 = vweird.f32 %v5378_v0  ;;  %v2335_v53 = vand.u32 2147483648, %v5270_v51 }
 0x2ff   : > { %3996 = vpow2.f32 %v3544_v29  ;;  %vm5494_vm0 = vmor %vm2329_vm13, %vm2330_vm12 }
 0x300   : > { %v5184_v43 = vpop.f32.mrf.mxu2 }
 0x301   : > { %v5192_v49 = vpop.f32.mrf.mxu3  ;;  %v5194_v63 = vpop.f32.mrf.mxu0  ;;  %2669 = vmatpush.bf16.msra.mxu0 %v3550_v58 }
 0x302   : > { %v5201_v13 = vpop.f32.mrf.mxu1 }
 0x303   : > { %v2035_v35 = vadd.f32 %v5201_v13, %v5194_v63  ;;  %v2091_v63 = vadd.f32 %v5192_v49, %v5184_v43  ;;  %v3622_v13 = vor.u32 %v3818_v39, %v3621_v27  ;;  %v3554_v43 = vor.u32 %v3799_v5, %v3551_v45  ;;  %v3613_v39 = vld [vmem:[%s4438_s25 + $0x80] sm:$0xf] }
 0x304   : > { %v3618_v49 = vor.u32 %v3815_v14, %v3615_v3  ;;  %v5398_v14 = vpop.eup %3986 }
 0x305   : > { %v2432_v21 = vmul.f32 %v5223_v28, %v2035_v35  ;;  %v2257_v28 = vsel %vm5369_vm1, %v5175_v48, %v5327_v15  ;;  %2697 = vmatpush.bf16.msra.mxu1 %v3622_v13  ;;  %2727 = vmatpush.bf16.msra.mxu2 %v3554_v43  ;;  %v3989_v46 = vpop.eup %3988  ;;  %v2431_v6 = vmul.f32 %v5220_v12, %v2091_v63  ;;  %v2290_v15 = vand.u32 2147483648, %v5112_v62 }
 0x306   : > { %2756 = vmatpush.bf16.msra.mxu3 %v3618_v49  ;;  %v5408_v5 = vpop.eup %3990  ;;  %v5762_v12 = vand.u32 2147483647, %v5077_v47  ;;  %v2295_v47 = vmul.f32 %v5363_v26, %v5261_v23  ;;  %v2326_v63 = vsub.f32 1.0, %v2325_v9  ;;  %v5448_v58 = vadd.f32 1.0, %v3989_v46 }
 0x307   : > { %v2462_v48 = vpack.c.bf16 %v2432_v21, %v2430_v57  ;;  %v3993_v27 = vpop.eup %3992  ;;  %v2291_v57 = vor.u32 1.1754944e-38, %v2290_v15  ;;  %vm2315_vm14 = vweird.f32 %v5398_v14  ;;  %vm2345_vm1 = vweird.f32 %v5408_v5 }
 0x308   : > { %v5255_v31 = vpop.f32.mrf.mxu2  ;;  %vm2259_vm4 = vcmp.eq.f32.partialorder %v5762_v12, 8.507059e+37  ;;  %v3995_v35 = vpop.eup %3994  ;;  %v5440_v13 = vadd.f32 1.0, %v3993_v27  ;;  %vm5520_vm3 = vmor %vm2314_vm15, %vm2315_vm14  ;;  %vm2359_vm9 = vweird.f32 %v5448_v58 }
 0x309   : > { %v5263_v20 = vpop.f32.mrf.mxu3  ;;  %v5265_v8 = vpop.f32.mrf.mxu0  ;;  %2728 = vmatmul.bf16.vlgmr.msra.gmra.mxu2 %v2462_v48  ;;  %v2262_v17 = vsel %vm2259_vm4, %v5247_v40, %v2257_v28  ;;  %v2287_v40 = vsel %vm5426_vm7, %v5208_v52, %v2283_v1  ;;  %2670 = vmatmul.bf16.vlgmr.msra.gmra.mxu0 %v2462_v48  ;;  %v5452_v42 = vadd.f32 1.0, %v3995_v35  ;;  %v2320_v35 = vand.u32 2147483648, %v5281_v41 }
 0x30a   : > { %v5276_v38 = vpop.f32.mrf.mxu1  ;;  %v2093_v45 = vadd.f32 %v5263_v20, %v5255_v31  ;;  %v3614_v20 = vor.u32 %v3816_v19, %v3613_v39  ;;  %v3997_v10 = vpop.eup %3996  ;;  %v2419_v37 = vmul.f32 %v2262_v17, %v5005_v60  ;;  %v2292_v49 = vsel %vm2289_vm8, %v2291_v57, %v2287_v40 }
 0x30b   : > { %v2296_v39 = vsub.f32 1.0, %v2295_v47  ;;  %v5454_v3 = vadd.f32 1.0, %v3997_v10  ;;  %v2303_v60 = vand.u32 2147483647, %v5261_v23  ;;  %3998 = vrcp.f32 %v5440_v13 }
 0x30c   : > { %v2433_v31 = vmul.f32 %v5286_v2, %v2093_v45  ;;  %v5763_v2 = vand.u32 2147483647, %v5086_v11  ;;  %2698 = vmatpush.bf16.msra.mxu1 %v3614_v20  ;;  %v2310_v11 = vmul.f32 %v5398_v14, %v5281_v41  ;;  %v2038_v45 = vadd.f32 %v5276_v38, %v5265_v8 }
 0x30d   : > { %4000 = vrcp.f32 %v5448_v58  ;;  %v2297_v8 = vmul.f32 %v5363_v26, %v2296_v39  ;;  %v2305_v38 = vand.u32 2147483648, %v5261_v23  ;;  %vm5477_vm11 = vcmp.eq.f32.partialorder %v2303_v60, 8.507059e+37 }
 0x30e   : > { %vm2274_vm5 = vcmp.eq.f32.partialorder %v5763_v2, 8.507059e+37  ;;  %v2463_v55 = vpack.c.bf16 %v2433_v31, %v2431_v6  ;;  %v2311_v19 = vsub.f32 1.0, %v2310_v11  ;;  %4002 = vrcp.f32 %v5452_v42 }
 0x30f   : > { %v2277_v4 = vsel %vm2274_vm5, %v5268_v59, %v2272_v7  ;;  %v2340_v59 = vmul.f32 %v5408_v5, %v5300_v54  ;;  %4004 = vrcp.f32 %v5454_v3  ;;  %v2434_v31 = vmul.f32 %v2418_v50, %v2038_v45 }
 0x310   : > { %v5340_v32 = vpop.f32.mrf.mxu2  ;;  %2757 = vmatmul.bf16.vlgmr.msra.gmra.mxu3 %v2463_v55  ;;  %2699 = vmatmul.bf16.vlgmr.msra.gmra.mxu1 %v2463_v55  ;;  %v2420_v52 = vmul.f32 %v2277_v4, %v5010_v22  ;;  %v2327_v22 = vmul.f32 %v5378_v0, %v2326_v63  ;;  %v2312_v1 = vmul.f32 %v5398_v14, %v2311_v19  ;;  %v2333_v2 = vand.u32 2147483647, %v5270_v51 }
 0x311   : > { %v5346_v16 = vpop.f32.mrf.mxu3  ;;  %v5348_v33 = vpop.f32.mrf.mxu0  ;;  %v2341_v28 = vsub.f32 1.0, %v2340_v59  ;;  %v2298_v27 = vadd.f32 %v5363_v26, %v2297_v8  ;;  %v2350_v40 = vand.u32 2147483648, %v5300_v54  ;;  %v2336_v10 = vor.u32 1.1754944e-38, %v2335_v53 }
 0x312   : > { %v5361_v18 = vpop.f32.mrf.mxu1  ;;  %v5485_v9 = vpop.eup %3998  ;;  %v2313_v12 = vadd.f32 %v5398_v14, %v2312_v1  ;;  %vm2344_vm4 = vweird.f32 %v5300_v54  ;;  %v2348_v57 = vand.u32 2147483647, %v5300_v54  ;;  %vm2334_vm5 = vcmp.eq.f32.partialorder %v2333_v2, 8.507059e+37 }
 0x313   : > { %v2040_v43 = vadd.f32 %v5361_v18, %v5348_v33  ;;  %v2421_v33 = vmul.f32 %v2292_v49, %v5023_v30  ;;  %v2096_v18 = vadd.f32 %v5346_v16, %v5340_v32  ;;  %v2342_v30 = vmul.f32 %v5408_v5, %v2341_v28  ;;  %v5491_v17 = vpop.eup %4000  ;;  %vm5536_vm6 = vmor %vm2344_vm4, %vm2345_vm1 }
 0x314   : > { %v2328_v16 = vadd.f32 %v5378_v0, %v2327_v22  ;;  %v5500_v11 = vpop.eup %4002  ;;  %v2302_v63 = vsel %vm5506_vm2, %v5363_v26, %v2298_v27  ;;  %v2355_v54 = vmul.f32 %v5491_v17, %v5448_v58  ;;  %v2306_v49 = vor.u32 1.1754944e-38, %v2305_v38  ;;  %v5777_v27 = vld [vmem:[#allocation18_spill] sm:$0xff] }
 0x315   : > { %v2436_v48 = vmul.f32 %v2420_v52, %v2040_v43  ;;  %v2435_v34 = vmul.f32 %v2419_v37, %v2096_v18  ;;  %v2343_v29 = vadd.f32 %v5408_v5, %v2342_v30  ;;  %v5516_v59 = vpop.eup %4004  ;;  %v2317_v37 = vsel %vm5520_vm3, %v5398_v14, %v2313_v12  ;;  %v2452_v52 = vld [vmem:[#allocation4 + $0x70] sm:$0xff] }
 0x316   : > { %v2332_v50 = vsel %vm5494_vm0, %v5378_v0, %v2328_v16  ;;  %v2400_v14 = vmul.f32 %v5500_v11, %v5452_v42  ;;  %v2321_v19 = vor.u32 1.1754944e-38, %v2320_v35  ;;  %v2351_v28 = vor.u32 1.1754944e-38, %v2350_v40  ;;  %v5776_v16 = vld [vmem:[#allocation19_spill] sm:$0xff] }
 0x317   : > { %v2464_v15 = vpack.c.bf16 %v2436_v48, %v2434_v31  ;;  %v2337_v39 = vsel %vm2334_vm5, %v2336_v10, %v2332_v50  ;;  %v2347_v26 = vsel %vm5536_vm6, %v5408_v5, %v2343_v29  ;;  %v2370_v45 = vmul.f32 %v5516_v59, %v5454_v3 }
 0x318   : > { %v2068_v44 = vpop.f32.mrf.mxu2  ;;  %vm2349_vm8 = vcmp.eq.f32.partialorder %v2348_v57, 8.507059e+37  ;;  %v2424_v5 = vmul.f32 %v2337_v39, %v5105_v56  ;;  %v2356_v48 = vsub.f32 1.0, %v2355_v54  ;;  %v2401_v8 = vsub.f32 1.0, %v2400_v14 }
 0x319   : > { %v2097_v62 = vpop.f32.mrf.mxu3  ;;  %v5442_v24 = vpop.f32.mrf.mxu0  ;;  %2733 = vmatmul.bf16.gmra.mxu2 %v2464_v15  ;;  %2675 = vmatmul.bf16.gmra.mxu0 %v2464_v15  ;;  %v2352_v18 = vsel %vm2349_vm8, %v2351_v28, %v2347_v26  ;;  %v2371_v31 = vsub.f32 1.0, %v2370_v45  ;;  %vm2390_vm10 = vweird.f32 %v5485_v9  ;;  %vm2389_vm12 = vweird.f32 %v5440_v13 }
 0x31a   : > { %v5444_v21 = vpop.f32.mrf.mxu1  ;;  %v2098_v7 = vadd.f32 %v2097_v62, %v2068_v44  ;;  %v2318_v62 = vand.u32 2147483647, %v5281_v41  ;;  %v2385_v41 = vmul.f32 %v5485_v9, %v5440_v13  ;;  %v2425_v53 = vmul.f32 %v2352_v18, %v5776_v16  ;;  %vm5584_vm15 = vmor %vm2389_vm12, %vm2390_vm10 }
 0x31b   : > { %v2043_v38 = vadd.f32 %v5444_v21, %v5442_v24  ;;  %v2402_v21 = vmul.f32 %v5500_v11, %v2401_v8  ;;  %v2372_v4 = vmul.f32 %v5516_v59, %v2371_v31  ;;  %v2395_v51 = vand.u32 2147483648, %v5440_v13  ;;  %v5787_v8 = vld [vmem:[#allocation20_spill] sm:$0xff] }
 0x31c   : > { %v2437_v20 = vmul.f32 %v2421_v33, %v2098_v7  ;;  %vm2319_vm7 = vcmp.eq.f32.partialorder %v2318_v62, 8.507059e+37  ;;  %v2307_v7 = vsel %vm5477_vm11, %v2306_v49, %v2302_v63  ;;  %v2386_v60 = vsub.f32 1.0, %v2385_v41 }
 0x31d   : > { %v2322_v33 = vsel %vm2319_vm7, %v2321_v19, %v2317_v37  ;;  %v2422_v30 = vmul.f32 %v2307_v7, %v5092_v25  ;;  %v2357_v25 = vmul.f32 %v5491_v17, %v2356_v48  ;;  %vm2360_vm11 = vweird.f32 %v5491_v17 }
 0x31e   : > { %v2465_v47 = vpack.c.bf16 %v2437_v20, %v2435_v34  ;;  %v2387_v34 = vmul.f32 %v5485_v9, %v2386_v60  ;;  %v2423_v12 = vmul.f32 %v2322_v33, %v5777_v27  ;;  %v2403_v35 = vadd.f32 %v5500_v11, %v2402_v21  ;;  %vm5591_vm0 = vmor %vm2359_vm9, %vm2360_vm11 }
 0x31f   : > { %v2358_v62 = vadd.f32 %v5491_v17, %v2357_v25  ;;  %vm2405_vm13 = vweird.f32 %v5500_v11  ;;  %v2363_v40 = vand.u32 2147483647, %v5448_v58  ;;  %v2365_v23 = vand.u32 2147483648, %v5448_v58 }
 0x320   : > { %v5466_v46 = vpop.f32.mrf.mxu2  ;;  %2762 = vmatmul.bf16.gmra.mxu3 %v2465_v47  ;;  %2704 = vmatmul.bf16.gmra.mxu1 %v2465_v47  ;;  %v2388_v29 = vadd.f32 %v5485_v9, %v2387_v34  ;;  %v2393_v47 = vand.u32 2147483647, %v5440_v13  ;;  %vm2375_vm14 = vweird.f32 %v5516_v59  ;;  %v2410_v57 = vand.u32 2147483648, %v5452_v42 }
 0x321   : > { %v5472_v6 = vpop.f32.mrf.mxu3  ;;  %v2015_v55 = vpop.f32.mrf.mxu0  ;;  %v2373_v41 = vadd.f32 %v5516_v59, %v2372_v4  ;;  %vm2404_vm1 = vweird.f32 %v5452_v42  ;;  %v2408_v63 = vand.u32 2147483647, %v5452_v42  ;;  %vm2374_vm2 = vweird.f32 %v5454_v3 }
 0x322   : > { %v2044_v44 = vpop.f32.mrf.mxu1  ;;  %v2101_v56 = vadd.f32 %v5472_v6, %v5466_v46  ;;  %v2380_v37 = vand.u32 2147483648, %v5454_v3  ;;  %v2396_v58 = vor.u32 1.1754944e-38, %v2395_v51  ;;  %vm5605_vm3 = vmor %vm2404_vm1, %vm2405_vm13  ;;  %v2378_v42 = vand.u32 2147483647, %v5454_v3 }
 0x323   : > { %v2045_v22 = vadd.f32 %v2044_v44, %v2015_v55  ;;  %v2438_v55 = vmul.f32 %v2422_v30, %v2043_v38  ;;  %vm2394_vm4 = vcmp.eq.f32.partialorder %v2393_v47, 8.507059e+37  ;;  %v2407_v49 = vsel %vm5605_vm3, %v5500_v11, %v2403_v35  ;;  %vm5618_vm5 = vmor %vm2374_vm2, %vm2375_vm14  ;;  %v2449_v47 = vld [vmem:[#allocation4 + $0x40] sm:$0xff] }
 0x324   : > { %v2439_v46 = vmul.f32 %v2423_v12, %v2101_v56  ;;  %v2366_v39 = vor.u32 1.1754944e-38, %v2365_v23  ;;  %v2411_v19 = vor.u32 1.1754944e-38, %v2410_v57  ;;  %vm2364_vm6 = vcmp.eq.f32.partialorder %v2363_v40, 8.507059e+37  ;;  %v2450_v40 = vld [vmem:[#allocation4 + $0x48] sm:$0xff] }
 0x325   : > { %v2440_v15 = vmul.f32 %v2424_v5, %v2045_v22  ;;  %v2377_v3 = vsel %vm5618_vm5, %v5516_v59, %v2373_v41  ;;  %vm2409_vm7 = vcmp.eq.f32.partialorder %v2408_v63, 8.507059e+37  ;;  %v2381_v7 = vor.u32 1.1754944e-38, %v2380_v37  ;;  %v5786_v22 = vld [vmem:[#allocation21_spill] sm:$0xff]  ;;  %v2451_v41 = vld [vmem:[#allocation4 + $0x30] sm:$0xff] }
 0x326   : > { %v2412_v60 = vsel %vm2409_vm7, %v2411_v19, %v2407_v49  ;;  %vm2379_vm8 = vcmp.eq.f32.partialorder %v2378_v42, 8.507059e+37  ;;  %v2453_v49 = vld [vmem:[#allocation4 + $0x38] sm:$0xff] }
 0x327   : > { %v2466_v6 = vpack.c.bf16 %v2440_v15, %v2438_v55  ;;  %v2382_v48 = vsel %vm2379_vm8, %v2381_v7, %v2377_v3  ;;  %v2455_v7 = vld [vmem:[#allocation4 + $0x78] sm:$0xff] }
 0x328   : > { %v2073_v0 = vpop.f32.mrf.mxu2  ;;  %v2427_v31 = vmul.f32 %v2382_v48, %v5304_v61 }
 0x329   : > { %v2102_v43 = vpop.f32.mrf.mxu3  ;;  %v5555_v20 = vpop.f32.mrf.mxu0  ;;  %2738 = vmatmul.bf16.gmra.mxu2 %v2466_v6  ;;  %2680 = vmatmul.bf16.gmra.mxu0 %v2466_v6 }
 0x32a   : > { %v2103_v1 = vadd.f32 %v2102_v43, %v2073_v0  ;;  %v5557_v32 = vpop.f32.mrf.mxu1  ;;  %v2392_v0 = vsel %vm5584_vm15, %v5485_v9, %v2388_v29  ;;  %v2362_v9 = vsel %vm5591_vm0, %v5491_v17, %v2358_v62 }
 0x32b   : > { %v2397_v14 = vsel %vm2394_vm4, %v2396_v58, %v2392_v0  ;;  %v2367_v45 = vsel %vm2364_vm6, %v2366_v39, %v2362_v9  ;;  %v2048_v5 = vadd.f32 %v5557_v32, %v5555_v20  ;;  %v2446_v32 = vld [vmem:[#allocation4 + $0x28] sm:$0xff] }
 0x32c   : > { %v2441_v44 = vmul.f32 %v2425_v53, %v2103_v1  ;;  %v2428_v33 = vmul.f32 %v2397_v14, %v5786_v22  ;;  %v2426_v38 = vmul.f32 %v2367_v45, %v5787_v8  ;;  %v2429_v1 = vmul.f32 %v2412_v60, %v5292_v36 }
 0x32e   : > { %v2467_v50 = vpack.c.bf16 %v2441_v44, %v2439_v46  ;;  %v2442_v16 = vmul.f32 %v2426_v38, %v2048_v5  ;;  %v2448_v44 = vld [vmem:[#allocation4 + $0x10] sm:$0xff] }
 0x330   : > { %v5564_v2 = vpop.f32.mrf.mxu2  ;;  %2767 = vmatmul.bf16.gmra.mxu3 %v2467_v50  ;;  %2709 = vmatmul.bf16.gmra.mxu1 %v2467_v50 }
 0x331   : > { %v5566_v24 = vpop.f32.mrf.mxu3  ;;  %v2020_v54 = vpop.f32.mrf.mxu0 }
 0x332   : > { %v2049_v43 = vpop.f32.mrf.mxu1  ;;  %v2106_v59 = vadd.f32 %v5566_v24, %v5564_v2  ;;  %v2447_v2 = vld [vmem:[#allocation4 + $0x68] sm:$0xff] }
 0x333   : > { %v2050_v11 = vadd.f32 %v2049_v43, %v2020_v54 }
 0x334   : > { %v2443_v34 = vmul.f32 %v2427_v31, %v2106_v59  ;;  %v2457_v59 = vld [vmem:[#allocation4 + $0x58] sm:$0xff] }
 0x335   : > { %v2444_v30 = vmul.f32 %v2428_v33, %v2050_v11 }
 0x337   : > { %v2468_v56 = vpack.c.bf16 %v2444_v30, %v2442_v16 }
 0x338   : > { %v2078_v17 = vpop.f32.mrf.mxu2 }
 0x339   : > { %v2107_v28 = vpop.f32.mrf.mxu3  ;;  %2743 = vmatmul.bf16.gmra.mxu2 %v2468_v56  ;;  %2685 = vmatmul.bf16.gmra.mxu0 %v2468_v56 }
 0x33a   : > { %v2108_v18 = vadd.f32 %v2107_v28, %v2078_v17  ;;  %v2454_v17 = vld [vmem:[#allocation4 + $0x20] sm:$0xff] }
 0x33c   : > { %v2445_v53 = vmul.f32 %v2429_v1, %v2108_v18  ;;  %v2456_v18 = vld [vmem:[#allocation4 + $0x18] sm:$0xff] }
 0x33e   : > { %v2469_v15 = vpack.c.bf16 %v2445_v53, %v2443_v34  ;;  %v2458_v34 = vld [vmem:[#allocation4] sm:$0xff] }
 0x340   : > { %2772 = vmatmul.bf16.gmra.mxu3 %v2469_v15  ;;  %2714 = vmatmul.bf16.gmra.mxu1 %v2469_v15 }
 0x386   : > { %v2671_v20 = vpop.f32.mrf.mxu0 }
 0x38c   : > { %v2729_v25 = vpop.f32.mrf.mxu2 }
 0x38d   : > { %v2700_v27 = vpop.f32.mrf.mxu1 }
 0x38e   : > { %v2701_v12 = vadd.f32 %v2700_v27, %v2671_v20  ;;  %v2673_v61 = vpop.f32.mrf.mxu0  ;;  %v2459_v27 = vld [vmem:[#allocation4 + $0x8] sm:$0xff] }
 0x390   : > { %v2778_v36 = vadd.f32 %v2701_v12, %v2446_v32 }
 0x392   : > { %2794 = vst [vmem:[#allocation4 + $0x28] sm:$0xff] %v2778_v36 }
 0x393   : > { %v2758_v24 = vpop.f32.mrf.mxu3 }
 0x394   : > { %v2759_v21 = vadd.f32 %v2758_v24, %v2729_v25  ;;  %v2731_v6 = vpop.f32.mrf.mxu2  ;;  %v2460_v24 = vld [vmem:[#allocation4 + $0x60] sm:$0xff] }
 0x395   : > { %v2702_v4 = vpop.f32.mrf.mxu1 }
 0x396   : > { %v2779_v55 = vadd.f32 %v2759_v21, %v2447_v2  ;;  %v2703_v29 = vadd.f32 %v2702_v4, %v2673_v61  ;;  %v2676_v35 = vpop.f32.mrf.mxu0  ;;  %v2461_v4 = vld [vmem:[#allocation4 + $0x50] sm:$0xff] }
 0x398   : > { %2795 = vst [vmem:[#allocation4 + $0x68] sm:$0xff] %v2779_v55  ;;  %v2780_v46 = vadd.f32 %v2703_v29, %v2448_v44 }
 0x39a   : > { %2796 = vst [vmem:[#allocation4 + $0x10] sm:$0xff] %v2780_v46 }
 0x39b   : > { %v2760_v51 = vpop.f32.mrf.mxu3 }
 0x39c   : > { %v2761_v62 = vadd.f32 %v2760_v51, %v2731_v6  ;;  %v2734_v13 = vpop.f32.mrf.mxu2 }
 0x39d   : > { %v2705_v23 = vpop.f32.mrf.mxu1 }
 0x39e   : > { %v2781_v50 = vadd.f32 %v2761_v62, %v2449_v47  ;;  %v2706_v10 = vadd.f32 %v2705_v23, %v2676_v35  ;;  %v2678_v37 = vpop.f32.mrf.mxu0 }
 0x3a0   : > { %2797 = vst [vmem:[#allocation4 + $0x40] sm:$0xff] %v2781_v50  ;;  %v2782_v57 = vadd.f32 %v2706_v10, %v2450_v40 }
 0x3a2   : > { %2798 = vst [vmem:[#allocation4 + $0x48] sm:$0xff] %v2782_v57 }
 0x3a3   : > { %v2763_v0 = vpop.f32.mrf.mxu3 }
 0x3a4   : > { %v2764_v63 = vadd.f32 %v2763_v0, %v2734_v13  ;;  %v2736_v42 = vpop.f32.mrf.mxu2 }
 0x3a5   : > { %v2707_v54 = vpop.f32.mrf.mxu1 }
 0x3a6   : > { %v2783_v58 = vadd.f32 %v2764_v63, %v2451_v41  ;;  %v2708_v43 = vadd.f32 %v2707_v54, %v2678_v37  ;;  %v2681_v14 = vpop.f32.mrf.mxu0 }
 0x3a8   : > { %2799 = vst [vmem:[#allocation4 + $0x30] sm:$0xff] %v2783_v58  ;;  %v2784_v9 = vadd.f32 %v2708_v43, %v2452_v52 }
 0x3aa   : > { %2800 = vst [vmem:[#allocation4 + $0x70] sm:$0xff] %v2784_v9 }
 0x3ab   : > { %v2765_v39 = vpop.f32.mrf.mxu3 }
 0x3ac   : > { %v2766_v26 = vadd.f32 %v2765_v39, %v2736_v42  ;;  %v2739_v45 = vpop.f32.mrf.mxu2 }
 0x3ad   : > { %v2710_v28 = vpop.f32.mrf.mxu1 }
 0x3ae   : > { %v2785_v19 = vadd.f32 %v2766_v26, %v2453_v49  ;;  %v2711_v3 = vadd.f32 %v2710_v28, %v2681_v14  ;;  %v2683_v33 = vpop.f32.mrf.mxu0 }
 0x3b0   : > { %2801 = vst [vmem:[#allocation4 + $0x38] sm:$0xff] %v2785_v19  ;;  %v2786_v11 = vadd.f32 %v2711_v3, %v2454_v17 }
 0x3b2   : > { %2802 = vst [vmem:[#allocation4 + $0x20] sm:$0xff] %v2786_v11 }
 0x3b3   : > { %v2768_v60 = vpop.f32.mrf.mxu3 }
 0x3b4   : > { %v2769_v22 = vadd.f32 %v2768_v60, %v2739_v45  ;;  %v2741_v1 = vpop.f32.mrf.mxu2 }
 0x3b5   : > { %v2712_v48 = vpop.f32.mrf.mxu1 }
 0x3b6   : > { %v2787_v5 = vadd.f32 %v2769_v22, %v2455_v7  ;;  %v2713_v8 = vadd.f32 %v2712_v48, %v2683_v33  ;;  %v2686_v16 = vpop.f32.mrf.mxu0 }
 0x3b8   : > { %2803 = vst [vmem:[#allocation4 + $0x78] sm:$0xff] %v2787_v5  ;;  %v2788_v38 = vadd.f32 %v2713_v8, %v2456_v18 }
 0x3ba   : > { %2804 = vst [vmem:[#allocation4 + $0x18] sm:$0xff] %v2788_v38 }
 0x3bb   : > { %v2770_v30 = vpop.f32.mrf.mxu3 }
 0x3bc   : > { %v2771_v31 = vadd.f32 %v2770_v30, %v2741_v1  ;;  %v2744_v32 = vpop.f32.mrf.mxu2 }
 0x3bd   : > { %v2715_v56 = vpop.f32.mrf.mxu1 }
 0x3be   : > { %v2789_v53 = vadd.f32 %v2771_v31, %v2457_v59  ;;  %v2716_v15 = vadd.f32 %v2715_v56, %v2686_v16  ;;  %v2688_v25 = vpop.f32.mrf.mxu0 }
 0x3c0   : > { %2805 = vst [vmem:[#allocation4 + $0x58] sm:$0xff] %v2789_v53  ;;  %v2790_v20 = vadd.f32 %v2716_v15, %v2458_v34 }
 0x3c2   : > { %2806 = vst [vmem:[#allocation4] sm:$0xff] %v2790_v20 }
 0x3c3   : > { %v2773_v12 = vpop.f32.mrf.mxu3 }
 0x3c4   : > { %v2774_v36 = vadd.f32 %v2773_v12, %v2744_v32  ;;  %v2746_v44 = vpop.f32.mrf.mxu2 }
 0x3c5   : > { %v2717_v21 = vpop.f32.mrf.mxu1 }
 0x3c6   : > { %v2791_v2 = vadd.f32 %v2774_v36, %v2459_v27  ;;  %v2718_v61 = vadd.f32 %v2717_v21, %v2688_v25 }
 0x3c8   : > { %2807 = vst [vmem:[#allocation4 + $0x8] sm:$0xff] %v2791_v2  ;;  %v2792_v55 = vadd.f32 %v2718_v61, %v2460_v24 }
 0x3ca   : > { %2808 = vst [vmem:[#allocation4 + $0x60] sm:$0xff] %v2792_v55 }
 0x3cb   : > { %v2775_v29 = vpop.f32.mrf.mxu3 }
 0x3cc   : > { %v2776_v46 = vadd.f32 %v2775_v29, %v2746_v44  ;;  %2813 = sbr.rel (%p3675_p7) target bundleno = 996 (0x3e4), region = 173 }
 0x3ce   : > { %v2793_v6 = vadd.f32 %v2776_v46, %v2461_v4 }
 0x3d0   : > { %2809 = vst [vmem:[#allocation4 + $0x50] sm:$0xff] %v2793_v6 }
 0x3d1   : > { %v2814_v47 = vld [vmem:[#allocation2 + $0x30] sm:$0xff]  ;;  %v2830_v51 = vld [vmem:[#allocation4 + $0x28] sm:$0xff]  ;;  %v2815_v62 = vld [vmem:[#allocation2] sm:$0xff] }
 0x3d2   : > { %v2846_v35 = vadd.f32 %v2830_v51, %v2814_v47  ;;  %v2831_v50 = vld [vmem:[#allocation4 + $0x68] sm:$0xff]  ;;  %v2816_v40 = vld [vmem:[#allocation2 + $0x58] sm:$0xff]  ;;  %v2832_v23 = vld [vmem:[#allocation4 + $0x10] sm:$0xff] }
 0x3d3   : > { %v2847_v10 = vadd.f32 %v2831_v50, %v2815_v62  ;;  %v2848_v57 = vadd.f32 %v2832_v23, %v2816_v40  ;;  %v2817_v13 = vld [vmem:[#allocation2 + $0x18] sm:$0xff]  ;;  %v2833_v41 = vld [vmem:[#allocation4 + $0x40] sm:$0xff]  ;;  %v2818_v0 = vld [vmem:[#allocation2 + $0x50] sm:$0xff] }
 0x3d4   : > { %2862 = vst [vmem:[%s4446_s19] sm:$0xff] %v2846_v35  ;;  %v2849_v63 = vadd.f32 %v2833_v41, %v2817_v13  ;;  %v2834_v37 = vld [vmem:[#allocation4 + $0x48] sm:$0xff]  ;;  %v2835_v52 = vld [vmem:[#allocation4 + $0x30] sm:$0xff]  ;;  %v2837_v26 = vld [vmem:[#allocation4 + $0x38] sm:$0xff] }
 0x3d5   : > { %v2819_v58 = vld [vmem:[#allocation2 + $0x68] sm:$0xff]  ;;  %2863 = vst [vmem:[%s4446_s19 + $0x8] sm:$0xff] %v2847_v10  ;;  %v2850_v54 = vadd.f32 %v2834_v37, %v2818_v0  ;;  %v2836_v42 = vld [vmem:[#allocation4 + $0x70] sm:$0xff]  ;;  %v2822_v14 = vld [vmem:[#allocation2 + $0x40] sm:$0xff] }
 0x3d6   : > { %v2851_v43 = vadd.f32 %v2835_v52, %v2819_v58  ;;  %v2820_v9 = vld [vmem:[#allocation2 + $0x8] sm:$0xff]  ;;  %2864 = vst [vmem:[%s4446_s19 + $0x10] sm:$0xff] %v2848_v57  ;;  %v2838_v19 = vld [vmem:[#allocation4 + $0x20] sm:$0xff]  ;;  %v2839_v3 = vld [vmem:[#allocation4 + $0x78] sm:$0xff] }
 0x3d7   : > { %v2821_v49 = vld [vmem:[#allocation2 + $0x48] sm:$0xff]  ;;  %v2852_v39 = vadd.f32 %v2836_v42, %v2820_v9  ;;  %2865 = vst [vmem:[%s4446_s19 + $0x18] sm:$0xff] %v2849_v63  ;;  %v2823_v28 = vld [vmem:[#allocation2 + $0x20] sm:$0xff]  ;;  %v2824_v11 = vld [vmem:[#allocation2 + $0x10] sm:$0xff]  ;;  %v2854_v45 = vadd.f32 %v2838_v19, %v2822_v14 }
 0x3d8   : > { %v2853_v17 = vadd.f32 %v2837_v26, %v2821_v49  ;;  %2866 = vst [vmem:[%s4446_s19 + $0x20] sm:$0xff] %v2850_v54  ;;  %v2840_v7 = vld [vmem:[#allocation4 + $0x18] sm:$0xff]  ;;  %v2855_v33 = vadd.f32 %v2839_v3, %v2823_v28  ;;  %v2826_v5 = vld [vmem:[#allocation2 + $0x60] sm:$0xff]  ;;  %v2827_v8 = vld [vmem:[#allocation2 + $0x70] sm:$0xff] }
 0x3d9   : > { %v2825_v60 = vld [vmem:[#allocation2 + $0x38] sm:$0xff]  ;;  %2867 = vst [vmem:[%s4446_s19 + $0x28] sm:$0xff] %v2851_v43  ;;  %v2842_v18 = vld [vmem:[#allocation4] sm:$0xff]  ;;  %v2856_v48 = vadd.f32 %v2840_v7, %v2824_v11  ;;  %v2843_v38 = vld [vmem:[#allocation4 + $0x8] sm:$0xff] }
 0x3da   : > { %v2841_v22 = vld [vmem:[#allocation4 + $0x58] sm:$0xff]  ;;  %2868 = vst [vmem:[%s4446_s19 + $0x30] sm:$0xff] %v2852_v39  ;;  %v2844_v30 = vld [vmem:[#allocation4 + $0x60] sm:$0xff]  ;;  %v2858_v31 = vadd.f32 %v2842_v18, %v2826_v5  ;;  %v2829_v16 = vld [vmem:[#allocation2 + $0x28] sm:$0xff]  ;;  %v2859_v34 = vadd.f32 %v2843_v38, %v2827_v8 }
 0x3db   : > { %2869 = vst [vmem:[%s4446_s19 + $0x38] sm:$0xff] %v2853_v17  ;;  %v2857_v1 = vadd.f32 %v2841_v22, %v2825_v60  ;;  %v2828_v59 = vld [vmem:[#allocation2 + $0x78] sm:$0xff]  ;;  %v2845_v53 = vld [vmem:[#allocation4 + $0x50] sm:$0xff] }
 0x3dc   : > { %2870 = vst [vmem:[%s4446_s19 + $0x40] sm:$0xff] %v2854_v45  ;;  %v2860_v56 = vadd.f32 %v2844_v30, %v2828_v59  ;;  %v2861_v15 = vadd.f32 %v2845_v53, %v2829_v16 }
 0x3dd   : > { %2871 = vst [vmem:[%s4446_s19 + $0x48] sm:$0xff] %v2855_v33 }
 0x3de   : > { %2872 = vst [vmem:[%s4446_s19 + $0x50] sm:$0xff] %v2856_v48 }
 0x3df   : > { %2873 = vst [vmem:[%s4446_s19 + $0x58] sm:$0xff] %v2857_v1 }
 0x3e0   : > { %2874 = vst [vmem:[%s4446_s19 + $0x60] sm:$0xff] %v2858_v31 }
 0x3e1   : > { %2875 = vst [vmem:[%s4446_s19 + $0x68] sm:$0xff] %v2859_v34 }
 0x3e2   : > { %2876 = vst [vmem:[%s4446_s19 + $0x70] sm:$0xff] %v2860_v56 }
 0x3e3   : > { %2877 = vst [vmem:[%s4446_s19 + $0x78] sm:$0xff] %v2861_v15 }
 0x3e4 PF: > { %s3832_s28 = sshll.u32 %s4104_s30, 7  ;;  %s2892_s14 = sshll.u32 %s4446_s19, 4  ;;  %s2893_s14 = int_to_ptr.vmem [resolvable:$true] %s2892_s14 }
 0x3e5   : > { %s2891_s25 = scalar_lea.hbm %s5707_s7, %s3832_s28  ;;  %s2879_s11 = scalar_lea.sflag [#allocation9], %s4423_s20 }
 0x3e6   : > { %s2894_s16 = sshll.u32 %s2891_s25, 4  ;;  %s4026_s30 = scalar_lea.hbm %s5707_s7, 256  ;;  %s2895_s16 = int_to_ptr.hbm [resolvable:$true] %s2894_s16 }
 0x3e7   : > { %s4020_s21 = sshra.s32 %s2895_s16, 4  ;;  %s4021_s21 = int_to_ptr.hbm [resolvable:$true] %s4020_s21 }
 0x3e8   : > { %s4022_s1 = scalar_lea.hbm %s4021_s21, 128  ;;  %p4027_p11 = scmp.lt.s32.totalorder %s4021_s21, %s5707_s7 }
 0x3e9   : > { %p4023_p8 = scmp.ne.s32.totalorder %s4021_s21, %s4022_s1  ;;  %p4028_p0 = scmp.lt.s32.totalorder %s4026_s30, %s4022_s1 }
 0x3eb   : > { %p4024_p9 = pnand %p4023_p8, %p4254_p12  ;;  %p4029_p1 = por %p4028_p0, %p4027_p11 }
 0x3ed   : > { %p4025_p10 = pneg %p4024_p9 }
 0x3ef   : > { %p4030_p2 = pnand %p4029_p1, %p4025_p10 }
 0x3f1   : > { %4033 = shalt.err (!%p4030_p2)
}
 0x3f2   : > { %s4120_s19 = smov 256   ;;  %s4121_s20 = smov 16  }
 0x3f3   : > { %3833 = dma.vmem_to_hbm [thread:$0]  (%p4254_p12), %s2893_s14, 2048, %s2895_s16, %s2879_s11, %s4120_s19, %s4120_s19, %s4121_s20  }
 0x3f4 PF: > { %p3839_p3 = scmp.ge.s32.totalorder %s4116_s10, 2  ;;  %s2909_s8 = sand.u32 1, %s4080_s24  }
 0x3f5   : > { %s2910_s9 = scalar_lea.sflag [#allocation9], %s2909_s8 }
 0x3f6   : > { %p3836_p4 = pnand %p3839_p3, %p4258_p13 }
 0x3f8   : > { %p3837_p5 = pneg %p3836_p4 }
 0x3fa   : > { %4075 = dma.done.wait (%p3837_p5), %s2910_s9, 2048  }
 0x3fb   : > { %4077 = vsyncadd (%p3837_p5), %s2910_s9, 4294965248  ;;  %s20_s10 = sadd.s32 1, %s4116_s10   ;;  %s5788_s4 = sld [smem:[#allocation16_spill]] }
 0x3fc   : > { %p17_p6 = scmp.ge.s32.totalorder %s20_s10, 6   ;;  %s5789_s23 = sld [smem:[#allocation11_spill]] }
 0x3fd   : > { %s5790_s28 = sld [smem:[#allocation17_spill]]  ;;  %s5795_s24 = smov %s4092_s27 }
 0x3fe   : > { %s5791_s29 = sld [smem:[#allocation12_spill]]  ;;  %s5796_s25 = smov %s4088_s26 }
 0x3ff   : > { %s5792_s30 = sld [smem:[#allocation13_spill]]  ;;  %19 = sbr.rel (!%p17_p6) target bundleno = 10 (0xa), region = 237 }
 0x400   : > { %s5793_s8 = sld [smem:[#allocation14_spill]] }
 0x401   : > { %s5794_s9 = sld [smem:[#allocation15_spill]]  ;;  %s5797_s26 = smov %s5788_s4 }
 0x402   : > { %s5798_s27 = smov %s5789_s23 }
 0x404   :  { %2916 = vsyncpa [#allocation9], 1 }
 0x405   :  { %2918 = vsyncpa [#allocation9 + $0x1], 1 }

</bundles_post_ra>
